<compile_context>
chip_gen: v7x
topology: tpu7x:2x2x1
jax: 0.10.0
libtpu: 0.0.40
codegen_flags: <defaults>
</compile_context>

<pallas_src>
import math
import jax
import jax.numpy as jnp
from jax.experimental import pallas as pl
from jax.experimental.pallas import tpu as pltpu

EPS = 1e-5
ROW_TILE_CAP = 512  # 512-1024 rows keeps mem-bound kernels near the HBM roofline

_CPARAMS = pltpu.CompilerParams(
    dimension_semantics=("parallel",),
    vmem_limit_bytes=32 * 1024 * 1024,   # fits v7x (64 MiB physical) and v5e/v6e
)


# ---------------------------- small helpers ----------------------------

def _rup(x, m):
    return ((x + m - 1) // m) * m


def _row_tiling(m, cap=ROW_TILE_CAP):
    mp = _rup(m, 8)
    tm = min(cap, mp)
    mp = _rup(mp, tm)
    return tm, mp


def _pad_rows(x2d, mp):
    m = x2d.shape[0]
    if mp == m:
        return x2d
    return jnp.pad(x2d, ((0, mp - m), (0, 0)))


def _split(a, sizes, axis):
    out, off = [], 0
    for c in sizes:
        out.append(jax.lax.slice_in_dim(a, off, off + c, axis=axis))
        off += c
    return out


# ---------------------------- Pallas kernels ----------------------------

def _make_fused_matmul_kernel(n_parts, with_prologue, epilogue):
    """[per-part BN+ReLU] -> sum_p (x_p @ w_p) -> [BN (+ReLU)] epilogue."""

    def kernel(*refs):
        idx = 0
        xs = refs[idx:idx + n_parts]; idx += n_parts
        if with_prologue:
            sc1 = refs[idx:idx + n_parts]; idx += n_parts
            sh1 = refs[idx:idx + n_parts]; idx += n_parts
        ws = refs[idx:idx + n_parts]; idx += n_parts
        if epilogue != "none":
            sc2, sh2 = refs[idx], refs[idx + 1]; idx += 2
        o_ref = refs[idx]

        acc = jnp.zeros(o_ref.shape, jnp.float32)
        for p in range(n_parts):
            x = xs[p][...]
            if with_prologue:
                x = jnp.maximum(x.astype(jnp.float32) * sc1[p][...] + sh1[p][...], 0.0)
                x = x.astype(jnp.bfloat16)
            acc = acc + jnp.dot(x, ws[p][...], preferred_element_type=jnp.float32)
        if epilogue != "none":
            acc = acc * sc2[...] + sh2[...]
            if epilogue == "bn_relu":
                acc = jnp.maximum(acc, 0.0)
        o_ref[...] = acc.astype(o_ref.dtype)

    return kernel


def _make_conv3x3_kernel(wp):
    """3x3/s1/p1 conv as 9 shifted matmuls on a flattened padded image (width = wp)."""

    def kernel(x_ref, w_ref, o_ref):
        n = o_ref.shape[1]
        cout = o_ref.shape[2]
        acc = jnp.zeros((n, cout), jnp.float32)
        for di in range(3):
            for dj in range(3):
                off = di * wp + dj
                xs = x_ref[0, off:off + n, :]
                acc = acc + jnp.dot(xs, w_ref[di * 3 + dj],
                                    preferred_element_type=jnp.float32)
        o_ref[0] = acc.astype(o_ref.dtype)

    return kernel


def _make_reduce_kernel(n_windows, op):
    def kernel(*refs):
        o_ref = refs[n_windows]
        if op == "max":
            r = refs[0][...]
            for p in range(1, n_windows):
                r = jnp.maximum(r, refs[p][...])
        else:  # mean
            r = refs[0][...].astype(jnp.float32)
            for p in range(1, n_windows):
                r = r + refs[p][...].astype(jnp.float32)
            r = r * (1.0 / n_windows)
        o_ref[...] = r.astype(o_ref.dtype)

    return kernel


def _affine_kernel(x_ref, sc_ref, sh_ref, o_ref):
    o_ref[...] = (x_ref[...].astype(jnp.float32) * sc_ref[...] + sh_ref[...]
                  ).astype(o_ref.dtype)


# ---------------------------- Pallas wrappers ----------------------------

def fused_matmul(parts, scales, shifts, w_parts, *, prologue, epilogue,
                 ep_scale=None, ep_shift=None, out_dtype=jnp.bfloat16):
    """parts: list of [M, C_p] (bf16).  Returns [M, Cout]."""
    M = parts[0].shape[0]
    out_ch = w_parts[0].shape[1]
    tm, mp = _row_tiling(M)
    n = len(parts)

    args, in_specs = [], []
    for q in parts:
        args.append(_pad_rows(q, mp))
        in_specs.append(pl.BlockSpec((tm, q.shape[1]), lambda i: (i, 0)))
    if prologue:
        for s in scales:
            args.append(s)
            in_specs.append(pl.BlockSpec((1, s.shape[1]), lambda i: (0, 0)))
        for s in shifts:
            args.append(s)
            in_specs.append(pl.BlockSpec((1, s.shape[1]), lambda i: (0, 0)))
    for w in w_parts:
        args.append(w)
        in_specs.append(pl.BlockSpec(w.shape, lambda i: (0, 0)))
    if epilogue != "none":
        args.append(ep_scale)
        in_specs.append(pl.BlockSpec(ep_scale.shape, lambda i: (0, 0)))
        args.append(ep_shift)
        in_specs.append(pl.BlockSpec(ep_shift.shape, lambda i: (0, 0)))

    out = pl.pallas_call(
        _make_fused_matmul_kernel(n, prologue, epilogue),
        out_shape=jax.ShapeDtypeStruct((mp, out_ch), out_dtype),
        grid=(mp // tm,),
        in_specs=in_specs,
        out_specs=pl.BlockSpec((tm, out_ch), lambda i: (i, 0)),
        compiler_params=_CPARAMS,
    )(*args)
    return out[:M] if mp != M else out


def conv3x3_same(x, w9):
    """x: [B, H, W, Cin] bf16, w9: [9, Cin, Cout] bf16 -> [B, H, W, Cout] bf16."""
    B, H, W, Cin = x.shape
    Cout = w9.shape[2]
    Wp = W + 2
    # pad: 1 top, 2 bottom (extra zero row keeps shifted reads in-bounds), 1 left/right
    xp = jnp.pad(x, ((0, 0), (1, 2), (1, 1), (0, 0)))
    xflat = xp.reshape(B, (H + 3) * Wp, Cin)
    n = H * Wp

    out = pl.pallas_call(
        _make_conv3x3_kernel(Wp),
        out_shape=jax.ShapeDtypeStruct((B, n, Cout), x.dtype),
        grid=(B,),
        in_specs=[pl.BlockSpec((1, (H + 3) * Wp, Cin), lambda b: (b, 0, 0)),
                  pl.BlockSpec((9, Cin, Cout), lambda b: (0, 0, 0))],
        out_specs=pl.BlockSpec((1, n, Cout), lambda b: (b, 0, 0)),
        compiler_params=_CPARAMS,
    )(xflat, w9)
    # drop the 2 garbage columns produced by computing at padded width
    return out.reshape(B, H, Wp, Cout)[:, :, :W, :]


def _window_reduce(wins, op, out_dtype):
    n = len(wins)
    M, C = wins[0].shape
    tm, mp = _row_tiling(M)
    args = [_pad_rows(w, mp) for w in wins]
    in_specs = [pl.BlockSpec((tm, C), lambda i: (i, 0)) for _ in range(n)]
    out = pl.pallas_call(
        _make_reduce_kernel(n, op),
        out_shape=jax.ShapeDtypeStruct((mp, C), out_dtype),
        grid=(mp // tm,),
        in_specs=in_specs,
        out_specs=pl.BlockSpec((tm, C), lambda i: (i, 0)),
        compiler_params=_CPARAMS,
    )(*args)
    return out[:M] if mp != M else out


def maxpool_3x3_s2(x):
    """3x3 max pool, stride 2, pad 1.  Input is post-ReLU (>=0) so zero padding == -inf."""
    B, H, W, C = x.shape
    Ho, Wo = (H - 1) // 2 + 1, (W - 1) // 2 + 1
    xp = jnp.pad(x, ((0, 0), (1, 1), (1, 1), (0, 0)))
    wins = [xp[:, i:i + 2 * Ho:2, j:j + 2 * Wo:2, :].reshape(B * Ho * Wo, C)
            for i in range(3) for j in range(3)]
    out = _window_reduce(wins, "max", x.dtype)
    return out.reshape(B, Ho, Wo, C)


def avgpool_2x2(x):
    B, H, W, C = x.shape
    Ho, Wo = H // 2, W // 2
    wins = [x[:, i::2, j::2, :].reshape(B * Ho * Wo, C)
            for i in range(2) for j in range(2)]
    out = _window_reduce(wins, "mean", x.dtype)
    return out.reshape(B, Ho, Wo, C)


def affine_bn(x, scale, shift):
    """post_norm: y = x*scale + shift (no ReLU), f32 output."""
    B, H, W, C = x.shape
    M = B * H * W
    tm, mp = _row_tiling(M)
    xm = _pad_rows(x.reshape(M, C), mp)
    out = pl.pallas_call(
        _affine_kernel,
        out_shape=jax.ShapeDtypeStruct((mp, C), jnp.float32),
        grid=(mp // tm,),
        in_specs=[pl.BlockSpec((tm, C), lambda i: (i, 0)),
                  pl.BlockSpec((1, C), lambda i: (0, 0)),
                  pl.BlockSpec((1, C), lambda i: (0, 0))],
        out_specs=pl.BlockSpec((tm, C), lambda i: (i, 0)),
        compiler_params=_CPARAMS,
    )(xm, scale, shift)
    out = out[:M] if mp != M else out
    return out.reshape(B, H, W, C)


# ---------------------------- conv0 glue ----------------------------
# TODO(synk): conv0 (7x7/s2, Cin=1, runs once) still uses a small JAX-side im2col; the
# repeated 3x3 convs use the in-kernel shifted-matmul path instead.

def _im2col(x, kh, kw, stride, pad):
    B, H, W, C = x.shape
    Ho = (H + 2 * pad - kh) // stride + 1
    Wo = (W + 2 * pad - kw) // stride + 1
    xp = jnp.pad(x, ((0, 0), (pad, pad), (pad, pad), (0, 0)))
    patches = [xp[:, i:i + Ho * stride:stride, j:j + Wo * stride:stride, :]
               for i in range(kh) for j in range(kw)]
    col = jnp.stack(patches, axis=3).reshape(B * Ho * Wo, kh * kw * C)
    return col, Ho, Wo


# ---------------------------- parameters ----------------------------

def _init_bn(key, c):
    k1, k2 = jax.random.split(key)
    gamma = jax.random.uniform(k1, (c,), jnp.float32, 0.5, 1.5)
    beta = jax.random.uniform(k2, (c,), jnp.float32, -0.5, 0.5)
    # inference-mode BN with PyTorch default running stats (mean=0, var=1)
    scale = gamma / jnp.sqrt(1.0 + EPS)
    shift = beta
    return scale.reshape(1, c), shift.reshape(1, c)


def _init_conv_w(key, cout, cin, kh, kw):
    fan_in = cin * kh * kw
    return jax.random.normal(key, (cout, cin, kh, kw), jnp.float32) / math.sqrt(fan_in)


def init_densenet_params(key, growth_rate, block_depth, compression):
    keys = iter(jax.random.split(key, 256))
    g = growth_rate
    p = {}

    nf = 2 * g
    w0 = _init_conv_w(next(keys), nf, 1, 7, 7)
    p["conv0_w"] = jnp.transpose(w0, (2, 3, 1, 0)).reshape(49, nf).astype(jnp.bfloat16)
    p["norm0"] = _init_bn(next(keys), nf)

    def make_block(nf_in):
        layers = []
        for i in range(block_depth):
            sizes = [nf_in] + [g] * i
            cin = sum(sizes)
            sc1, sh1 = _init_bn(next(keys), cin)
            w1 = _init_conv_w(next(keys), 4 * g, cin, 1, 1).reshape(4 * g, cin).T
            sc2, sh2 = _init_bn(next(keys), 4 * g)
            w2 = _init_conv_w(next(keys), g, 4 * g, 3, 3)
            layers.append({
                "n1_scales": _split(sc1, sizes, axis=1),
                "n1_shifts": _split(sh1, sizes, axis=1),
                "conv1_w_parts": [w.astype(jnp.bfloat16) for w in _split(w1, sizes, axis=0)],
                "n2_scale": sc2, "n2_shift": sh2,
                "conv2_w": jnp.transpose(w2, (2, 3, 1, 0)).reshape(9, 4 * g, g).astype(jnp.bfloat16),
            })
        return layers, [nf_in] + [g] * block_depth

    def make_trans(in_sizes):
        cin = sum(in_sizes)
        cout = math.floor(cin * compression)
        sc, sh = _init_bn(next(keys), cin)
        w = _init_conv_w(next(keys), cout, cin, 1, 1).reshape(cout, cin).T
        return {"n_scales": _split(sc, in_sizes, axis=1),
                "n_shifts": _split(sh, in_sizes, axis=1),
                "conv_w_parts": [x.astype(jnp.bfloat16) for x in _split(w, in_sizes, axis=0)]}, cout

    p["block1"], s1 = make_block(nf)
    p["trans1"], nf = make_trans(s1)
    p["block2"], s2 = make_block(nf)
    p["trans2"], nf = make_trans(s2)
    p["block3"], s3 = make_block(nf)
    nf = sum(s3)
    p["post_norm"] = _init_bn(next(keys), nf)
    p["out_features"] = nf
    return p


# ---------------------------- forward pass ----------------------------

def dense_layer(parts, lp):
    B, Hc, Wc, _ = parts[0].shape
    M = B * Hc * Wc
    flat = [q.reshape(M, q.shape[-1]) for q in parts]
    # norm1+relu1 (per part) -> 1x1 conv (per-part split weight) -> norm2+relu2: ONE kernel
    bott = fused_matmul(flat, lp["n1_scales"], lp["n1_shifts"], lp["conv1_w_parts"],
                        prologue=True, epilogue="bn_relu",
                        ep_scale=lp["n2_scale"], ep_shift=lp["n2_shift"])
    bott = bott.reshape(B, Hc, Wc, bott.shape[1])
    # conv2: 3x3/s1/p1 via in-kernel 9-tap shifted matmul accumulation
    new = conv3x3_same(bott, lp["conv2_w"])
    # TODO(synk): nn.Dropout(p=0.2) is applied as inference-mode identity (no RNG masking).
    return new


def dense_block(parts, layers):
    parts = list(parts)
    for lp in layers:
        parts = parts + [dense_layer(parts, lp)]   # no concatenation inside the block
    return parts


def transition_fwd(parts, tp):
    B, Hc, Wc, _ = parts[0].shape
    M = B * Hc * Wc
    flat = [q.reshape(M, q.shape[-1]) for q in parts]
    # norm+relu (per part) -> 1x1 conv (per-part split weight), no epilogue
    h = fused_matmul(flat, tp["n_scales"], tp["n_shifts"], tp["conv_w_parts"],
                     prologue=True, epilogue="none")
    h = h.reshape(B, Hc, Wc, h.shape[1])
    return [avgpool_2x2(h)]


def densenet_forward(x_nchw, p):
    x = jnp.transpose(x_nchw, (0, 2, 3, 1)).astype(jnp.bfloat16)   # NCHW -> NHWC, bf16
    B = x.shape[0]

    # conv0 (7x7, s2, p3) + norm0 + relu0 fused into one matmul kernel
    col, Ho, Wo = _im2col(x, 7, 7, 2, 3)
    nf0 = p["conv0_w"].shape[1]
    h = fused_matmul([col], None, None, [p["conv0_w"]],
                     prologue=False, epilogue="bn_relu",
                     ep_scale=p["norm0"][0], ep_shift=p["norm0"][1])
    h = h.reshape(B, Ho, Wo, nf0)

    h = maxpool_3x3_s2(h)                                          # pool0

    parts = [h]
    parts = dense_block(parts, p["block1"])
    parts = transition_fwd(parts, p["trans1"])
    parts = dense_block(parts, p["block2"])
    parts = transition_fwd(parts, p["trans2"])
    parts = dense_block(parts, p["block3"])

    feats = jnp.concatenate(parts, axis=-1)                        # single concat at end
    out = affine_bn(feats, *p["post_norm"])                        # post_norm (no relu), f32
    return jnp.transpose(out, (0, 3, 1, 2))                        # NHWC -> NCHW


# ---------------------------- main ----------------------------

if __name__ == "__main__":
    key = jax.random.PRNGKey(0)
    kp, kx = jax.random.split(key)

    # small but structurally-faithful config
    growth_rate, block_depth, compression = 8, 2, 0.5
    params = init_densenet_params(kp, growth_rate, block_depth, compression)

    x = jax.random.normal(kx, (2, 1, 32, 32), jnp.float32)         # [B, 1, H, W]

    fwd = jax.jit(densenet_forward)
    out = jax.block_until_ready(fwd(x, params))

    expected = (2, params["out_features"], 32 // 16, 32 // 16)     # [B, out_features, H/16, W/16]
    assert out.shape == expected, (out.shape, expected)
    assert bool(jnp.all(jnp.isfinite(out)))
    print("KERNEL_OK")
</pallas_src>

<mosaic_0001>
module attributes {stable_mosaic.version = 11 : i64} {
  func.func @kernel(%arg0: i32, %arg1: memref<512x49xbf16, #tpu.memory_space<vmem>>, %arg2: memref<49x16xbf16, #tpu.memory_space<vmem>>, %arg3: memref<1x16xf32, #tpu.memory_space<vmem>>, %arg4: memref<1x16xf32, #tpu.memory_space<vmem>>, %arg5: memref<512x16xbf16, #tpu.memory_space<vmem>>) attributes {dimension_semantics = [#tpu.dimension_semantics<parallel>], iteration_bounds = array<i64: 1>, scalar_prefetch = 0 : i64, scratch_operands = 0 : i64, tpu.core_type = #tpu.core_type<tc>, window_params = [{transform_indices = @transform_0, window_bounds = array<i64: 512, 49>}, {pipeline_mode = #tpu.pipeline_mode<synchronous>, transform_indices = @transform_1, window_bounds = array<i64: 49, 16>}, {pipeline_mode = #tpu.pipeline_mode<synchronous>, transform_indices = @transform_2, window_bounds = array<i64: 1, 16>}, {pipeline_mode = #tpu.pipeline_mode<synchronous>, transform_indices = @transform_3, window_bounds = array<i64: 1, 16>}, {transform_indices = @transform_4, window_bounds = array<i64: 512, 16>}]} {
    %cst = arith.constant 0.000000e+00 : f32
    %0 = vector.broadcast %cst : f32 to vector<512x16xf32>
    %c0 = arith.constant 0 : index
    %c0_0 = arith.constant 0 : index
    %1 = vector.load %arg1[%c0, %c0_0] : memref<512x49xbf16, #tpu.memory_space<vmem>>, vector<512x49xbf16>
    %c0_1 = arith.constant 0 : index
    %c0_2 = arith.constant 0 : index
    %2 = vector.load %arg2[%c0_1, %c0_2] : memref<49x16xbf16, #tpu.memory_space<vmem>>, vector<49x16xbf16>
    %cst_3 = arith.constant dense<0.000000e+00> : vector<512x16xf32>
    %3 = tpu.matmul %1, %2, %cst_3 {dimension_numbers = #tpu.dot_dimension_numbers<[1], [0], [0], [1], [0, 0, 1, 1], [], []>} : vector<512x49xbf16>, vector<49x16xbf16>, vector<512x16xf32> -> vector<512x16xf32>
    %4 = arith.addf %0, %3 : vector<512x16xf32>
    %c0_4 = arith.constant 0 : index
    %c0_5 = arith.constant 0 : index
    %5 = vector.load %arg3[%c0_4, %c0_5] : memref<1x16xf32, #tpu.memory_space<vmem>>, vector<1x16xf32>
    %6 = vector.broadcast %5 : vector<1x16xf32> to vector<512x16xf32>
    %7 = arith.mulf %4, %6 : vector<512x16xf32>
    %c0_6 = arith.constant 0 : index
    %c0_7 = arith.constant 0 : index
    %8 = vector.load %arg4[%c0_6, %c0_7] : memref<1x16xf32, #tpu.memory_space<vmem>>, vector<1x16xf32>
    %9 = vector.broadcast %8 : vector<1x16xf32> to vector<512x16xf32>
    %10 = arith.addf %7, %9 : vector<512x16xf32>
    %cst_8 = arith.constant 0.000000e+00 : f32
    %11 = vector.broadcast %cst_8 : f32 to vector<512x16xf32>
    %12 = arith.maximumf %10, %11 : vector<512x16xf32>
    %13 = arith.truncf %12 : vector<512x16xf32> to vector<512x16xbf16>
    %c0_9 = arith.constant 0 : index
    %c0_10 = arith.constant 0 : index
    %14 = vector.load %arg5[%c0_9, %c0_10] : memref<512x16xbf16, #tpu.memory_space<vmem>>, vector<512x16xbf16>
    tpu.vector_store %arg5[%c0_9, %c0_10], %13 {strides = array<i32>} : memref<512x16xbf16, #tpu.memory_space<vmem>>, vector<512x16xbf16>,
    return
  }
  func.func @transform_0(%arg0: i32) -> (i32, i32) {
    %c0_i32 = arith.constant 0 : i32
    %c0_i32_0 = arith.constant 0 : i32
    return %arg0, %c0_i32 : i32, i32
  }
  func.func @transform_1(%arg0: i32) -> (i32, i32) {
    %c0_i32 = arith.constant 0 : i32
    %c0_i32_0 = arith.constant 0 : i32
    %c0_i32_1 = arith.constant 0 : i32
    return %c0_i32, %c0_i32_0 : i32, i32
  }
  func.func @transform_2(%arg0: i32) -> (i32, i32) {
    %c0_i32 = arith.constant 0 : i32
    %c0_i32_0 = arith.constant 0 : i32
    %c0_i32_1 = arith.constant 0 : i32
    return %c0_i32, %c0_i32_0 : i32, i32
  }
  func.func @transform_3(%arg0: i32) -> (i32, i32) {
    %c0_i32 = arith.constant 0 : i32
    %c0_i32_0 = arith.constant 0 : i32
    %c0_i32_1 = arith.constant 0 : i32
    return %c0_i32, %c0_i32_0 : i32, i32
  }
  func.func @transform_4(%arg0: i32) -> (i32, i32) {
    %c0_i32 = arith.constant 0 : i32
    %c0_i32_0 = arith.constant 0 : i32
    return %arg0, %c0_i32 : i32, i32
  }
}

module attributes {stable_mosaic.version = 11 : i64} {
  func.func @kernel(%arg0: i32, %arg1: memref<128x16xbf16, #tpu.memory_space<vmem>>, %arg2: memref<128x16xbf16, #tpu.memory_space<vmem>>, %arg3: memref<128x16xbf16, #tpu.memory_space<vmem>>, %arg4: memref<128x16xbf16, #tpu.memory_space<vmem>>, %arg5: memref<128x16xbf16, #tpu.memory_space<vmem>>, %arg6: memref<128x16xbf16, #tpu.memory_space<vmem>>, %arg7: memref<128x16xbf16, #tpu.memory_space<vmem>>, %arg8: memref<128x16xbf16, #tpu.memory_space<vmem>>, %arg9: memref<128x16xbf16, #tpu.memory_space<vmem>>, %arg10: memref<128x16xbf16, #tpu.memory_space<vmem>>) attributes {dimension_semantics = [#tpu.dimension_semantics<parallel>], iteration_bounds = array<i64: 1>, scalar_prefetch = 0 : i64, scratch_operands = 0 : i64, tpu.core_type = #tpu.core_type<tc>, window_params = [{transform_indices = @transform_0, window_bounds = array<i64: 128, 16>}, {transform_indices = @transform_1, window_bounds = array<i64: 128, 16>}, {transform_indices = @transform_2, window_bounds = array<i64: 128, 16>}, {transform_indices = @transform_3, window_bounds = array<i64: 128, 16>}, {transform_indices = @transform_4, window_bounds = array<i64: 128, 16>}, {transform_indices = @transform_5, window_bounds = array<i64: 128, 16>}, {transform_indices = @transform_6, window_bounds = array<i64: 128, 16>}, {transform_indices = @transform_7, window_bounds = array<i64: 128, 16>}, {transform_indices = @transform_8, window_bounds = array<i64: 128, 16>}, {transform_indices = @transform_9, window_bounds = array<i64: 128, 16>}]} {
    %c0 = arith.constant 0 : index
    %c0_0 = arith.constant 0 : index
    %0 = vector.load %arg1[%c0, %c0_0] : memref<128x16xbf16, #tpu.memory_space<vmem>>, vector<128x16xbf16>
    %c0_1 = arith.constant 0 : index
    %c0_2 = arith.constant 0 : index
    %1 = vector.load %arg2[%c0_1, %c0_2] : memref<128x16xbf16, #tpu.memory_space<vmem>>, vector<128x16xbf16>
    %2 = arith.maximumf %0, %1 : vector<128x16xbf16>
    %c0_3 = arith.constant 0 : index
    %c0_4 = arith.constant 0 : index
    %3 = vector.load %arg3[%c0_3, %c0_4] : memref<128x16xbf16, #tpu.memory_space<vmem>>, vector<128x16xbf16>
    %4 = arith.maximumf %2, %3 : vector<128x16xbf16>
    %c0_5 = arith.constant 0 : index
    %c0_6 = arith.constant 0 : index
    %5 = vector.load %arg4[%c0_5, %c0_6] : memref<128x16xbf16, #tpu.memory_space<vmem>>, vector<128x16xbf16>
    %6 = arith.maximumf %4, %5 : vector<128x16xbf16>
    %c0_7 = arith.constant 0 : index
    %c0_8 = arith.constant 0 : index
    %7 = vector.load %arg5[%c0_7, %c0_8] : memref<128x16xbf16, #tpu.memory_space<vmem>>, vector<128x16xbf16>
    %8 = arith.maximumf %6, %7 : vector<128x16xbf16>
    %c0_9 = arith.constant 0 : index
    %c0_10 = arith.constant 0 : index
    %9 = vector.load %arg6[%c0_9, %c0_10] : memref<128x16xbf16, #tpu.memory_space<vmem>>, vector<128x16xbf16>
    %10 = arith.maximumf %8, %9 : vector<128x16xbf16>
    %c0_11 = arith.constant 0 : index
    %c0_12 = arith.constant 0 : index
    %11 = vector.load %arg7[%c0_11, %c0_12] : memref<128x16xbf16, #tpu.memory_space<vmem>>, vector<128x16xbf16>
    %12 = arith.maximumf %10, %11 : vector<128x16xbf16>
    %c0_13 = arith.constant 0 : index
    %c0_14 = arith.constant 0 : index
    %13 = vector.load %arg8[%c0_13, %c0_14] : memref<128x16xbf16, #tpu.memory_space<vmem>>, vector<128x16xbf16>
    %14 = arith.maximumf %12, %13 : vector<128x16xbf16>
    %c0_15 = arith.constant 0 : index
    %c0_16 = arith.constant 0 : index
    %15 = vector.load %arg9[%c0_15, %c0_16] : memref<128x16xbf16, #tpu.memory_space<vmem>>, vector<128x16xbf16>
    %16 = arith.maximumf %14, %15 : vector<128x16xbf16>
    %c0_17 = arith.constant 0 : index
    %c0_18 = arith.constant 0 : index
    %17 = vector.load %arg10[%c0_17, %c0_18] : memref<128x16xbf16, #tpu.memory_space<vmem>>, vector<128x16xbf16>
    tpu.vector_store %arg10[%c0_17, %c0_18], %16 {strides = array<i32>} : memref<128x16xbf16, #tpu.memory_space<vmem>>, vector<128x16xbf16>,
    return
  }
  func.func @transform_0(%arg0: i32) -> (i32, i32) {
    %c0_i32 = arith.constant 0 : i32
    %c0_i32_0 = arith.constant 0 : i32
    return %arg0, %c0_i32 : i32, i32
  }
  func.func @transform_1(%arg0: i32) -> (i32, i32) {
    %c0_i32 = arith.constant 0 : i32
    %c0_i32_0 = arith.constant 0 : i32
    return %arg0, %c0_i32 : i32, i32
  }
  func.func @transform_2(%arg0: i32) -> (i32, i32) {
    %c0_i32 = arith.constant 0 : i32
    %c0_i32_0 = arith.constant 0 : i32
    return %arg0, %c0_i32 : i32, i32
  }
  func.func @transform_3(%arg0: i32) -> (i32, i32) {
    %c0_i32 = arith.constant 0 : i32
    %c0_i32_0 = arith.constant 0 : i32
    return %arg0, %c0_i32 : i32, i32
  }
  func.func @transform_4(%arg0: i32) -> (i32, i32) {
    %c0_i32 = arith.constant 0 : i32
    %c0_i32_0 = arith.constant 0 : i32
    return %arg0, %c0_i32 : i32, i32
  }
  func.func @transform_5(%arg0: i32) -> (i32, i32) {
    %c0_i32 = arith.constant 0 : i32
    %c0_i32_0 = arith.constant 0 : i32
    return %arg0, %c0_i32 : i32, i32
  }
  func.func @transform_6(%arg0: i32) -> (i32, i32) {
    %c0_i32 = arith.constant 0 : i32
    %c0_i32_0 = arith.constant 0 : i32
    return %arg0, %c0_i32 : i32, i32
  }
  func.func @transform_7(%arg0: i32) -> (i32, i32) {
    %c0_i32 = arith.constant 0 : i32
    %c0_i32_0 = arith.constant 0 : i32
    return %arg0, %c0_i32 : i32, i32
  }
  func.func @transform_8(%arg0: i32) -> (i32, i32) {
    %c0_i32 = arith.constant 0 : i32
    %c0_i32_0 = arith.constant 0 : i32
    return %arg0, %c0_i32 : i32, i32
  }
  func.func @transform_9(%arg0: i32) -> (i32, i32) {
    %c0_i32 = arith.constant 0 : i32
    %c0_i32_0 = arith.constant 0 : i32
    return %arg0, %c0_i32 : i32, i32
  }
}

module attributes {stable_mosaic.version = 11 : i64} {
  func.func @kernel(%arg0: i32, %arg1: memref<128x16xbf16, #tpu.memory_space<vmem>>, %arg2: memref<1x16xf32, #tpu.memory_space<vmem>>, %arg3: memref<1x16xf32, #tpu.memory_space<vmem>>, %arg4: memref<16x32xbf16, #tpu.memory_space<vmem>>, %arg5: memref<1x32xf32, #tpu.memory_space<vmem>>, %arg6: memref<1x32xf32, #tpu.memory_space<vmem>>, %arg7: memref<128x32xbf16, #tpu.memory_space<vmem>>) attributes {dimension_semantics = [#tpu.dimension_semantics<parallel>], iteration_bounds = array<i64: 1>, scalar_prefetch = 0 : i64, scratch_operands = 0 : i64, tpu.core_type = #tpu.core_type<tc>, window_params = [{transform_indices = @transform_0, window_bounds = array<i64: 128, 16>}, {pipeline_mode = #tpu.pipeline_mode<synchronous>, transform_indices = @transform_1, window_bounds = array<i64: 1, 16>}, {pipeline_mode = #tpu.pipeline_mode<synchronous>, transform_indices = @transform_2, window_bounds = array<i64: 1, 16>}, {pipeline_mode = #tpu.pipeline_mode<synchronous>, transform_indices = @transform_3, window_bounds = array<i64: 16, 32>}, {pipeline_mode = #tpu.pipeline_mode<synchronous>, transform_indices = @transform_4, window_bounds = array<i64: 1, 32>}, {pipeline_mode = #tpu.pipeline_mode<synchronous>, transform_indices = @transform_5, window_bounds = array<i64: 1, 32>}, {transform_indices = @transform_6, window_bounds = array<i64: 128, 32>}]} {
    %cst = arith.constant 0.000000e+00 : f32
    %0 = vector.broadcast %cst : f32 to vector<128x32xf32>
    %c0 = arith.constant 0 : index
    %c0_0 = arith.constant 0 : index
    %1 = vector.load %arg1[%c0, %c0_0] : memref<128x16xbf16, #tpu.memory_space<vmem>>, vector<128x16xbf16>
    %2 = arith.extf %1 : vector<128x16xbf16> to vector<128x16xf32>
    %c0_1 = arith.constant 0 : index
    %c0_2 = arith.constant 0 : index
    %3 = vector.load %arg2[%c0_1, %c0_2] : memref<1x16xf32, #tpu.memory_space<vmem>>, vector<1x16xf32>
    %4 = vector.broadcast %3 : vector<1x16xf32> to vector<128x16xf32>
    %5 = arith.mulf %2, %4 : vector<128x16xf32>
    %c0_3 = arith.constant 0 : index
    %c0_4 = arith.constant 0 : index
    %6 = vector.load %arg3[%c0_3, %c0_4] : memref<1x16xf32, #tpu.memory_space<vmem>>, vector<1x16xf32>
    %7 = vector.broadcast %6 : vector<1x16xf32> to vector<128x16xf32>
    %8 = arith.addf %5, %7 : vector<128x16xf32>
    %cst_5 = arith.constant 0.000000e+00 : f32
    %9 = vector.broadcast %cst_5 : f32 to vector<128x16xf32>
    %10 = arith.maximumf %8, %9 : vector<128x16xf32>
    %11 = arith.truncf %10 : vector<128x16xf32> to vector<128x16xbf16>
    %c0_6 = arith.constant 0 : index
    %c0_7 = arith.constant 0 : index
    %12 = vector.load %arg4[%c0_6, %c0_7] : memref<16x32xbf16, #tpu.memory_space<vmem>>, vector<16x32xbf16>
    %cst_8 = arith.constant dense<0.000000e+00> : vector<128x32xf32>
    %13 = tpu.matmul %11, %12, %cst_8 {dimension_numbers = #tpu.dot_dimension_numbers<[1], [0], [0], [1], [0, 0, 1, 1], [], []>} : vector<128x16xbf16>, vector<16x32xbf16>, vector<128x32xf32> -> vector<128x32xf32>
    %14 = arith.addf %0, %13 : vector<128x32xf32>
    %c0_9 = arith.constant 0 : index
    %c0_10 = arith.constant 0 : index
    %15 = vector.load %arg5[%c0_9, %c0_10] : memref<1x32xf32, #tpu.memory_space<vmem>>, vector<1x32xf32>
    %16 = vector.broadcast %15 : vector<1x32xf32> to vector<128x32xf32>
    %17 = arith.mulf %14, %16 : vector<128x32xf32>
    %c0_11 = arith.constant 0 : index
    %c0_12 = arith.constant 0 : index
    %18 = vector.load %arg6[%c0_11, %c0_12] : memref<1x32xf32, #tpu.memory_space<vmem>>, vector<1x32xf32>
    %19 = vector.broadcast %18 : vector<1x32xf32> to vector<128x32xf32>
    %20 = arith.addf %17, %19 : vector<128x32xf32>
    %cst_13 = arith.constant 0.000000e+00 : f32
    %21 = vector.broadcast %cst_13 : f32 to vector<128x32xf32>
    %22 = arith.maximumf %20, %21 : vector<128x32xf32>
    %23 = arith.truncf %22 : vector<128x32xf32> to vector<128x32xbf16>
    %c0_14 = arith.constant 0 : index
    %c0_15 = arith.constant 0 : index
    %24 = vector.load %arg7[%c0_14, %c0_15] : memref<128x32xbf16, #tpu.memory_space<vmem>>, vector<128x32xbf16>
    tpu.vector_store %arg7[%c0_14, %c0_15], %23 {strides = array<i32>} : memref<128x32xbf16, #tpu.memory_space<vmem>>, vector<128x32xbf16>,
    return
  }
  func.func @transform_0(%arg0: i32) -> (i32, i32) {
    %c0_i32 = arith.constant 0 : i32
    %c0_i32_0 = arith.constant 0 : i32
    return %arg0, %c0_i32 : i32, i32
  }
  func.func @transform_1(%arg0: i32) -> (i32, i32) {
    %c0_i32 = arith.constant 0 : i32
    %c0_i32_0 = arith.constant 0 : i32
    %c0_i32_1 = arith.constant 0 : i32
    return %c0_i32, %c0_i32_0 : i32, i32
  }
  func.func @transform_2(%arg0: i32) -> (i32, i32) {
    %c0_i32 = arith.constant 0 : i32
    %c0_i32_0 = arith.constant 0 : i32
    %c0_i32_1 = arith.constant 0 : i32
    return %c0_i32, %c0_i32_0 : i32, i32
  }
  func.func @transform_3(%arg0: i32) -> (i32, i32) {
    %c0_i32 = arith.constant 0 : i32
    %c0_i32_0 = arith.constant 0 : i32
    %c0_i32_1 = arith.constant 0 : i32
    return %c0_i32, %c0_i32_0 : i32, i32
  }
  func.func @transform_4(%arg0: i32) -> (i32, i32) {
    %c0_i32 = arith.constant 0 : i32
    %c0_i32_0 = arith.constant 0 : i32
    %c0_i32_1 = arith.constant 0 : i32
    return %c0_i32, %c0_i32_0 : i32, i32
  }
  func.func @transform_5(%arg0: i32) -> (i32, i32) {
    %c0_i32 = arith.constant 0 : i32
    %c0_i32_0 = arith.constant 0 : i32
    %c0_i32_1 = arith.constant 0 : i32
    return %c0_i32, %c0_i32_0 : i32, i32
  }
  func.func @transform_6(%arg0: i32) -> (i32, i32) {
    %c0_i32 = arith.constant 0 : i32
    %c0_i32_0 = arith.constant 0 : i32
    return %arg0, %c0_i32 : i32, i32
  }
}

module attributes {stable_mosaic.version = 11 : i64} {
  func.func @kernel(%arg0: i32, %arg1: memref<1x110x32xbf16, #tpu.memory_space<vmem>>, %arg2: memref<9x32x8xbf16, #tpu.memory_space<vmem>>, %arg3: memref<1x80x8xbf16, #tpu.memory_space<vmem>>) attributes {dimension_semantics = [#tpu.dimension_semantics<parallel>], iteration_bounds = array<i64: 2>, scalar_prefetch = 0 : i64, scratch_operands = 0 : i64, tpu.core_type = #tpu.core_type<tc>, window_params = [{transform_indices = @transform_0, window_bounds = array<i64: 1, 110, 32>}, {pipeline_mode = #tpu.pipeline_mode<synchronous>, transform_indices = @transform_1, window_bounds = array<i64: 9, 32, 8>}, {transform_indices = @transform_2, window_bounds = array<i64: 1, 80, 8>}]} {
    %cst = arith.constant 0.000000e+00 : f32
    %0 = vector.broadcast %cst : f32 to vector<80x8xf32>
    %c0 = arith.constant 0 : index
    %c0_0 = arith.constant 0 : index
    %c0_1 = arith.constant 0 : index
    %1 = vector.load %arg1[%c0, %c0_0, %c0_1] : memref<1x110x32xbf16, #tpu.memory_space<vmem>>, vector<1x80x32xbf16>
    %2 = vector.shape_cast %1 : vector<1x80x32xbf16> to vector<80x32xbf16>
    %c0_2 = arith.constant 0 : index
    %c0_3 = arith.constant 0 : index
    %c0_4 = arith.constant 0 : index
    %3 = vector.load %arg2[%c0_2, %c0_3, %c0_4] : memref<9x32x8xbf16, #tpu.memory_space<vmem>>, vector<1x32x8xbf16>
    %4 = vector.shape_cast %3 : vector<1x32x8xbf16> to vector<32x8xbf16>
    %cst_5 = arith.constant dense<0.000000e+00> : vector<80x8xf32>
    %5 = tpu.matmul %2, %4, %cst_5 {dimension_numbers = #tpu.dot_dimension_numbers<[1], [0], [0], [1], [0, 0, 1, 1], [], []>} : vector<80x32xbf16>, vector<32x8xbf16>, vector<80x8xf32> -> vector<80x8xf32>
    %6 = arith.addf %0, %5 : vector<80x8xf32>
    %c0_6 = arith.constant 0 : index
    %c1 = arith.constant 1 : index
    %c0_7 = arith.constant 0 : index
    %7 = vector.load %arg1[%c0_6, %c1, %c0_7] : memref<1x110x32xbf16, #tpu.memory_space<vmem>>, vector<1x80x32xbf16>
    %8 = vector.shape_cast %7 : vector<1x80x32xbf16> to vector<80x32xbf16>
    %c1_8 = arith.constant 1 : index
    %c0_9 = arith.constant 0 : index
    %c0_10 = arith.constant 0 : index
    %9 = vector.load %arg2[%c1_8, %c0_9, %c0_10] : memref<9x32x8xbf16, #tpu.memory_space<vmem>>, vector<1x32x8xbf16>
    %10 = vector.shape_cast %9 : vector<1x32x8xbf16> to vector<32x8xbf16>
    %cst_11 = arith.constant dense<0.000000e+00> : vector<80x8xf32>
    %11 = tpu.matmul %8, %10, %cst_11 {dimension_numbers = #tpu.dot_dimension_numbers<[1], [0], [0], [1], [0, 0, 1, 1], [], []>} : vector<80x32xbf16>, vector<32x8xbf16>, vector<80x8xf32> -> vector<80x8xf32>
    %12 = arith.addf %6, %11 : vector<80x8xf32>
    %c0_12 = arith.constant 0 : index
    %c2 = arith.constant 2 : index
    %c0_13 = arith.constant 0 : index
    %13 = vector.load %arg1[%c0_12, %c2, %c0_13] : memref<1x110x32xbf16, #tpu.memory_space<vmem>>, vector<1x80x32xbf16>
    %14 = vector.shape_cast %13 : vector<1x80x32xbf16> to vector<80x32xbf16>
    %c2_14 = arith.constant 2 : index
    %c0_15 = arith.constant 0 : index
    %c0_16 = arith.constant 0 : index
    %15 = vector.load %arg2[%c2_14, %c0_15, %c0_16] : memref<9x32x8xbf16, #tpu.memory_space<vmem>>, vector<1x32x8xbf16>
    %16 = vector.shape_cast %15 : vector<1x32x8xbf16> to vector<32x8xbf16>
    %cst_17 = arith.constant dense<0.000000e+00> : vector<80x8xf32>
    %17 = tpu.matmul %14, %16, %cst_17 {dimension_numbers = #tpu.dot_dimension_numbers<[1], [0], [0], [1], [0, 0, 1, 1], [], []>} : vector<80x32xbf16>, vector<32x8xbf16>, vector<80x8xf32> -> vector<80x8xf32>
    %18 = arith.addf %12, %17 : vector<80x8xf32>
    %c0_18 = arith.constant 0 : index
    %c10 = arith.constant 10 : index
    %c0_19 = arith.constant 0 : index
    %19 = vector.load %arg1[%c0_18, %c10, %c0_19] : memref<1x110x32xbf16, #tpu.memory_space<vmem>>, vector<1x80x32xbf16>
    %20 = vector.shape_cast %19 : vector<1x80x32xbf16> to vector<80x32xbf16>
    %c3 = arith.constant 3 : index
    %c0_20 = arith.constant 0 : index
    %c0_21 = arith.constant 0 : index
    %21 = vector.load %arg2[%c3, %c0_20, %c0_21] : memref<9x32x8xbf16, #tpu.memory_space<vmem>>, vector<1x32x8xbf16>
    %22 = vector.shape_cast %21 : vector<1x32x8xbf16> to vector<32x8xbf16>
    %cst_22 = arith.constant dense<0.000000e+00> : vector<80x8xf32>
    %23 = tpu.matmul %20, %22, %cst_22 {dimension_numbers = #tpu.dot_dimension_numbers<[1], [0], [0], [1], [0, 0, 1, 1], [], []>} : vector<80x32xbf16>, vector<32x8xbf16>, vector<80x8xf32> -> vector<80x8xf32>
    %24 = arith.addf %18, %23 : vector<80x8xf32>
    %c0_23 = arith.constant 0 : index
    %c11 = arith.constant 11 : index
    %c0_24 = arith.constant 0 : index
    %25 = vector.load %arg1[%c0_23, %c11, %c0_24] : memref<1x110x32xbf16, #tpu.memory_space<vmem>>, vector<1x80x32xbf16>
    %26 = vector.shape_cast %25 : vector<1x80x32xbf16> to vector<80x32xbf16>
    %c4 = arith.constant 4 : index
    %c0_25 = arith.constant 0 : index
    %c0_26 = arith.constant 0 : index
    %27 = vector.load %arg2[%c4, %c0_25, %c0_26] : memref<9x32x8xbf16, #tpu.memory_space<vmem>>, vector<1x32x8xbf16>
    %28 = vector.shape_cast %27 : vector<1x32x8xbf16> to vector<32x8xbf16>
    %cst_27 = arith.constant dense<0.000000e+00> : vector<80x8xf32>
    %29 = tpu.matmul %26, %28, %cst_27 {dimension_numbers = #tpu.dot_dimension_numbers<[1], [0], [0], [1], [0, 0, 1, 1], [], []>} : vector<80x32xbf16>, vector<32x8xbf16>, vector<80x8xf32> -> vector<80x8xf32>
    %30 = arith.addf %24, %29 : vector<80x8xf32>
    %c0_28 = arith.constant 0 : index
    %c12 = arith.constant 12 : index
    %c0_29 = arith.constant 0 : index
    %31 = vector.load %arg1[%c0_28, %c12, %c0_29] : memref<1x110x32xbf16, #tpu.memory_space<vmem>>, vector<1x80x32xbf16>
    %32 = vector.shape_cast %31 : vector<1x80x32xbf16> to vector<80x32xbf16>
    %c5 = arith.constant 5 : index
    %c0_30 = arith.constant 0 : index
    %c0_31 = arith.constant 0 : index
    %33 = vector.load %arg2[%c5, %c0_30, %c0_31] : memref<9x32x8xbf16, #tpu.memory_space<vmem>>, vector<1x32x8xbf16>
    %34 = vector.shape_cast %33 : vector<1x32x8xbf16> to vector<32x8xbf16>
    %cst_32 = arith.constant dense<0.000000e+00> : vector<80x8xf32>
    %35 = tpu.matmul %32, %34, %cst_32 {dimension_numbers = #tpu.dot_dimension_numbers<[1], [0], [0], [1], [0, 0, 1, 1], [], []>} : vector<80x32xbf16>, vector<32x8xbf16>, vector<80x8xf32> -> vector<80x8xf32>
    %36 = arith.addf %30, %35 : vector<80x8xf32>
    %c0_33 = arith.constant 0 : index
    %c20 = arith.constant 20 : index
    %c0_34 = arith.constant 0 : index
    %37 = vector.load %arg1[%c0_33, %c20, %c0_34] : memref<1x110x32xbf16, #tpu.memory_space<vmem>>, vector<1x80x32xbf16>
    %38 = vector.shape_cast %37 : vector<1x80x32xbf16> to vector<80x32xbf16>
    %c6 = arith.constant 6 : index
    %c0_35 = arith.constant 0 : index
    %c0_36 = arith.constant 0 : index
    %39 = vector.load %arg2[%c6, %c0_35, %c0_36] : memref<9x32x8xbf16, #tpu.memory_space<vmem>>, vector<1x32x8xbf16>
    %40 = vector.shape_cast %39 : vector<1x32x8xbf16> to vector<32x8xbf16>
    %cst_37 = arith.constant dense<0.000000e+00> : vector<80x8xf32>
    %41 = tpu.matmul %38, %40, %cst_37 {dimension_numbers = #tpu.dot_dimension_numbers<[1], [0], [0], [1], [0, 0, 1, 1], [], []>} : vector<80x32xbf16>, vector<32x8xbf16>, vector<80x8xf32> -> vector<80x8xf32>
    %42 = arith.addf %36, %41 : vector<80x8xf32>
    %c0_38 = arith.constant 0 : index
    %c21 = arith.constant 21 : index
    %c0_39 = arith.constant 0 : index
    %43 = vector.load %arg1[%c0_38, %c21, %c0_39] : memref<1x110x32xbf16, #tpu.memory_space<vmem>>, vector<1x80x32xbf16>
    %44 = vector.shape_cast %43 : vector<1x80x32xbf16> to vector<80x32xbf16>
    %c7 = arith.constant 7 : index
    %c0_40 = arith.constant 0 : index
    %c0_41 = arith.constant 0 : index
    %45 = vector.load %arg2[%c7, %c0_40, %c0_41] : memref<9x32x8xbf16, #tpu.memory_space<vmem>>, vector<1x32x8xbf16>
    %46 = vector.shape_cast %45 : vector<1x32x8xbf16> to vector<32x8xbf16>
    %cst_42 = arith.constant dense<0.000000e+00> : vector<80x8xf32>
    %47 = tpu.matmul %44, %46, %cst_42 {dimension_numbers = #tpu.dot_dimension_numbers<[1], [0], [0], [1], [0, 0, 1, 1], [], []>} : vector<80x32xbf16>, vector<32x8xbf16>, vector<80x8xf32> -> vector<80x8xf32>
    %48 = arith.addf %42, %47 : vector<80x8xf32>
    %c0_43 = arith.constant 0 : index
    %c22 = arith.constant 22 : index
    %c0_44 = arith.constant 0 : index
    %49 = vector.load %arg1[%c0_43, %c22, %c0_44] : memref<1x110x32xbf16, #tpu.memory_space<vmem>>, vector<1x80x32xbf16>
    %50 = vector.shape_cast %49 : vector<1x80x32xbf16> to vector<80x32xbf16>
    %c8 = arith.constant 8 : index
    %c0_45 = arith.constant 0 : index
    %c0_46 = arith.constant 0 : index
    %51 = vector.load %arg2[%c8, %c0_45, %c0_46] : memref<9x32x8xbf16, #tpu.memory_space<vmem>>, vector<1x32x8xbf16>
    %52 = vector.shape_cast %51 : vector<1x32x8xbf16> to vector<32x8xbf16>
    %cst_47 = arith.constant dense<0.000000e+00> : vector<80x8xf32>
    %53 = tpu.matmul %50, %52, %cst_47 {dimension_numbers = #tpu.dot_dimension_numbers<[1], [0], [0], [1], [0, 0, 1, 1], [], []>} : vector<80x32xbf16>, vector<32x8xbf16>, vector<80x8xf32> -> vector<80x8xf32>
    %54 = arith.addf %48, %53 : vector<80x8xf32>
    %55 = arith.truncf %54 : vector<80x8xf32> to vector<80x8xbf16>
    %c0_48 = arith.constant 0 : index
    %c0_49 = arith.constant 0 : index
    %c0_50 = arith.constant 0 : index
    %56 = vector.load %arg3[%c0_48, %c0_49, %c0_50] : memref<1x80x8xbf16, #tpu.memory_space<vmem>>, vector<1x80x8xbf16>
    %57 = vector.shape_cast %56 : vector<1x80x8xbf16> to vector<80x8xbf16>
    %58 = vector.shape_cast %55 : vector<80x8xbf16> to vector<1x80x8xbf16>
    tpu.vector_store %arg3[%c0_48, %c0_49, %c0_50], %58 {strides = array<i32>} : memref<1x80x8xbf16, #tpu.memory_space<vmem>>, vector<1x80x8xbf16>,
    return
  }
  func.func @transform_0(%arg0: i32) -> (i32, i32, i32) {
    %c0_i32 = arith.constant 0 : i32
    %c0_i32_0 = arith.constant 0 : i32
    %c0_i32_1 = arith.constant 0 : i32
    return %arg0, %c0_i32, %c0_i32_0 : i32, i32, i32
  }
  func.func @transform_1(%arg0: i32) -> (i32, i32, i32) {
    %c0_i32 = arith.constant 0 : i32
    %c0_i32_0 = arith.constant 0 : i32
    %c0_i32_1 = arith.constant 0 : i32
    %c0_i32_2 = arith.constant 0 : i32
    return %c0_i32, %c0_i32_0, %c0_i32_1 : i32, i32, i32
  }
  func.func @transform_2(%arg0: i32) -> (i32, i32, i32) {
    %c0_i32 = arith.constant 0 : i32
    %c0_i32_0 = arith.constant 0 : i32
    %c0_i32_1 = arith.constant 0 : i32
    return %arg0, %c0_i32, %c0_i32_0 : i32, i32, i32
  }
}

module attributes {stable_mosaic.version = 11 : i64} {
  func.func @kernel(%arg0: i32, %arg1: memref<128x16xbf16, #tpu.memory_space<vmem>>, %arg2: memref<128x8xbf16, #tpu.memory_space<vmem>>, %arg3: memref<128x8xbf16, #tpu.memory_space<vmem>>, %arg4: memref<1x16xf32, #tpu.memory_space<vmem>>, %arg5: memref<1x8xf32, #tpu.memory_space<vmem>>, %arg6: memref<1x8xf32, #tpu.memory_space<vmem>>, %arg7: memref<1x16xf32, #tpu.memory_space<vmem>>, %arg8: memref<1x8xf32, #tpu.memory_space<vmem>>, %arg9: memref<1x8xf32, #tpu.memory_space<vmem>>, %arg10: memref<16x16xbf16, #tpu.memory_space<vmem>>, %arg11: memref<8x16xbf16, #tpu.memory_space<vmem>>, %arg12: memref<8x16xbf16, #tpu.memory_space<vmem>>, %arg13: memref<128x16xbf16, #tpu.memory_space<vmem>>) attributes {dimension_semantics = [#tpu.dimension_semantics<parallel>], iteration_bounds = array<i64: 1>, scalar_prefetch = 0 : i64, scratch_operands = 0 : i64, tpu.core_type = #tpu.core_type<tc>, window_params = [{transform_indices = @transform_0, window_bounds = array<i64: 128, 16>}, {transform_indices = @transform_1, window_bounds = array<i64: 128, 8>}, {transform_indices = @transform_2, window_bounds = array<i64: 128, 8>}, {pipeline_mode = #tpu.pipeline_mode<synchronous>, transform_indices = @transform_3, window_bounds = array<i64: 1, 16>}, {pipeline_mode = #tpu.pipeline_mode<synchronous>, transform_indices = @transform_4, window_bounds = array<i64: 1, 8>}, {pipeline_mode = #tpu.pipeline_mode<synchronous>, transform_indices = @transform_5, window_bounds = array<i64: 1, 8>}, {pipeline_mode = #tpu.pipeline_mode<synchronous>, transform_indices = @transform_6, window_bounds = array<i64: 1, 16>}, {pipeline_mode = #tpu.pipeline_mode<synchronous>, transform_indices = @transform_7, window_bounds = array<i64: 1, 8>}, {pipeline_mode = #tpu.pipeline_mode<synchronous>, transform_indices = @transform_8, window_bounds = array<i64: 1, 8>}, {pipeline_mode = #tpu.pipeline_mode<synchronous>, transform_indices = @transform_9, window_bounds = array<i64: 16, 16>}, {pipeline_mode = #tpu.pipeline_mode<synchronous>, transform_indices = @transform_10, window_bounds = array<i64: 8, 16>}, {pipeline_mode = #tpu.pipeline_mode<synchronous>, transform_indices = @transform_11, window_bounds = array<i64: 8, 16>}, {transform_indices = @transform_12, window_bounds = array<i64: 128, 16>}]} {
    %cst = arith.constant 0.000000e+00 : f32
    %0 = vector.broadcast %cst : f32 to vector<128x16xf32>
    %c0 = arith.constant 0 : index
    %c0_0 = arith.constant 0 : index
    %1 = vector.load %arg1[%c0, %c0_0] : memref<128x16xbf16, #tpu.memory_space<vmem>>, vector<128x16xbf16>
    %2 = arith.extf %1 : vector<128x16xbf16> to vector<128x16xf32>
    %c0_1 = arith.constant 0 : index
    %c0_2 = arith.constant 0 : index
    %3 = vector.load %arg4[%c0_1, %c0_2] : memref<1x16xf32, #tpu.memory_space<vmem>>, vector<1x16xf32>
    %4 = vector.broadcast %3 : vector<1x16xf32> to vector<128x16xf32>
    %5 = arith.mulf %2, %4 : vector<128x16xf32>
    %c0_3 = arith.constant 0 : index
    %c0_4 = arith.constant 0 : index
    %6 = vector.load %arg7[%c0_3, %c0_4] : memref<1x16xf32, #tpu.memory_space<vmem>>, vector<1x16xf32>
    %7 = vector.broadcast %6 : vector<1x16xf32> to vector<128x16xf32>
    %8 = arith.addf %5, %7 : vector<128x16xf32>
    %cst_5 = arith.constant 0.000000e+00 : f32
    %9 = vector.broadcast %cst_5 : f32 to vector<128x16xf32>
    %10 = arith.maximumf %8, %9 : vector<128x16xf32>
    %11 = arith.truncf %10 : vector<128x16xf32> to vector<128x16xbf16>
    %c0_6 = arith.constant 0 : index
    %c0_7 = arith.constant 0 : index
    %12 = vector.load %arg10[%c0_6, %c0_7] : memref<16x16xbf16, #tpu.memory_space<vmem>>, vector<16x16xbf16>
    %cst_8 = arith.constant dense<0.000000e+00> : vector<128x16xf32>
    %13 = tpu.matmul %11, %12, %cst_8 {dimension_numbers = #tpu.dot_dimension_numbers<[1], [0], [0], [1], [0, 0, 1, 1], [], []>} : vector<128x16xbf16>, vector<16x16xbf16>, vector<128x16xf32> -> vector<128x16xf32>
    %14 = arith.addf %0, %13 : vector<128x16xf32>
    %c0_9 = arith.constant 0 : index
    %c0_10 = arith.constant 0 : index
    %15 = vector.load %arg2[%c0_9, %c0_10] : memref<128x8xbf16, #tpu.memory_space<vmem>>, vector<128x8xbf16>
    %16 = arith.extf %15 : vector<128x8xbf16> to vector<128x8xf32>
    %c0_11 = arith.constant 0 : index
    %c0_12 = arith.constant 0 : index
    %17 = vector.load %arg5[%c0_11, %c0_12] : memref<1x8xf32, #tpu.memory_space<vmem>>, vector<1x8xf32>
    %18 = vector.broadcast %17 : vector<1x8xf32> to vector<128x8xf32>
    %19 = arith.mulf %16, %18 : vector<128x8xf32>
    %c0_13 = arith.constant 0 : index
    %c0_14 = arith.constant 0 : index
    %20 = vector.load %arg8[%c0_13, %c0_14] : memref<1x8xf32, #tpu.memory_space<vmem>>, vector<1x8xf32>
    %21 = vector.broadcast %20 : vector<1x8xf32> to vector<128x8xf32>
    %22 = arith.addf %19, %21 : vector<128x8xf32>
    %cst_15 = arith.constant 0.000000e+00 : f32
    %23 = vector.broadcast %cst_15 : f32 to vector<128x8xf32>
    %24 = arith.maximumf %22, %23 : vector<128x8xf32>
    %25 = arith.truncf %24 : vector<128x8xf32> to vector<128x8xbf16>
    %c0_16 = arith.constant 0 : index
    %c0_17 = arith.constant 0 : index
    %26 = vector.load %arg11[%c0_16, %c0_17] : memref<8x16xbf16, #tpu.memory_space<vmem>>, vector<8x16xbf16>
    %cst_18 = arith.constant dense<0.000000e+00> : vector<128x16xf32>
    %27 = tpu.matmul %25, %26, %cst_18 {dimension_numbers = #tpu.dot_dimension_numbers<[1], [0], [0], [1], [0, 0, 1, 1], [], []>} : vector<128x8xbf16>, vector<8x16xbf16>, vector<128x16xf32> -> vector<128x16xf32>
    %28 = arith.addf %14, %27 : vector<128x16xf32>
    %c0_19 = arith.constant 0 : index
    %c0_20 = arith.constant 0 : index
    %29 = vector.load %arg3[%c0_19, %c0_20] : memref<128x8xbf16, #tpu.memory_space<vmem>>, vector<128x8xbf16>
    %30 = arith.extf %29 : vector<128x8xbf16> to vector<128x8xf32>
    %c0_21 = arith.constant 0 : index
    %c0_22 = arith.constant 0 : index
    %31 = vector.load %arg6[%c0_21, %c0_22] : memref<1x8xf32, #tpu.memory_space<vmem>>, vector<1x8xf32>
    %32 = vector.broadcast %31 : vector<1x8xf32> to vector<128x8xf32>
    %33 = arith.mulf %30, %32 : vector<128x8xf32>
    %c0_23 = arith.constant 0 : index
    %c0_24 = arith.constant 0 : index
    %34 = vector.load %arg9[%c0_23, %c0_24] : memref<1x8xf32, #tpu.memory_space<vmem>>, vector<1x8xf32>
    %35 = vector.broadcast %34 : vector<1x8xf32> to vector<128x8xf32>
    %36 = arith.addf %33, %35 : vector<128x8xf32>
    %cst_25 = arith.constant 0.000000e+00 : f32
    %37 = vector.broadcast %cst_25 : f32 to vector<128x8xf32>
    %38 = arith.maximumf %36, %37 : vector<128x8xf32>
    %39 = arith.truncf %38 : vector<128x8xf32> to vector<128x8xbf16>
    %c0_26 = arith.constant 0 : index
    %c0_27 = arith.constant 0 : index
    %40 = vector.load %arg12[%c0_26, %c0_27] : memref<8x16xbf16, #tpu.memory_space<vmem>>, vector<8x16xbf16>
    %cst_28 = arith.constant dense<0.000000e+00> : vector<128x16xf32>
    %41 = tpu.matmul %39, %40, %cst_28 {dimension_numbers = #tpu.dot_dimension_numbers<[1], [0], [0], [1], [0, 0, 1, 1], [], []>} : vector<128x8xbf16>, vector<8x16xbf16>, vector<128x16xf32> -> vector<128x16xf32>
    %42 = arith.addf %28, %41 : vector<128x16xf32>
    %43 = arith.truncf %42 : vector<128x16xf32> to vector<128x16xbf16>
    %c0_29 = arith.constant 0 : index
    %c0_30 = arith.constant 0 : index
    %44 = vector.load %arg13[%c0_29, %c0_30] : memref<128x16xbf16, #tpu.memory_space<vmem>>, vector<128x16xbf16>
    tpu.vector_store %arg13[%c0_29, %c0_30], %43 {strides = array<i32>} : memref<128x16xbf16, #tpu.memory_space<vmem>>, vector<128x16xbf16>,
    return
  }
  func.func @transform_0(%arg0: i32) -> (i32, i32) {
    %c0_i32 = arith.constant 0 : i32
    %c0_i32_0 = arith.constant 0 : i32
    return %arg0, %c0_i32 : i32, i32
  }
  func.func @transform_1(%arg0: i32) -> (i32, i32) {
    %c0_i32 = arith.constant 0 : i32
    %c0_i32_0 = arith.constant 0 : i32
    return %arg0, %c0_i32 : i32, i32
  }
  func.func @transform_2(%arg0: i32) -> (i32, i32) {
    %c0_i32 = arith.constant 0 : i32
    %c0_i32_0 = arith.constant 0 : i32
    return %arg0, %c0_i32 : i32, i32
  }
  func.func @transform_3(%arg0: i32) -> (i32, i32) {
    %c0_i32 = arith.constant 0 : i32
    %c0_i32_0 = arith.constant 0 : i32
    %c0_i32_1 = arith.constant 0 : i32
    return %c0_i32, %c0_i32_0 : i32, i32
  }
  func.func @transform_4(%arg0: i32) -> (i32, i32) {
    %c0_i32 = arith.constant 0 : i32
    %c0_i32_0 = arith.constant 0 : i32
    %c0_i32_1 = arith.constant 0 : i32
    return %c0_i32, %c0_i32_0 : i32, i32
  }
  func.func @transform_5(%arg0: i32) -> (i32, i32) {
    %c0_i32 = arith.constant 0 : i32
    %c0_i32_0 = arith.constant 0 : i32
    %c0_i32_1 = arith.constant 0 : i32
    return %c0_i32, %c0_i32_0 : i32, i32
  }
  func.func @transform_6(%arg0: i32) -> (i32, i32) {
    %c0_i32 = arith.constant 0 : i32
    %c0_i32_0 = arith.constant 0 : i32
    %c0_i32_1 = arith.constant 0 : i32
    return %c0_i32, %c0_i32_0 : i32, i32
  }
  func.func @transform_7(%arg0: i32) -> (i32, i32) {
    %c0_i32 = arith.constant 0 : i32
    %c0_i32_0 = arith.constant 0 : i32
    %c0_i32_1 = arith.constant 0 : i32
    return %c0_i32, %c0_i32_0 : i32, i32
  }
  func.func @transform_8(%arg0: i32) -> (i32, i32) {
    %c0_i32 = arith.constant 0 : i32
    %c0_i32_0 = arith.constant 0 : i32
    %c0_i32_1 = arith.constant 0 : i32
    return %c0_i32, %c0_i32_0 : i32, i32
  }
  func.func @transform_9(%arg0: i32) -> (i32, i32) {
    %c0_i32 = arith.constant 0 : i32
    %c0_i32_0 = arith.constant 0 : i32
    %c0_i32_1 = arith.constant 0 : i32
    return %c0_i32, %c0_i32_0 : i32, i32
  }
  func.func @transform_10(%arg0: i32) -> (i32, i32) {
    %c0_i32 = arith.constant 0 : i32
    %c0_i32_0 = arith.constant 0 : i32
    %c0_i32_1 = arith.constant 0 : i32
    return %c0_i32, %c0_i32_0 : i32, i32
  }
  func.func @transform_11(%arg0: i32) -> (i32, i32) {
    %c0_i32 = arith.constant 0 : i32
    %c0_i32_0 = arith.constant 0 : i32
    %c0_i32_1 = arith.constant 0 : i32
    return %c0_i32, %c0_i32_0 : i32, i32
  }
  func.func @transform_12(%arg0: i32) -> (i32, i32) {
    %c0_i32 = arith.constant 0 : i32
    %c0_i32_0 = arith.constant 0 : i32
    return %arg0, %c0_i32 : i32, i32
  }
}

module attributes {stable_mosaic.version = 11 : i64} {
  func.func @kernel(%arg0: i32, %arg1: memref<128x16xbf16, #tpu.memory_space<vmem>>, %arg2: memref<128x8xbf16, #tpu.memory_space<vmem>>, %arg3: memref<1x16xf32, #tpu.memory_space<vmem>>, %arg4: memref<1x8xf32, #tpu.memory_space<vmem>>, %arg5: memref<1x16xf32, #tpu.memory_space<vmem>>, %arg6: memref<1x8xf32, #tpu.memory_space<vmem>>, %arg7: memref<16x32xbf16, #tpu.memory_space<vmem>>, %arg8: memref<8x32xbf16, #tpu.memory_space<vmem>>, %arg9: memref<1x32xf32, #tpu.memory_space<vmem>>, %arg10: memref<1x32xf32, #tpu.memory_space<vmem>>, %arg11: memref<128x32xbf16, #tpu.memory_space<vmem>>) attributes {dimension_semantics = [#tpu.dimension_semantics<parallel>], iteration_bounds = array<i64: 1>, scalar_prefetch = 0 : i64, scratch_operands = 0 : i64, tpu.core_type = #tpu.core_type<tc>, window_params = [{transform_indices = @transform_0, window_bounds = array<i64: 128, 16>}, {transform_indices = @transform_1, window_bounds = array<i64: 128, 8>}, {pipeline_mode = #tpu.pipeline_mode<synchronous>, transform_indices = @transform_2, window_bounds = array<i64: 1, 16>}, {pipeline_mode = #tpu.pipeline_mode<synchronous>, transform_indices = @transform_3, window_bounds = array<i64: 1, 8>}, {pipeline_mode = #tpu.pipeline_mode<synchronous>, transform_indices = @transform_4, window_bounds = array<i64: 1, 16>}, {pipeline_mode = #tpu.pipeline_mode<synchronous>, transform_indices = @transform_5, window_bounds = array<i64: 1, 8>}, {pipeline_mode = #tpu.pipeline_mode<synchronous>, transform_indices = @transform_6, window_bounds = array<i64: 16, 32>}, {pipeline_mode = #tpu.pipeline_mode<synchronous>, transform_indices = @transform_7, window_bounds = array<i64: 8, 32>}, {pipeline_mode = #tpu.pipeline_mode<synchronous>, transform_indices = @transform_8, window_bounds = array<i64: 1, 32>}, {pipeline_mode = #tpu.pipeline_mode<synchronous>, transform_indices = @transform_9, window_bounds = array<i64: 1, 32>}, {transform_indices = @transform_10, window_bounds = array<i64: 128, 32>}]} {
    %cst = arith.constant 0.000000e+00 : f32
    %0 = vector.broadcast %cst : f32 to vector<128x32xf32>
    %c0 = arith.constant 0 : index
    %c0_0 = arith.constant 0 : index
    %1 = vector.load %arg1[%c0, %c0_0] : memref<128x16xbf16, #tpu.memory_space<vmem>>, vector<128x16xbf16>
    %2 = arith.extf %1 : vector<128x16xbf16> to vector<128x16xf32>
    %c0_1 = arith.constant 0 : index
    %c0_2 = arith.constant 0 : index
    %3 = vector.load %arg3[%c0_1, %c0_2] : memref<1x16xf32, #tpu.memory_space<vmem>>, vector<1x16xf32>
    %4 = vector.broadcast %3 : vector<1x16xf32> to vector<128x16xf32>
    %5 = arith.mulf %2, %4 : vector<128x16xf32>
    %c0_3 = arith.constant 0 : index
    %c0_4 = arith.constant 0 : index
    %6 = vector.load %arg5[%c0_3, %c0_4] : memref<1x16xf32, #tpu.memory_space<vmem>>, vector<1x16xf32>
    %7 = vector.broadcast %6 : vector<1x16xf32> to vector<128x16xf32>
    %8 = arith.addf %5, %7 : vector<128x16xf32>
    %cst_5 = arith.constant 0.000000e+00 : f32
    %9 = vector.broadcast %cst_5 : f32 to vector<128x16xf32>
    %10 = arith.maximumf %8, %9 : vector<128x16xf32>
    %11 = arith.truncf %10 : vector<128x16xf32> to vector<128x16xbf16>
    %c0_6 = arith.constant 0 : index
    %c0_7 = arith.constant 0 : index
    %12 = vector.load %arg7[%c0_6, %c0_7] : memref<16x32xbf16, #tpu.memory_space<vmem>>, vector<16x32xbf16>
    %cst_8 = arith.constant dense<0.000000e+00> : vector<128x32xf32>
    %13 = tpu.matmul %11, %12, %cst_8 {dimension_numbers = #tpu.dot_dimension_numbers<[1], [0], [0], [1], [0, 0, 1, 1], [], []>} : vector<128x16xbf16>, vector<16x32xbf16>, vector<128x32xf32> -> vector<128x32xf32>
    %14 = arith.addf %0, %13 : vector<128x32xf32>
    %c0_9 = arith.constant 0 : index
    %c0_10 = arith.constant 0 : index
    %15 = vector.load %arg2[%c0_9, %c0_10] : memref<128x8xbf16, #tpu.memory_space<vmem>>, vector<128x8xbf16>
    %16 = arith.extf %15 : vector<128x8xbf16> to vector<128x8xf32>
    %c0_11 = arith.constant 0 : index
    %c0_12 = arith.constant 0 : index
    %17 = vector.load %arg4[%c0_11, %c0_12] : memref<1x8xf32, #tpu.memory_space<vmem>>, vector<1x8xf32>
    %18 = vector.broadcast %17 : vector<1x8xf32> to vector<128x8xf32>
    %19 = arith.mulf %16, %18 : vector<128x8xf32>
    %c0_13 = arith.constant 0 : index
    %c0_14 = arith.constant 0 : index
    %20 = vector.load %arg6[%c0_13, %c0_14] : memref<1x8xf32, #tpu.memory_space<vmem>>, vector<1x8xf32>
    %21 = vector.broadcast %20 : vector<1x8xf32> to vector<128x8xf32>
    %22 = arith.addf %19, %21 : vector<128x8xf32>
    %cst_15 = arith.constant 0.000000e+00 : f32
    %23 = vector.broadcast %cst_15 : f32 to vector<128x8xf32>
    %24 = arith.maximumf %22, %23 : vector<128x8xf32>
    %25 = arith.truncf %24 : vector<128x8xf32> to vector<128x8xbf16>
    %c0_16 = arith.constant 0 : index
    %c0_17 = arith.constant 0 : index
    %26 = vector.load %arg8[%c0_16, %c0_17] : memref<8x32xbf16, #tpu.memory_space<vmem>>, vector<8x32xbf16>
    %cst_18 = arith.constant dense<0.000000e+00> : vector<128x32xf32>
    %27 = tpu.matmul %25, %26, %cst_18 {dimension_numbers = #tpu.dot_dimension_numbers<[1], [0], [0], [1], [0, 0, 1, 1], [], []>} : vector<128x8xbf16>, vector<8x32xbf16>, vector<128x32xf32> -> vector<128x32xf32>
    %28 = arith.addf %14, %27 : vector<128x32xf32>
    %c0_19 = arith.constant 0 : index
    %c0_20 = arith.constant 0 : index
    %29 = vector.load %arg9[%c0_19, %c0_20] : memref<1x32xf32, #tpu.memory_space<vmem>>, vector<1x32xf32>
    %30 = vector.broadcast %29 : vector<1x32xf32> to vector<128x32xf32>
    %31 = arith.mulf %28, %30 : vector<128x32xf32>
    %c0_21 = arith.constant 0 : index
    %c0_22 = arith.constant 0 : index
    %32 = vector.load %arg10[%c0_21, %c0_22] : memref<1x32xf32, #tpu.memory_space<vmem>>, vector<1x32xf32>
    %33 = vector.broadcast %32 : vector<1x32xf32> to vector<128x32xf32>
    %34 = arith.addf %31, %33 : vector<128x32xf32>
    %cst_23 = arith.constant 0.000000e+00 : f32
    %35 = vector.broadcast %cst_23 : f32 to vector<128x32xf32>
    %36 = arith.maximumf %34, %35 : vector<128x32xf32>
    %37 = arith.truncf %36 : vector<128x32xf32> to vector<128x32xbf16>
    %c0_24 = arith.constant 0 : index
    %c0_25 = arith.constant 0 : index
    %38 = vector.load %arg11[%c0_24, %c0_25] : memref<128x32xbf16, #tpu.memory_space<vmem>>, vector<128x32xbf16>
    tpu.vector_store %arg11[%c0_24, %c0_25], %37 {strides = array<i32>} : memref<128x32xbf16, #tpu.memory_space<vmem>>, vector<128x32xbf16>,
    return
  }
  func.func @transform_0(%arg0: i32) -> (i32, i32) {
    %c0_i32 = arith.constant 0 : i32
    %c0_i32_0 = arith.constant 0 : i32
    return %arg0, %c0_i32 : i32, i32
  }
  func.func @transform_1(%arg0: i32) -> (i32, i32) {
    %c0_i32 = arith.constant 0 : i32
    %c0_i32_0 = arith.constant 0 : i32
    return %arg0, %c0_i32 : i32, i32
  }
  func.func @transform_2(%arg0: i32) -> (i32, i32) {
    %c0_i32 = arith.constant 0 : i32
    %c0_i32_0 = arith.constant 0 : i32
    %c0_i32_1 = arith.constant 0 : i32
    return %c0_i32, %c0_i32_0 : i32, i32
  }
  func.func @transform_3(%arg0: i32) -> (i32, i32) {
    %c0_i32 = arith.constant 0 : i32
    %c0_i32_0 = arith.constant 0 : i32
    %c0_i32_1 = arith.constant 0 : i32
    return %c0_i32, %c0_i32_0 : i32, i32
  }
  func.func @transform_4(%arg0: i32) -> (i32, i32) {
    %c0_i32 = arith.constant 0 : i32
    %c0_i32_0 = arith.constant 0 : i32
    %c0_i32_1 = arith.constant 0 : i32
    return %c0_i32, %c0_i32_0 : i32, i32
  }
  func.func @transform_5(%arg0: i32) -> (i32, i32) {
    %c0_i32 = arith.constant 0 : i32
    %c0_i32_0 = arith.constant 0 : i32
    %c0_i32_1 = arith.constant 0 : i32
    return %c0_i32, %c0_i32_0 : i32, i32
  }
  func.func @transform_6(%arg0: i32) -> (i32, i32) {
    %c0_i32 = arith.constant 0 : i32
    %c0_i32_0 = arith.constant 0 : i32
    %c0_i32_1 = arith.constant 0 : i32
    return %c0_i32, %c0_i32_0 : i32, i32
  }
  func.func @transform_7(%arg0: i32) -> (i32, i32) {
    %c0_i32 = arith.constant 0 : i32
    %c0_i32_0 = arith.constant 0 : i32
    %c0_i32_1 = arith.constant 0 : i32
    return %c0_i32, %c0_i32_0 : i32, i32
  }
  func.func @transform_8(%arg0: i32) -> (i32, i32) {
    %c0_i32 = arith.constant 0 : i32
    %c0_i32_0 = arith.constant 0 : i32
    %c0_i32_1 = arith.constant 0 : i32
    return %c0_i32, %c0_i32_0 : i32, i32
  }
  func.func @transform_9(%arg0: i32) -> (i32, i32) {
    %c0_i32 = arith.constant 0 : i32
    %c0_i32_0 = arith.constant 0 : i32
    %c0_i32_1 = arith.constant 0 : i32
    return %c0_i32, %c0_i32_0 : i32, i32
  }
  func.func @transform_10(%arg0: i32) -> (i32, i32) {
    %c0_i32 = arith.constant 0 : i32
    %c0_i32_0 = arith.constant 0 : i32
    return %arg0, %c0_i32 : i32, i32
  }
}

module attributes {stable_mosaic.version = 11 : i64} {
  func.func @kernel(%arg0: i32, %arg1: memref<32x16xbf16, #tpu.memory_space<vmem>>, %arg2: memref<32x16xbf16, #tpu.memory_space<vmem>>, %arg3: memref<32x16xbf16, #tpu.memory_space<vmem>>, %arg4: memref<32x16xbf16, #tpu.memory_space<vmem>>, %arg5: memref<32x16xbf16, #tpu.memory_space<vmem>>) attributes {dimension_semantics = [#tpu.dimension_semantics<parallel>], iteration_bounds = array<i64: 1>, scalar_prefetch = 0 : i64, scratch_operands = 0 : i64, tpu.core_type = #tpu.core_type<tc>, window_params = [{transform_indices = @transform_0, window_bounds = array<i64: 32, 16>}, {transform_indices = @transform_1, window_bounds = array<i64: 32, 16>}, {transform_indices = @transform_2, window_bounds = array<i64: 32, 16>}, {transform_indices = @transform_3, window_bounds = array<i64: 32, 16>}, {transform_indices = @transform_4, window_bounds = array<i64: 32, 16>}]} {
    %c0 = arith.constant 0 : index
    %c0_0 = arith.constant 0 : index
    %0 = vector.load %arg1[%c0, %c0_0] : memref<32x16xbf16, #tpu.memory_space<vmem>>, vector<32x16xbf16>
    %1 = arith.extf %0 : vector<32x16xbf16> to vector<32x16xf32>
    %c0_1 = arith.constant 0 : index
    %c0_2 = arith.constant 0 : index
    %2 = vector.load %arg2[%c0_1, %c0_2] : memref<32x16xbf16, #tpu.memory_space<vmem>>, vector<32x16xbf16>
    %3 = arith.extf %2 : vector<32x16xbf16> to vector<32x16xf32>
    %4 = arith.addf %1, %3 : vector<32x16xf32>
    %c0_3 = arith.constant 0 : index
    %c0_4 = arith.constant 0 : index
    %5 = vector.load %arg3[%c0_3, %c0_4] : memref<32x16xbf16, #tpu.memory_space<vmem>>, vector<32x16xbf16>
    %6 = arith.extf %5 : vector<32x16xbf16> to vector<32x16xf32>
    %7 = arith.addf %4, %6 : vector<32x16xf32>
    %c0_5 = arith.constant 0 : index
    %c0_6 = arith.constant 0 : index
    %8 = vector.load %arg4[%c0_5, %c0_6] : memref<32x16xbf16, #tpu.memory_space<vmem>>, vector<32x16xbf16>
    %9 = arith.extf %8 : vector<32x16xbf16> to vector<32x16xf32>
    %10 = arith.addf %7, %9 : vector<32x16xf32>
    %cst = arith.constant 2.500000e-01 : f32
    %11 = vector.broadcast %cst : f32 to vector<32x16xf32>
    %12 = arith.mulf %10, %11 : vector<32x16xf32>
    %13 = arith.truncf %12 : vector<32x16xf32> to vector<32x16xbf16>
    %c0_7 = arith.constant 0 : index
    %c0_8 = arith.constant 0 : index
    %14 = vector.load %arg5[%c0_7, %c0_8] : memref<32x16xbf16, #tpu.memory_space<vmem>>, vector<32x16xbf16>
    tpu.vector_store %arg5[%c0_7, %c0_8], %13 {strides = array<i32>} : memref<32x16xbf16, #tpu.memory_space<vmem>>, vector<32x16xbf16>,
    return
  }
  func.func @transform_0(%arg0: i32) -> (i32, i32) {
    %c0_i32 = arith.constant 0 : i32
    %c0_i32_0 = arith.constant 0 : i32
    return %arg0, %c0_i32 : i32, i32
  }
  func.func @transform_1(%arg0: i32) -> (i32, i32) {
    %c0_i32 = arith.constant 0 : i32
    %c0_i32_0 = arith.constant 0 : i32
    return %arg0, %c0_i32 : i32, i32
  }
  func.func @transform_2(%arg0: i32) -> (i32, i32) {
    %c0_i32 = arith.constant 0 : i32
    %c0_i32_0 = arith.constant 0 : i32
    return %arg0, %c0_i32 : i32, i32
  }
  func.func @transform_3(%arg0: i32) -> (i32, i32) {
    %c0_i32 = arith.constant 0 : i32
    %c0_i32_0 = arith.constant 0 : i32
    return %arg0, %c0_i32 : i32, i32
  }
  func.func @transform_4(%arg0: i32) -> (i32, i32) {
    %c0_i32 = arith.constant 0 : i32
    %c0_i32_0 = arith.constant 0 : i32
    return %arg0, %c0_i32 : i32, i32
  }
}

module attributes {stable_mosaic.version = 11 : i64} {
  func.func @kernel(%arg0: i32, %arg1: memref<32x16xbf16, #tpu.memory_space<vmem>>, %arg2: memref<1x16xf32, #tpu.memory_space<vmem>>, %arg3: memref<1x16xf32, #tpu.memory_space<vmem>>, %arg4: memref<16x32xbf16, #tpu.memory_space<vmem>>, %arg5: memref<1x32xf32, #tpu.memory_space<vmem>>, %arg6: memref<1x32xf32, #tpu.memory_space<vmem>>, %arg7: memref<32x32xbf16, #tpu.memory_space<vmem>>) attributes {dimension_semantics = [#tpu.dimension_semantics<parallel>], iteration_bounds = array<i64: 1>, scalar_prefetch = 0 : i64, scratch_operands = 0 : i64, tpu.core_type = #tpu.core_type<tc>, window_params = [{transform_indices = @transform_0, window_bounds = array<i64: 32, 16>}, {pipeline_mode = #tpu.pipeline_mode<synchronous>, transform_indices = @transform_1, window_bounds = array<i64: 1, 16>}, {pipeline_mode = #tpu.pipeline_mode<synchronous>, transform_indices = @transform_2, window_bounds = array<i64: 1, 16>}, {pipeline_mode = #tpu.pipeline_mode<synchronous>, transform_indices = @transform_3, window_bounds = array<i64: 16, 32>}, {pipeline_mode = #tpu.pipeline_mode<synchronous>, transform_indices = @transform_4, window_bounds = array<i64: 1, 32>}, {pipeline_mode = #tpu.pipeline_mode<synchronous>, transform_indices = @transform_5, window_bounds = array<i64: 1, 32>}, {transform_indices = @transform_6, window_bounds = array<i64: 32, 32>}]} {
    %cst = arith.constant 0.000000e+00 : f32
    %0 = vector.broadcast %cst : f32 to vector<32x32xf32>
    %c0 = arith.constant 0 : index
    %c0_0 = arith.constant 0 : index
    %1 = vector.load %arg1[%c0, %c0_0] : memref<32x16xbf16, #tpu.memory_space<vmem>>, vector<32x16xbf16>
    %2 = arith.extf %1 : vector<32x16xbf16> to vector<32x16xf32>
    %c0_1 = arith.constant 0 : index
    %c0_2 = arith.constant 0 : index
    %3 = vector.load %arg2[%c0_1, %c0_2] : memref<1x16xf32, #tpu.memory_space<vmem>>, vector<1x16xf32>
    %4 = vector.broadcast %3 : vector<1x16xf32> to vector<32x16xf32>
    %5 = arith.mulf %2, %4 : vector<32x16xf32>
    %c0_3 = arith.constant 0 : index
    %c0_4 = arith.constant 0 : index
    %6 = vector.load %arg3[%c0_3, %c0_4] : memref<1x16xf32, #tpu.memory_space<vmem>>, vector<1x16xf32>
    %7 = vector.broadcast %6 : vector<1x16xf32> to vector<32x16xf32>
    %8 = arith.addf %5, %7 : vector<32x16xf32>
    %cst_5 = arith.constant 0.000000e+00 : f32
    %9 = vector.broadcast %cst_5 : f32 to vector<32x16xf32>
    %10 = arith.maximumf %8, %9 : vector<32x16xf32>
    %11 = arith.truncf %10 : vector<32x16xf32> to vector<32x16xbf16>
    %c0_6 = arith.constant 0 : index
    %c0_7 = arith.constant 0 : index
    %12 = vector.load %arg4[%c0_6, %c0_7] : memref<16x32xbf16, #tpu.memory_space<vmem>>, vector<16x32xbf16>
    %cst_8 = arith.constant dense<0.000000e+00> : vector<32x32xf32>
    %13 = tpu.matmul %11, %12, %cst_8 {dimension_numbers = #tpu.dot_dimension_numbers<[1], [0], [0], [1], [0, 0, 1, 1], [], []>} : vector<32x16xbf16>, vector<16x32xbf16>, vector<32x32xf32> -> vector<32x32xf32>
    %14 = arith.addf %0, %13 : vector<32x32xf32>
    %c0_9 = arith.constant 0 : index
    %c0_10 = arith.constant 0 : index
    %15 = vector.load %arg5[%c0_9, %c0_10] : memref<1x32xf32, #tpu.memory_space<vmem>>, vector<1x32xf32>
    %16 = vector.broadcast %15 : vector<1x32xf32> to vector<32x32xf32>
    %17 = arith.mulf %14, %16 : vector<32x32xf32>
    %c0_11 = arith.constant 0 : index
    %c0_12 = arith.constant 0 : index
    %18 = vector.load %arg6[%c0_11, %c0_12] : memref<1x32xf32, #tpu.memory_space<vmem>>, vector<1x32xf32>
    %19 = vector.broadcast %18 : vector<1x32xf32> to vector<32x32xf32>
    %20 = arith.addf %17, %19 : vector<32x32xf32>
    %cst_13 = arith.constant 0.000000e+00 : f32
    %21 = vector.broadcast %cst_13 : f32 to vector<32x32xf32>
    %22 = arith.maximumf %20, %21 : vector<32x32xf32>
    %23 = arith.truncf %22 : vector<32x32xf32> to vector<32x32xbf16>
    %c0_14 = arith.constant 0 : index
    %c0_15 = arith.constant 0 : index
    %24 = vector.load %arg7[%c0_14, %c0_15] : memref<32x32xbf16, #tpu.memory_space<vmem>>, vector<32x32xbf16>
    tpu.vector_store %arg7[%c0_14, %c0_15], %23 {strides = array<i32>} : memref<32x32xbf16, #tpu.memory_space<vmem>>, vector<32x32xbf16>,
    return
  }
  func.func @transform_0(%arg0: i32) -> (i32, i32) {
    %c0_i32 = arith.constant 0 : i32
    %c0_i32_0 = arith.constant 0 : i32
    return %arg0, %c0_i32 : i32, i32
  }
  func.func @transform_1(%arg0: i32) -> (i32, i32) {
    %c0_i32 = arith.constant 0 : i32
    %c0_i32_0 = arith.constant 0 : i32
    %c0_i32_1 = arith.constant 0 : i32
    return %c0_i32, %c0_i32_0 : i32, i32
  }
  func.func @transform_2(%arg0: i32) -> (i32, i32) {
    %c0_i32 = arith.constant 0 : i32
    %c0_i32_0 = arith.constant 0 : i32
    %c0_i32_1 = arith.constant 0 : i32
    return %c0_i32, %c0_i32_0 : i32, i32
  }
  func.func @transform_3(%arg0: i32) -> (i32, i32) {
    %c0_i32 = arith.constant 0 : i32
    %c0_i32_0 = arith.constant 0 : i32
    %c0_i32_1 = arith.constant 0 : i32
    return %c0_i32, %c0_i32_0 : i32, i32
  }
  func.func @transform_4(%arg0: i32) -> (i32, i32) {
    %c0_i32 = arith.constant 0 : i32
    %c0_i32_0 = arith.constant 0 : i32
    %c0_i32_1 = arith.constant 0 : i32
    return %c0_i32, %c0_i32_0 : i32, i32
  }
  func.func @transform_5(%arg0: i32) -> (i32, i32) {
    %c0_i32 = arith.constant 0 : i32
    %c0_i32_0 = arith.constant 0 : i32
    %c0_i32_1 = arith.constant 0 : i32
    return %c0_i32, %c0_i32_0 : i32, i32
  }
  func.func @transform_6(%arg0: i32) -> (i32, i32) {
    %c0_i32 = arith.constant 0 : i32
    %c0_i32_0 = arith.constant 0 : i32
    return %arg0, %c0_i32 : i32, i32
  }
}

module attributes {stable_mosaic.version = 11 : i64} {
  func.func @kernel(%arg0: i32, %arg1: memref<1x42x32xbf16, #tpu.memory_space<vmem>>, %arg2: memref<9x32x8xbf16, #tpu.memory_space<vmem>>, %arg3: memref<1x24x8xbf16, #tpu.memory_space<vmem>>) attributes {dimension_semantics = [#tpu.dimension_semantics<parallel>], iteration_bounds = array<i64: 2>, scalar_prefetch = 0 : i64, scratch_operands = 0 : i64, tpu.core_type = #tpu.core_type<tc>, window_params = [{transform_indices = @transform_0, window_bounds = array<i64: 1, 42, 32>}, {pipeline_mode = #tpu.pipeline_mode<synchronous>, transform_indices = @transform_1, window_bounds = array<i64: 9, 32, 8>}, {transform_indices = @transform_2, window_bounds = array<i64: 1, 24, 8>}]} {
    %cst = arith.constant 0.000000e+00 : f32
    %0 = vector.broadcast %cst : f32 to vector<24x8xf32>
    %c0 = arith.constant 0 : index
    %c0_0 = arith.constant 0 : index
    %c0_1 = arith.constant 0 : index
    %1 = vector.load %arg1[%c0, %c0_0, %c0_1] : memref<1x42x32xbf16, #tpu.memory_space<vmem>>, vector<1x24x32xbf16>
    %2 = vector.shape_cast %1 : vector<1x24x32xbf16> to vector<24x32xbf16>
    %c0_2 = arith.constant 0 : index
    %c0_3 = arith.constant 0 : index
    %c0_4 = arith.constant 0 : index
    %3 = vector.load %arg2[%c0_2, %c0_3, %c0_4] : memref<9x32x8xbf16, #tpu.memory_space<vmem>>, vector<1x32x8xbf16>
    %4 = vector.shape_cast %3 : vector<1x32x8xbf16> to vector<32x8xbf16>
    %cst_5 = arith.constant dense<0.000000e+00> : vector<24x8xf32>
    %5 = tpu.matmul %2, %4, %cst_5 {dimension_numbers = #tpu.dot_dimension_numbers<[1], [0], [0], [1], [0, 0, 1, 1], [], []>} : vector<24x32xbf16>, vector<32x8xbf16>, vector<24x8xf32> -> vector<24x8xf32>
    %6 = arith.addf %0, %5 : vector<24x8xf32>
    %c0_6 = arith.constant 0 : index
    %c1 = arith.constant 1 : index
    %c0_7 = arith.constant 0 : index
    %7 = vector.load %arg1[%c0_6, %c1, %c0_7] : memref<1x42x32xbf16, #tpu.memory_space<vmem>>, vector<1x24x32xbf16>
    %8 = vector.shape_cast %7 : vector<1x24x32xbf16> to vector<24x32xbf16>
    %c1_8 = arith.constant 1 : index
    %c0_9 = arith.constant 0 : index
    %c0_10 = arith.constant 0 : index
    %9 = vector.load %arg2[%c1_8, %c0_9, %c0_10] : memref<9x32x8xbf16, #tpu.memory_space<vmem>>, vector<1x32x8xbf16>
    %10 = vector.shape_cast %9 : vector<1x32x8xbf16> to vector<32x8xbf16>
    %cst_11 = arith.constant dense<0.000000e+00> : vector<24x8xf32>
    %11 = tpu.matmul %8, %10, %cst_11 {dimension_numbers = #tpu.dot_dimension_numbers<[1], [0], [0], [1], [0, 0, 1, 1], [], []>} : vector<24x32xbf16>, vector<32x8xbf16>, vector<24x8xf32> -> vector<24x8xf32>
    %12 = arith.addf %6, %11 : vector<24x8xf32>
    %c0_12 = arith.constant 0 : index
    %c2 = arith.constant 2 : index
    %c0_13 = arith.constant 0 : index
    %13 = vector.load %arg1[%c0_12, %c2, %c0_13] : memref<1x42x32xbf16, #tpu.memory_space<vmem>>, vector<1x24x32xbf16>
    %14 = vector.shape_cast %13 : vector<1x24x32xbf16> to vector<24x32xbf16>
    %c2_14 = arith.constant 2 : index
    %c0_15 = arith.constant 0 : index
    %c0_16 = arith.constant 0 : index
    %15 = vector.load %arg2[%c2_14, %c0_15, %c0_16] : memref<9x32x8xbf16, #tpu.memory_space<vmem>>, vector<1x32x8xbf16>
    %16 = vector.shape_cast %15 : vector<1x32x8xbf16> to vector<32x8xbf16>
    %cst_17 = arith.constant dense<0.000000e+00> : vector<24x8xf32>
    %17 = tpu.matmul %14, %16, %cst_17 {dimension_numbers = #tpu.dot_dimension_numbers<[1], [0], [0], [1], [0, 0, 1, 1], [], []>} : vector<24x32xbf16>, vector<32x8xbf16>, vector<24x8xf32> -> vector<24x8xf32>
    %18 = arith.addf %12, %17 : vector<24x8xf32>
    %c0_18 = arith.constant 0 : index
    %c6 = arith.constant 6 : index
    %c0_19 = arith.constant 0 : index
    %19 = vector.load %arg1[%c0_18, %c6, %c0_19] : memref<1x42x32xbf16, #tpu.memory_space<vmem>>, vector<1x24x32xbf16>
    %20 = vector.shape_cast %19 : vector<1x24x32xbf16> to vector<24x32xbf16>
    %c3 = arith.constant 3 : index
    %c0_20 = arith.constant 0 : index
    %c0_21 = arith.constant 0 : index
    %21 = vector.load %arg2[%c3, %c0_20, %c0_21] : memref<9x32x8xbf16, #tpu.memory_space<vmem>>, vector<1x32x8xbf16>
    %22 = vector.shape_cast %21 : vector<1x32x8xbf16> to vector<32x8xbf16>
    %cst_22 = arith.constant dense<0.000000e+00> : vector<24x8xf32>
    %23 = tpu.matmul %20, %22, %cst_22 {dimension_numbers = #tpu.dot_dimension_numbers<[1], [0], [0], [1], [0, 0, 1, 1], [], []>} : vector<24x32xbf16>, vector<32x8xbf16>, vector<24x8xf32> -> vector<24x8xf32>
    %24 = arith.addf %18, %23 : vector<24x8xf32>
    %c0_23 = arith.constant 0 : index
    %c7 = arith.constant 7 : index
    %c0_24 = arith.constant 0 : index
    %25 = vector.load %arg1[%c0_23, %c7, %c0_24] : memref<1x42x32xbf16, #tpu.memory_space<vmem>>, vector<1x24x32xbf16>
    %26 = vector.shape_cast %25 : vector<1x24x32xbf16> to vector<24x32xbf16>
    %c4 = arith.constant 4 : index
    %c0_25 = arith.constant 0 : index
    %c0_26 = arith.constant 0 : index
    %27 = vector.load %arg2[%c4, %c0_25, %c0_26] : memref<9x32x8xbf16, #tpu.memory_space<vmem>>, vector<1x32x8xbf16>
    %28 = vector.shape_cast %27 : vector<1x32x8xbf16> to vector<32x8xbf16>
    %cst_27 = arith.constant dense<0.000000e+00> : vector<24x8xf32>
    %29 = tpu.matmul %26, %28, %cst_27 {dimension_numbers = #tpu.dot_dimension_numbers<[1], [0], [0], [1], [0, 0, 1, 1], [], []>} : vector<24x32xbf16>, vector<32x8xbf16>, vector<24x8xf32> -> vector<24x8xf32>
    %30 = arith.addf %24, %29 : vector<24x8xf32>
    %c0_28 = arith.constant 0 : index
    %c8 = arith.constant 8 : index
    %c0_29 = arith.constant 0 : index
    %31 = vector.load %arg1[%c0_28, %c8, %c0_29] : memref<1x42x32xbf16, #tpu.memory_space<vmem>>, vector<1x24x32xbf16>
    %32 = vector.shape_cast %31 : vector<1x24x32xbf16> to vector<24x32xbf16>
    %c5 = arith.constant 5 : index
    %c0_30 = arith.constant 0 : index
    %c0_31 = arith.constant 0 : index
    %33 = vector.load %arg2[%c5, %c0_30, %c0_31] : memref<9x32x8xbf16, #tpu.memory_space<vmem>>, vector<1x32x8xbf16>
    %34 = vector.shape_cast %33 : vector<1x32x8xbf16> to vector<32x8xbf16>
    %cst_32 = arith.constant dense<0.000000e+00> : vector<24x8xf32>
    %35 = tpu.matmul %32, %34, %cst_32 {dimension_numbers = #tpu.dot_dimension_numbers<[1], [0], [0], [1], [0, 0, 1, 1], [], []>} : vector<24x32xbf16>, vector<32x8xbf16>, vector<24x8xf32> -> vector<24x8xf32>
    %36 = arith.addf %30, %35 : vector<24x8xf32>
    %c0_33 = arith.constant 0 : index
    %c12 = arith.constant 12 : index
    %c0_34 = arith.constant 0 : index
    %37 = vector.load %arg1[%c0_33, %c12, %c0_34] : memref<1x42x32xbf16, #tpu.memory_space<vmem>>, vector<1x24x32xbf16>
    %38 = vector.shape_cast %37 : vector<1x24x32xbf16> to vector<24x32xbf16>
    %c6_35 = arith.constant 6 : index
    %c0_36 = arith.constant 0 : index
    %c0_37 = arith.constant 0 : index
    %39 = vector.load %arg2[%c6_35, %c0_36, %c0_37] : memref<9x32x8xbf16, #tpu.memory_space<vmem>>, vector<1x32x8xbf16>
    %40 = vector.shape_cast %39 : vector<1x32x8xbf16> to vector<32x8xbf16>
    %cst_38 = arith.constant dense<0.000000e+00> : vector<24x8xf32>
    %41 = tpu.matmul %38, %40, %cst_38 {dimension_numbers = #tpu.dot_dimension_numbers<[1], [0], [0], [1], [0, 0, 1, 1], [], []>} : vector<24x32xbf16>, vector<32x8xbf16>, vector<24x8xf32> -> vector<24x8xf32>
    %42 = arith.addf %36, %41 : vector<24x8xf32>
    %c0_39 = arith.constant 0 : index
    %c13 = arith.constant 13 : index
    %c0_40 = arith.constant 0 : index
    %43 = vector.load %arg1[%c0_39, %c13, %c0_40] : memref<1x42x32xbf16, #tpu.memory_space<vmem>>, vector<1x24x32xbf16>
    %44 = vector.shape_cast %43 : vector<1x24x32xbf16> to vector<24x32xbf16>
    %c7_41 = arith.constant 7 : index
    %c0_42 = arith.constant 0 : index
    %c0_43 = arith.constant 0 : index
    %45 = vector.load %arg2[%c7_41, %c0_42, %c0_43] : memref<9x32x8xbf16, #tpu.memory_space<vmem>>, vector<1x32x8xbf16>
    %46 = vector.shape_cast %45 : vector<1x32x8xbf16> to vector<32x8xbf16>
    %cst_44 = arith.constant dense<0.000000e+00> : vector<24x8xf32>
    %47 = tpu.matmul %44, %46, %cst_44 {dimension_numbers = #tpu.dot_dimension_numbers<[1], [0], [0], [1], [0, 0, 1, 1], [], []>} : vector<24x32xbf16>, vector<32x8xbf16>, vector<24x8xf32> -> vector<24x8xf32>
    %48 = arith.addf %42, %47 : vector<24x8xf32>
    %c0_45 = arith.constant 0 : index
    %c14 = arith.constant 14 : index
    %c0_46 = arith.constant 0 : index
    %49 = vector.load %arg1[%c0_45, %c14, %c0_46] : memref<1x42x32xbf16, #tpu.memory_space<vmem>>, vector<1x24x32xbf16>
    %50 = vector.shape_cast %49 : vector<1x24x32xbf16> to vector<24x32xbf16>
    %c8_47 = arith.constant 8 : index
    %c0_48 = arith.constant 0 : index
    %c0_49 = arith.constant 0 : index
    %51 = vector.load %arg2[%c8_47, %c0_48, %c0_49] : memref<9x32x8xbf16, #tpu.memory_space<vmem>>, vector<1x32x8xbf16>
    %52 = vector.shape_cast %51 : vector<1x32x8xbf16> to vector<32x8xbf16>
    %cst_50 = arith.constant dense<0.000000e+00> : vector<24x8xf32>
    %53 = tpu.matmul %50, %52, %cst_50 {dimension_numbers = #tpu.dot_dimension_numbers<[1], [0], [0], [1], [0, 0, 1, 1], [], []>} : vector<24x32xbf16>, vector<32x8xbf16>, vector<24x8xf32> -> vector<24x8xf32>
    %54 = arith.addf %48, %53 : vector<24x8xf32>
    %55 = arith.truncf %54 : vector<24x8xf32> to vector<24x8xbf16>
    %c0_51 = arith.constant 0 : index
    %c0_52 = arith.constant 0 : index
    %c0_53 = arith.constant 0 : index
    %56 = vector.load %arg3[%c0_51, %c0_52, %c0_53] : memref<1x24x8xbf16, #tpu.memory_space<vmem>>, vector<1x24x8xbf16>
    %57 = vector.shape_cast %56 : vector<1x24x8xbf16> to vector<24x8xbf16>
    %58 = vector.shape_cast %55 : vector<24x8xbf16> to vector<1x24x8xbf16>
    tpu.vector_store %arg3[%c0_51, %c0_52, %c0_53], %58 {strides = array<i32>} : memref<1x24x8xbf16, #tpu.memory_space<vmem>>, vector<1x24x8xbf16>,
    return
  }
  func.func @transform_0(%arg0: i32) -> (i32, i32, i32) {
    %c0_i32 = arith.constant 0 : i32
    %c0_i32_0 = arith.constant 0 : i32
    %c0_i32_1 = arith.constant 0 : i32
    return %arg0, %c0_i32, %c0_i32_0 : i32, i32, i32
  }
  func.func @transform_1(%arg0: i32) -> (i32, i32, i32) {
    %c0_i32 = arith.constant 0 : i32
    %c0_i32_0 = arith.constant 0 : i32
    %c0_i32_1 = arith.constant 0 : i32
    %c0_i32_2 = arith.constant 0 : i32
    return %c0_i32, %c0_i32_0, %c0_i32_1 : i32, i32, i32
  }
  func.func @transform_2(%arg0: i32) -> (i32, i32, i32) {
    %c0_i32 = arith.constant 0 : i32
    %c0_i32_0 = arith.constant 0 : i32
    %c0_i32_1 = arith.constant 0 : i32
    return %arg0, %c0_i32, %c0_i32_0 : i32, i32, i32
  }
}

module attributes {stable_mosaic.version = 11 : i64} {
  func.func @kernel(%arg0: i32, %arg1: memref<32x16xbf16, #tpu.memory_space<vmem>>, %arg2: memref<32x8xbf16, #tpu.memory_space<vmem>>, %arg3: memref<1x16xf32, #tpu.memory_space<vmem>>, %arg4: memref<1x8xf32, #tpu.memory_space<vmem>>, %arg5: memref<1x16xf32, #tpu.memory_space<vmem>>, %arg6: memref<1x8xf32, #tpu.memory_space<vmem>>, %arg7: memref<16x32xbf16, #tpu.memory_space<vmem>>, %arg8: memref<8x32xbf16, #tpu.memory_space<vmem>>, %arg9: memref<1x32xf32, #tpu.memory_space<vmem>>, %arg10: memref<1x32xf32, #tpu.memory_space<vmem>>, %arg11: memref<32x32xbf16, #tpu.memory_space<vmem>>) attributes {dimension_semantics = [#tpu.dimension_semantics<parallel>], iteration_bounds = array<i64: 1>, scalar_prefetch = 0 : i64, scratch_operands = 0 : i64, tpu.core_type = #tpu.core_type<tc>, window_params = [{transform_indices = @transform_0, window_bounds = array<i64: 32, 16>}, {transform_indices = @transform_1, window_bounds = array<i64: 32, 8>}, {pipeline_mode = #tpu.pipeline_mode<synchronous>, transform_indices = @transform_2, window_bounds = array<i64: 1, 16>}, {pipeline_mode = #tpu.pipeline_mode<synchronous>, transform_indices = @transform_3, window_bounds = array<i64: 1, 8>}, {pipeline_mode = #tpu.pipeline_mode<synchronous>, transform_indices = @transform_4, window_bounds = array<i64: 1, 16>}, {pipeline_mode = #tpu.pipeline_mode<synchronous>, transform_indices = @transform_5, window_bounds = array<i64: 1, 8>}, {pipeline_mode = #tpu.pipeline_mode<synchronous>, transform_indices = @transform_6, window_bounds = array<i64: 16, 32>}, {pipeline_mode = #tpu.pipeline_mode<synchronous>, transform_indices = @transform_7, window_bounds = array<i64: 8, 32>}, {pipeline_mode = #tpu.pipeline_mode<synchronous>, transform_indices = @transform_8, window_bounds = array<i64: 1, 32>}, {pipeline_mode = #tpu.pipeline_mode<synchronous>, transform_indices = @transform_9, window_bounds = array<i64: 1, 32>}, {transform_indices = @transform_10, window_bounds = array<i64: 32, 32>}]} {
    %cst = arith.constant 0.000000e+00 : f32
    %0 = vector.broadcast %cst : f32 to vector<32x32xf32>
    %c0 = arith.constant 0 : index
    %c0_0 = arith.constant 0 : index
    %1 = vector.load %arg1[%c0, %c0_0] : memref<32x16xbf16, #tpu.memory_space<vmem>>, vector<32x16xbf16>
    %2 = arith.extf %1 : vector<32x16xbf16> to vector<32x16xf32>
    %c0_1 = arith.constant 0 : index
    %c0_2 = arith.constant 0 : index
    %3 = vector.load %arg3[%c0_1, %c0_2] : memref<1x16xf32, #tpu.memory_space<vmem>>, vector<1x16xf32>
    %4 = vector.broadcast %3 : vector<1x16xf32> to vector<32x16xf32>
    %5 = arith.mulf %2, %4 : vector<32x16xf32>
    %c0_3 = arith.constant 0 : index
    %c0_4 = arith.constant 0 : index
    %6 = vector.load %arg5[%c0_3, %c0_4] : memref<1x16xf32, #tpu.memory_space<vmem>>, vector<1x16xf32>
    %7 = vector.broadcast %6 : vector<1x16xf32> to vector<32x16xf32>
    %8 = arith.addf %5, %7 : vector<32x16xf32>
    %cst_5 = arith.constant 0.000000e+00 : f32
    %9 = vector.broadcast %cst_5 : f32 to vector<32x16xf32>
    %10 = arith.maximumf %8, %9 : vector<32x16xf32>
    %11 = arith.truncf %10 : vector<32x16xf32> to vector<32x16xbf16>
    %c0_6 = arith.constant 0 : index
    %c0_7 = arith.constant 0 : index
    %12 = vector.load %arg7[%c0_6, %c0_7] : memref<16x32xbf16, #tpu.memory_space<vmem>>, vector<16x32xbf16>
    %cst_8 = arith.constant dense<0.000000e+00> : vector<32x32xf32>
    %13 = tpu.matmul %11, %12, %cst_8 {dimension_numbers = #tpu.dot_dimension_numbers<[1], [0], [0], [1], [0, 0, 1, 1], [], []>} : vector<32x16xbf16>, vector<16x32xbf16>, vector<32x32xf32> -> vector<32x32xf32>
    %14 = arith.addf %0, %13 : vector<32x32xf32>
    %c0_9 = arith.constant 0 : index
    %c0_10 = arith.constant 0 : index
    %15 = vector.load %arg2[%c0_9, %c0_10] : memref<32x8xbf16, #tpu.memory_space<vmem>>, vector<32x8xbf16>
    %16 = arith.extf %15 : vector<32x8xbf16> to vector<32x8xf32>
    %c0_11 = arith.constant 0 : index
    %c0_12 = arith.constant 0 : index
    %17 = vector.load %arg4[%c0_11, %c0_12] : memref<1x8xf32, #tpu.memory_space<vmem>>, vector<1x8xf32>
    %18 = vector.broadcast %17 : vector<1x8xf32> to vector<32x8xf32>
    %19 = arith.mulf %16, %18 : vector<32x8xf32>
    %c0_13 = arith.constant 0 : index
    %c0_14 = arith.constant 0 : index
    %20 = vector.load %arg6[%c0_13, %c0_14] : memref<1x8xf32, #tpu.memory_space<vmem>>, vector<1x8xf32>
    %21 = vector.broadcast %20 : vector<1x8xf32> to vector<32x8xf32>
    %22 = arith.addf %19, %21 : vector<32x8xf32>
    %cst_15 = arith.constant 0.000000e+00 : f32
    %23 = vector.broadcast %cst_15 : f32 to vector<32x8xf32>
    %24 = arith.maximumf %22, %23 : vector<32x8xf32>
    %25 = arith.truncf %24 : vector<32x8xf32> to vector<32x8xbf16>
    %c0_16 = arith.constant 0 : index
    %c0_17 = arith.constant 0 : index
    %26 = vector.load %arg8[%c0_16, %c0_17] : memref<8x32xbf16, #tpu.memory_space<vmem>>, vector<8x32xbf16>
    %cst_18 = arith.constant dense<0.000000e+00> : vector<32x32xf32>
    %27 = tpu.matmul %25, %26, %cst_18 {dimension_numbers = #tpu.dot_dimension_numbers<[1], [0], [0], [1], [0, 0, 1, 1], [], []>} : vector<32x8xbf16>, vector<8x32xbf16>, vector<32x32xf32> -> vector<32x32xf32>
    %28 = arith.addf %14, %27 : vector<32x32xf32>
    %c0_19 = arith.constant 0 : index
    %c0_20 = arith.constant 0 : index
    %29 = vector.load %arg9[%c0_19, %c0_20] : memref<1x32xf32, #tpu.memory_space<vmem>>, vector<1x32xf32>
    %30 = vector.broadcast %29 : vector<1x32xf32> to vector<32x32xf32>
    %31 = arith.mulf %28, %30 : vector<32x32xf32>
    %c0_21 = arith.constant 0 : index
    %c0_22 = arith.constant 0 : index
    %32 = vector.load %arg10[%c0_21, %c0_22] : memref<1x32xf32, #tpu.memory_space<vmem>>, vector<1x32xf32>
    %33 = vector.broadcast %32 : vector<1x32xf32> to vector<32x32xf32>
    %34 = arith.addf %31, %33 : vector<32x32xf32>
    %cst_23 = arith.constant 0.000000e+00 : f32
    %35 = vector.broadcast %cst_23 : f32 to vector<32x32xf32>
    %36 = arith.maximumf %34, %35 : vector<32x32xf32>
    %37 = arith.truncf %36 : vector<32x32xf32> to vector<32x32xbf16>
    %c0_24 = arith.constant 0 : index
    %c0_25 = arith.constant 0 : index
    %38 = vector.load %arg11[%c0_24, %c0_25] : memref<32x32xbf16, #tpu.memory_space<vmem>>, vector<32x32xbf16>
    tpu.vector_store %arg11[%c0_24, %c0_25], %37 {strides = array<i32>} : memref<32x32xbf16, #tpu.memory_space<vmem>>, vector<32x32xbf16>,
    return
  }
  func.func @transform_0(%arg0: i32) -> (i32, i32) {
    %c0_i32 = arith.constant 0 : i32
    %c0_i32_0 = arith.constant 0 : i32
    return %arg0, %c0_i32 : i32, i32
  }
  func.func @transform_1(%arg0: i32) -> (i32, i32) {
    %c0_i32 = arith.constant 0 : i32
    %c0_i32_0 = arith.constant 0 : i32
    return %arg0, %c0_i32 : i32, i32
  }
  func.func @transform_2(%arg0: i32) -> (i32, i32) {
    %c0_i32 = arith.constant 0 : i32
    %c0_i32_0 = arith.constant 0 : i32
    %c0_i32_1 = arith.constant 0 : i32
    return %c0_i32, %c0_i32_0 : i32, i32
  }
  func.func @transform_3(%arg0: i32) -> (i32, i32) {
    %c0_i32 = arith.constant 0 : i32
    %c0_i32_0 = arith.constant 0 : i32
    %c0_i32_1 = arith.constant 0 : i32
    return %c0_i32, %c0_i32_0 : i32, i32
  }
  func.func @transform_4(%arg0: i32) -> (i32, i32) {
    %c0_i32 = arith.constant 0 : i32
    %c0_i32_0 = arith.constant 0 : i32
    %c0_i32_1 = arith.constant 0 : i32
    return %c0_i32, %c0_i32_0 : i32, i32
  }
  func.func @transform_5(%arg0: i32) -> (i32, i32) {
    %c0_i32 = arith.constant 0 : i32
    %c0_i32_0 = arith.constant 0 : i32
    %c0_i32_1 = arith.constant 0 : i32
    return %c0_i32, %c0_i32_0 : i32, i32
  }
  func.func @transform_6(%arg0: i32) -> (i32, i32) {
    %c0_i32 = arith.constant 0 : i32
    %c0_i32_0 = arith.constant 0 : i32
    %c0_i32_1 = arith.constant 0 : i32
    return %c0_i32, %c0_i32_0 : i32, i32
  }
  func.func @transform_7(%arg0: i32) -> (i32, i32) {
    %c0_i32 = arith.constant 0 : i32
    %c0_i32_0 = arith.constant 0 : i32
    %c0_i32_1 = arith.constant 0 : i32
    return %c0_i32, %c0_i32_0 : i32, i32
  }
  func.func @transform_8(%arg0: i32) -> (i32, i32) {
    %c0_i32 = arith.constant 0 : i32
    %c0_i32_0 = arith.constant 0 : i32
    %c0_i32_1 = arith.constant 0 : i32
    return %c0_i32, %c0_i32_0 : i32, i32
  }
  func.func @transform_9(%arg0: i32) -> (i32, i32) {
    %c0_i32 = arith.constant 0 : i32
    %c0_i32_0 = arith.constant 0 : i32
    %c0_i32_1 = arith.constant 0 : i32
    return %c0_i32, %c0_i32_0 : i32, i32
  }
  func.func @transform_10(%arg0: i32) -> (i32, i32) {
    %c0_i32 = arith.constant 0 : i32
    %c0_i32_0 = arith.constant 0 : i32
    return %arg0, %c0_i32 : i32, i32
  }
}

module attributes {stable_mosaic.version = 11 : i64} {
  func.func @kernel(%arg0: i32, %arg1: memref<32x16xbf16, #tpu.memory_space<vmem>>, %arg2: memref<32x8xbf16, #tpu.memory_space<vmem>>, %arg3: memref<32x8xbf16, #tpu.memory_space<vmem>>, %arg4: memref<1x16xf32, #tpu.memory_space<vmem>>, %arg5: memref<1x8xf32, #tpu.memory_space<vmem>>, %arg6: memref<1x8xf32, #tpu.memory_space<vmem>>, %arg7: memref<1x16xf32, #tpu.memory_space<vmem>>, %arg8: memref<1x8xf32, #tpu.memory_space<vmem>>, %arg9: memref<1x8xf32, #tpu.memory_space<vmem>>, %arg10: memref<16x16xbf16, #tpu.memory_space<vmem>>, %arg11: memref<8x16xbf16, #tpu.memory_space<vmem>>, %arg12: memref<8x16xbf16, #tpu.memory_space<vmem>>, %arg13: memref<32x16xbf16, #tpu.memory_space<vmem>>) attributes {dimension_semantics = [#tpu.dimension_semantics<parallel>], iteration_bounds = array<i64: 1>, scalar_prefetch = 0 : i64, scratch_operands = 0 : i64, tpu.core_type = #tpu.core_type<tc>, window_params = [{transform_indices = @transform_0, window_bounds = array<i64: 32, 16>}, {transform_indices = @transform_1, window_bounds = array<i64: 32, 8>}, {transform_indices = @transform_2, window_bounds = array<i64: 32, 8>}, {pipeline_mode = #tpu.pipeline_mode<synchronous>, transform_indices = @transform_3, window_bounds = array<i64: 1, 16>}, {pipeline_mode = #tpu.pipeline_mode<synchronous>, transform_indices = @transform_4, window_bounds = array<i64: 1, 8>}, {pipeline_mode = #tpu.pipeline_mode<synchronous>, transform_indices = @transform_5, window_bounds = array<i64: 1, 8>}, {pipeline_mode = #tpu.pipeline_mode<synchronous>, transform_indices = @transform_6, window_bounds = array<i64: 1, 16>}, {pipeline_mode = #tpu.pipeline_mode<synchronous>, transform_indices = @transform_7, window_bounds = array<i64: 1, 8>}, {pipeline_mode = #tpu.pipeline_mode<synchronous>, transform_indices = @transform_8, window_bounds = array<i64: 1, 8>}, {pipeline_mode = #tpu.pipeline_mode<synchronous>, transform_indices = @transform_9, window_bounds = array<i64: 16, 16>}, {pipeline_mode = #tpu.pipeline_mode<synchronous>, transform_indices = @transform_10, window_bounds = array<i64: 8, 16>}, {pipeline_mode = #tpu.pipeline_mode<synchronous>, transform_indices = @transform_11, window_bounds = array<i64: 8, 16>}, {transform_indices = @transform_12, window_bounds = array<i64: 32, 16>}]} {
    %cst = arith.constant 0.000000e+00 : f32
    %0 = vector.broadcast %cst : f32 to vector<32x16xf32>
    %c0 = arith.constant 0 : index
    %c0_0 = arith.constant 0 : index
    %1 = vector.load %arg1[%c0, %c0_0] : memref<32x16xbf16, #tpu.memory_space<vmem>>, vector<32x16xbf16>
    %2 = arith.extf %1 : vector<32x16xbf16> to vector<32x16xf32>
    %c0_1 = arith.constant 0 : index
    %c0_2 = arith.constant 0 : index
    %3 = vector.load %arg4[%c0_1, %c0_2] : memref<1x16xf32, #tpu.memory_space<vmem>>, vector<1x16xf32>
    %4 = vector.broadcast %3 : vector<1x16xf32> to vector<32x16xf32>
    %5 = arith.mulf %2, %4 : vector<32x16xf32>
    %c0_3 = arith.constant 0 : index
    %c0_4 = arith.constant 0 : index
    %6 = vector.load %arg7[%c0_3, %c0_4] : memref<1x16xf32, #tpu.memory_space<vmem>>, vector<1x16xf32>
    %7 = vector.broadcast %6 : vector<1x16xf32> to vector<32x16xf32>
    %8 = arith.addf %5, %7 : vector<32x16xf32>
    %cst_5 = arith.constant 0.000000e+00 : f32
    %9 = vector.broadcast %cst_5 : f32 to vector<32x16xf32>
    %10 = arith.maximumf %8, %9 : vector<32x16xf32>
    %11 = arith.truncf %10 : vector<32x16xf32> to vector<32x16xbf16>
    %c0_6 = arith.constant 0 : index
    %c0_7 = arith.constant 0 : index
    %12 = vector.load %arg10[%c0_6, %c0_7] : memref<16x16xbf16, #tpu.memory_space<vmem>>, vector<16x16xbf16>
    %cst_8 = arith.constant dense<0.000000e+00> : vector<32x16xf32>
    %13 = tpu.matmul %11, %12, %cst_8 {dimension_numbers = #tpu.dot_dimension_numbers<[1], [0], [0], [1], [0, 0, 1, 1], [], []>} : vector<32x16xbf16>, vector<16x16xbf16>, vector<32x16xf32> -> vector<32x16xf32>
    %14 = arith.addf %0, %13 : vector<32x16xf32>
    %c0_9 = arith.constant 0 : index
    %c0_10 = arith.constant 0 : index
    %15 = vector.load %arg2[%c0_9, %c0_10] : memref<32x8xbf16, #tpu.memory_space<vmem>>, vector<32x8xbf16>
    %16 = arith.extf %15 : vector<32x8xbf16> to vector<32x8xf32>
    %c0_11 = arith.constant 0 : index
    %c0_12 = arith.constant 0 : index
    %17 = vector.load %arg5[%c0_11, %c0_12] : memref<1x8xf32, #tpu.memory_space<vmem>>, vector<1x8xf32>
    %18 = vector.broadcast %17 : vector<1x8xf32> to vector<32x8xf32>
    %19 = arith.mulf %16, %18 : vector<32x8xf32>
    %c0_13 = arith.constant 0 : index
    %c0_14 = arith.constant 0 : index
    %20 = vector.load %arg8[%c0_13, %c0_14] : memref<1x8xf32, #tpu.memory_space<vmem>>, vector<1x8xf32>
    %21 = vector.broadcast %20 : vector<1x8xf32> to vector<32x8xf32>
    %22 = arith.addf %19, %21 : vector<32x8xf32>
    %cst_15 = arith.constant 0.000000e+00 : f32
    %23 = vector.broadcast %cst_15 : f32 to vector<32x8xf32>
    %24 = arith.maximumf %22, %23 : vector<32x8xf32>
    %25 = arith.truncf %24 : vector<32x8xf32> to vector<32x8xbf16>
    %c0_16 = arith.constant 0 : index
    %c0_17 = arith.constant 0 : index
    %26 = vector.load %arg11[%c0_16, %c0_17] : memref<8x16xbf16, #tpu.memory_space<vmem>>, vector<8x16xbf16>
    %cst_18 = arith.constant dense<0.000000e+00> : vector<32x16xf32>
    %27 = tpu.matmul %25, %26, %cst_18 {dimension_numbers = #tpu.dot_dimension_numbers<[1], [0], [0], [1], [0, 0, 1, 1], [], []>} : vector<32x8xbf16>, vector<8x16xbf16>, vector<32x16xf32> -> vector<32x16xf32>
    %28 = arith.addf %14, %27 : vector<32x16xf32>
    %c0_19 = arith.constant 0 : index
    %c0_20 = arith.constant 0 : index
    %29 = vector.load %arg3[%c0_19, %c0_20] : memref<32x8xbf16, #tpu.memory_space<vmem>>, vector<32x8xbf16>
    %30 = arith.extf %29 : vector<32x8xbf16> to vector<32x8xf32>
    %c0_21 = arith.constant 0 : index
    %c0_22 = arith.constant 0 : index
    %31 = vector.load %arg6[%c0_21, %c0_22] : memref<1x8xf32, #tpu.memory_space<vmem>>, vector<1x8xf32>
    %32 = vector.broadcast %31 : vector<1x8xf32> to vector<32x8xf32>
    %33 = arith.mulf %30, %32 : vector<32x8xf32>
    %c0_23 = arith.constant 0 : index
    %c0_24 = arith.constant 0 : index
    %34 = vector.load %arg9[%c0_23, %c0_24] : memref<1x8xf32, #tpu.memory_space<vmem>>, vector<1x8xf32>
    %35 = vector.broadcast %34 : vector<1x8xf32> to vector<32x8xf32>
    %36 = arith.addf %33, %35 : vector<32x8xf32>
    %cst_25 = arith.constant 0.000000e+00 : f32
    %37 = vector.broadcast %cst_25 : f32 to vector<32x8xf32>
    %38 = arith.maximumf %36, %37 : vector<32x8xf32>
    %39 = arith.truncf %38 : vector<32x8xf32> to vector<32x8xbf16>
    %c0_26 = arith.constant 0 : index
    %c0_27 = arith.constant 0 : index
    %40 = vector.load %arg12[%c0_26, %c0_27] : memref<8x16xbf16, #tpu.memory_space<vmem>>, vector<8x16xbf16>
    %cst_28 = arith.constant dense<0.000000e+00> : vector<32x16xf32>
    %41 = tpu.matmul %39, %40, %cst_28 {dimension_numbers = #tpu.dot_dimension_numbers<[1], [0], [0], [1], [0, 0, 1, 1], [], []>} : vector<32x8xbf16>, vector<8x16xbf16>, vector<32x16xf32> -> vector<32x16xf32>
    %42 = arith.addf %28, %41 : vector<32x16xf32>
    %43 = arith.truncf %42 : vector<32x16xf32> to vector<32x16xbf16>
    %c0_29 = arith.constant 0 : index
    %c0_30 = arith.constant 0 : index
    %44 = vector.load %arg13[%c0_29, %c0_30] : memref<32x16xbf16, #tpu.memory_space<vmem>>, vector<32x16xbf16>
    tpu.vector_store %arg13[%c0_29, %c0_30], %43 {strides = array<i32>} : memref<32x16xbf16, #tpu.memory_space<vmem>>, vector<32x16xbf16>,
    return
  }
  func.func @transform_0(%arg0: i32) -> (i32, i32) {
    %c0_i32 = arith.constant 0 : i32
    %c0_i32_0 = arith.constant 0 : i32
    return %arg0, %c0_i32 : i32, i32
  }
  func.func @transform_1(%arg0: i32) -> (i32, i32) {
    %c0_i32 = arith.constant 0 : i32
    %c0_i32_0 = arith.constant 0 : i32
    return %arg0, %c0_i32 : i32, i32
  }
  func.func @transform_2(%arg0: i32) -> (i32, i32) {
    %c0_i32 = arith.constant 0 : i32
    %c0_i32_0 = arith.constant 0 : i32
    return %arg0, %c0_i32 : i32, i32
  }
  func.func @transform_3(%arg0: i32) -> (i32, i32) {
    %c0_i32 = arith.constant 0 : i32
    %c0_i32_0 = arith.constant 0 : i32
    %c0_i32_1 = arith.constant 0 : i32
    return %c0_i32, %c0_i32_0 : i32, i32
  }
  func.func @transform_4(%arg0: i32) -> (i32, i32) {
    %c0_i32 = arith.constant 0 : i32
    %c0_i32_0 = arith.constant 0 : i32
    %c0_i32_1 = arith.constant 0 : i32
    return %c0_i32, %c0_i32_0 : i32, i32
  }
  func.func @transform_5(%arg0: i32) -> (i32, i32) {
    %c0_i32 = arith.constant 0 : i32
    %c0_i32_0 = arith.constant 0 : i32
    %c0_i32_1 = arith.constant 0 : i32
    return %c0_i32, %c0_i32_0 : i32, i32
  }
  func.func @transform_6(%arg0: i32) -> (i32, i32) {
    %c0_i32 = arith.constant 0 : i32
    %c0_i32_0 = arith.constant 0 : i32
    %c0_i32_1 = arith.constant 0 : i32
    return %c0_i32, %c0_i32_0 : i32, i32
  }
  func.func @transform_7(%arg0: i32) -> (i32, i32) {
    %c0_i32 = arith.constant 0 : i32
    %c0_i32_0 = arith.constant 0 : i32
    %c0_i32_1 = arith.constant 0 : i32
    return %c0_i32, %c0_i32_0 : i32, i32
  }
  func.func @transform_8(%arg0: i32) -> (i32, i32) {
    %c0_i32 = arith.constant 0 : i32
    %c0_i32_0 = arith.constant 0 : i32
    %c0_i32_1 = arith.constant 0 : i32
    return %c0_i32, %c0_i32_0 : i32, i32
  }
  func.func @transform_9(%arg0: i32) -> (i32, i32) {
    %c0_i32 = arith.constant 0 : i32
    %c0_i32_0 = arith.constant 0 : i32
    %c0_i32_1 = arith.constant 0 : i32
    return %c0_i32, %c0_i32_0 : i32, i32
  }
  func.func @transform_10(%arg0: i32) -> (i32, i32) {
    %c0_i32 = arith.constant 0 : i32
    %c0_i32_0 = arith.constant 0 : i32
    %c0_i32_1 = arith.constant 0 : i32
    return %c0_i32, %c0_i32_0 : i32, i32
  }
  func.func @transform_11(%arg0: i32) -> (i32, i32) {
    %c0_i32 = arith.constant 0 : i32
    %c0_i32_0 = arith.constant 0 : i32
    %c0_i32_1 = arith.constant 0 : i32
    return %c0_i32, %c0_i32_0 : i32, i32
  }
  func.func @transform_12(%arg0: i32) -> (i32, i32) {
    %c0_i32 = arith.constant 0 : i32
    %c0_i32_0 = arith.constant 0 : i32
    return %arg0, %c0_i32 : i32, i32
  }
}

module attributes {stable_mosaic.version = 11 : i64} {
  func.func @kernel(%arg0: i32, %arg1: memref<8x16xbf16, #tpu.memory_space<vmem>>, %arg2: memref<8x16xbf16, #tpu.memory_space<vmem>>, %arg3: memref<8x16xbf16, #tpu.memory_space<vmem>>, %arg4: memref<8x16xbf16, #tpu.memory_space<vmem>>, %arg5: memref<8x16xbf16, #tpu.memory_space<vmem>>) attributes {dimension_semantics = [#tpu.dimension_semantics<parallel>], iteration_bounds = array<i64: 1>, scalar_prefetch = 0 : i64, scratch_operands = 0 : i64, tpu.core_type = #tpu.core_type<tc>, window_params = [{transform_indices = @transform_0, window_bounds = array<i64: 8, 16>}, {transform_indices = @transform_1, window_bounds = array<i64: 8, 16>}, {transform_indices = @transform_2, window_bounds = array<i64: 8, 16>}, {transform_indices = @transform_3, window_bounds = array<i64: 8, 16>}, {transform_indices = @transform_4, window_bounds = array<i64: 8, 16>}]} {
    %c0 = arith.constant 0 : index
    %c0_0 = arith.constant 0 : index
    %0 = vector.load %arg1[%c0, %c0_0] : memref<8x16xbf16, #tpu.memory_space<vmem>>, vector<8x16xbf16>
    %1 = arith.extf %0 : vector<8x16xbf16> to vector<8x16xf32>
    %c0_1 = arith.constant 0 : index
    %c0_2 = arith.constant 0 : index
    %2 = vector.load %arg2[%c0_1, %c0_2] : memref<8x16xbf16, #tpu.memory_space<vmem>>, vector<8x16xbf16>
    %3 = arith.extf %2 : vector<8x16xbf16> to vector<8x16xf32>
    %4 = arith.addf %1, %3 : vector<8x16xf32>
    %c0_3 = arith.constant 0 : index
    %c0_4 = arith.constant 0 : index
    %5 = vector.load %arg3[%c0_3, %c0_4] : memref<8x16xbf16, #tpu.memory_space<vmem>>, vector<8x16xbf16>
    %6 = arith.extf %5 : vector<8x16xbf16> to vector<8x16xf32>
    %7 = arith.addf %4, %6 : vector<8x16xf32>
    %c0_5 = arith.constant 0 : index
    %c0_6 = arith.constant 0 : index
    %8 = vector.load %arg4[%c0_5, %c0_6] : memref<8x16xbf16, #tpu.memory_space<vmem>>, vector<8x16xbf16>
    %9 = arith.extf %8 : vector<8x16xbf16> to vector<8x16xf32>
    %10 = arith.addf %7, %9 : vector<8x16xf32>
    %cst = arith.constant 2.500000e-01 : f32
    %11 = vector.broadcast %cst : f32 to vector<8x16xf32>
    %12 = arith.mulf %10, %11 : vector<8x16xf32>
    %13 = arith.truncf %12 : vector<8x16xf32> to vector<8x16xbf16>
    %c0_7 = arith.constant 0 : index
    %c0_8 = arith.constant 0 : index
    %14 = vector.load %arg5[%c0_7, %c0_8] : memref<8x16xbf16, #tpu.memory_space<vmem>>, vector<8x16xbf16>
    tpu.vector_store %arg5[%c0_7, %c0_8], %13 {strides = array<i32>} : memref<8x16xbf16, #tpu.memory_space<vmem>>, vector<8x16xbf16>,
    return
  }
  func.func @transform_0(%arg0: i32) -> (i32, i32) {
    %c0_i32 = arith.constant 0 : i32
    %c0_i32_0 = arith.constant 0 : i32
    return %arg0, %c0_i32 : i32, i32
  }
  func.func @transform_1(%arg0: i32) -> (i32, i32) {
    %c0_i32 = arith.constant 0 : i32
    %c0_i32_0 = arith.constant 0 : i32
    return %arg0, %c0_i32 : i32, i32
  }
  func.func @transform_2(%arg0: i32) -> (i32, i32) {
    %c0_i32 = arith.constant 0 : i32
    %c0_i32_0 = arith.constant 0 : i32
    return %arg0, %c0_i32 : i32, i32
  }
  func.func @transform_3(%arg0: i32) -> (i32, i32) {
    %c0_i32 = arith.constant 0 : i32
    %c0_i32_0 = arith.constant 0 : i32
    return %arg0, %c0_i32 : i32, i32
  }
  func.func @transform_4(%arg0: i32) -> (i32, i32) {
    %c0_i32 = arith.constant 0 : i32
    %c0_i32_0 = arith.constant 0 : i32
    return %arg0, %c0_i32 : i32, i32
  }
}

module attributes {stable_mosaic.version = 11 : i64} {
  func.func @kernel(%arg0: i32, %arg1: memref<8x16xbf16, #tpu.memory_space<vmem>>, %arg2: memref<1x16xf32, #tpu.memory_space<vmem>>, %arg3: memref<1x16xf32, #tpu.memory_space<vmem>>, %arg4: memref<16x32xbf16, #tpu.memory_space<vmem>>, %arg5: memref<1x32xf32, #tpu.memory_space<vmem>>, %arg6: memref<1x32xf32, #tpu.memory_space<vmem>>, %arg7: memref<8x32xbf16, #tpu.memory_space<vmem>>) attributes {dimension_semantics = [#tpu.dimension_semantics<parallel>], iteration_bounds = array<i64: 1>, scalar_prefetch = 0 : i64, scratch_operands = 0 : i64, tpu.core_type = #tpu.core_type<tc>, window_params = [{transform_indices = @transform_0, window_bounds = array<i64: 8, 16>}, {pipeline_mode = #tpu.pipeline_mode<synchronous>, transform_indices = @transform_1, window_bounds = array<i64: 1, 16>}, {pipeline_mode = #tpu.pipeline_mode<synchronous>, transform_indices = @transform_2, window_bounds = array<i64: 1, 16>}, {pipeline_mode = #tpu.pipeline_mode<synchronous>, transform_indices = @transform_3, window_bounds = array<i64: 16, 32>}, {pipeline_mode = #tpu.pipeline_mode<synchronous>, transform_indices = @transform_4, window_bounds = array<i64: 1, 32>}, {pipeline_mode = #tpu.pipeline_mode<synchronous>, transform_indices = @transform_5, window_bounds = array<i64: 1, 32>}, {transform_indices = @transform_6, window_bounds = array<i64: 8, 32>}]} {
    %cst = arith.constant 0.000000e+00 : f32
    %0 = vector.broadcast %cst : f32 to vector<8x32xf32>
    %c0 = arith.constant 0 : index
    %c0_0 = arith.constant 0 : index
    %1 = vector.load %arg1[%c0, %c0_0] : memref<8x16xbf16, #tpu.memory_space<vmem>>, vector<8x16xbf16>
    %2 = arith.extf %1 : vector<8x16xbf16> to vector<8x16xf32>
    %c0_1 = arith.constant 0 : index
    %c0_2 = arith.constant 0 : index
    %3 = vector.load %arg2[%c0_1, %c0_2] : memref<1x16xf32, #tpu.memory_space<vmem>>, vector<1x16xf32>
    %4 = vector.broadcast %3 : vector<1x16xf32> to vector<8x16xf32>
    %5 = arith.mulf %2, %4 : vector<8x16xf32>
    %c0_3 = arith.constant 0 : index
    %c0_4 = arith.constant 0 : index
    %6 = vector.load %arg3[%c0_3, %c0_4] : memref<1x16xf32, #tpu.memory_space<vmem>>, vector<1x16xf32>
    %7 = vector.broadcast %6 : vector<1x16xf32> to vector<8x16xf32>
    %8 = arith.addf %5, %7 : vector<8x16xf32>
    %cst_5 = arith.constant 0.000000e+00 : f32
    %9 = vector.broadcast %cst_5 : f32 to vector<8x16xf32>
    %10 = arith.maximumf %8, %9 : vector<8x16xf32>
    %11 = arith.truncf %10 : vector<8x16xf32> to vector<8x16xbf16>
    %c0_6 = arith.constant 0 : index
    %c0_7 = arith.constant 0 : index
    %12 = vector.load %arg4[%c0_6, %c0_7] : memref<16x32xbf16, #tpu.memory_space<vmem>>, vector<16x32xbf16>
    %cst_8 = arith.constant dense<0.000000e+00> : vector<8x32xf32>
    %13 = tpu.matmul %11, %12, %cst_8 {dimension_numbers = #tpu.dot_dimension_numbers<[1], [0], [0], [1], [0, 0, 1, 1], [], []>} : vector<8x16xbf16>, vector<16x32xbf16>, vector<8x32xf32> -> vector<8x32xf32>
    %14 = arith.addf %0, %13 : vector<8x32xf32>
    %c0_9 = arith.constant 0 : index
    %c0_10 = arith.constant 0 : index
    %15 = vector.load %arg5[%c0_9, %c0_10] : memref<1x32xf32, #tpu.memory_space<vmem>>, vector<1x32xf32>
    %16 = vector.broadcast %15 : vector<1x32xf32> to vector<8x32xf32>
    %17 = arith.mulf %14, %16 : vector<8x32xf32>
    %c0_11 = arith.constant 0 : index
    %c0_12 = arith.constant 0 : index
    %18 = vector.load %arg6[%c0_11, %c0_12] : memref<1x32xf32, #tpu.memory_space<vmem>>, vector<1x32xf32>
    %19 = vector.broadcast %18 : vector<1x32xf32> to vector<8x32xf32>
    %20 = arith.addf %17, %19 : vector<8x32xf32>
    %cst_13 = arith.constant 0.000000e+00 : f32
    %21 = vector.broadcast %cst_13 : f32 to vector<8x32xf32>
    %22 = arith.maximumf %20, %21 : vector<8x32xf32>
    %23 = arith.truncf %22 : vector<8x32xf32> to vector<8x32xbf16>
    %c0_14 = arith.constant 0 : index
    %c0_15 = arith.constant 0 : index
    %24 = vector.load %arg7[%c0_14, %c0_15] : memref<8x32xbf16, #tpu.memory_space<vmem>>, vector<8x32xbf16>
    tpu.vector_store %arg7[%c0_14, %c0_15], %23 {strides = array<i32>} : memref<8x32xbf16, #tpu.memory_space<vmem>>, vector<8x32xbf16>,
    return
  }
  func.func @transform_0(%arg0: i32) -> (i32, i32) {
    %c0_i32 = arith.constant 0 : i32
    %c0_i32_0 = arith.constant 0 : i32
    return %arg0, %c0_i32 : i32, i32
  }
  func.func @transform_1(%arg0: i32) -> (i32, i32) {
    %c0_i32 = arith.constant 0 : i32
    %c0_i32_0 = arith.constant 0 : i32
    %c0_i32_1 = arith.constant 0 : i32
    return %c0_i32, %c0_i32_0 : i32, i32
  }
  func.func @transform_2(%arg0: i32) -> (i32, i32) {
    %c0_i32 = arith.constant 0 : i32
    %c0_i32_0 = arith.constant 0 : i32
    %c0_i32_1 = arith.constant 0 : i32
    return %c0_i32, %c0_i32_0 : i32, i32
  }
  func.func @transform_3(%arg0: i32) -> (i32, i32) {
    %c0_i32 = arith.constant 0 : i32
    %c0_i32_0 = arith.constant 0 : i32
    %c0_i32_1 = arith.constant 0 : i32
    return %c0_i32, %c0_i32_0 : i32, i32
  }
  func.func @transform_4(%arg0: i32) -> (i32, i32) {
    %c0_i32 = arith.constant 0 : i32
    %c0_i32_0 = arith.constant 0 : i32
    %c0_i32_1 = arith.constant 0 : i32
    return %c0_i32, %c0_i32_0 : i32, i32
  }
  func.func @transform_5(%arg0: i32) -> (i32, i32) {
    %c0_i32 = arith.constant 0 : i32
    %c0_i32_0 = arith.constant 0 : i32
    %c0_i32_1 = arith.constant 0 : i32
    return %c0_i32, %c0_i32_0 : i32, i32
  }
  func.func @transform_6(%arg0: i32) -> (i32, i32) {
    %c0_i32 = arith.constant 0 : i32
    %c0_i32_0 = arith.constant 0 : i32
    return %arg0, %c0_i32 : i32, i32
  }
}

module attributes {stable_mosaic.version = 11 : i64} {
  func.func @kernel(%arg0: i32, %arg1: memref<1x20x32xbf16, #tpu.memory_space<vmem>>, %arg2: memref<9x32x8xbf16, #tpu.memory_space<vmem>>, %arg3: memref<1x8x8xbf16, #tpu.memory_space<vmem>>) attributes {dimension_semantics = [#tpu.dimension_semantics<parallel>], iteration_bounds = array<i64: 2>, scalar_prefetch = 0 : i64, scratch_operands = 0 : i64, tpu.core_type = #tpu.core_type<tc>, window_params = [{transform_indices = @transform_0, window_bounds = array<i64: 1, 20, 32>}, {pipeline_mode = #tpu.pipeline_mode<synchronous>, transform_indices = @transform_1, window_bounds = array<i64: 9, 32, 8>}, {transform_indices = @transform_2, window_bounds = array<i64: 1, 8, 8>}]} {
    %cst = arith.constant 0.000000e+00 : f32
    %0 = vector.broadcast %cst : f32 to vector<8x8xf32>
    %c0 = arith.constant 0 : index
    %c0_0 = arith.constant 0 : index
    %c0_1 = arith.constant 0 : index
    %1 = vector.load %arg1[%c0, %c0_0, %c0_1] : memref<1x20x32xbf16, #tpu.memory_space<vmem>>, vector<1x8x32xbf16>
    %2 = vector.shape_cast %1 : vector<1x8x32xbf16> to vector<8x32xbf16>
    %c0_2 = arith.constant 0 : index
    %c0_3 = arith.constant 0 : index
    %c0_4 = arith.constant 0 : index
    %3 = vector.load %arg2[%c0_2, %c0_3, %c0_4] : memref<9x32x8xbf16, #tpu.memory_space<vmem>>, vector<1x32x8xbf16>
    %4 = vector.shape_cast %3 : vector<1x32x8xbf16> to vector<32x8xbf16>
    %cst_5 = arith.constant dense<0.000000e+00> : vector<8x8xf32>
    %5 = tpu.matmul %2, %4, %cst_5 {dimension_numbers = #tpu.dot_dimension_numbers<[1], [0], [0], [1], [0, 0, 1, 1], [], []>} : vector<8x32xbf16>, vector<32x8xbf16>, vector<8x8xf32> -> vector<8x8xf32>
    %6 = arith.addf %0, %5 : vector<8x8xf32>
    %c0_6 = arith.constant 0 : index
    %c1 = arith.constant 1 : index
    %c0_7 = arith.constant 0 : index
    %7 = vector.load %arg1[%c0_6, %c1, %c0_7] : memref<1x20x32xbf16, #tpu.memory_space<vmem>>, vector<1x8x32xbf16>
    %8 = vector.shape_cast %7 : vector<1x8x32xbf16> to vector<8x32xbf16>
    %c1_8 = arith.constant 1 : index
    %c0_9 = arith.constant 0 : index
    %c0_10 = arith.constant 0 : index
    %9 = vector.load %arg2[%c1_8, %c0_9, %c0_10] : memref<9x32x8xbf16, #tpu.memory_space<vmem>>, vector<1x32x8xbf16>
    %10 = vector.shape_cast %9 : vector<1x32x8xbf16> to vector<32x8xbf16>
    %cst_11 = arith.constant dense<0.000000e+00> : vector<8x8xf32>
    %11 = tpu.matmul %8, %10, %cst_11 {dimension_numbers = #tpu.dot_dimension_numbers<[1], [0], [0], [1], [0, 0, 1, 1], [], []>} : vector<8x32xbf16>, vector<32x8xbf16>, vector<8x8xf32> -> vector<8x8xf32>
    %12 = arith.addf %6, %11 : vector<8x8xf32>
    %c0_12 = arith.constant 0 : index
    %c2 = arith.constant 2 : index
    %c0_13 = arith.constant 0 : index
    %13 = vector.load %arg1[%c0_12, %c2, %c0_13] : memref<1x20x32xbf16, #tpu.memory_space<vmem>>, vector<1x8x32xbf16>
    %14 = vector.shape_cast %13 : vector<1x8x32xbf16> to vector<8x32xbf16>
    %c2_14 = arith.constant 2 : index
    %c0_15 = arith.constant 0 : index
    %c0_16 = arith.constant 0 : index
    %15 = vector.load %arg2[%c2_14, %c0_15, %c0_16] : memref<9x32x8xbf16, #tpu.memory_space<vmem>>, vector<1x32x8xbf16>
    %16 = vector.shape_cast %15 : vector<1x32x8xbf16> to vector<32x8xbf16>
    %cst_17 = arith.constant dense<0.000000e+00> : vector<8x8xf32>
    %17 = tpu.matmul %14, %16, %cst_17 {dimension_numbers = #tpu.dot_dimension_numbers<[1], [0], [0], [1], [0, 0, 1, 1], [], []>} : vector<8x32xbf16>, vector<32x8xbf16>, vector<8x8xf32> -> vector<8x8xf32>
    %18 = arith.addf %12, %17 : vector<8x8xf32>
    %c0_18 = arith.constant 0 : index
    %c4 = arith.constant 4 : index
    %c0_19 = arith.constant 0 : index
    %19 = vector.load %arg1[%c0_18, %c4, %c0_19] : memref<1x20x32xbf16, #tpu.memory_space<vmem>>, vector<1x8x32xbf16>
    %20 = vector.shape_cast %19 : vector<1x8x32xbf16> to vector<8x32xbf16>
    %c3 = arith.constant 3 : index
    %c0_20 = arith.constant 0 : index
    %c0_21 = arith.constant 0 : index
    %21 = vector.load %arg2[%c3, %c0_20, %c0_21] : memref<9x32x8xbf16, #tpu.memory_space<vmem>>, vector<1x32x8xbf16>
    %22 = vector.shape_cast %21 : vector<1x32x8xbf16> to vector<32x8xbf16>
    %cst_22 = arith.constant dense<0.000000e+00> : vector<8x8xf32>
    %23 = tpu.matmul %20, %22, %cst_22 {dimension_numbers = #tpu.dot_dimension_numbers<[1], [0], [0], [1], [0, 0, 1, 1], [], []>} : vector<8x32xbf16>, vector<32x8xbf16>, vector<8x8xf32> -> vector<8x8xf32>
    %24 = arith.addf %18, %23 : vector<8x8xf32>
    %c0_23 = arith.constant 0 : index
    %c5 = arith.constant 5 : index
    %c0_24 = arith.constant 0 : index
    %25 = vector.load %arg1[%c0_23, %c5, %c0_24] : memref<1x20x32xbf16, #tpu.memory_space<vmem>>, vector<1x8x32xbf16>
    %26 = vector.shape_cast %25 : vector<1x8x32xbf16> to vector<8x32xbf16>
    %c4_25 = arith.constant 4 : index
    %c0_26 = arith.constant 0 : index
    %c0_27 = arith.constant 0 : index
    %27 = vector.load %arg2[%c4_25, %c0_26, %c0_27] : memref<9x32x8xbf16, #tpu.memory_space<vmem>>, vector<1x32x8xbf16>
    %28 = vector.shape_cast %27 : vector<1x32x8xbf16> to vector<32x8xbf16>
    %cst_28 = arith.constant dense<0.000000e+00> : vector<8x8xf32>
    %29 = tpu.matmul %26, %28, %cst_28 {dimension_numbers = #tpu.dot_dimension_numbers<[1], [0], [0], [1], [0, 0, 1, 1], [], []>} : vector<8x32xbf16>, vector<32x8xbf16>, vector<8x8xf32> -> vector<8x8xf32>
    %30 = arith.addf %24, %29 : vector<8x8xf32>
    %c0_29 = arith.constant 0 : index
    %c6 = arith.constant 6 : index
    %c0_30 = arith.constant 0 : index
    %31 = vector.load %arg1[%c0_29, %c6, %c0_30] : memref<1x20x32xbf16, #tpu.memory_space<vmem>>, vector<1x8x32xbf16>
    %32 = vector.shape_cast %31 : vector<1x8x32xbf16> to vector<8x32xbf16>
    %c5_31 = arith.constant 5 : index
    %c0_32 = arith.constant 0 : index
    %c0_33 = arith.constant 0 : index
    %33 = vector.load %arg2[%c5_31, %c0_32, %c0_33] : memref<9x32x8xbf16, #tpu.memory_space<vmem>>, vector<1x32x8xbf16>
    %34 = vector.shape_cast %33 : vector<1x32x8xbf16> to vector<32x8xbf16>
    %cst_34 = arith.constant dense<0.000000e+00> : vector<8x8xf32>
    %35 = tpu.matmul %32, %34, %cst_34 {dimension_numbers = #tpu.dot_dimension_numbers<[1], [0], [0], [1], [0, 0, 1, 1], [], []>} : vector<8x32xbf16>, vector<32x8xbf16>, vector<8x8xf32> -> vector<8x8xf32>
    %36 = arith.addf %30, %35 : vector<8x8xf32>
    %c0_35 = arith.constant 0 : index
    %c8 = arith.constant 8 : index
    %c0_36 = arith.constant 0 : index
    %37 = vector.load %arg1[%c0_35, %c8, %c0_36] : memref<1x20x32xbf16, #tpu.memory_space<vmem>>, vector<1x8x32xbf16>
    %38 = vector.shape_cast %37 : vector<1x8x32xbf16> to vector<8x32xbf16>
    %c6_37 = arith.constant 6 : index
    %c0_38 = arith.constant 0 : index
    %c0_39 = arith.constant 0 : index
    %39 = vector.load %arg2[%c6_37, %c0_38, %c0_39] : memref<9x32x8xbf16, #tpu.memory_space<vmem>>, vector<1x32x8xbf16>
    %40 = vector.shape_cast %39 : vector<1x32x8xbf16> to vector<32x8xbf16>
    %cst_40 = arith.constant dense<0.000000e+00> : vector<8x8xf32>
    %41 = tpu.matmul %38, %40, %cst_40 {dimension_numbers = #tpu.dot_dimension_numbers<[1], [0], [0], [1], [0, 0, 1, 1], [], []>} : vector<8x32xbf16>, vector<32x8xbf16>, vector<8x8xf32> -> vector<8x8xf32>
    %42 = arith.addf %36, %41 : vector<8x8xf32>
    %c0_41 = arith.constant 0 : index
    %c9 = arith.constant 9 : index
    %c0_42 = arith.constant 0 : index
    %43 = vector.load %arg1[%c0_41, %c9, %c0_42] : memref<1x20x32xbf16, #tpu.memory_space<vmem>>, vector<1x8x32xbf16>
    %44 = vector.shape_cast %43 : vector<1x8x32xbf16> to vector<8x32xbf16>
    %c7 = arith.constant 7 : index
    %c0_43 = arith.constant 0 : index
    %c0_44 = arith.constant 0 : index
    %45 = vector.load %arg2[%c7, %c0_43, %c0_44] : memref<9x32x8xbf16, #tpu.memory_space<vmem>>, vector<1x32x8xbf16>
    %46 = vector.shape_cast %45 : vector<1x32x8xbf16> to vector<32x8xbf16>
    %cst_45 = arith.constant dense<0.000000e+00> : vector<8x8xf32>
    %47 = tpu.matmul %44, %46, %cst_45 {dimension_numbers = #tpu.dot_dimension_numbers<[1], [0], [0], [1], [0, 0, 1, 1], [], []>} : vector<8x32xbf16>, vector<32x8xbf16>, vector<8x8xf32> -> vector<8x8xf32>
    %48 = arith.addf %42, %47 : vector<8x8xf32>
    %c0_46 = arith.constant 0 : index
    %c10 = arith.constant 10 : index
    %c0_47 = arith.constant 0 : index
    %49 = vector.load %arg1[%c0_46, %c10, %c0_47] : memref<1x20x32xbf16, #tpu.memory_space<vmem>>, vector<1x8x32xbf16>
    %50 = vector.shape_cast %49 : vector<1x8x32xbf16> to vector<8x32xbf16>
    %c8_48 = arith.constant 8 : index
    %c0_49 = arith.constant 0 : index
    %c0_50 = arith.constant 0 : index
    %51 = vector.load %arg2[%c8_48, %c0_49, %c0_50] : memref<9x32x8xbf16, #tpu.memory_space<vmem>>, vector<1x32x8xbf16>
    %52 = vector.shape_cast %51 : vector<1x32x8xbf16> to vector<32x8xbf16>
    %cst_51 = arith.constant dense<0.000000e+00> : vector<8x8xf32>
    %53 = tpu.matmul %50, %52, %cst_51 {dimension_numbers = #tpu.dot_dimension_numbers<[1], [0], [0], [1], [0, 0, 1, 1], [], []>} : vector<8x32xbf16>, vector<32x8xbf16>, vector<8x8xf32> -> vector<8x8xf32>
    %54 = arith.addf %48, %53 : vector<8x8xf32>
    %55 = arith.truncf %54 : vector<8x8xf32> to vector<8x8xbf16>
    %c0_52 = arith.constant 0 : index
    %c0_53 = arith.constant 0 : index
    %c0_54 = arith.constant 0 : index
    %56 = vector.load %arg3[%c0_52, %c0_53, %c0_54] : memref<1x8x8xbf16, #tpu.memory_space<vmem>>, vector<1x8x8xbf16>
    %57 = vector.shape_cast %56 : vector<1x8x8xbf16> to vector<8x8xbf16>
    %58 = vector.shape_cast %55 : vector<8x8xbf16> to vector<1x8x8xbf16>
    tpu.vector_store %arg3[%c0_52, %c0_53, %c0_54], %58 {strides = array<i32>} : memref<1x8x8xbf16, #tpu.memory_space<vmem>>, vector<1x8x8xbf16>,
    return
  }
  func.func @transform_0(%arg0: i32) -> (i32, i32, i32) {
    %c0_i32 = arith.constant 0 : i32
    %c0_i32_0 = arith.constant 0 : i32
    %c0_i32_1 = arith.constant 0 : i32
    return %arg0, %c0_i32, %c0_i32_0 : i32, i32, i32
  }
  func.func @transform_1(%arg0: i32) -> (i32, i32, i32) {
    %c0_i32 = arith.constant 0 : i32
    %c0_i32_0 = arith.constant 0 : i32
    %c0_i32_1 = arith.constant 0 : i32
    %c0_i32_2 = arith.constant 0 : i32
    return %c0_i32, %c0_i32_0, %c0_i32_1 : i32, i32, i32
  }
  func.func @transform_2(%arg0: i32) -> (i32, i32, i32) {
    %c0_i32 = arith.constant 0 : i32
    %c0_i32_0 = arith.constant 0 : i32
    %c0_i32_1 = arith.constant 0 : i32
    return %arg0, %c0_i32, %c0_i32_0 : i32, i32, i32
  }
}

module attributes {stable_mosaic.version = 11 : i64} {
  func.func @_affine_kernel(%arg0: i32, %arg1: memref<8x32xbf16, #tpu.memory_space<vmem>>, %arg2: memref<1x32xf32, #tpu.memory_space<vmem>>, %arg3: memref<1x32xf32, #tpu.memory_space<vmem>>, %arg4: memref<8x32xf32, #tpu.memory_space<vmem>>) attributes {dimension_semantics = [#tpu.dimension_semantics<parallel>], iteration_bounds = array<i64: 1>, scalar_prefetch = 0 : i64, scratch_operands = 0 : i64, tpu.core_type = #tpu.core_type<tc>, window_params = [{transform_indices = @transform_0, window_bounds = array<i64: 8, 32>}, {pipeline_mode = #tpu.pipeline_mode<synchronous>, transform_indices = @transform_1, window_bounds = array<i64: 1, 32>}, {pipeline_mode = #tpu.pipeline_mode<synchronous>, transform_indices = @transform_2, window_bounds = array<i64: 1, 32>}, {transform_indices = @transform_3, window_bounds = array<i64: 8, 32>}]} {
    %c0 = arith.constant 0 : index
    %c0_0 = arith.constant 0 : index
    %0 = vector.load %arg1[%c0, %c0_0] : memref<8x32xbf16, #tpu.memory_space<vmem>>, vector<8x32xbf16>
    %1 = arith.extf %0 : vector<8x32xbf16> to vector<8x32xf32>
    %c0_1 = arith.constant 0 : index
    %c0_2 = arith.constant 0 : index
    %2 = vector.load %arg2[%c0_1, %c0_2] : memref<1x32xf32, #tpu.memory_space<vmem>>, vector<1x32xf32>
    %3 = vector.broadcast %2 : vector<1x32xf32> to vector<8x32xf32>
    %4 = arith.mulf %1, %3 : vector<8x32xf32>
    %c0_3 = arith.constant 0 : index
    %c0_4 = arith.constant 0 : index
    %5 = vector.load %arg3[%c0_3, %c0_4] : memref<1x32xf32, #tpu.memory_space<vmem>>, vector<1x32xf32>
    %6 = vector.broadcast %5 : vector<1x32xf32> to vector<8x32xf32>
    %7 = arith.addf %4, %6 : vector<8x32xf32>
    %c0_5 = arith.constant 0 : index
    %c0_6 = arith.constant 0 : index
    %8 = vector.load %arg4[%c0_5, %c0_6] : memref<8x32xf32, #tpu.memory_space<vmem>>, vector<8x32xf32>
    tpu.vector_store %arg4[%c0_5, %c0_6], %7 {strides = array<i32>} : memref<8x32xf32, #tpu.memory_space<vmem>>, vector<8x32xf32>,
    return
  }
  func.func @transform_0(%arg0: i32) -> (i32, i32) {
    %c0_i32 = arith.constant 0 : i32
    %c0_i32_0 = arith.constant 0 : i32
    return %arg0, %c0_i32 : i32, i32
  }
  func.func @transform_1(%arg0: i32) -> (i32, i32) {
    %c0_i32 = arith.constant 0 : i32
    %c0_i32_0 = arith.constant 0 : i32
    %c0_i32_1 = arith.constant 0 : i32
    return %c0_i32, %c0_i32_0 : i32, i32
  }
  func.func @transform_2(%arg0: i32) -> (i32, i32) {
    %c0_i32 = arith.constant 0 : i32
    %c0_i32_0 = arith.constant 0 : i32
    %c0_i32_1 = arith.constant 0 : i32
    return %c0_i32, %c0_i32_0 : i32, i32
  }
  func.func @transform_3(%arg0: i32) -> (i32, i32) {
    %c0_i32 = arith.constant 0 : i32
    %c0_i32_0 = arith.constant 0 : i32
    return %arg0, %c0_i32 : i32, i32
  }
}

module attributes {stable_mosaic.version = 11 : i64} {
  func.func @kernel(%arg0: i32, %arg1: memref<8x16xbf16, #tpu.memory_space<vmem>>, %arg2: memref<8x8xbf16, #tpu.memory_space<vmem>>, %arg3: memref<1x16xf32, #tpu.memory_space<vmem>>, %arg4: memref<1x8xf32, #tpu.memory_space<vmem>>, %arg5: memref<1x16xf32, #tpu.memory_space<vmem>>, %arg6: memref<1x8xf32, #tpu.memory_space<vmem>>, %arg7: memref<16x32xbf16, #tpu.memory_space<vmem>>, %arg8: memref<8x32xbf16, #tpu.memory_space<vmem>>, %arg9: memref<1x32xf32, #tpu.memory_space<vmem>>, %arg10: memref<1x32xf32, #tpu.memory_space<vmem>>, %arg11: memref<8x32xbf16, #tpu.memory_space<vmem>>) attributes {dimension_semantics = [#tpu.dimension_semantics<parallel>], iteration_bounds = array<i64: 1>, scalar_prefetch = 0 : i64, scratch_operands = 0 : i64, tpu.core_type = #tpu.core_type<tc>, window_params = [{transform_indices = @transform_0, window_bounds = array<i64: 8, 16>}, {transform_indices = @transform_1, window_bounds = array<i64: 8, 8>}, {pipeline_mode = #tpu.pipeline_mode<synchronous>, transform_indices = @transform_2, window_bounds = array<i64: 1, 16>}, {pipeline_mode = #tpu.pipeline_mode<synchronous>, transform_indices = @transform_3, window_bounds = array<i64: 1, 8>}, {pipeline_mode = #tpu.pipeline_mode<synchronous>, transform_indices = @transform_4, window_bounds = array<i64: 1, 16>}, {pipeline_mode = #tpu.pipeline_mode<synchronous>, transform_indices = @transform_5, window_bounds = array<i64: 1, 8>}, {pipeline_mode = #tpu.pipeline_mode<synchronous>, transform_indices = @transform_6, window_bounds = array<i64: 16, 32>}, {pipeline_mode = #tpu.pipeline_mode<synchronous>, transform_indices = @transform_7, window_bounds = array<i64: 8, 32>}, {pipeline_mode = #tpu.pipeline_mode<synchronous>, transform_indices = @transform_8, window_bounds = array<i64: 1, 32>}, {pipeline_mode = #tpu.pipeline_mode<synchronous>, transform_indices = @transform_9, window_bounds = array<i64: 1, 32>}, {transform_indices = @transform_10, window_bounds = array<i64: 8, 32>}]} {
    %cst = arith.constant 0.000000e+00 : f32
    %0 = vector.broadcast %cst : f32 to vector<8x32xf32>
    %c0 = arith.constant 0 : index
    %c0_0 = arith.constant 0 : index
    %1 = vector.load %arg1[%c0, %c0_0] : memref<8x16xbf16, #tpu.memory_space<vmem>>, vector<8x16xbf16>
    %2 = arith.extf %1 : vector<8x16xbf16> to vector<8x16xf32>
    %c0_1 = arith.constant 0 : index
    %c0_2 = arith.constant 0 : index
    %3 = vector.load %arg3[%c0_1, %c0_2] : memref<1x16xf32, #tpu.memory_space<vmem>>, vector<1x16xf32>
    %4 = vector.broadcast %3 : vector<1x16xf32> to vector<8x16xf32>
    %5 = arith.mulf %2, %4 : vector<8x16xf32>
    %c0_3 = arith.constant 0 : index
    %c0_4 = arith.constant 0 : index
    %6 = vector.load %arg5[%c0_3, %c0_4] : memref<1x16xf32, #tpu.memory_space<vmem>>, vector<1x16xf32>
    %7 = vector.broadcast %6 : vector<1x16xf32> to vector<8x16xf32>
    %8 = arith.addf %5, %7 : vector<8x16xf32>
    %cst_5 = arith.constant 0.000000e+00 : f32
    %9 = vector.broadcast %cst_5 : f32 to vector<8x16xf32>
    %10 = arith.maximumf %8, %9 : vector<8x16xf32>
    %11 = arith.truncf %10 : vector<8x16xf32> to vector<8x16xbf16>
    %c0_6 = arith.constant 0 : index
    %c0_7 = arith.constant 0 : index
    %12 = vector.load %arg7[%c0_6, %c0_7] : memref<16x32xbf16, #tpu.memory_space<vmem>>, vector<16x32xbf16>
    %cst_8 = arith.constant dense<0.000000e+00> : vector<8x32xf32>
    %13 = tpu.matmul %11, %12, %cst_8 {dimension_numbers = #tpu.dot_dimension_numbers<[1], [0], [0], [1], [0, 0, 1, 1], [], []>} : vector<8x16xbf16>, vector<16x32xbf16>, vector<8x32xf32> -> vector<8x32xf32>
    %14 = arith.addf %0, %13 : vector<8x32xf32>
    %c0_9 = arith.constant 0 : index
    %c0_10 = arith.constant 0 : index
    %15 = vector.load %arg2[%c0_9, %c0_10] : memref<8x8xbf16, #tpu.memory_space<vmem>>, vector<8x8xbf16>
    %16 = arith.extf %15 : vector<8x8xbf16> to vector<8x8xf32>
    %c0_11 = arith.constant 0 : index
    %c0_12 = arith.constant 0 : index
    %17 = vector.load %arg4[%c0_11, %c0_12] : memref<1x8xf32, #tpu.memory_space<vmem>>, vector<1x8xf32>
    %18 = vector.broadcast %17 : vector<1x8xf32> to vector<8x8xf32>
    %19 = arith.mulf %16, %18 : vector<8x8xf32>
    %c0_13 = arith.constant 0 : index
    %c0_14 = arith.constant 0 : index
    %20 = vector.load %arg6[%c0_13, %c0_14] : memref<1x8xf32, #tpu.memory_space<vmem>>, vector<1x8xf32>
    %21 = vector.broadcast %20 : vector<1x8xf32> to vector<8x8xf32>
    %22 = arith.addf %19, %21 : vector<8x8xf32>
    %cst_15 = arith.constant 0.000000e+00 : f32
    %23 = vector.broadcast %cst_15 : f32 to vector<8x8xf32>
    %24 = arith.maximumf %22, %23 : vector<8x8xf32>
    %25 = arith.truncf %24 : vector<8x8xf32> to vector<8x8xbf16>
    %c0_16 = arith.constant 0 : index
    %c0_17 = arith.constant 0 : index
    %26 = vector.load %arg8[%c0_16, %c0_17] : memref<8x32xbf16, #tpu.memory_space<vmem>>, vector<8x32xbf16>
    %cst_18 = arith.constant dense<0.000000e+00> : vector<8x32xf32>
    %27 = tpu.matmul %25, %26, %cst_18 {dimension_numbers = #tpu.dot_dimension_numbers<[1], [0], [0], [1], [0, 0, 1, 1], [], []>} : vector<8x8xbf16>, vector<8x32xbf16>, vector<8x32xf32> -> vector<8x32xf32>
    %28 = arith.addf %14, %27 : vector<8x32xf32>
    %c0_19 = arith.constant 0 : index
    %c0_20 = arith.constant 0 : index
    %29 = vector.load %arg9[%c0_19, %c0_20] : memref<1x32xf32, #tpu.memory_space<vmem>>, vector<1x32xf32>
    %30 = vector.broadcast %29 : vector<1x32xf32> to vector<8x32xf32>
    %31 = arith.mulf %28, %30 : vector<8x32xf32>
    %c0_21 = arith.constant 0 : index
    %c0_22 = arith.constant 0 : index
    %32 = vector.load %arg10[%c0_21, %c0_22] : memref<1x32xf32, #tpu.memory_space<vmem>>, vector<1x32xf32>
    %33 = vector.broadcast %32 : vector<1x32xf32> to vector<8x32xf32>
    %34 = arith.addf %31, %33 : vector<8x32xf32>
    %cst_23 = arith.constant 0.000000e+00 : f32
    %35 = vector.broadcast %cst_23 : f32 to vector<8x32xf32>
    %36 = arith.maximumf %34, %35 : vector<8x32xf32>
    %37 = arith.truncf %36 : vector<8x32xf32> to vector<8x32xbf16>
    %c0_24 = arith.constant 0 : index
    %c0_25 = arith.constant 0 : index
    %38 = vector.load %arg11[%c0_24, %c0_25] : memref<8x32xbf16, #tpu.memory_space<vmem>>, vector<8x32xbf16>
    tpu.vector_store %arg11[%c0_24, %c0_25], %37 {strides = array<i32>} : memref<8x32xbf16, #tpu.memory_space<vmem>>, vector<8x32xbf16>,
    return
  }
  func.func @transform_0(%arg0: i32) -> (i32, i32) {
    %c0_i32 = arith.constant 0 : i32
    %c0_i32_0 = arith.constant 0 : i32
    return %arg0, %c0_i32 : i32, i32
  }
  func.func @transform_1(%arg0: i32) -> (i32, i32) {
    %c0_i32 = arith.constant 0 : i32
    %c0_i32_0 = arith.constant 0 : i32
    return %arg0, %c0_i32 : i32, i32
  }
  func.func @transform_2(%arg0: i32) -> (i32, i32) {
    %c0_i32 = arith.constant 0 : i32
    %c0_i32_0 = arith.constant 0 : i32
    %c0_i32_1 = arith.constant 0 : i32
    return %c0_i32, %c0_i32_0 : i32, i32
  }
  func.func @transform_3(%arg0: i32) -> (i32, i32) {
    %c0_i32 = arith.constant 0 : i32
    %c0_i32_0 = arith.constant 0 : i32
    %c0_i32_1 = arith.constant 0 : i32
    return %c0_i32, %c0_i32_0 : i32, i32
  }
  func.func @transform_4(%arg0: i32) -> (i32, i32) {
    %c0_i32 = arith.constant 0 : i32
    %c0_i32_0 = arith.constant 0 : i32
    %c0_i32_1 = arith.constant 0 : i32
    return %c0_i32, %c0_i32_0 : i32, i32
  }
  func.func @transform_5(%arg0: i32) -> (i32, i32) {
    %c0_i32 = arith.constant 0 : i32
    %c0_i32_0 = arith.constant 0 : i32
    %c0_i32_1 = arith.constant 0 : i32
    return %c0_i32, %c0_i32_0 : i32, i32
  }
  func.func @transform_6(%arg0: i32) -> (i32, i32) {
    %c0_i32 = arith.constant 0 : i32
    %c0_i32_0 = arith.constant 0 : i32
    %c0_i32_1 = arith.constant 0 : i32
    return %c0_i32, %c0_i32_0 : i32, i32
  }
  func.func @transform_7(%arg0: i32) -> (i32, i32) {
    %c0_i32 = arith.constant 0 : i32
    %c0_i32_0 = arith.constant 0 : i32
    %c0_i32_1 = arith.constant 0 : i32
    return %c0_i32, %c0_i32_0 : i32, i32
  }
  func.func @transform_8(%arg0: i32) -> (i32, i32) {
    %c0_i32 = arith.constant 0 : i32
    %c0_i32_0 = arith.constant 0 : i32
    %c0_i32_1 = arith.constant 0 : i32
    return %c0_i32, %c0_i32_0 : i32, i32
  }
  func.func @transform_9(%arg0: i32) -> (i32, i32) {
    %c0_i32 = arith.constant 0 : i32
    %c0_i32_0 = arith.constant 0 : i32
    %c0_i32_1 = arith.constant 0 : i32
    return %c0_i32, %c0_i32_0 : i32, i32
  }
  func.func @transform_10(%arg0: i32) -> (i32, i32) {
    %c0_i32 = arith.constant 0 : i32
    %c0_i32_0 = arith.constant 0 : i32
    return %arg0, %c0_i32 : i32, i32
  }
}

</mosaic_0001>

<bundles_post_ra>
// kernel: densenet_forward.21
= control target key start
LH: loop header
LB: loop body
LE: loop exit
PB: predicated region body
PF: predicated region fallthrough
CT: control target
= control target key end

     0   :  { %vm134_vm0 = vcmask 130048   ;;  %vm382_vm1 = vcmask 257024   ;;  %s735_s3 = inlined_call_operand.vmem [shape: bf16[16,32], index: 3, kind: input, shape index: {}]   ;;  %s736_s0 = inlined_call_operand.vmem [shape: bf16[128,16], index: 0, kind: input, shape index: {}]   ;;  %s737_s1 = inlined_call_operand.vmem [shape: f32[1,16], index: 1, kind: input, shape index: {}]   ;;  %s738_s2 = inlined_call_operand.vmem [shape: f32[1,16], index: 2, kind: input, shape index: {}]   ;;  %s739_s4 = inlined_call_operand.vmem [shape: f32[1,32], index: 4, kind: input, shape index: {}]   ;;  %s740_s5 = inlined_call_operand.vmem [shape: f32[1,32], index: 5, kind: input, shape index: {}]   ;;  %s741_s6 = inlined_call_operand.vmem [shape: bf16[128,32], index: 6, kind: output, shape index: {}]  }
   0x1   :  { %v516_v0 = vld [vmem:[%s735_s3] sm:$0xff]   ;;  %v480_v6 = vld [vmem:[%s736_s0 + $0x8] sm:$0xff]   ;;  %v481_v29 = vld [vmem:[%s736_s0 + $0x10] sm:$0xff]  }
   0x2   :  { %v449_v1 = vld [vmem:[%s736_s0] sm:$0xff]   ;;  %496 = vmatprep.subr.bf16.mxu0 %v516_v0  ;;  %514 = vmatprep.subr.bf16.mxu1 %v516_v0  ;;  %v484_v7 = vld [vmem:[%s736_s0 + $0x28] sm:$0xff]   ;;  %v454_v11 = vunpack.c.l.bf16 %v480_v6  ;;  %v455_v12 = vunpack.c.h.bf16 %v480_v6  ;;  %v485_v34 = vld [vmem:[%s736_s0 + $0x30] sm:$0xff]   ;;  %v458_v43 = vunpack.c.l.bf16 %v481_v29  ;;  %v459_v47 = vunpack.c.h.bf16 %v481_v29 }
   0x3   :  { %v561_v2 = vld [vmem:[%s737_s1] ss:$0 sm:$0xff]  ;;  %v450_v3 = vunpack.c.l.bf16 %v449_v1  ;;  %v451_v4 = vunpack.c.h.bf16 %v449_v1  ;;  %497 = vmatpush3.bf16.msra.mxu0 %v516_v0  ;;  %515 = vmatpush3.bf16.msra.mxu1 %v516_v0  ;;  %v470_v15 = vunpack.c.l.bf16 %v484_v7  ;;  %v471_v16 = vunpack.c.h.bf16 %v484_v7  ;;  %v482_v39 = vld [vmem:[%s736_s0 + $0x18] sm:$0xff]  }
   0x4   :  { %v483_v5 = vld [vmem:[%s736_s0 + $0x20] sm:$0xff]   ;;  %v65_v19 = vmul.f32 %v454_v11, %v561_v2  ;;  %v66_v20 = vmul.f32 %v455_v12, %v561_v2  ;;  %v486_v44 = vld [vmem:[%s736_s0 + $0x38] sm:$0xff]   ;;  %v474_v48 = vunpack.c.l.bf16 %v485_v34  ;;  %v67_v50 = vmul.f32 %v458_v43, %v561_v2 }
   0x5   :  { %v575_v8 = vld [vmem:[%s738_s2] ss:$0 sm:$0xff]  ;;  %v466_v9 = vunpack.c.l.bf16 %v483_v5  ;;  %v467_v10 = vunpack.c.h.bf16 %v483_v5  ;;  %v63_v13 = vmul.f32 %v450_v3, %v561_v2  ;;  %v64_v14 = vmul.f32 %v451_v4, %v561_v2 }
   0x6   :  { %v73_v23 = vmul.f32 %v470_v15, %v561_v2  ;;  %v74_v24 = vmul.f32 %v471_v16, %v561_v2  ;;  %v88_v27 = vadd.f32 %v575_v8, %v65_v19  ;;  %v89_v28 = vadd.f32 %v575_v8, %v66_v20  ;;  %v632_v20 = vld [vmem:[%s739_s4] ss:$0 sm:$0xff] }
   0x7   :  { %v71_v17 = vmul.f32 %v466_v9, %v561_v2  ;;  %v72_v18 = vmul.f32 %v467_v10, %v561_v2  ;;  %v86_v21 = vadd.f32 %v575_v8, %v63_v13  ;;  %v87_v22 = vadd.f32 %v575_v8, %v64_v14 }
   0x8   :  { %v96_v32 = vadd.f32 %v575_v8, %v73_v23  ;;  %v97_v33 = vadd.f32 %v575_v8, %v74_v24  ;;  %v104_v37 = vmax.f32 %v88_v27, 0.0  ;;  %v105_v38 = vmax.f32 %v89_v28, 0.0 }
   0x9   :  { %v94_v25 = vadd.f32 %v575_v8, %v71_v17  ;;  %v95_v26 = vadd.f32 %v575_v8, %v72_v18  ;;  %v102_v30 = vmax.f32 %v86_v21, 0.0  ;;  %v103_v31 = vmax.f32 %v87_v22, 0.0  ;;  %v637_v21 = vld [vmem:[%s740_s5] ss:$0 sm:$0xff] }
   0xa   :  { %v112_v41 = vmax.f32 %v96_v32, 0.0  ;;  %v113_v42 = vmax.f32 %v97_v33, 0.0  ;;  %v119_v46 = vpack.c.bf16 %v105_v38, %v104_v37  ;;  %v475_v51 = vunpack.c.h.bf16 %v485_v34 }
   0xb   :  { %v110_v35 = vmax.f32 %v94_v25, 0.0  ;;  %v111_v36 = vmax.f32 %v95_v26, 0.0  ;;  %v118_v40 = vpack.c.bf16 %v103_v31, %v102_v30  ;;  %v462_v52 = vunpack.c.l.bf16 %v482_v39 }
   0xc   :  { %v123_v49 = vpack.c.bf16 %v113_v42, %v112_v41  ;;  %v68_v53 = vmul.f32 %v459_v47, %v561_v2  ;;  %v75_v54 = vmul.f32 %v474_v48, %v561_v2  ;;  %v463_v55 = vunpack.c.h.bf16 %v482_v39 }
   0xd   :  { %v122_v45 = vpack.c.bf16 %v111_v36, %v110_v35  ;;  %498 = vmatprep.mubr.msk.bf16.mxu0 %vm134_vm0, %v118_v40  ;;  %v478_v56 = vunpack.c.l.bf16 %v486_v44  ;;  %v90_v57 = vadd.f32 %v575_v8, %v67_v50  ;;  %v76_v58 = vmul.f32 %v475_v51, %v561_v2 }
   0xe   :  { %499 = vmatmul.mubr.msk.bf16.vlgmr.msra.gmra.mrb[0].mxu0 %vm134_vm0, %v119_v46  ;;  %v69_v59 = vmul.f32 %v462_v52, %v561_v2  ;;  %v479_v60 = vunpack.c.h.bf16 %v486_v44  ;;  %v91_v61 = vadd.f32 %v575_v8, %v68_v53  ;;  %v98_v62 = vadd.f32 %v575_v8, %v75_v54 }
   0xf   :  { %506 = vmatprep.mubr.msk.bf16.mxu1 %vm134_vm0, %v122_v45  ;;  %v70_v63 = vmul.f32 %v463_v55, %v561_v2  ;;  %v77_v0 = vmul.f32 %v478_v56, %v561_v2  ;;  %v106_v1 = vmax.f32 %v90_v57, 0.0  ;;  %v99_v3 = vadd.f32 %v575_v8, %v76_v58 }
  0x10   :  { %507 = vmatmul.mubr.msk.bf16.vlgmr.msra.gmra.mrb[0].mxu1 %vm134_vm0, %v123_v49  ;;  %v92_v4 = vadd.f32 %v575_v8, %v69_v59  ;;  %v78_v5 = vmul.f32 %v479_v60, %v561_v2  ;;  %v107_v6 = vmax.f32 %v91_v61, 0.0  ;;  %v114_v7 = vmax.f32 %v98_v62, 0.0 }
  0x11   :  { %v93_v9 = vadd.f32 %v575_v8, %v70_v63  ;;  %v100_v10 = vadd.f32 %v575_v8, %v77_v0  ;;  %v115_v11 = vmax.f32 %v99_v3, 0.0 }
  0x12   :  { %v108_v12 = vmax.f32 %v92_v4, 0.0  ;;  %v101_v13 = vadd.f32 %v575_v8, %v78_v5  ;;  %v120_v14 = vpack.c.bf16 %v107_v6, %v106_v1 }
  0x13   :  { %v109_v15 = vmax.f32 %v93_v9, 0.0  ;;  %v116_v16 = vmax.f32 %v100_v10, 0.0  ;;  %v124_v17 = vpack.c.bf16 %v115_v11, %v114_v7 }
  0x14   :  { %v117_v18 = vmax.f32 %v101_v13, 0.0  ;;  %502 = vmatprep.mubr.msk.bf16.mxu0 %vm134_vm0, %v120_v14 }
  0x15   :  { %v121_v19 = vpack.c.bf16 %v109_v15, %v108_v12  ;;  %510 = vmatprep.mubr.msk.bf16.mxu1 %vm134_vm0, %v124_v17 }
  0x16   :  { %v125_v2 = vpack.c.bf16 %v117_v18, %v116_v16 }
  0x17   :  { %503 = vmatmul.mubr.msk.bf16.gmra.mrb[4].mxu0 %vm134_vm0, %v121_v19 }
  0x18   :  { %511 = vmatmul.mubr.msk.bf16.gmra.mrb[4].mxu1 %vm134_vm0, %v125_v2 }
  0xe1   :  { %v500_v8 = vpop.f32.mrb[0].mxu0 }
  0xe2   :  { %v265_v22 = vmul.f32 %v500_v8, %v632_v20  ;;  %v193_v24 = vpop.f32.mrb[1].mxu0 }
  0xe3   :  { %v508_v23 = vpop.f32.mrb[0].mxu1  ;;  %v263_v26 = vmul.f32 %v632_v20, %v193_v24  ;;  %v501_v28 = vpop.f32.mrb[2].mxu0 }
  0xe4   :  { %v273_v25 = vmul.f32 %v508_v23, %v632_v20  ;;  %v225_v27 = vpop.f32.mrb[1].mxu1  ;;  %v288_v29 = vadd.f32 %v637_v21, %v265_v22  ;;  %v266_v31 = vmul.f32 %v501_v28, %v632_v20  ;;  %v196_v33 = vpop.f32.mrb[3].mxu0 }
  0xe5   :  { %v271_v30 = vmul.f32 %v632_v20, %v225_v27  ;;  %v509_v32 = vpop.f32.mrb[2].mxu1  ;;  %v286_v35 = vadd.f32 %v637_v21, %v263_v26  ;;  %v264_v37 = vmul.f32 %v632_v20, %v196_v33 }
  0xe6   :  { %v296_v34 = vadd.f32 %v637_v21, %v273_v25  ;;  %v274_v36 = vmul.f32 %v509_v32, %v632_v20  ;;  %v228_v38 = vpop.f32.mrb[3].mxu1  ;;  %v304_v39 = vmax.f32 %v288_v29, 0.0  ;;  %v289_v41 = vadd.f32 %v637_v21, %v266_v31 }
  0xe7   :  { %v294_v40 = vadd.f32 %v637_v21, %v271_v30  ;;  %v272_v42 = vmul.f32 %v632_v20, %v228_v38  ;;  %v302_v44 = vmax.f32 %v286_v35, 0.0  ;;  %v287_v46 = vadd.f32 %v637_v21, %v264_v37 }
  0xe8   :  { %v312_v43 = vmax.f32 %v296_v34, 0.0  ;;  %v297_v45 = vadd.f32 %v637_v21, %v274_v36  ;;  %v434_v47 = vpack.c.bf16 %v304_v39, %v304_v39  ;;  %v305_v49 = vmax.f32 %v289_v41, 0.0 }
  0xe9   :  { %v310_v48 = vmax.f32 %v294_v40, 0.0  ;;  %v295_v50 = vadd.f32 %v637_v21, %v272_v42  ;;  %v432_v52 = vpack.c.bf16 %v302_v44, %v302_v44  ;;  %v303_v54 = vmax.f32 %v287_v46, 0.0 }
  0xea   :  { %v442_v51 = vpack.c.bf16 %v312_v43, %v312_v43  ;;  %v313_v53 = vmax.f32 %v297_v45, 0.0  ;;  %385 = vst.msk [vmem:[%s741_s6 + $0x8] sm:$0xf] %vm382_vm1, %v434_v47  ;;  %v435_v56 = vpack.c.bf16 %v305_v49, %v305_v49  ;;  %v504_v60 = vpop.f32.mrb[4].mxu0 }
  0xeb   :  { %v440_v55 = vpack.c.bf16 %v310_v48, %v310_v48  ;;  %v311_v57 = vmax.f32 %v295_v50, 0.0  ;;  %383 = vst.msk [vmem:[%s741_s6] sm:$0xf] %vm382_vm1, %v432_v52  ;;  %v433_v59 = vpack.c.bf16 %v303_v54, %v303_v54  ;;  %v269_v62 = vmul.f32 %v504_v60, %v632_v20  ;;  %v512_v63 = vpop.f32.mrb[4].mxu1  ;;  %v209_v0 = vpop.f32.mrb[5].mxu0 }
  0xec   :  { %393 = vst.msk [vmem:[%s741_s6 + $0x28] sm:$0xf] %vm382_vm1, %v442_v51  ;;  %v443_v58 = vpack.c.bf16 %v313_v53, %v313_v53  ;;  %386 = vst.msk [vmem:[%s741_s6 + $0xc] sm:$0xf] %vm382_vm1, %v435_v56  ;;  %v277_v1 = vmul.f32 %v512_v63, %v632_v20  ;;  %v267_v3 = vmul.f32 %v632_v20, %v209_v0  ;;  %v241_v4 = vpop.f32.mrb[5].mxu1  ;;  %v505_v5 = vpop.f32.mrb[6].mxu0 }
  0xed   :  { %391 = vst.msk [vmem:[%s741_s6 + $0x20] sm:$0xf] %vm382_vm1, %v440_v55  ;;  %v441_v61 = vpack.c.bf16 %v311_v57, %v311_v57  ;;  %384 = vst.msk [vmem:[%s741_s6 + $0x4] sm:$0xf] %vm382_vm1, %v433_v59  ;;  %v292_v6 = vadd.f32 %v637_v21, %v269_v62  ;;  %v275_v7 = vmul.f32 %v632_v20, %v241_v4  ;;  %v513_v10 = vpop.f32.mrb[6].mxu1  ;;  %v212_v11 = vpop.f32.mrb[7].mxu0 }
  0xee   :  { %394 = vst.msk [vmem:[%s741_s6 + $0x2c] sm:$0xf] %vm382_vm1, %v443_v58  ;;  %v270_v9 = vmul.f32 %v505_v5, %v632_v20  ;;  %v300_v12 = vadd.f32 %v637_v21, %v277_v1  ;;  %v290_v13 = vadd.f32 %v637_v21, %v267_v3  ;;  %v278_v14 = vmul.f32 %v513_v10, %v632_v20  ;;  %v244_v16 = vpop.f32.mrb[7].mxu1 }
  0xef   :  { %392 = vst.msk [vmem:[%s741_s6 + $0x24] sm:$0xf] %vm382_vm1, %v441_v61  ;;  %v268_v15 = vmul.f32 %v632_v20, %v212_v11  ;;  %v308_v17 = vmax.f32 %v292_v6, 0.0  ;;  %v298_v18 = vadd.f32 %v637_v21, %v275_v7  ;;  %v276_v2 = vmul.f32 %v632_v20, %v244_v16 }
  0xf0   :  { %v293_v19 = vadd.f32 %v637_v21, %v270_v9  ;;  %v316_v8 = vmax.f32 %v300_v12, 0.0  ;;  %v306_v22 = vmax.f32 %v290_v13, 0.0  ;;  %v301_v23 = vadd.f32 %v637_v21, %v278_v14 }
  0xf1   :  { %v291_v24 = vadd.f32 %v637_v21, %v268_v15  ;;  %v438_v25 = vpack.c.bf16 %v308_v17, %v308_v17  ;;  %v314_v26 = vmax.f32 %v298_v18, 0.0  ;;  %v299_v28 = vadd.f32 %v637_v21, %v276_v2 }
  0xf2   :  { %v309_v27 = vmax.f32 %v293_v19, 0.0  ;;  %v446_v29 = vpack.c.bf16 %v316_v8, %v316_v8  ;;  %v436_v30 = vpack.c.bf16 %v306_v22, %v306_v22  ;;  %v317_v31 = vmax.f32 %v301_v23, 0.0 }
  0xf3   :  { %v307_v32 = vmax.f32 %v291_v24, 0.0  ;;  %389 = vst.msk [vmem:[%s741_s6 + $0x18] sm:$0xf] %vm382_vm1, %v438_v25  ;;  %v444_v20 = vpack.c.bf16 %v314_v26, %v314_v26  ;;  %v315_v34 = vmax.f32 %v299_v28, 0.0 }
  0xf4   :  { %v439_v33 = vpack.c.bf16 %v309_v27, %v309_v27  ;;  %397 = vst.msk [vmem:[%s741_s6 + $0x38] sm:$0xf] %vm382_vm1, %v446_v29  ;;  %387 = vst.msk [vmem:[%s741_s6 + $0x10] sm:$0xf] %vm382_vm1, %v436_v30  ;;  %v447_v21 = vpack.c.bf16 %v317_v31, %v317_v31 }
  0xf5   :  { %v437_v35 = vpack.c.bf16 %v307_v32, %v307_v32  ;;  %395 = vst.msk [vmem:[%s741_s6 + $0x30] sm:$0xf] %vm382_vm1, %v444_v20  ;;  %v445_v36 = vpack.c.bf16 %v315_v34, %v315_v34 }
  0xf6   :  { %390 = vst.msk [vmem:[%s741_s6 + $0x1c] sm:$0xf] %vm382_vm1, %v439_v33  ;;  %398 = vst.msk [vmem:[%s741_s6 + $0x3c] sm:$0xf] %vm382_vm1, %v447_v21 }
  0xf7   :  { %388 = vst.msk [vmem:[%s741_s6 + $0x14] sm:$0xf] %vm382_vm1, %v437_v35  ;;  %396 = vst.msk [vmem:[%s741_s6 + $0x34] sm:$0xf] %vm382_vm1, %v445_v36 }

// kernel: densenet_forward.20
= control target key start
LH: loop header
LB: loop body
LE: loop exit
PB: predicated region body
PF: predicated region fallthrough
CT: control target
= control target key end

     0   :  { %vm304_vm0 = vcmask 125952   ;;  %s871_s0 = inlined_call_operand.vmem [shape: bf16[128,16], index: 0, kind: input, shape index: {}]   ;;  %s872_s1 = inlined_call_operand.vmem [shape: bf16[128,16], index: 1, kind: input, shape index: {}]   ;;  %s873_s2 = inlined_call_operand.vmem [shape: bf16[128,16], index: 2, kind: input, shape index: {}]   ;;  %s874_s3 = inlined_call_operand.vmem [shape: bf16[128,16], index: 3, kind: input, shape index: {}]   ;;  %s875_s4 = inlined_call_operand.vmem [shape: bf16[128,16], index: 4, kind: input, shape index: {}]   ;;  %s876_s5 = inlined_call_operand.vmem [shape: bf16[128,16], index: 5, kind: input, shape index: {}]   ;;  %s877_s6 = inlined_call_operand.vmem [shape: bf16[128,16], index: 6, kind: input, shape index: {}]   ;;  %s878_s7 = inlined_call_operand.vmem [shape: bf16[128,16], index: 7, kind: input, shape index: {}]   ;;  %s879_s8 = inlined_call_operand.vmem [shape: bf16[128,16], index: 8, kind: input, shape index: {}]   ;;  %s880_s9 = inlined_call_operand.vmem [shape: bf16[128,16], index: 9, kind: output, shape index: {}]  }
   0x1   :  { %v32_v0 = vld [vmem:[%s871_s0] sm:$0xf]  ;;  %v33_v6 = vld [vmem:[%s871_s0 + $0x4] sm:$0xf]  ;;  %v34_v15 = vld [vmem:[%s871_s0 + $0x8] sm:$0xf] }
   0x2   :  { %v48_v1 = vld [vmem:[%s872_s1] sm:$0xf]  ;;  %v49_v7 = vld [vmem:[%s872_s1 + $0x4] sm:$0xf]  ;;  %v50_v16 = vld [vmem:[%s872_s1 + $0x8] sm:$0xf] }
   0x3   :  { %v80_v2 = vld [vmem:[%s873_s2] sm:$0xf]  ;;  %v64_v3 = vmax.bf16 %v48_v1, %v32_v0  ;;  %v81_v8 = vld [vmem:[%s873_s2 + $0x4] sm:$0xf]  ;;  %v65_v10 = vmax.bf16 %v49_v7, %v33_v6  ;;  %v82_v17 = vld [vmem:[%s873_s2 + $0x8] sm:$0xf]  ;;  %v66_v20 = vmax.bf16 %v50_v16, %v34_v15 }
   0x4   :  { %v112_v4 = vld [vmem:[%s874_s3] sm:$0xf]  ;;  %v113_v13 = vld [vmem:[%s874_s3 + $0x4] sm:$0xf]  ;;  %v114_v24 = vld [vmem:[%s874_s3 + $0x8] sm:$0xf] }
   0x5   :  { %v96_v5 = vmax.bf16 %v80_v2, %v64_v3  ;;  %v144_v9 = vld [vmem:[%s875_s4] sm:$0xf]  ;;  %v97_v14 = vmax.bf16 %v81_v8, %v65_v10  ;;  %v145_v19 = vld [vmem:[%s875_s4 + $0x4] sm:$0xf]  ;;  %v98_v26 = vmax.bf16 %v82_v17, %v66_v20  ;;  %v35_v27 = vld [vmem:[%s871_s0 + $0xc] sm:$0xf] }
   0x6   :  { %v176_v12 = vld [vmem:[%s876_s5] sm:$0xf]  ;;  %v177_v23 = vld [vmem:[%s876_s5 + $0x4] sm:$0xf]  ;;  %v51_v28 = vld [vmem:[%s872_s1 + $0xc] sm:$0xf] }
   0x7   :  { %v128_v11 = vmax.bf16 %v112_v4, %v96_v5  ;;  %v208_v21 = vld [vmem:[%s877_s6] sm:$0xf]  ;;  %v129_v22 = vmax.bf16 %v113_v13, %v97_v14  ;;  %v83_v29 = vld [vmem:[%s873_s2 + $0xc] sm:$0xf]  ;;  %v146_v33 = vld [vmem:[%s875_s4 + $0x8] sm:$0xf]  ;;  %v67_v34 = vmax.bf16 %v51_v28, %v35_v27  ;;  %v130_v37 = vmax.bf16 %v114_v24, %v98_v26 }
   0x8   :  { %v240_v30 = vld [vmem:[%s878_s7] sm:$0xf]  ;;  %v209_v36 = vld [vmem:[%s877_s6 + $0x4] sm:$0xf]  ;;  %v178_v38 = vld [vmem:[%s876_s5 + $0x8] sm:$0xf] }
   0x9   :  { %v160_v18 = vmax.bf16 %v144_v9, %v128_v11  ;;  %v272_v31 = vld [vmem:[%s879_s8] sm:$0xf]  ;;  %v161_v32 = vmax.bf16 %v145_v19, %v129_v22  ;;  %v115_v39 = vld [vmem:[%s874_s3 + $0xc] sm:$0xf]  ;;  %v99_v41 = vmax.bf16 %v83_v29, %v67_v34  ;;  %v36_v42 = vld [vmem:[%s871_s0 + $0x10] sm:$0xf]  ;;  %v162_v48 = vmax.bf16 %v146_v33, %v130_v37 }
   0xa   :  { %v52_v43 = vld [vmem:[%s872_s1 + $0x10] sm:$0xf]  ;;  %v241_v46 = vld [vmem:[%s878_s7 + $0x4] sm:$0xf]  ;;  %v147_v49 = vld [vmem:[%s875_s4 + $0xc] sm:$0xf] }
   0xb   :  { %v192_v25 = vmax.bf16 %v176_v12, %v160_v18  ;;  %v193_v40 = vmax.bf16 %v177_v23, %v161_v32  ;;  %v84_v44 = vld [vmem:[%s873_s2 + $0x10] sm:$0xf]  ;;  %v273_v47 = vld [vmem:[%s879_s8 + $0x4] sm:$0xf]  ;;  %v68_v50 = vmax.bf16 %v52_v43, %v36_v42  ;;  %v210_v52 = vld [vmem:[%s877_s6 + $0x8] sm:$0xf]  ;;  %v131_v53 = vmax.bf16 %v115_v39, %v99_v41 }
   0xc   :  { %v179_v54 = vld [vmem:[%s876_s5 + $0xc] sm:$0xf]  ;;  %v116_v55 = vld [vmem:[%s874_s3 + $0x10] sm:$0xf]  ;;  %v194_v57 = vmax.bf16 %v178_v38, %v162_v48  ;;  %v37_v59 = vld [vmem:[%s871_s0 + $0x14] sm:$0xf] }
   0xd   :  { %v224_v35 = vmax.bf16 %v208_v21, %v192_v25  ;;  %v225_v51 = vmax.bf16 %v209_v36, %v193_v40  ;;  %v100_v58 = vmax.bf16 %v84_v44, %v68_v50  ;;  %v53_v60 = vld [vmem:[%s872_s1 + $0x14] sm:$0xf]  ;;  %v242_v63 = vld [vmem:[%s878_s7 + $0x8] sm:$0xf]  ;;  %v163_v1 = vmax.bf16 %v147_v49, %v131_v53  ;;  %v148_v2 = vld [vmem:[%s875_s4 + $0x10] sm:$0xf] }
   0xe   :  { %v85_v61 = vld [vmem:[%s873_s2 + $0x14] sm:$0xf]  ;;  %v274_v0 = vld [vmem:[%s879_s8 + $0x8] sm:$0xf]  ;;  %v69_v3 = vmax.bf16 %v53_v60, %v37_v59  ;;  %v226_v4 = vmax.bf16 %v210_v52, %v194_v57  ;;  %v211_v5 = vld [vmem:[%s877_s6 + $0xc] sm:$0xf] }
   0xf   :  { %v256_v45 = vmax.bf16 %v240_v30, %v224_v35  ;;  %v257_v62 = vmax.bf16 %v241_v46, %v225_v51  ;;  %v132_v6 = vmax.bf16 %v116_v55, %v100_v58  ;;  %v180_v7 = vld [vmem:[%s876_s5 + $0x10] sm:$0xf]  ;;  %v117_v8 = vld [vmem:[%s874_s3 + $0x14] sm:$0xf]  ;;  %v195_v10 = vmax.bf16 %v179_v54, %v163_v1  ;;  %v38_v12 = vld [vmem:[%s871_s0 + $0x18] sm:$0xf] }
  0x10   :  { %v101_v11 = vmax.bf16 %v85_v61, %v69_v3  ;;  %v54_v13 = vld [vmem:[%s872_s1 + $0x18] sm:$0xf]  ;;  %v258_v15 = vmax.bf16 %v242_v63, %v226_v4  ;;  %v243_v16 = vld [vmem:[%s878_s7 + $0xc] sm:$0xf]  ;;  %v149_v19 = vld [vmem:[%s875_s4 + $0x14] sm:$0xf] }
  0x11   :  { %v288_v56 = vmax.bf16 %v272_v31, %v256_v45  ;;  %v289_v9 = vmax.bf16 %v273_v47, %v257_v62  ;;  %v86_v14 = vld [vmem:[%s873_s2 + $0x18] sm:$0xf]  ;;  %v275_v17 = vld [vmem:[%s879_s8 + $0xc] sm:$0xf]  ;;  %v164_v18 = vmax.bf16 %v148_v2, %v132_v6  ;;  %v70_v20 = vmax.bf16 %v54_v13, %v38_v12  ;;  %v212_v22 = vld [vmem:[%s877_s6 + $0x10] sm:$0xf] }
  0x12   :  { %v227_v21 = vmax.bf16 %v211_v5, %v195_v10  ;;  %v133_v23 = vmax.bf16 %v117_v8, %v101_v11  ;;  %v181_v24 = vld [vmem:[%s876_s5 + $0x14] sm:$0xf]  ;;  %v118_v25 = vld [vmem:[%s874_s3 + $0x18] sm:$0xf]  ;;  %v290_v26 = vmax.bf16 %v274_v0, %v258_v15  ;;  %v39_v29 = vld [vmem:[%s871_s0 + $0x1c] sm:$0xf] }
  0x13   :  { %305 = vst.msk [vmem:[%s880_s9] sm:$0xf] %vm304_vm0, %v288_v56  ;;  %306 = vst.msk [vmem:[%s880_s9 + $0x4] sm:$0xf] %vm304_vm0, %v289_v9  ;;  %v196_v27 = vmax.bf16 %v180_v7, %v164_v18  ;;  %v102_v28 = vmax.bf16 %v86_v14, %v70_v20  ;;  %v55_v30 = vld [vmem:[%s872_s1 + $0x1c] sm:$0xf] }
  0x14   :  { %v87_v31 = vld [vmem:[%s873_s2 + $0x1c] sm:$0xf]  ;;  %v259_v32 = vmax.bf16 %v243_v16, %v227_v21  ;;  %v244_v33 = vld [vmem:[%s878_s7 + $0x10] sm:$0xf]  ;;  %v165_v35 = vmax.bf16 %v149_v19, %v133_v23  ;;  %v150_v36 = vld [vmem:[%s875_s4 + $0x18] sm:$0xf]  ;;  %v71_v37 = vmax.bf16 %v55_v30, %v39_v29 }
  0x15   :  { %v276_v34 = vld [vmem:[%s879_s8 + $0x10] sm:$0xf]  ;;  %307 = vst.msk [vmem:[%s880_s9 + $0x8] sm:$0xf] %vm304_vm0, %v290_v26  ;;  %v228_v38 = vmax.bf16 %v212_v22, %v196_v27  ;;  %v213_v39 = vld [vmem:[%s877_s6 + $0x14] sm:$0xf]  ;;  %v134_v40 = vmax.bf16 %v118_v25, %v102_v28 }
  0x16   :  { %v182_v41 = vld [vmem:[%s876_s5 + $0x18] sm:$0xf]  ;;  %v119_v42 = vld [vmem:[%s874_s3 + $0x1c] sm:$0xf]  ;;  %v291_v43 = vmax.bf16 %v275_v17, %v259_v32  ;;  %v197_v44 = vmax.bf16 %v181_v24, %v165_v35  ;;  %v103_v45 = vmax.bf16 %v87_v31, %v71_v37  ;;  %v40_v46 = vld [vmem:[%s871_s0 + $0x20] sm:$0xf] }
  0x17   :  { %v56_v47 = vld [vmem:[%s872_s1 + $0x20] sm:$0xf]  ;;  %v260_v49 = vmax.bf16 %v244_v33, %v228_v38  ;;  %v245_v50 = vld [vmem:[%s878_s7 + $0x14] sm:$0xf]  ;;  %v166_v52 = vmax.bf16 %v150_v36, %v134_v40  ;;  %v151_v53 = vld [vmem:[%s875_s4 + $0x1c] sm:$0xf] }
  0x18   :  { %v88_v48 = vld [vmem:[%s873_s2 + $0x20] sm:$0xf]  ;;  %v277_v51 = vld [vmem:[%s879_s8 + $0x14] sm:$0xf]  ;;  %v72_v54 = vmax.bf16 %v56_v47, %v40_v46  ;;  %308 = vst.msk [vmem:[%s880_s9 + $0xc] sm:$0xf] %vm304_vm0, %v291_v43  ;;  %v229_v55 = vmax.bf16 %v213_v39, %v197_v44  ;;  %v135_v57 = vmax.bf16 %v119_v42, %v103_v45 }
  0x19   :  { %v214_v56 = vld [vmem:[%s877_s6 + $0x18] sm:$0xf]  ;;  %v183_v58 = vld [vmem:[%s876_s5 + $0x1c] sm:$0xf]  ;;  %v120_v59 = vld [vmem:[%s874_s3 + $0x20] sm:$0xf]  ;;  %v292_v60 = vmax.bf16 %v276_v34, %v260_v49  ;;  %v198_v61 = vmax.bf16 %v182_v41, %v166_v52 }
  0x1a   :  { %v104_v62 = vmax.bf16 %v88_v48, %v72_v54  ;;  %v41_v63 = vld [vmem:[%s871_s0 + $0x24] sm:$0xf]  ;;  %v261_v2 = vmax.bf16 %v245_v50, %v229_v55  ;;  %v246_v3 = vld [vmem:[%s878_s7 + $0x18] sm:$0xf]  ;;  %v167_v5 = vmax.bf16 %v151_v53, %v135_v57  ;;  %v152_v6 = vld [vmem:[%s875_s4 + $0x20] sm:$0xf] }
  0x1b   :  { %v57_v0 = vld [vmem:[%s872_s1 + $0x24] sm:$0xf]  ;;  %v278_v4 = vld [vmem:[%s879_s8 + $0x18] sm:$0xf]  ;;  %309 = vst.msk [vmem:[%s880_s9 + $0x10] sm:$0xf] %vm304_vm0, %v292_v60  ;;  %v230_v8 = vmax.bf16 %v214_v56, %v198_v61 }
  0x1c   :  { %v89_v1 = vld [vmem:[%s873_s2 + $0x24] sm:$0xf]  ;;  %v73_v7 = vmax.bf16 %v57_v0, %v41_v63  ;;  %v215_v9 = vld [vmem:[%s877_s6 + $0x1c] sm:$0xf]  ;;  %v136_v10 = vmax.bf16 %v120_v59, %v104_v62  ;;  %v184_v11 = vld [vmem:[%s876_s5 + $0x20] sm:$0xf]  ;;  %v293_v13 = vmax.bf16 %v277_v51, %v261_v2  ;;  %v199_v14 = vmax.bf16 %v183_v58, %v167_v5 }
  0x1d   :  { %v121_v12 = vld [vmem:[%s874_s3 + $0x24] sm:$0xf]  ;;  %v42_v16 = vld [vmem:[%s871_s0 + $0x28] sm:$0xf]  ;;  %v262_v19 = vmax.bf16 %v246_v3, %v230_v8  ;;  %v247_v20 = vld [vmem:[%s878_s7 + $0x1c] sm:$0xf] }
  0x1e   :  { %v105_v15 = vmax.bf16 %v89_v1, %v73_v7  ;;  %v58_v17 = vld [vmem:[%s872_s1 + $0x28] sm:$0xf]  ;;  %v279_v21 = vld [vmem:[%s879_s8 + $0x1c] sm:$0xf]  ;;  %v168_v22 = vmax.bf16 %v152_v6, %v136_v10  ;;  %v153_v23 = vld [vmem:[%s875_s4 + $0x24] sm:$0xf]  ;;  %v231_v25 = vmax.bf16 %v215_v9, %v199_v14 }
  0x1f   :  { %v90_v18 = vld [vmem:[%s873_s2 + $0x28] sm:$0xf]  ;;  %v74_v24 = vmax.bf16 %v58_v17, %v42_v16  ;;  %310 = vst.msk [vmem:[%s880_s9 + $0x14] sm:$0xf] %vm304_vm0, %v293_v13  ;;  %v216_v26 = vld [vmem:[%s877_s6 + $0x20] sm:$0xf]  ;;  %v294_v30 = vmax.bf16 %v278_v4, %v262_v19 }
  0x20   :  { %v137_v27 = vmax.bf16 %v121_v12, %v105_v15  ;;  %v185_v28 = vld [vmem:[%s876_s5 + $0x24] sm:$0xf]  ;;  %v122_v29 = vld [vmem:[%s874_s3 + $0x28] sm:$0xf]  ;;  %v200_v31 = vmax.bf16 %v184_v11, %v168_v22  ;;  %v43_v33 = vld [vmem:[%s871_s0 + $0x2c] sm:$0xf]  ;;  %v263_v36 = vmax.bf16 %v247_v20, %v231_v25 }
  0x21   :  { %v106_v32 = vmax.bf16 %v90_v18, %v74_v24  ;;  %v59_v34 = vld [vmem:[%s872_s1 + $0x2c] sm:$0xf]  ;;  %v248_v37 = vld [vmem:[%s878_s7 + $0x20] sm:$0xf]  ;;  %v154_v40 = vld [vmem:[%s875_s4 + $0x28] sm:$0xf] }
  0x22   :  { %v91_v35 = vld [vmem:[%s873_s2 + $0x2c] sm:$0xf]  ;;  %v280_v38 = vld [vmem:[%s879_s8 + $0x20] sm:$0xf]  ;;  %v169_v39 = vmax.bf16 %v153_v23, %v137_v27  ;;  %v75_v41 = vmax.bf16 %v59_v34, %v43_v33  ;;  %311 = vst.msk [vmem:[%s880_s9 + $0x18] sm:$0xf] %vm304_vm0, %v294_v30  ;;  %v232_v42 = vmax.bf16 %v216_v26, %v200_v31  ;;  %v295_v47 = vmax.bf16 %v279_v21, %v263_v36 }
  0x23   :  { %v217_v43 = vld [vmem:[%s877_s6 + $0x24] sm:$0xf]  ;;  %v138_v44 = vmax.bf16 %v122_v29, %v106_v32  ;;  %v186_v45 = vld [vmem:[%s876_s5 + $0x28] sm:$0xf]  ;;  %v123_v46 = vld [vmem:[%s874_s3 + $0x2c] sm:$0xf] }
  0x24   :  { %v201_v48 = vmax.bf16 %v185_v28, %v169_v39  ;;  %v107_v49 = vmax.bf16 %v91_v35, %v75_v41  ;;  %v44_v50 = vld [vmem:[%s871_s0 + $0x30] sm:$0xf]  ;;  %v264_v53 = vmax.bf16 %v248_v37, %v232_v42  ;;  %v249_v54 = vld [vmem:[%s878_s7 + $0x24] sm:$0xf]  ;;  %v155_v57 = vld [vmem:[%s875_s4 + $0x2c] sm:$0xf] }
  0x25   :  { %v60_v51 = vld [vmem:[%s872_s1 + $0x30] sm:$0xf]  ;;  %v281_v55 = vld [vmem:[%s879_s8 + $0x24] sm:$0xf]  ;;  %v170_v56 = vmax.bf16 %v154_v40, %v138_v44  ;;  %312 = vst.msk [vmem:[%s880_s9 + $0x1c] sm:$0xf] %vm304_vm0, %v295_v47 }
  0x26   :  { %v92_v52 = vld [vmem:[%s873_s2 + $0x30] sm:$0xf]  ;;  %v76_v58 = vmax.bf16 %v60_v51, %v44_v50  ;;  %v233_v59 = vmax.bf16 %v217_v43, %v201_v48  ;;  %v218_v60 = vld [vmem:[%s877_s6 + $0x28] sm:$0xf]  ;;  %v139_v61 = vmax.bf16 %v123_v46, %v107_v49  ;;  %v187_v62 = vld [vmem:[%s876_s5 + $0x2c] sm:$0xf]  ;;  %v296_v0 = vmax.bf16 %v280_v38, %v264_v53 }
  0x27   :  { %v124_v63 = vld [vmem:[%s874_s3 + $0x30] sm:$0xf]  ;;  %v202_v1 = vmax.bf16 %v186_v45, %v170_v56  ;;  %v45_v3 = vld [vmem:[%s871_s0 + $0x34] sm:$0xf]  ;;  %v250_v7 = vld [vmem:[%s878_s7 + $0x28] sm:$0xf] }
  0x28   :  { %v108_v2 = vmax.bf16 %v92_v52, %v76_v58  ;;  %v61_v4 = vld [vmem:[%s872_s1 + $0x34] sm:$0xf]  ;;  %v265_v6 = vmax.bf16 %v249_v54, %v233_v59  ;;  %v282_v8 = vld [vmem:[%s879_s8 + $0x28] sm:$0xf]  ;;  %v171_v9 = vmax.bf16 %v155_v57, %v139_v61  ;;  %v156_v10 = vld [vmem:[%s875_s4 + $0x30] sm:$0xf] }
  0x29   :  { %v93_v5 = vld [vmem:[%s873_s2 + $0x34] sm:$0xf]  ;;  %v77_v11 = vmax.bf16 %v61_v4, %v45_v3  ;;  %313 = vst.msk [vmem:[%s880_s9 + $0x20] sm:$0xf] %vm304_vm0, %v296_v0  ;;  %v234_v12 = vmax.bf16 %v218_v60, %v202_v1  ;;  %v219_v13 = vld [vmem:[%s877_s6 + $0x2c] sm:$0xf] }
  0x2a   :  { %v140_v14 = vmax.bf16 %v124_v63, %v108_v2  ;;  %v188_v15 = vld [vmem:[%s876_s5 + $0x30] sm:$0xf]  ;;  %v125_v16 = vld [vmem:[%s874_s3 + $0x34] sm:$0xf]  ;;  %v297_v17 = vmax.bf16 %v281_v55, %v265_v6  ;;  %v203_v18 = vmax.bf16 %v187_v62, %v171_v9  ;;  %v46_v20 = vld [vmem:[%s871_s0 + $0x38] sm:$0xf] }
  0x2b   :  { %v109_v19 = vmax.bf16 %v93_v5, %v77_v11  ;;  %v62_v21 = vld [vmem:[%s872_s1 + $0x38] sm:$0xf]  ;;  %v266_v23 = vmax.bf16 %v250_v7, %v234_v12  ;;  %v251_v24 = vld [vmem:[%s878_s7 + $0x2c] sm:$0xf]  ;;  %v157_v27 = vld [vmem:[%s875_s4 + $0x34] sm:$0xf] }
  0x2c   :  { %v94_v22 = vld [vmem:[%s873_s2 + $0x38] sm:$0xf]  ;;  %v283_v25 = vld [vmem:[%s879_s8 + $0x2c] sm:$0xf]  ;;  %v172_v26 = vmax.bf16 %v156_v10, %v140_v14  ;;  %v78_v28 = vmax.bf16 %v62_v21, %v46_v20  ;;  %314 = vst.msk [vmem:[%s880_s9 + $0x24] sm:$0xf] %vm304_vm0, %v297_v17  ;;  %v235_v29 = vmax.bf16 %v219_v13, %v203_v18 }
  0x2d   :  { %v220_v30 = vld [vmem:[%s877_s6 + $0x30] sm:$0xf]  ;;  %v141_v31 = vmax.bf16 %v125_v16, %v109_v19  ;;  %v189_v32 = vld [vmem:[%s876_s5 + $0x34] sm:$0xf]  ;;  %v126_v33 = vld [vmem:[%s874_s3 + $0x38] sm:$0xf]  ;;  %v298_v34 = vmax.bf16 %v282_v8, %v266_v23 }
  0x2e   :  { %v204_v35 = vmax.bf16 %v188_v15, %v172_v26  ;;  %v110_v36 = vmax.bf16 %v94_v22, %v78_v28  ;;  %v47_v37 = vld [vmem:[%s871_s0 + $0x3c] sm:$0xf]  ;;  %v267_v40 = vmax.bf16 %v251_v24, %v235_v29  ;;  %v252_v41 = vld [vmem:[%s878_s7 + $0x30] sm:$0xf]  ;;  %v158_v43 = vld [vmem:[%s875_s4 + $0x38] sm:$0xf] }
  0x2f   :  { %v63_v38 = vld [vmem:[%s872_s1 + $0x3c] sm:$0xf]  ;;  %v173_v42 = vmax.bf16 %v157_v27, %v141_v31  ;;  %315 = vst.msk [vmem:[%s880_s9 + $0x28] sm:$0xf] %vm304_vm0, %v298_v34  ;;  %v221_v46 = vld [vmem:[%s877_s6 + $0x34] sm:$0xf] }
  0x30   :  { %v95_v39 = vld [vmem:[%s873_s2 + $0x3c] sm:$0xf]  ;;  %v79_v44 = vmax.bf16 %v63_v38, %v47_v37  ;;  %v236_v45 = vmax.bf16 %v220_v30, %v204_v35  ;;  %v142_v47 = vmax.bf16 %v126_v33, %v110_v36  ;;  %v299_v49 = vmax.bf16 %v283_v25, %v267_v40  ;;  %v284_v50 = vld [vmem:[%s879_s8 + $0x30] sm:$0xf]  ;;  %v190_v52 = vld [vmem:[%s876_s5 + $0x38] sm:$0xf] }
  0x31   :  { %v127_v48 = vld [vmem:[%s874_s3 + $0x3c] sm:$0xf]  ;;  %v205_v51 = vmax.bf16 %v189_v32, %v173_v42  ;;  %v253_v55 = vld [vmem:[%s878_s7 + $0x34] sm:$0xf]  ;;  %v222_v59 = vld [vmem:[%s877_s6 + $0x38] sm:$0xf] }
  0x32   :  { %v111_v53 = vmax.bf16 %v95_v39, %v79_v44  ;;  %v268_v54 = vmax.bf16 %v252_v41, %v236_v45  ;;  %v174_v56 = vmax.bf16 %v158_v43, %v142_v47  ;;  %v159_v57 = vld [vmem:[%s875_s4 + $0x3c] sm:$0xf]  ;;  %316 = vst.msk [vmem:[%s880_s9 + $0x2c] sm:$0xf] %vm304_vm0, %v299_v49  ;;  %v285_v62 = vld [vmem:[%s879_s8 + $0x34] sm:$0xf] }
  0x33   :  { %v237_v58 = vmax.bf16 %v221_v46, %v205_v51  ;;  %v191_v0 = vld [vmem:[%s876_s5 + $0x3c] sm:$0xf]  ;;  %v254_v2 = vld [vmem:[%s878_s7 + $0x38] sm:$0xf] }
  0x34   :  { %v143_v60 = vmax.bf16 %v127_v48, %v111_v53  ;;  %v300_v61 = vmax.bf16 %v284_v50, %v268_v54  ;;  %v206_v63 = vmax.bf16 %v190_v52, %v174_v56  ;;  %v223_v5 = vld [vmem:[%s877_s6 + $0x3c] sm:$0xf]  ;;  %v286_v7 = vld [vmem:[%s879_s8 + $0x38] sm:$0xf] }
  0x35   :  { %v269_v1 = vmax.bf16 %v253_v55, %v237_v58  ;;  %v255_v10 = vld [vmem:[%s878_s7 + $0x3c] sm:$0xf] }
  0x36   :  { %v175_v3 = vmax.bf16 %v159_v57, %v143_v60  ;;  %317 = vst.msk [vmem:[%s880_s9 + $0x30] sm:$0xf] %vm304_vm0, %v300_v61  ;;  %v238_v4 = vmax.bf16 %v222_v59, %v206_v63  ;;  %v287_v13 = vld [vmem:[%s879_s8 + $0x3c] sm:$0xf] }
  0x37   :  { %v301_v6 = vmax.bf16 %v285_v62, %v269_v1 }
  0x38   :  { %v207_v8 = vmax.bf16 %v191_v0, %v175_v3  ;;  %v270_v9 = vmax.bf16 %v254_v2, %v238_v4 }
  0x39   :  { %318 = vst.msk [vmem:[%s880_s9 + $0x34] sm:$0xf] %vm304_vm0, %v301_v6 }
  0x3a   :  { %v239_v11 = vmax.bf16 %v223_v5, %v207_v8  ;;  %v302_v12 = vmax.bf16 %v286_v7, %v270_v9 }
  0x3c   :  { %v271_v14 = vmax.bf16 %v255_v10, %v239_v11  ;;  %319 = vst.msk [vmem:[%s880_s9 + $0x38] sm:$0xf] %vm304_vm0, %v302_v12 }
  0x3e   :  { %v303_v15 = vmax.bf16 %v287_v13, %v271_v14 }
  0x40   :  { %320 = vst.msk [vmem:[%s880_s9 + $0x3c] sm:$0xf] %vm304_vm0, %v303_v15 }

// kernel: densenet_forward.19
= control target key start
LH: loop header
LB: loop body
LE: loop exit
PB: predicated region body
PF: predicated region fallthrough
CT: control target
= control target key end

     0   :  { %vm367_vm0 = vcmask 1040384   ;;  %vm270_vm1 = vcmask 400384   ;;  %v1544_v5 = vmov 0   ;;  %vm1124_vm2 = vcmask 125952   ;;  %s2104_s1 = inlined_call_operand.vmem [shape: bf16[49,16], index: 1, kind: input, shape index: {}]   ;;  %s2105_s0 = inlined_call_operand.vmem [shape: bf16[512,49], index: 0, kind: input, shape index: {}]   ;;  %s2106_s2 = inlined_call_operand.vmem [shape: f32[1,16], index: 2, kind: input, shape index: {}]   ;;  %s2107_s3 = inlined_call_operand.vmem [shape: f32[1,16], index: 3, kind: input, shape index: {}]   ;;  %s2108_s4 = inlined_call_operand.vmem [shape: bf16[512,16], index: 4, kind: output, shape index: {}]  }
   0x1   :  { %v1508_v0 = vld [vmem:[%s2104_s1] sm:$0xff]   ;;  %v1509_v1 = vld [vmem:[%s2104_s1 + $0x8] sm:$0xff]   ;;  %v1510_v2 = vld [vmem:[%s2104_s1 + $0x10] sm:$0xff]   ;;  %v369_v6 = vsel %vm367_vm0, 65535, %v1544_v5 }
   0x2   :  { %1427 = vmatprep.subr.bf16.mxu0 %v1508_v0  ;;  %1499 = vmatprep.subr.bf16.mxu1 %v1508_v0  ;;  %v1511_v3 = vld [vmem:[%s2104_s1 + $0x18] ss:$0 sps:$4 sm:$0x11]   ;;  %v1512_v4 = vld [vmem:[%s2105_s0] sm:$0xff]   ;;  %v1514_v9 = vld [vmem:[%s2105_s0 + $0x8] sm:$0xff]  }
   0x3   :  { %1428 = vmatpush3.bf16.msra.mxu0 %v1508_v0  ;;  %1503 = vmatpush3.bf16.msra.mxu1 %v1508_v0  ;;  %v1513_v7 = vld [vmem:[%s2105_s0 + $0x80] sm:$0xff]   ;;  %v371_v8 = vand.u32 %v1511_v3, %v369_v6  ;;  %v1515_v10 = vld [vmem:[%s2105_s0 + $0x88] sm:$0xff]   ;;  %v1516_v11 = vld [vmem:[%s2105_s0 + $0x10] sm:$0xff]  }
   0x4   :  { %1429 = vmatprep.subr.bf16.mxu0 %v1509_v1  ;;  %1500 = vmatprep.subr.bf16.mxu1 %v1509_v1  ;;  %v1517_v12 = vld [vmem:[%s2105_s0 + $0x90] sm:$0xff]   ;;  %v1518_v13 = vld [vmem:[%s2105_s0 + $0x18] sm:$0xff]   ;;  %v1520_v15 = vld [vmem:[%s2105_s0 + $0x20] sm:$0xff]  }
   0x5   :  { %1435 = vmatprep.mubr.msk.bf16.mxu0 %vm270_vm1, %v1512_v4  ;;  %1467 = vmatprep.mubr.msk.bf16.mxu1 %vm270_vm1, %v1513_v7  ;;  %v1519_v14 = vld [vmem:[%s2105_s0 + $0x98] sm:$0xff]   ;;  %v1521_v16 = vld [vmem:[%s2105_s0 + $0xa0] sm:$0xff]   ;;  %v1522_v17 = vld [vmem:[%s2105_s0 + $0x28] sm:$0xff]  }
   0x6   :  { %v1523_v18 = vld [vmem:[%s2105_s0 + $0xa8] sm:$0xff]   ;;  %v1524_v19 = vld [vmem:[%s2105_s0 + $0x30] sm:$0xff]   ;;  %v1526_v21 = vld [vmem:[%s2105_s0 + $0x38] sm:$0xff]  }
   0x7   :  { %1430 = vmatpush3.bf16.msra.mxu0 %v1509_v1  ;;  %1504 = vmatpush3.bf16.msra.mxu1 %v1509_v1  ;;  %v1525_v20 = vld [vmem:[%s2105_s0 + $0xb0] sm:$0xff]   ;;  %v1527_v22 = vld [vmem:[%s2105_s0 + $0xb8] sm:$0xff]   ;;  %v1528_v23 = vld [vmem:[%s2105_s0 + $0x40] sm:$0xff]  }
   0x8   :  { %1431 = vmatprep.subr.bf16.mxu0 %v1510_v2  ;;  %1501 = vmatprep.subr.bf16.mxu1 %v1510_v2  ;;  %v1529_v24 = vld [vmem:[%s2105_s0 + $0xc0] sm:$0xff]   ;;  %v1530_v25 = vld [vmem:[%s2105_s0 + $0x48] sm:$0xff]   ;;  %v1532_v27 = vld [vmem:[%s2105_s0 + $0x50] sm:$0xff]  }
   0x9   :  { %v1531_v26 = vld [vmem:[%s2105_s0 + $0xc8] sm:$0xff]   ;;  %v1533_v28 = vld [vmem:[%s2105_s0 + $0xd0] sm:$0xff]   ;;  %v1534_v29 = vld [vmem:[%s2105_s0 + $0x58] sm:$0xff]  }
   0xa   :  { %v1535_v30 = vld [vmem:[%s2105_s0 + $0xd8] sm:$0xff]   ;;  %v1536_v31 = vld [vmem:[%s2105_s0 + $0x60] sm:$0xff]   ;;  %v1538_v33 = vld [vmem:[%s2105_s0 + $0x68] sm:$0xff]  }
   0xb   :  { %1432 = vmatpush3.bf16.msra.mxu0 %v1510_v2  ;;  %1505 = vmatpush3.bf16.msra.mxu1 %v1510_v2  ;;  %v1537_v32 = vld [vmem:[%s2105_s0 + $0xe0] sm:$0xff]   ;;  %v1539_v34 = vld [vmem:[%s2105_s0 + $0xe8] sm:$0xff]   ;;  %v1540_v35 = vld [vmem:[%s2105_s0 + $0x70] sm:$0xff]  }
   0xc   :  { %1433 = vmatprep.subr.bf16.mxu0 %v371_v8  ;;  %1502 = vmatprep.subr.bf16.mxu1 %v371_v8  ;;  %v1541_v36 = vld [vmem:[%s2105_s0 + $0xf0] sm:$0xff]   ;;  %v1542_v37 = vld [vmem:[%s2105_s0 + $0x78] sm:$0xff]   ;;  %v1713_v39 = vld [vmem:[%s2106_s2] ss:$0 sm:$0xff] }
   0xd   :  { %v1543_v38 = vld [vmem:[%s2105_s0 + $0xf8] sm:$0xff]   ;;  %v1718_v41 = vld [vmem:[%s2107_s3] ss:$0 sm:$0xff] }
   0xf   :  { %1434 = vmatpush3.bf16.msra.mxu0 %v371_v8  ;;  %1506 = vmatpush3.bf16.msra.mxu1 %v371_v8 }
  0x12   :  { %1436 = vmatmul.mubr.msk.bf16.vlgmr.msra.gmra.mrb[0].mxu0 %vm270_vm1, %v1514_v9  ;;  %1468 = vmatmul.mubr.msk.bf16.vlgmr.msra.gmra.mrb[0].mxu1 %vm270_vm1, %v1515_v10 }
  0x13   :  { %1439 = vmatprep.mubr.msk.bf16.mxu0 %vm270_vm1, %v1516_v11  ;;  %1471 = vmatprep.mubr.msk.bf16.mxu1 %vm270_vm1, %v1517_v12 }
  0x1a   :  { %1440 = vmatmul.mubr.msk.bf16.gmra.mrb[4].mxu0 %vm270_vm1, %v1518_v13  ;;  %1472 = vmatmul.mubr.msk.bf16.gmra.mrb[4].mxu1 %vm270_vm1, %v1519_v14 }
  0x1b   :  { %1443 = vmatprep.mubr.msk.bf16.mxu0 %vm270_vm1, %v1520_v15  ;;  %1475 = vmatprep.mubr.msk.bf16.mxu1 %vm270_vm1, %v1521_v16 }
  0x22   :  { %1444 = vmatmul.mubr.msk.bf16.gmra.mrb[8].mxu0 %vm270_vm1, %v1522_v17  ;;  %1476 = vmatmul.mubr.msk.bf16.gmra.mrb[8].mxu1 %vm270_vm1, %v1523_v18 }
  0x23   :  { %1447 = vmatprep.mubr.msk.bf16.mxu0 %vm270_vm1, %v1524_v19  ;;  %1479 = vmatprep.mubr.msk.bf16.mxu1 %vm270_vm1, %v1525_v20 }
  0x2a   :  { %1448 = vmatmul.mubr.msk.bf16.gmra.mrb[12].mxu0 %vm270_vm1, %v1526_v21  ;;  %1480 = vmatmul.mubr.msk.bf16.gmra.mrb[12].mxu1 %vm270_vm1, %v1527_v22 }
  0x2b   :  { %1451 = vmatprep.mubr.msk.bf16.mxu0 %vm270_vm1, %v1528_v23  ;;  %1483 = vmatprep.mubr.msk.bf16.mxu1 %vm270_vm1, %v1529_v24 }
  0x32   :  { %1452 = vmatmul.mubr.msk.bf16.gmra.mrb[16].mxu0 %vm270_vm1, %v1530_v25  ;;  %1484 = vmatmul.mubr.msk.bf16.gmra.mrb[16].mxu1 %vm270_vm1, %v1531_v26 }
  0x33   :  { %1455 = vmatprep.mubr.msk.bf16.mxu0 %vm270_vm1, %v1532_v27  ;;  %1487 = vmatprep.mubr.msk.bf16.mxu1 %vm270_vm1, %v1533_v28 }
  0x3a   :  { %1456 = vmatmul.mubr.msk.bf16.gmra.mrb[20].mxu0 %vm270_vm1, %v1534_v29  ;;  %1488 = vmatmul.mubr.msk.bf16.gmra.mrb[20].mxu1 %vm270_vm1, %v1535_v30 }
  0x3b   :  { %1459 = vmatprep.mubr.msk.bf16.mxu0 %vm270_vm1, %v1536_v31  ;;  %1491 = vmatprep.mubr.msk.bf16.mxu1 %vm270_vm1, %v1537_v32 }
  0x42   :  { %1460 = vmatmul.mubr.msk.bf16.gmra.mrb[24].mxu0 %vm270_vm1, %v1538_v33  ;;  %1492 = vmatmul.mubr.msk.bf16.gmra.mrb[24].mxu1 %vm270_vm1, %v1539_v34 }
  0x43   :  { %1463 = vmatprep.mubr.msk.bf16.mxu0 %vm270_vm1, %v1540_v35  ;;  %1495 = vmatprep.mubr.msk.bf16.mxu1 %vm270_vm1, %v1541_v36 }
  0x4a   :  { %1464 = vmatmul.mubr.msk.bf16.gmra.mrb[28].mxu0 %vm270_vm1, %v1542_v37  ;;  %1496 = vmatmul.mubr.msk.bf16.gmra.mrb[28].mxu1 %vm270_vm1, %v1543_v38 }
  0xe5   :  { %v1437_v40 = vpop.f32.mrb[0].mxu0  ;;  %v1469_v42 = vpop.f32.mrb[0].mxu1 }
  0xe6   :  { %v671_v43 = vmul.f32 %v1437_v40, %v1713_v39  ;;  %v703_v44 = vmul.f32 %v1469_v42, %v1713_v39  ;;  %v407_v45 = vpop.f32.mrb[1].mxu0  ;;  %v535_v46 = vpop.f32.mrb[1].mxu1 }
  0xe7   :  { %v669_v47 = vmul.f32 %v1713_v39, %v407_v45  ;;  %v701_v48 = vmul.f32 %v1713_v39, %v535_v46  ;;  %v1438_v49 = vpop.f32.mrb[2].mxu0  ;;  %v1470_v50 = vpop.f32.mrb[2].mxu1 }
  0xe8   :  { %v742_v51 = vadd.f32 %v1718_v41, %v671_v43  ;;  %v774_v52 = vadd.f32 %v1718_v41, %v703_v44  ;;  %v672_v53 = vmul.f32 %v1438_v49, %v1713_v39  ;;  %v704_v54 = vmul.f32 %v1470_v50, %v1713_v39  ;;  %v410_v55 = vpop.f32.mrb[3].mxu0  ;;  %v538_v56 = vpop.f32.mrb[3].mxu1 }
  0xe9   :  { %v740_v57 = vadd.f32 %v1718_v41, %v669_v47  ;;  %v772_v58 = vadd.f32 %v1718_v41, %v701_v48  ;;  %v670_v59 = vmul.f32 %v1713_v39, %v410_v55  ;;  %v702_v60 = vmul.f32 %v1713_v39, %v538_v56 }
  0xea   :  { %v806_v61 = vmax.f32 %v742_v51, 0.0  ;;  %v838_v62 = vmax.f32 %v774_v52, 0.0  ;;  %v743_v63 = vadd.f32 %v1718_v41, %v672_v53  ;;  %v775_v0 = vadd.f32 %v1718_v41, %v704_v54 }
  0xeb   :  { %v804_v1 = vmax.f32 %v740_v57, 0.0  ;;  %v836_v2 = vmax.f32 %v772_v58, 0.0  ;;  %v741_v3 = vadd.f32 %v1718_v41, %v670_v59  ;;  %v773_v4 = vadd.f32 %v1718_v41, %v702_v60 }
  0xec   :  { %v1329_v5 = vpack.c.bf16 %v806_v61, %v806_v61  ;;  %v1361_v6 = vpack.c.bf16 %v838_v62, %v838_v62  ;;  %v807_v7 = vmax.f32 %v743_v63, 0.0  ;;  %v839_v8 = vmax.f32 %v775_v0, 0.0 }
  0xed   :  { %v1327_v9 = vpack.c.bf16 %v804_v1, %v804_v1  ;;  %v1359_v10 = vpack.c.bf16 %v836_v2, %v836_v2  ;;  %v805_v11 = vmax.f32 %v741_v3, 0.0  ;;  %v837_v12 = vmax.f32 %v773_v4, 0.0  ;;  %v1441_v13 = vpop.f32.mrb[4].mxu0  ;;  %v1473_v14 = vpop.f32.mrb[4].mxu1 }
  0xee   :  { %1127 = vst.msk [vmem:[%s2108_s4 + $0x8] sm:$0xf] %vm1124_vm2, %v1329_v5  ;;  %1159 = vst.msk [vmem:[%s2108_s4 + $0x88] sm:$0xf] %vm1124_vm2, %v1361_v6  ;;  %v1330_v15 = vpack.c.bf16 %v807_v7, %v807_v7  ;;  %v1362_v16 = vpack.c.bf16 %v839_v8, %v839_v8  ;;  %v675_v17 = vmul.f32 %v1441_v13, %v1713_v39  ;;  %v423_v19 = vpop.f32.mrb[5].mxu0  ;;  %v551_v20 = vpop.f32.mrb[5].mxu1 }
  0xef   :  { %v707_v18 = vmul.f32 %v1473_v14, %v1713_v39  ;;  %1125 = vst.msk [vmem:[%s2108_s4] sm:$0xf] %vm1124_vm2, %v1327_v9  ;;  %1157 = vst.msk [vmem:[%s2108_s4 + $0x80] sm:$0xf] %vm1124_vm2, %v1359_v10  ;;  %v1328_v21 = vpack.c.bf16 %v805_v11, %v805_v11  ;;  %v1360_v22 = vpack.c.bf16 %v837_v12, %v837_v12  ;;  %v1442_v25 = vpop.f32.mrb[6].mxu0  ;;  %v1474_v26 = vpop.f32.mrb[6].mxu1 }
  0xf0   :  { %v673_v23 = vmul.f32 %v1713_v39, %v423_v19  ;;  %v705_v24 = vmul.f32 %v1713_v39, %v551_v20  ;;  %1128 = vst.msk [vmem:[%s2108_s4 + $0xc] sm:$0xf] %vm1124_vm2, %v1330_v15  ;;  %1160 = vst.msk [vmem:[%s2108_s4 + $0x8c] sm:$0xf] %vm1124_vm2, %v1362_v16  ;;  %v746_v27 = vadd.f32 %v1718_v41, %v675_v17  ;;  %v426_v31 = vpop.f32.mrb[7].mxu0  ;;  %v554_v32 = vpop.f32.mrb[7].mxu1 }
  0xf1   :  { %v778_v28 = vadd.f32 %v1718_v41, %v707_v18  ;;  %v676_v29 = vmul.f32 %v1442_v25, %v1713_v39  ;;  %v708_v30 = vmul.f32 %v1474_v26, %v1713_v39  ;;  %1126 = vst.msk [vmem:[%s2108_s4 + $0x4] sm:$0xf] %vm1124_vm2, %v1328_v21  ;;  %1158 = vst.msk [vmem:[%s2108_s4 + $0x84] sm:$0xf] %vm1124_vm2, %v1360_v22 }
  0xf2   :  { %v744_v33 = vadd.f32 %v1718_v41, %v673_v23  ;;  %v776_v34 = vadd.f32 %v1718_v41, %v705_v24  ;;  %v674_v35 = vmul.f32 %v1713_v39, %v426_v31  ;;  %v706_v36 = vmul.f32 %v1713_v39, %v554_v32 }
  0xf3   :  { %v810_v37 = vmax.f32 %v746_v27, 0.0  ;;  %v842_v38 = vmax.f32 %v778_v28, 0.0  ;;  %v747_v40 = vadd.f32 %v1718_v41, %v676_v29  ;;  %v779_v42 = vadd.f32 %v1718_v41, %v708_v30 }
  0xf4   :  { %v808_v43 = vmax.f32 %v744_v33, 0.0  ;;  %v840_v44 = vmax.f32 %v776_v34, 0.0  ;;  %v745_v45 = vadd.f32 %v1718_v41, %v674_v35  ;;  %v777_v46 = vadd.f32 %v1718_v41, %v706_v36 }
  0xf5   :  { %v1333_v47 = vpack.c.bf16 %v810_v37, %v810_v37  ;;  %v1365_v48 = vpack.c.bf16 %v842_v38, %v842_v38  ;;  %v811_v49 = vmax.f32 %v747_v40, 0.0  ;;  %v843_v50 = vmax.f32 %v779_v42, 0.0  ;;  %v1445_v55 = vpop.f32.mrb[8].mxu0  ;;  %v1477_v56 = vpop.f32.mrb[8].mxu1 }
  0xf6   :  { %v1331_v51 = vpack.c.bf16 %v808_v43, %v808_v43  ;;  %v1363_v52 = vpack.c.bf16 %v840_v44, %v840_v44  ;;  %v809_v53 = vmax.f32 %v745_v45, 0.0  ;;  %v841_v54 = vmax.f32 %v777_v46, 0.0  ;;  %v439_v61 = vpop.f32.mrb[9].mxu0  ;;  %v567_v62 = vpop.f32.mrb[9].mxu1 }
  0xf7   :  { %1131 = vst.msk [vmem:[%s2108_s4 + $0x18] sm:$0xf] %vm1124_vm2, %v1333_v47  ;;  %1163 = vst.msk [vmem:[%s2108_s4 + $0x98] sm:$0xf] %vm1124_vm2, %v1365_v48  ;;  %v1334_v57 = vpack.c.bf16 %v811_v49, %v811_v49  ;;  %v1366_v58 = vpack.c.bf16 %v843_v50, %v843_v50  ;;  %v679_v59 = vmul.f32 %v1445_v55, %v1713_v39  ;;  %v1446_v3 = vpop.f32.mrb[10].mxu0  ;;  %v1478_v4 = vpop.f32.mrb[10].mxu1 }
  0xf8   :  { %v711_v60 = vmul.f32 %v1477_v56, %v1713_v39  ;;  %1129 = vst.msk [vmem:[%s2108_s4 + $0x10] sm:$0xf] %vm1124_vm2, %v1331_v51  ;;  %1161 = vst.msk [vmem:[%s2108_s4 + $0x90] sm:$0xf] %vm1124_vm2, %v1363_v52  ;;  %v1332_v63 = vpack.c.bf16 %v809_v53, %v809_v53  ;;  %v1364_v0 = vpack.c.bf16 %v841_v54, %v841_v54  ;;  %v442_v9 = vpop.f32.mrb[11].mxu0  ;;  %v570_v10 = vpop.f32.mrb[11].mxu1 }
  0xf9   :  { %v677_v1 = vmul.f32 %v1713_v39, %v439_v61  ;;  %v709_v2 = vmul.f32 %v1713_v39, %v567_v62  ;;  %1132 = vst.msk [vmem:[%s2108_s4 + $0x1c] sm:$0xf] %vm1124_vm2, %v1334_v57  ;;  %1164 = vst.msk [vmem:[%s2108_s4 + $0x9c] sm:$0xf] %vm1124_vm2, %v1366_v58  ;;  %v750_v5 = vadd.f32 %v1718_v41, %v679_v59 }
  0xfa   :  { %v782_v6 = vadd.f32 %v1718_v41, %v711_v60  ;;  %v680_v7 = vmul.f32 %v1446_v3, %v1713_v39  ;;  %v712_v8 = vmul.f32 %v1478_v4, %v1713_v39  ;;  %1130 = vst.msk [vmem:[%s2108_s4 + $0x14] sm:$0xf] %vm1124_vm2, %v1332_v63  ;;  %1162 = vst.msk [vmem:[%s2108_s4 + $0x94] sm:$0xf] %vm1124_vm2, %v1364_v0 }
  0xfb   :  { %v748_v11 = vadd.f32 %v1718_v41, %v677_v1  ;;  %v780_v12 = vadd.f32 %v1718_v41, %v709_v2  ;;  %v678_v13 = vmul.f32 %v1713_v39, %v442_v9  ;;  %v710_v14 = vmul.f32 %v1713_v39, %v570_v10 }
  0xfc   :  { %v814_v15 = vmax.f32 %v750_v5, 0.0  ;;  %v846_v16 = vmax.f32 %v782_v6, 0.0  ;;  %v751_v17 = vadd.f32 %v1718_v41, %v680_v7  ;;  %v783_v18 = vadd.f32 %v1718_v41, %v712_v8 }
  0xfd   :  { %v812_v19 = vmax.f32 %v748_v11, 0.0  ;;  %v844_v20 = vmax.f32 %v780_v12, 0.0  ;;  %v749_v21 = vadd.f32 %v1718_v41, %v678_v13  ;;  %v781_v22 = vadd.f32 %v1718_v41, %v710_v14  ;;  %v1449_v31 = vpop.f32.mrb[12].mxu0  ;;  %v1481_v32 = vpop.f32.mrb[12].mxu1 }
  0xfe   :  { %v1337_v23 = vpack.c.bf16 %v814_v15, %v814_v15  ;;  %v1369_v24 = vpack.c.bf16 %v846_v16, %v846_v16  ;;  %v815_v25 = vmax.f32 %v751_v17, 0.0  ;;  %v847_v26 = vmax.f32 %v783_v18, 0.0  ;;  %v455_v37 = vpop.f32.mrb[13].mxu0  ;;  %v583_v38 = vpop.f32.mrb[13].mxu1 }
  0xff   :  { %v1335_v27 = vpack.c.bf16 %v812_v19, %v812_v19  ;;  %v1367_v28 = vpack.c.bf16 %v844_v20, %v844_v20  ;;  %v813_v29 = vmax.f32 %v749_v21, 0.0  ;;  %v845_v30 = vmax.f32 %v781_v22, 0.0  ;;  %v1450_v45 = vpop.f32.mrb[14].mxu0  ;;  %v1482_v46 = vpop.f32.mrb[14].mxu1 }
 0x100   :  { %1135 = vst.msk [vmem:[%s2108_s4 + $0x28] sm:$0xf] %vm1124_vm2, %v1337_v23  ;;  %1167 = vst.msk [vmem:[%s2108_s4 + $0xa8] sm:$0xf] %vm1124_vm2, %v1369_v24  ;;  %v1338_v33 = vpack.c.bf16 %v815_v25, %v815_v25  ;;  %v1370_v34 = vpack.c.bf16 %v847_v26, %v847_v26  ;;  %v683_v35 = vmul.f32 %v1449_v31, %v1713_v39  ;;  %v458_v51 = vpop.f32.mrb[15].mxu0  ;;  %v586_v52 = vpop.f32.mrb[15].mxu1 }
 0x101   :  { %v715_v36 = vmul.f32 %v1481_v32, %v1713_v39  ;;  %1133 = vst.msk [vmem:[%s2108_s4 + $0x20] sm:$0xf] %vm1124_vm2, %v1335_v27  ;;  %1165 = vst.msk [vmem:[%s2108_s4 + $0xa0] sm:$0xf] %vm1124_vm2, %v1367_v28  ;;  %v1336_v40 = vpack.c.bf16 %v813_v29, %v813_v29  ;;  %v1368_v42 = vpack.c.bf16 %v845_v30, %v845_v30 }
 0x102   :  { %v681_v43 = vmul.f32 %v1713_v39, %v455_v37  ;;  %v713_v44 = vmul.f32 %v1713_v39, %v583_v38  ;;  %1136 = vst.msk [vmem:[%s2108_s4 + $0x2c] sm:$0xf] %vm1124_vm2, %v1338_v33  ;;  %1168 = vst.msk [vmem:[%s2108_s4 + $0xac] sm:$0xf] %vm1124_vm2, %v1370_v34  ;;  %v754_v47 = vadd.f32 %v1718_v41, %v683_v35 }
 0x103   :  { %v786_v48 = vadd.f32 %v1718_v41, %v715_v36  ;;  %v684_v49 = vmul.f32 %v1450_v45, %v1713_v39  ;;  %v716_v50 = vmul.f32 %v1482_v46, %v1713_v39  ;;  %1134 = vst.msk [vmem:[%s2108_s4 + $0x24] sm:$0xf] %vm1124_vm2, %v1336_v40  ;;  %1166 = vst.msk [vmem:[%s2108_s4 + $0xa4] sm:$0xf] %vm1124_vm2, %v1368_v42 }
 0x104   :  { %v752_v53 = vadd.f32 %v1718_v41, %v681_v43  ;;  %v784_v54 = vadd.f32 %v1718_v41, %v713_v44  ;;  %v682_v55 = vmul.f32 %v1713_v39, %v458_v51  ;;  %v714_v56 = vmul.f32 %v1713_v39, %v586_v52 }
 0x105   :  { %v818_v57 = vmax.f32 %v754_v47, 0.0  ;;  %v850_v58 = vmax.f32 %v786_v48, 0.0  ;;  %v755_v59 = vadd.f32 %v1718_v41, %v684_v49  ;;  %v787_v60 = vadd.f32 %v1718_v41, %v716_v50  ;;  %v1453_v9 = vpop.f32.mrb[16].mxu0  ;;  %v1485_v10 = vpop.f32.mrb[16].mxu1 }
 0x106   :  { %v816_v61 = vmax.f32 %v752_v53, 0.0  ;;  %v848_v62 = vmax.f32 %v784_v54, 0.0  ;;  %v753_v63 = vadd.f32 %v1718_v41, %v682_v55  ;;  %v785_v0 = vadd.f32 %v1718_v41, %v714_v56  ;;  %v471_v15 = vpop.f32.mrb[17].mxu0  ;;  %v599_v16 = vpop.f32.mrb[17].mxu1 }
 0x107   :  { %v1341_v1 = vpack.c.bf16 %v818_v57, %v818_v57  ;;  %v1373_v2 = vpack.c.bf16 %v850_v58, %v850_v58  ;;  %v819_v3 = vmax.f32 %v755_v59, 0.0  ;;  %v851_v4 = vmax.f32 %v787_v60, 0.0  ;;  %v1454_v21 = vpop.f32.mrb[18].mxu0  ;;  %v1486_v22 = vpop.f32.mrb[18].mxu1 }
 0x108   :  { %v1339_v5 = vpack.c.bf16 %v816_v61, %v816_v61  ;;  %v1371_v6 = vpack.c.bf16 %v848_v62, %v848_v62  ;;  %v817_v7 = vmax.f32 %v753_v63, 0.0  ;;  %v849_v8 = vmax.f32 %v785_v0, 0.0  ;;  %v474_v27 = vpop.f32.mrb[19].mxu0  ;;  %v602_v28 = vpop.f32.mrb[19].mxu1 }
 0x109   :  { %1139 = vst.msk [vmem:[%s2108_s4 + $0x38] sm:$0xf] %vm1124_vm2, %v1341_v1  ;;  %1171 = vst.msk [vmem:[%s2108_s4 + $0xb8] sm:$0xf] %vm1124_vm2, %v1373_v2  ;;  %v1342_v11 = vpack.c.bf16 %v819_v3, %v819_v3  ;;  %v1374_v12 = vpack.c.bf16 %v851_v4, %v851_v4  ;;  %v687_v13 = vmul.f32 %v1453_v9, %v1713_v39 }
 0x10a   :  { %v719_v14 = vmul.f32 %v1485_v10, %v1713_v39  ;;  %1137 = vst.msk [vmem:[%s2108_s4 + $0x30] sm:$0xf] %vm1124_vm2, %v1339_v5  ;;  %1169 = vst.msk [vmem:[%s2108_s4 + $0xb0] sm:$0xf] %vm1124_vm2, %v1371_v6  ;;  %v1340_v17 = vpack.c.bf16 %v817_v7, %v817_v7  ;;  %v1372_v18 = vpack.c.bf16 %v849_v8, %v849_v8 }
 0x10b   :  { %v685_v19 = vmul.f32 %v1713_v39, %v471_v15  ;;  %v717_v20 = vmul.f32 %v1713_v39, %v599_v16  ;;  %1140 = vst.msk [vmem:[%s2108_s4 + $0x3c] sm:$0xf] %vm1124_vm2, %v1342_v11  ;;  %1172 = vst.msk [vmem:[%s2108_s4 + $0xbc] sm:$0xf] %vm1124_vm2, %v1374_v12  ;;  %v758_v23 = vadd.f32 %v1718_v41, %v687_v13 }
 0x10c   :  { %v790_v24 = vadd.f32 %v1718_v41, %v719_v14  ;;  %v688_v25 = vmul.f32 %v1454_v21, %v1713_v39  ;;  %v720_v26 = vmul.f32 %v1486_v22, %v1713_v39  ;;  %1138 = vst.msk [vmem:[%s2108_s4 + $0x34] sm:$0xf] %vm1124_vm2, %v1340_v17  ;;  %1170 = vst.msk [vmem:[%s2108_s4 + $0xb4] sm:$0xf] %vm1124_vm2, %v1372_v18 }
 0x10d   :  { %v756_v29 = vadd.f32 %v1718_v41, %v685_v19  ;;  %v788_v30 = vadd.f32 %v1718_v41, %v717_v20  ;;  %v686_v31 = vmul.f32 %v1713_v39, %v474_v27  ;;  %v718_v32 = vmul.f32 %v1713_v39, %v602_v28  ;;  %v1457_v51 = vpop.f32.mrb[20].mxu0  ;;  %v1489_v52 = vpop.f32.mrb[20].mxu1 }
 0x10e   :  { %v822_v33 = vmax.f32 %v758_v23, 0.0  ;;  %v854_v34 = vmax.f32 %v790_v24, 0.0  ;;  %v759_v35 = vadd.f32 %v1718_v41, %v688_v25  ;;  %v791_v36 = vadd.f32 %v1718_v41, %v720_v26  ;;  %v487_v57 = vpop.f32.mrb[21].mxu0  ;;  %v615_v58 = vpop.f32.mrb[21].mxu1 }
 0x10f   :  { %v820_v37 = vmax.f32 %v756_v29, 0.0  ;;  %v852_v38 = vmax.f32 %v788_v30, 0.0  ;;  %v757_v40 = vadd.f32 %v1718_v41, %v686_v31  ;;  %v789_v42 = vadd.f32 %v1718_v41, %v718_v32  ;;  %v1458_v63 = vpop.f32.mrb[22].mxu0  ;;  %v1490_v0 = vpop.f32.mrb[22].mxu1 }
 0x110   :  { %v1345_v43 = vpack.c.bf16 %v822_v33, %v822_v33  ;;  %v1377_v44 = vpack.c.bf16 %v854_v34, %v854_v34  ;;  %v823_v45 = vmax.f32 %v759_v35, 0.0  ;;  %v855_v46 = vmax.f32 %v791_v36, 0.0  ;;  %v490_v5 = vpop.f32.mrb[23].mxu0  ;;  %v618_v6 = vpop.f32.mrb[23].mxu1 }
 0x111   :  { %v1343_v47 = vpack.c.bf16 %v820_v37, %v820_v37  ;;  %v1375_v48 = vpack.c.bf16 %v852_v38, %v852_v38  ;;  %v821_v49 = vmax.f32 %v757_v40, 0.0  ;;  %v853_v50 = vmax.f32 %v789_v42, 0.0 }
 0x112   :  { %1143 = vst.msk [vmem:[%s2108_s4 + $0x48] sm:$0xf] %vm1124_vm2, %v1345_v43  ;;  %1175 = vst.msk [vmem:[%s2108_s4 + $0xc8] sm:$0xf] %vm1124_vm2, %v1377_v44  ;;  %v1346_v53 = vpack.c.bf16 %v823_v45, %v823_v45  ;;  %v1378_v54 = vpack.c.bf16 %v855_v46, %v855_v46  ;;  %v691_v55 = vmul.f32 %v1457_v51, %v1713_v39 }
 0x113   :  { %v723_v56 = vmul.f32 %v1489_v52, %v1713_v39  ;;  %1141 = vst.msk [vmem:[%s2108_s4 + $0x40] sm:$0xf] %vm1124_vm2, %v1343_v47  ;;  %1173 = vst.msk [vmem:[%s2108_s4 + $0xc0] sm:$0xf] %vm1124_vm2, %v1375_v48  ;;  %v1344_v59 = vpack.c.bf16 %v821_v49, %v821_v49  ;;  %v1376_v60 = vpack.c.bf16 %v853_v50, %v853_v50 }
 0x114   :  { %v689_v61 = vmul.f32 %v1713_v39, %v487_v57  ;;  %v721_v62 = vmul.f32 %v1713_v39, %v615_v58  ;;  %1144 = vst.msk [vmem:[%s2108_s4 + $0x4c] sm:$0xf] %vm1124_vm2, %v1346_v53  ;;  %1176 = vst.msk [vmem:[%s2108_s4 + $0xcc] sm:$0xf] %vm1124_vm2, %v1378_v54  ;;  %v762_v1 = vadd.f32 %v1718_v41, %v691_v55 }
 0x115   :  { %v794_v2 = vadd.f32 %v1718_v41, %v723_v56  ;;  %v692_v3 = vmul.f32 %v1458_v63, %v1713_v39  ;;  %v724_v4 = vmul.f32 %v1490_v0, %v1713_v39  ;;  %1142 = vst.msk [vmem:[%s2108_s4 + $0x44] sm:$0xf] %vm1124_vm2, %v1344_v59  ;;  %1174 = vst.msk [vmem:[%s2108_s4 + $0xc4] sm:$0xf] %vm1124_vm2, %v1376_v60  ;;  %v1461_v27 = vpop.f32.mrb[24].mxu0  ;;  %v1493_v28 = vpop.f32.mrb[24].mxu1 }
 0x116   :  { %v760_v7 = vadd.f32 %v1718_v41, %v689_v61  ;;  %v792_v8 = vadd.f32 %v1718_v41, %v721_v62  ;;  %v690_v9 = vmul.f32 %v1713_v39, %v490_v5  ;;  %v722_v10 = vmul.f32 %v1713_v39, %v618_v6  ;;  %v503_v33 = vpop.f32.mrb[25].mxu0  ;;  %v631_v34 = vpop.f32.mrb[25].mxu1 }
 0x117   :  { %v826_v11 = vmax.f32 %v762_v1, 0.0  ;;  %v858_v12 = vmax.f32 %v794_v2, 0.0  ;;  %v763_v13 = vadd.f32 %v1718_v41, %v692_v3  ;;  %v795_v14 = vadd.f32 %v1718_v41, %v724_v4  ;;  %v1462_v40 = vpop.f32.mrb[26].mxu0  ;;  %v1494_v42 = vpop.f32.mrb[26].mxu1 }
 0x118   :  { %v824_v15 = vmax.f32 %v760_v7, 0.0  ;;  %v856_v16 = vmax.f32 %v792_v8, 0.0  ;;  %v761_v17 = vadd.f32 %v1718_v41, %v690_v9  ;;  %v793_v18 = vadd.f32 %v1718_v41, %v722_v10  ;;  %v506_v47 = vpop.f32.mrb[27].mxu0  ;;  %v634_v48 = vpop.f32.mrb[27].mxu1 }
 0x119   :  { %v1349_v19 = vpack.c.bf16 %v826_v11, %v826_v11  ;;  %v1381_v20 = vpack.c.bf16 %v858_v12, %v858_v12  ;;  %v827_v21 = vmax.f32 %v763_v13, 0.0  ;;  %v859_v22 = vmax.f32 %v795_v14, 0.0 }
 0x11a   :  { %v1347_v23 = vpack.c.bf16 %v824_v15, %v824_v15  ;;  %v1379_v24 = vpack.c.bf16 %v856_v16, %v856_v16  ;;  %v825_v25 = vmax.f32 %v761_v17, 0.0  ;;  %v857_v26 = vmax.f32 %v793_v18, 0.0 }
 0x11b   :  { %1147 = vst.msk [vmem:[%s2108_s4 + $0x58] sm:$0xf] %vm1124_vm2, %v1349_v19  ;;  %1179 = vst.msk [vmem:[%s2108_s4 + $0xd8] sm:$0xf] %vm1124_vm2, %v1381_v20  ;;  %v1350_v29 = vpack.c.bf16 %v827_v21, %v827_v21  ;;  %v1382_v30 = vpack.c.bf16 %v859_v22, %v859_v22  ;;  %v695_v31 = vmul.f32 %v1461_v27, %v1713_v39 }
 0x11c   :  { %v727_v32 = vmul.f32 %v1493_v28, %v1713_v39  ;;  %1145 = vst.msk [vmem:[%s2108_s4 + $0x50] sm:$0xf] %vm1124_vm2, %v1347_v23  ;;  %1177 = vst.msk [vmem:[%s2108_s4 + $0xd0] sm:$0xf] %vm1124_vm2, %v1379_v24  ;;  %v1348_v35 = vpack.c.bf16 %v825_v25, %v825_v25  ;;  %v1380_v36 = vpack.c.bf16 %v857_v26, %v857_v26 }
 0x11d   :  { %v693_v37 = vmul.f32 %v1713_v39, %v503_v33  ;;  %v725_v38 = vmul.f32 %v1713_v39, %v631_v34  ;;  %1148 = vst.msk [vmem:[%s2108_s4 + $0x5c] sm:$0xf] %vm1124_vm2, %v1350_v29  ;;  %1180 = vst.msk [vmem:[%s2108_s4 + $0xdc] sm:$0xf] %vm1124_vm2, %v1382_v30  ;;  %v766_v43 = vadd.f32 %v1718_v41, %v695_v31  ;;  %v1465_v5 = vpop.f32.mrb[28].mxu0  ;;  %v1497_v6 = vpop.f32.mrb[28].mxu1 }
 0x11e   :  { %v798_v44 = vadd.f32 %v1718_v41, %v727_v32  ;;  %v696_v45 = vmul.f32 %v1462_v40, %v1713_v39  ;;  %v728_v46 = vmul.f32 %v1494_v42, %v1713_v39  ;;  %1146 = vst.msk [vmem:[%s2108_s4 + $0x54] sm:$0xf] %vm1124_vm2, %v1348_v35  ;;  %1178 = vst.msk [vmem:[%s2108_s4 + $0xd4] sm:$0xf] %vm1124_vm2, %v1380_v36  ;;  %v519_v11 = vpop.f32.mrb[29].mxu0  ;;  %v647_v12 = vpop.f32.mrb[29].mxu1 }
 0x11f   :  { %v764_v49 = vadd.f32 %v1718_v41, %v693_v37  ;;  %v796_v50 = vadd.f32 %v1718_v41, %v725_v38  ;;  %v694_v51 = vmul.f32 %v1713_v39, %v506_v47  ;;  %v726_v52 = vmul.f32 %v1713_v39, %v634_v48  ;;  %v1466_v17 = vpop.f32.mrb[30].mxu0  ;;  %v1498_v18 = vpop.f32.mrb[30].mxu1 }
 0x120   :  { %v830_v53 = vmax.f32 %v766_v43, 0.0  ;;  %v862_v54 = vmax.f32 %v798_v44, 0.0  ;;  %v767_v55 = vadd.f32 %v1718_v41, %v696_v45  ;;  %v799_v56 = vadd.f32 %v1718_v41, %v728_v46  ;;  %v522_v23 = vpop.f32.mrb[31].mxu0  ;;  %v650_v24 = vpop.f32.mrb[31].mxu1 }
 0x121   :  { %v828_v57 = vmax.f32 %v764_v49, 0.0  ;;  %v860_v58 = vmax.f32 %v796_v50, 0.0  ;;  %v765_v59 = vadd.f32 %v1718_v41, %v694_v51  ;;  %v797_v60 = vadd.f32 %v1718_v41, %v726_v52 }
 0x122   :  { %v1353_v61 = vpack.c.bf16 %v830_v53, %v830_v53  ;;  %v1385_v62 = vpack.c.bf16 %v862_v54, %v862_v54  ;;  %v831_v63 = vmax.f32 %v767_v55, 0.0  ;;  %v863_v0 = vmax.f32 %v799_v56, 0.0 }
 0x123   :  { %v1351_v1 = vpack.c.bf16 %v828_v57, %v828_v57  ;;  %v1383_v2 = vpack.c.bf16 %v860_v58, %v860_v58  ;;  %v829_v3 = vmax.f32 %v765_v59, 0.0  ;;  %v861_v4 = vmax.f32 %v797_v60, 0.0 }
 0x124   :  { %1151 = vst.msk [vmem:[%s2108_s4 + $0x68] sm:$0xf] %vm1124_vm2, %v1353_v61  ;;  %1183 = vst.msk [vmem:[%s2108_s4 + $0xe8] sm:$0xf] %vm1124_vm2, %v1385_v62  ;;  %v1354_v7 = vpack.c.bf16 %v831_v63, %v831_v63  ;;  %v1386_v8 = vpack.c.bf16 %v863_v0, %v863_v0  ;;  %v699_v9 = vmul.f32 %v1465_v5, %v1713_v39 }
 0x125   :  { %v731_v10 = vmul.f32 %v1497_v6, %v1713_v39  ;;  %1149 = vst.msk [vmem:[%s2108_s4 + $0x60] sm:$0xf] %vm1124_vm2, %v1351_v1  ;;  %1181 = vst.msk [vmem:[%s2108_s4 + $0xe0] sm:$0xf] %vm1124_vm2, %v1383_v2  ;;  %v1352_v13 = vpack.c.bf16 %v829_v3, %v829_v3  ;;  %v1384_v14 = vpack.c.bf16 %v861_v4, %v861_v4 }
 0x126   :  { %v697_v15 = vmul.f32 %v1713_v39, %v519_v11  ;;  %v729_v16 = vmul.f32 %v1713_v39, %v647_v12  ;;  %1152 = vst.msk [vmem:[%s2108_s4 + $0x6c] sm:$0xf] %vm1124_vm2, %v1354_v7  ;;  %1184 = vst.msk [vmem:[%s2108_s4 + $0xec] sm:$0xf] %vm1124_vm2, %v1386_v8  ;;  %v770_v19 = vadd.f32 %v1718_v41, %v699_v9 }
 0x127   :  { %v802_v20 = vadd.f32 %v1718_v41, %v731_v10  ;;  %v700_v21 = vmul.f32 %v1466_v17, %v1713_v39  ;;  %v732_v22 = vmul.f32 %v1498_v18, %v1713_v39  ;;  %1150 = vst.msk [vmem:[%s2108_s4 + $0x64] sm:$0xf] %vm1124_vm2, %v1352_v13  ;;  %1182 = vst.msk [vmem:[%s2108_s4 + $0xe4] sm:$0xf] %vm1124_vm2, %v1384_v14 }
 0x128   :  { %v768_v25 = vadd.f32 %v1718_v41, %v697_v15  ;;  %v800_v26 = vadd.f32 %v1718_v41, %v729_v16  ;;  %v698_v27 = vmul.f32 %v1713_v39, %v522_v23  ;;  %v730_v28 = vmul.f32 %v1713_v39, %v650_v24 }
 0x129   :  { %v834_v29 = vmax.f32 %v770_v19, 0.0  ;;  %v866_v30 = vmax.f32 %v802_v20, 0.0  ;;  %v771_v31 = vadd.f32 %v1718_v41, %v700_v21  ;;  %v803_v32 = vadd.f32 %v1718_v41, %v732_v22 }
 0x12a   :  { %v832_v33 = vmax.f32 %v768_v25, 0.0  ;;  %v864_v34 = vmax.f32 %v800_v26, 0.0  ;;  %v769_v35 = vadd.f32 %v1718_v41, %v698_v27  ;;  %v801_v36 = vadd.f32 %v1718_v41, %v730_v28 }
 0x12b   :  { %v1357_v37 = vpack.c.bf16 %v834_v29, %v834_v29  ;;  %v1389_v38 = vpack.c.bf16 %v866_v30, %v866_v30  ;;  %v835_v40 = vmax.f32 %v771_v31, 0.0  ;;  %v867_v42 = vmax.f32 %v803_v32, 0.0 }
 0x12c   :  { %v1355_v43 = vpack.c.bf16 %v832_v33, %v832_v33  ;;  %v1387_v44 = vpack.c.bf16 %v864_v34, %v864_v34  ;;  %v833_v45 = vmax.f32 %v769_v35, 0.0  ;;  %v865_v39 = vmax.f32 %v801_v36, 0.0 }
 0x12d   :  { %1155 = vst.msk [vmem:[%s2108_s4 + $0x78] sm:$0xf] %vm1124_vm2, %v1357_v37  ;;  %1187 = vst.msk [vmem:[%s2108_s4 + $0xf8] sm:$0xf] %vm1124_vm2, %v1389_v38  ;;  %v1358_v46 = vpack.c.bf16 %v835_v40, %v835_v40  ;;  %v1390_v41 = vpack.c.bf16 %v867_v42, %v867_v42 }
 0x12e   :  { %1153 = vst.msk [vmem:[%s2108_s4 + $0x70] sm:$0xf] %vm1124_vm2, %v1355_v43  ;;  %1185 = vst.msk [vmem:[%s2108_s4 + $0xf0] sm:$0xf] %vm1124_vm2, %v1387_v44  ;;  %v1356_v47 = vpack.c.bf16 %v833_v45, %v833_v45  ;;  %v1388_v48 = vpack.c.bf16 %v865_v39, %v865_v39 }
 0x12f   :  { %1156 = vst.msk [vmem:[%s2108_s4 + $0x7c] sm:$0xf] %vm1124_vm2, %v1358_v46  ;;  %1188 = vst.msk [vmem:[%s2108_s4 + $0xfc] sm:$0xf] %vm1124_vm2, %v1390_v41 }
 0x130   :  { %1154 = vst.msk [vmem:[%s2108_s4 + $0x74] sm:$0xf] %vm1124_vm2, %v1356_v47  ;;  %1186 = vst.msk [vmem:[%s2108_s4 + $0xf4] sm:$0xf] %vm1124_vm2, %v1388_v48 }

// kernel: densenet_forward.26
= control target key start
LH: loop header
LB: loop body
LE: loop exit
PB: predicated region body
PF: predicated region fallthrough
CT: control target
= control target key end

     0   :  { %vm81_vm0 = vcmask 125952   ;;  %s195_s0 = inlined_call_operand.vmem [shape: bf16[32,16], index: 0, kind: input, shape index: {}]   ;;  %s196_s1 = inlined_call_operand.vmem [shape: bf16[32,16], index: 1, kind: input, shape index: {}]   ;;  %s197_s2 = inlined_call_operand.vmem [shape: bf16[32,16], index: 2, kind: input, shape index: {}]   ;;  %s198_s3 = inlined_call_operand.vmem [shape: bf16[32,16], index: 3, kind: input, shape index: {}]   ;;  %s199_s4 = inlined_call_operand.vmem [shape: bf16[32,16], index: 4, kind: output, shape index: {}]  }
   0x1   :  { %v99_v0 = vld [vmem:[%s195_s0] sm:$0xff]   ;;  %v130_v8 = vld [vmem:[%s195_s0 + $0x8] sm:$0xff]  }
   0x2   :  { %v107_v1 = vld [vmem:[%s196_s1] sm:$0xff]   ;;  %v100_v3 = vunpack.c.l.bf16 %v99_v0  ;;  %v101_v7 = vunpack.c.h.bf16 %v99_v0  ;;  %v131_v9 = vld [vmem:[%s196_s1 + $0x8] sm:$0xff]   ;;  %v104_v16 = vunpack.c.l.bf16 %v130_v8  ;;  %v105_v21 = vunpack.c.h.bf16 %v130_v8 }
   0x3   :  { %v115_v2 = vld [vmem:[%s197_s2] sm:$0xff]   ;;  %v108_v4 = vunpack.c.l.bf16 %v107_v1  ;;  %v109_v11 = vunpack.c.h.bf16 %v107_v1  ;;  %v132_v13 = vld [vmem:[%s197_s2 + $0x8] sm:$0xff]   ;;  %v112_v17 = vunpack.c.l.bf16 %v131_v9  ;;  %v113_v22 = vunpack.c.h.bf16 %v131_v9 }
   0x4   :  { %v116_v5 = vunpack.c.l.bf16 %v115_v2  ;;  %v123_v6 = vld [vmem:[%s198_s3] sm:$0xff]   ;;  %v117_v12 = vunpack.c.h.bf16 %v115_v2  ;;  %v133_v14 = vld [vmem:[%s198_s3 + $0x8] sm:$0xff]   ;;  %v120_v18 = vunpack.c.l.bf16 %v132_v13  ;;  %v121_v26 = vunpack.c.h.bf16 %v132_v13 }
   0x5   :  { %v124_v10 = vunpack.c.l.bf16 %v123_v6  ;;  %v33_v15 = vadd.f32 %v108_v4, %v100_v3  ;;  %v34_v19 = vadd.f32 %v109_v11, %v101_v7  ;;  %v125_v20 = vunpack.c.h.bf16 %v123_v6 }
   0x6   :  { %v35_v24 = vadd.f32 %v112_v17, %v104_v16  ;;  %v128_v25 = vunpack.c.l.bf16 %v133_v14  ;;  %v36_v28 = vadd.f32 %v113_v22, %v105_v21  ;;  %v129_v29 = vunpack.c.h.bf16 %v133_v14 }
   0x7   :  { %v45_v23 = vadd.f32 %v116_v5, %v33_v15  ;;  %v46_v27 = vadd.f32 %v117_v12, %v34_v19 }
   0x8   :  { %v47_v31 = vadd.f32 %v120_v18, %v35_v24  ;;  %v48_v33 = vadd.f32 %v121_v26, %v36_v28 }
   0x9   :  { %v57_v30 = vadd.f32 %v124_v10, %v45_v23  ;;  %v58_v32 = vadd.f32 %v125_v20, %v46_v27 }
   0xa   :  { %v59_v35 = vadd.f32 %v128_v25, %v47_v31  ;;  %v60_v37 = vadd.f32 %v129_v29, %v48_v33 }
   0xb   :  { %v61_v34 = vmul.f32 0.25, %v57_v30  ;;  %v62_v36 = vmul.f32 0.25, %v58_v32 }
   0xc   :  { %v63_v39 = vmul.f32 0.25, %v59_v35  ;;  %v64_v41 = vmul.f32 0.25, %v60_v37 }
   0xd   :  { %v94_v38 = vpack.c.bf16 %v61_v34, %v61_v34  ;;  %v95_v40 = vpack.c.bf16 %v62_v36, %v62_v36 }
   0xe   :  { %v96_v42 = vpack.c.bf16 %v63_v39, %v63_v39  ;;  %v97_v43 = vpack.c.bf16 %v64_v41, %v64_v41 }
   0xf   :  { %82 = vst.msk [vmem:[%s199_s4] sm:$0xf] %vm81_vm0, %v94_v38  ;;  %83 = vst.msk [vmem:[%s199_s4 + $0x4] sm:$0xf] %vm81_vm0, %v95_v40 }
  0x10   :  { %84 = vst.msk [vmem:[%s199_s4 + $0x8] sm:$0xf] %vm81_vm0, %v96_v42  ;;  %85 = vst.msk [vmem:[%s199_s4 + $0xc] sm:$0xf] %vm81_vm0, %v97_v43 }

// kernel: densenet_forward.25
= control target key start
LH: loop header
LB: loop body
LE: loop exit
PB: predicated region body
PF: predicated region fallthrough
CT: control target
= control target key end

     0   :  { %vm274_vm0 = vcmask 1043456   ;;  %vm249_vm1 = vcmask 64512   ;;  %vm381_vm2 = vcmask 130048   ;;  %vm810_vm3 = vcmask 125952   ;;  %s1499_s10 = inlined_call_operand.vmem [shape: bf16[8,16], index: 10, kind: input, shape index: {}]   ;;  %s1500_s9 = inlined_call_operand.vmem [shape: bf16[16,16], index: 9, kind: input, shape index: {}]   ;;  %s1501_s1 = inlined_call_operand.vmem [shape: bf16[128,8], index: 1, kind: input, shape index: {}]   ;;  %s1502_s4 = inlined_call_operand.vmem [shape: f32[1,8], index: 4, kind: input, shape index: {}]   ;;  %s1503_s0 = inlined_call_operand.vmem [shape: bf16[128,16], index: 0, kind: input, shape index: {}]   ;;  %s1504_s3 = inlined_call_operand.vmem [shape: f32[1,16], index: 3, kind: input, shape index: {}]   ;;  %s1505_s7 = inlined_call_operand.vmem [shape: f32[1,8], index: 7, kind: input, shape index: {}]   ;;  %s1506_s11 = inlined_call_operand.vmem [shape: bf16[8,16], index: 11, kind: input, shape index: {}]   ;;  %s1507_s6 = inlined_call_operand.vmem [shape: f32[1,16], index: 6, kind: input, shape index: {}]   ;;  %s1508_s2 = inlined_call_operand.vmem [shape: bf16[128,8], index: 2, kind: input, shape index: {}]   ;;  %s1509_s5 = inlined_call_operand.vmem [shape: f32[1,8], index: 5, kind: input, shape index: {}]   ;;  %s1510_s8 = inlined_call_operand.vmem [shape: f32[1,8], index: 8, kind: input, shape index: {}]   ;;  %s1511_s12 = inlined_call_operand.vmem [shape: bf16[128,16], index: 12, kind: output, shape index: {}]  }
   0x1   :  { %v248_v0 = vld [vmem:[%s1499_s10] sm:$0xf]  ;;  %v997_v13 = vld [vmem:[%s1501_s1 + $0x8] sm:$0xff]   ;;  %v998_v36 = vld [vmem:[%s1501_s1 + $0x10] sm:$0xff]  }
   0x2   :  { %1126 = vmatprep.subr.msk.bf16.mxu1 %vm274_vm0, %v248_v0  ;;  %v1201_v1 = vld [vmem:[%s1500_s9] sm:$0xff]   ;;  %v276_v2 = vsel %vm274_vm0, %v248_v0, 0  ;;  %v932_v17 = vunpack.c.l.bf16 %v997_v13  ;;  %v933_v18 = vunpack.c.h.bf16 %v997_v13  ;;  %v990_v19 = vld [vmem:[%s1503_s0 + $0x8] sm:$0xff]   ;;  %v991_v41 = vld [vmem:[%s1503_s0 + $0x10] sm:$0xff]   ;;  %v936_v50 = vunpack.c.l.bf16 %v998_v36 }
   0x3   :  { %v927_v3 = vld [vmem:[%s1501_s1] sm:$0xff]   ;;  %1039 = vmatpush3.bf16.msra.mxu1 %v276_v2  ;;  %1056 = vmatprep.subr.bf16.mxu0 %v1201_v1  ;;  %v900_v22 = vunpack.c.l.bf16 %v990_v19  ;;  %v901_v23 = vunpack.c.h.bf16 %v990_v19  ;;  %v999_v46 = vld [vmem:[%s1501_s1 + $0x18] sm:$0xff]   ;;  %v937_v53 = vunpack.c.h.bf16 %v998_v36  ;;  %v904_v54 = vunpack.c.l.bf16 %v991_v41 }
   0x4   :  { %v1210_v4 = vld [vmem:[%s1502_s4] ss:$0 sm:$0xff]  ;;  %v928_v5 = vunpack.c.l.bf16 %v927_v3  ;;  %v929_v6 = vunpack.c.h.bf16 %v927_v3  ;;  %1092 = vmatprep.subr.bf16.mxu1 %v1201_v1  ;;  %1057 = vmatpush3.bf16.msra.mxu0 %v1201_v1  ;;  %v992_v51 = vld [vmem:[%s1503_s0 + $0x18] sm:$0xff]   ;;  %v905_v55 = vunpack.c.h.bf16 %v991_v41  ;;  %v940_v58 = vunpack.c.l.bf16 %v999_v46 }
   0x5   :  { %v895_v7 = vld [vmem:[%s1503_s0] sm:$0xff]   ;;  %v187_v26 = vmul.f32 %v932_v17, %v1210_v4  ;;  %v188_v27 = vmul.f32 %v933_v18, %v1210_v4  ;;  %v189_v57 = vmul.f32 %v936_v50, %v1210_v4  ;;  %v941_v59 = vunpack.c.h.bf16 %v999_v46  ;;  %v1002_v50 = vld [vmem:[%s1501_s1 + $0x30] sm:$0xff]  }
   0x6   :  { %v1218_v8 = vld [vmem:[%s1504_s3] ss:$0 sm:$0xff]  ;;  %v896_v10 = vunpack.c.l.bf16 %v895_v7  ;;  %v897_v11 = vunpack.c.h.bf16 %v895_v7  ;;  %v185_v14 = vmul.f32 %v928_v5, %v1210_v4  ;;  %v186_v15 = vmul.f32 %v929_v6, %v1210_v4 }
   0x7   :  { %v1224_v9 = vld [vmem:[%s1505_s7] ss:$0 sm:$0xff]  ;;  %v83_v30 = vmul.f32 %v900_v22, %v1218_v8  ;;  %v84_v31 = vmul.f32 %v901_v23, %v1218_v8  ;;  %v190_v60 = vmul.f32 %v937_v53, %v1210_v4  ;;  %v85_v61 = vmul.f32 %v904_v54, %v1218_v8 }
   0x8   :  { %v605_v12 = vld [vmem:[%s1506_s11] sm:$0xf]  ;;  %v81_v20 = vmul.f32 %v896_v10, %v1218_v8  ;;  %v82_v21 = vmul.f32 %v897_v11, %v1218_v8  ;;  %v208_v24 = vadd.f32 %v1224_v9, %v185_v14  ;;  %v209_v25 = vadd.f32 %v1224_v9, %v186_v15 }
   0x9   :  { %v1239_v16 = vld [vmem:[%s1507_s6] ss:$0 sm:$0xff]  ;;  %1127 = vmatprep.subr.msk.bf16.mxu0 %vm274_vm0, %v605_v12  ;;  %v210_v34 = vadd.f32 %v1224_v9, %v187_v26  ;;  %v211_v35 = vadd.f32 %v1224_v9, %v188_v27  ;;  %v631_v45 = vsel %vm274_vm0, %v605_v12, 0  ;;  %v86_v62 = vmul.f32 %v905_v55, %v1218_v8  ;;  %v1001_v26 = vld [vmem:[%s1501_s1 + $0x28] sm:$0xff]  }
   0xa   :  { %v104_v28 = vadd.f32 %v1239_v16, %v81_v20  ;;  %v105_v29 = vadd.f32 %v1239_v16, %v82_v21  ;;  %v224_v32 = vmax.f32 %v208_v24, 0.0  ;;  %v225_v33 = vmax.f32 %v209_v25, 0.0  ;;  %v959_v21 = vld [vmem:[%s1508_s2] sm:$0xff]  }
   0xb   :  { %v106_v39 = vadd.f32 %v1239_v16, %v83_v30  ;;  %v107_v40 = vadd.f32 %v1239_v16, %v84_v31  ;;  %v226_v43 = vmax.f32 %v210_v34, 0.0  ;;  %v227_v44 = vmax.f32 %v211_v35, 0.0  ;;  %v1305_v31 = vld [vmem:[%s1509_s5] ss:$0 sm:$0xff] }
   0xc   :  { %v120_v37 = vmax.f32 %v104_v28, 0.0  ;;  %v121_v38 = vmax.f32 %v105_v29, 0.0  ;;  %v240_v42 = vpack.c.bf16 %v225_v33, %v224_v32  ;;  %v908_v63 = vunpack.c.l.bf16 %v992_v51  ;;  %v1004_v32 = vld [vmem:[%s1508_s2 + $0x8] sm:$0xff]  }
   0xd   :  { %v122_v48 = vmax.f32 %v106_v39, 0.0  ;;  %v123_v49 = vmax.f32 %v107_v40, 0.0  ;;  %v241_v52 = vpack.c.bf16 %v227_v44, %v226_v43  ;;  %v212_v0 = vadd.f32 %v1224_v9, %v189_v57  ;;  %v1317_v39 = vld [vmem:[%s1510_s8] ss:$0 sm:$0xff] }
   0xe   :  { %v136_v47 = vpack.c.bf16 %v121_v38, %v120_v37  ;;  %1040 = vmatprep.mubr.msk.bf16.mxu1 %vm249_vm1, %v240_v42  ;;  %v191_v2 = vmul.f32 %v940_v58, %v1210_v4  ;;  %v192_v3 = vmul.f32 %v941_v59, %v1210_v4  ;;  %v909_v5 = vunpack.c.h.bf16 %v992_v51 }
   0xf   :  { %v137_v56 = vpack.c.bf16 %v123_v49, %v122_v48  ;;  %1041 = vmatmul.mubr.msk.bf16.vlgmr.msra.gmra.mrb[0].mxu1 %vm249_vm1, %v241_v52  ;;  %v213_v6 = vadd.f32 %v1224_v9, %v190_v60  ;;  %v108_v7 = vadd.f32 %v1239_v16, %v85_v61  ;;  %v109_v10 = vadd.f32 %v1239_v16, %v86_v62 }
  0x10   :  { %1058 = vmatprep.mubr.msk.bf16.mxu0 %vm381_vm2, %v136_v47  ;;  %1093 = vmatpush3.bf16.msra.mxu1 %v1201_v1  ;;  %v87_v11 = vmul.f32 %v908_v63, %v1218_v8  ;;  %v1000_v1 = vld [vmem:[%s1501_s1 + $0x20] sm:$0xff]   ;;  %v228_v12 = vmax.f32 %v212_v0, 0.0  ;;  %v214_v13 = vadd.f32 %v1224_v9, %v191_v2  ;;  %v215_v14 = vadd.f32 %v1224_v9, %v192_v3  ;;  %v1005_v63 = vld [vmem:[%s1508_s2 + $0x10] sm:$0xff]  }
  0x11   :  { %1059 = vmatmul.mubr.msk.bf16.vlgmr.msra.gmra.mrb[0].mxu0 %vm381_vm2, %v137_v56  ;;  %v88_v15 = vmul.f32 %v909_v5, %v1218_v8  ;;  %v229_v17 = vmax.f32 %v213_v6, 0.0  ;;  %v124_v18 = vmax.f32 %v108_v7, 0.0  ;;  %v125_v19 = vmax.f32 %v109_v10, 0.0  ;;  %v1003_v6 = vld [vmem:[%s1501_s1 + $0x38] sm:$0xff]  }
  0x12   :  { %1075 = vmatpush3.bf16.msra.mxu0 %v631_v45  ;;  %v110_v20 = vadd.f32 %v1239_v16, %v87_v11  ;;  %v230_v22 = vmax.f32 %v214_v13, 0.0  ;;  %v231_v23 = vmax.f32 %v215_v14, 0.0  ;;  %v944_v25 = vunpack.c.l.bf16 %v1000_v1 }
  0x13   :  { %v111_v24 = vadd.f32 %v1239_v16, %v88_v15  ;;  %v242_v27 = vpack.c.bf16 %v229_v17, %v228_v12  ;;  %v138_v28 = vpack.c.bf16 %v125_v19, %v124_v18  ;;  %v945_v30 = vunpack.c.h.bf16 %v1000_v1  ;;  %v1006_v12 = vld [vmem:[%s1508_s2 + $0x18] sm:$0xff]  }
  0x14   :  { %v126_v29 = vmax.f32 %v110_v20, 0.0  ;;  %v243_v33 = vpack.c.bf16 %v231_v23, %v230_v22  ;;  %v193_v35 = vmul.f32 %v944_v25, %v1210_v4  ;;  %v960_v36 = vunpack.c.l.bf16 %v959_v21 }
  0x15   :  { %v127_v34 = vmax.f32 %v111_v24, 0.0  ;;  %1044 = vmatprep.mubr.msk.bf16.mxu1 %vm249_vm1, %v242_v27  ;;  %1062 = vmatprep.mubr.msk.bf16.mxu0 %vm381_vm2, %v138_v28  ;;  %v194_v37 = vmul.f32 %v945_v30, %v1210_v4  ;;  %v961_v38 = vunpack.c.h.bf16 %v959_v21  ;;  %v948_v40 = vunpack.c.l.bf16 %v1001_v26 }
  0x16   :  { %v949_v41 = vunpack.c.h.bf16 %v1001_v26  ;;  %v216_v43 = vadd.f32 %v1224_v9, %v193_v35  ;;  %v542_v44 = vmul.f32 %v960_v36, %v1305_v31  ;;  %v964_v45 = vunpack.c.l.bf16 %v1004_v32  ;;  %v993_v26 = vld [vmem:[%s1503_s0 + $0x20] sm:$0xff]  }
  0x17   :  { %1045 = vmatmul.mubr.msk.bf16.gmra.mrb[4].mxu1 %vm249_vm1, %v243_v33  ;;  %v139_v42 = vpack.c.bf16 %v127_v34, %v126_v29  ;;  %v217_v46 = vadd.f32 %v1224_v9, %v194_v37  ;;  %v543_v47 = vmul.f32 %v961_v38, %v1305_v31  ;;  %v195_v48 = vmul.f32 %v948_v40, %v1210_v4 }
  0x18   :  { %v196_v49 = vmul.f32 %v949_v41, %v1210_v4  ;;  %v232_v51 = vmax.f32 %v216_v43, 0.0  ;;  %v565_v52 = vadd.f32 %v1317_v39, %v542_v44  ;;  %v965_v53 = vunpack.c.h.bf16 %v1004_v32 }
  0x19   :  { %1063 = vmatmul.mubr.msk.bf16.gmra.mrb[4].mxu0 %vm381_vm2, %v139_v42  ;;  %v544_v54 = vmul.f32 %v964_v45, %v1305_v31  ;;  %v233_v55 = vmax.f32 %v217_v46, 0.0  ;;  %v566_v56 = vadd.f32 %v1317_v39, %v543_v47  ;;  %v218_v57 = vadd.f32 %v1224_v9, %v195_v48  ;;  %v1007_v45 = vld [vmem:[%s1508_s2 + $0x20] sm:$0xff]  }
  0x1a   :  { %v219_v58 = vadd.f32 %v1224_v9, %v196_v49  ;;  %v581_v59 = vmax.f32 %v565_v52, 0.0  ;;  %v545_v60 = vmul.f32 %v965_v53, %v1305_v31  ;;  %v952_v62 = vunpack.c.l.bf16 %v1002_v50  ;;  %v994_v49 = vld [vmem:[%s1503_s0 + $0x28] sm:$0xff]  }
  0x1b   :  { %v567_v61 = vadd.f32 %v1317_v39, %v544_v54  ;;  %v244_v0 = vpack.c.bf16 %v233_v55, %v232_v51  ;;  %v582_v2 = vmax.f32 %v566_v56, 0.0  ;;  %v234_v3 = vmax.f32 %v218_v57, 0.0  ;;  %v1008_v57 = vld [vmem:[%s1508_s2 + $0x28] sm:$0xff]  }
  0x1c   :  { %v235_v5 = vmax.f32 %v219_v58, 0.0  ;;  %v568_v7 = vadd.f32 %v1317_v39, %v545_v60  ;;  %v953_v11 = vunpack.c.h.bf16 %v1002_v50  ;;  %v197_v1 = vmul.f32 %v952_v62, %v1210_v4 }
  0x1d   :  { %v583_v10 = vmax.f32 %v567_v61, 0.0  ;;  %1048 = vmatprep.mubr.msk.bf16.mxu1 %vm249_vm1, %v244_v0  ;;  %v597_v13 = vpack.c.bf16 %v582_v2, %v581_v59  ;;  %v968_v15 = vunpack.c.l.bf16 %v1005_v63  ;;  %v969_v17 = vunpack.c.h.bf16 %v1005_v63 }
  0x1e   :  { %v245_v14 = vpack.c.bf16 %v235_v5, %v234_v3  ;;  %v584_v18 = vmax.f32 %v568_v7, 0.0  ;;  %v198_v19 = vmul.f32 %v953_v11, %v1210_v4  ;;  %v220_v20 = vadd.f32 %v1224_v9, %v197_v1  ;;  %v995_v3 = vld [vmem:[%s1503_s0 + $0x30] sm:$0xff]  }
  0x1f   :  { %v956_v21 = vunpack.c.l.bf16 %v1003_v6  ;;  %1076 = vmatprep.mubr.msk.bf16.mxu0 %vm249_vm1, %v597_v13  ;;  %v546_v22 = vmul.f32 %v968_v15, %v1305_v31  ;;  %v547_v23 = vmul.f32 %v969_v17, %v1305_v31  ;;  %v957_v24 = vunpack.c.h.bf16 %v1003_v6 }
  0x20   :  { %1049 = vmatmul.mubr.msk.bf16.gmra.mrb[8].mxu1 %vm249_vm1, %v245_v14  ;;  %v972_v25 = vunpack.c.l.bf16 %v1006_v12  ;;  %v598_v27 = vpack.c.bf16 %v584_v18, %v583_v10  ;;  %v221_v28 = vadd.f32 %v1224_v9, %v198_v19  ;;  %v236_v29 = vmax.f32 %v220_v20, 0.0  ;;  %v1009_v19 = vld [vmem:[%s1508_s2 + $0x30] sm:$0xff]  }
  0x21   :  { %v199_v30 = vmul.f32 %v956_v21, %v1210_v4  ;;  %v569_v32 = vadd.f32 %v1317_v39, %v546_v22  ;;  %v570_v33 = vadd.f32 %v1317_v39, %v547_v23  ;;  %v200_v34 = vmul.f32 %v957_v24, %v1210_v4 }
  0x22   :  { %v973_v35 = vunpack.c.h.bf16 %v1006_v12  ;;  %1077 = vmatmul.mubr.msk.bf16.vlgmr.msra.gmra.mrb[0].mxu0 %vm249_vm1, %v598_v27  ;;  %v237_v36 = vmax.f32 %v221_v28, 0.0  ;;  %v548_v38 = vmul.f32 %v972_v25, %v1305_v31  ;;  %v912_v40 = vunpack.c.l.bf16 %v993_v26  ;;  %v996_v28 = vld [vmem:[%s1503_s0 + $0x38] sm:$0xff]  }
  0x23   :  { %v222_v37 = vadd.f32 %v1224_v9, %v199_v30  ;;  %v585_v41 = vmax.f32 %v569_v32, 0.0  ;;  %v586_v42 = vmax.f32 %v570_v33, 0.0  ;;  %v223_v43 = vadd.f32 %v1224_v9, %v200_v34 }
  0x24   :  { %v549_v44 = vmul.f32 %v973_v35, %v1305_v31  ;;  %v246_v4 = vpack.c.bf16 %v237_v36, %v236_v29  ;;  %v571_v47 = vadd.f32 %v1317_v39, %v548_v38  ;;  %v913_v48 = vunpack.c.h.bf16 %v993_v26  ;;  %v1010_v38 = vld [vmem:[%s1508_s2 + $0x38] sm:$0xff]  }
  0x25   :  { %v238_v46 = vmax.f32 %v222_v37, 0.0  ;;  %v599_v50 = vpack.c.bf16 %v586_v42, %v585_v41  ;;  %v239_v51 = vmax.f32 %v223_v43, 0.0  ;;  %v89_v9 = vmul.f32 %v912_v40, %v1218_v8 }
  0x26   :  { %v572_v52 = vadd.f32 %v1317_v39, %v549_v44  ;;  %1052 = vmatprep.mubr.msk.bf16.mxu1 %vm249_vm1, %v246_v4  ;;  %v587_v53 = vmax.f32 %v571_v47, 0.0  ;;  %v90_v54 = vmul.f32 %v913_v48, %v1218_v8  ;;  %v976_v55 = vunpack.c.l.bf16 %v1007_v45 }
  0x27   :  { %v977_v56 = vunpack.c.h.bf16 %v1007_v45  ;;  %1080 = vmatprep.mubr.msk.bf16.mxu0 %vm249_vm1, %v599_v50  ;;  %v247_v58 = vpack.c.bf16 %v239_v51, %v238_v46  ;;  %v112_v60 = vadd.f32 %v1239_v16, %v89_v9  ;;  %v916_v61 = vunpack.c.l.bf16 %v994_v49 }
  0x28   :  { %v588_v59 = vmax.f32 %v572_v52, 0.0  ;;  %v113_v62 = vadd.f32 %v1239_v16, %v90_v54  ;;  %v550_v63 = vmul.f32 %v976_v55, %v1305_v31  ;;  %v917_v2 = vunpack.c.h.bf16 %v994_v49 }
  0x29   :  { %v551_v0 = vmul.f32 %v977_v56, %v1305_v31  ;;  %1053 = vmatmul.mubr.msk.bf16.gmra.mrb[12].mxu1 %vm249_vm1, %v247_v58  ;;  %v128_v6 = vmax.f32 %v112_v60, 0.0  ;;  %v91_v7 = vmul.f32 %v916_v61, %v1218_v8  ;;  %v980_v10 = vunpack.c.l.bf16 %v1008_v57 }
  0x2a   :  { %v600_v5 = vpack.c.bf16 %v588_v59, %v587_v53  ;;  %v129_v11 = vmax.f32 %v113_v62, 0.0  ;;  %v573_v1 = vadd.f32 %v1317_v39, %v550_v63  ;;  %v92_v13 = vmul.f32 %v917_v2, %v1218_v8 }
  0x2b   :  { %v574_v12 = vadd.f32 %v1317_v39, %v551_v0  ;;  %v114_v14 = vadd.f32 %v1239_v16, %v91_v7  ;;  %v981_v15 = vunpack.c.h.bf16 %v1008_v57  ;;  %v552_v17 = vmul.f32 %v980_v10, %v1305_v31 }
  0x2c   :  { %1081 = vmatmul.mubr.msk.bf16.gmra.mrb[4].mxu0 %vm249_vm1, %v600_v5  ;;  %v920_v18 = vunpack.c.l.bf16 %v995_v3  ;;  %v140_v20 = vpack.c.bf16 %v129_v11, %v128_v6  ;;  %v589_v21 = vmax.f32 %v573_v1, 0.0  ;;  %v115_v23 = vadd.f32 %v1239_v16, %v92_v13 }
  0x2d   :  { %v590_v22 = vmax.f32 %v574_v12, 0.0  ;;  %v130_v24 = vmax.f32 %v114_v14, 0.0  ;;  %v553_v25 = vmul.f32 %v981_v15, %v1305_v31  ;;  %v575_v26 = vadd.f32 %v1317_v39, %v552_v17 }
  0x2e   :  { %v921_v27 = vunpack.c.h.bf16 %v995_v3  ;;  %1066 = vmatprep.mubr.msk.bf16.mxu1 %vm381_vm2, %v140_v20  ;;  %v131_v30 = vmax.f32 %v115_v23, 0.0  ;;  %v93_v32 = vmul.f32 %v920_v18, %v1218_v8  ;;  %v984_v33 = vunpack.c.l.bf16 %v1009_v19 }
  0x2f   :  { %v601_v29 = vpack.c.bf16 %v590_v22, %v589_v21  ;;  %v576_v34 = vadd.f32 %v1317_v39, %v553_v25  ;;  %v591_v35 = vmax.f32 %v575_v26, 0.0  ;;  %v985_v37 = vunpack.c.h.bf16 %v1009_v19 }
  0x30   :  { %v94_v36 = vmul.f32 %v921_v27, %v1218_v8  ;;  %v141_v40 = vpack.c.bf16 %v131_v30, %v130_v24  ;;  %v116_v41 = vadd.f32 %v1239_v16, %v93_v32  ;;  %v554_v42 = vmul.f32 %v984_v33, %v1305_v31 }
  0x31   :  { %1084 = vmatprep.mubr.msk.bf16.mxu0 %vm249_vm1, %v601_v29  ;;  %v924_v43 = vunpack.c.l.bf16 %v996_v28  ;;  %v592_v44 = vmax.f32 %v576_v34, 0.0  ;;  %v555_v4 = vmul.f32 %v985_v37, %v1305_v31  ;;  %v925_v46 = vunpack.c.h.bf16 %v996_v28 }
  0x32   :  { %v117_v45 = vadd.f32 %v1239_v16, %v94_v36  ;;  %1067 = vmatmul.mubr.msk.bf16.vlgmr.msra.gmra.mrb[8].mxu1 %vm381_vm2, %v141_v40  ;;  %v132_v47 = vmax.f32 %v116_v41, 0.0  ;;  %v577_v48 = vadd.f32 %v1317_v39, %v554_v42  ;;  %v988_v50 = vunpack.c.l.bf16 %v1010_v38 }
  0x33   :  { %v95_v49 = vmul.f32 %v924_v43, %v1218_v8  ;;  %v602_v51 = vpack.c.bf16 %v592_v44, %v591_v35  ;;  %v578_v9 = vadd.f32 %v1317_v39, %v555_v4  ;;  %v96_v53 = vmul.f32 %v925_v46, %v1218_v8 }
  0x34   :  { %v133_v52 = vmax.f32 %v117_v45, 0.0  ;;  %v593_v54 = vmax.f32 %v577_v48, 0.0  ;;  %v989_v56 = vunpack.c.h.bf16 %v1010_v38  ;;  %v556_v57 = vmul.f32 %v988_v50, %v1305_v31 }
  0x35   :  { %v118_v55 = vadd.f32 %v1239_v16, %v95_v49  ;;  %1085 = vmatmul.mubr.msk.bf16.gmra.mrb[8].mxu0 %vm249_vm1, %v602_v51  ;;  %v594_v59 = vmax.f32 %v578_v9, 0.0  ;;  %v119_v60 = vadd.f32 %v1239_v16, %v96_v53 }
  0x36   :  { %v142_v58 = vpack.c.bf16 %v133_v52, %v132_v47  ;;  %v557_v62 = vmul.f32 %v989_v56, %v1305_v31  ;;  %v579_v63 = vadd.f32 %v1317_v39, %v556_v57 }
  0x37   :  { %v134_v61 = vmax.f32 %v118_v55, 0.0  ;;  %v603_v8 = vpack.c.bf16 %v594_v59, %v593_v54  ;;  %v135_v0 = vmax.f32 %v119_v60, 0.0 }
  0x38   :  { %1070 = vmatprep.mubr.msk.bf16.mxu1 %vm381_vm2, %v142_v58  ;;  %v580_v2 = vadd.f32 %v1317_v39, %v557_v62  ;;  %v595_v3 = vmax.f32 %v579_v63, 0.0 }
  0x39   :  { %1088 = vmatprep.mubr.msk.bf16.mxu0 %vm249_vm1, %v603_v8  ;;  %v143_v5 = vpack.c.bf16 %v135_v0, %v134_v61 }
  0x3a   :  { %v596_v6 = vmax.f32 %v580_v2, 0.0 }
  0x3b   :  { %1071 = vmatmul.mubr.msk.bf16.gmra.mrb[12].mxu1 %vm381_vm2, %v143_v5 }
  0x3c   :  { %v604_v7 = vpack.c.bf16 %v596_v6, %v595_v3 }
  0x3e   :  { %1089 = vmatmul.mubr.msk.bf16.gmra.mrb[12].mxu0 %vm249_vm1, %v604_v7 }
  0xe2   :  { %v1042_v16 = vpop.f32.mrb[0].mxu1 }
  0xe3   :  { %v312_v31 = vpop.f32.mrb[1].mxu1 }
  0xe4   :  { %v1043_v10 = vpop.f32.mrb[2].mxu1 }
  0xe5   :  { %v315_v11 = vpop.f32.mrb[3].mxu1 }
  0xea   :  { %v1046_v1 = vpop.f32.mrb[4].mxu1 }
  0xeb   :  { %v328_v12 = vpop.f32.mrb[5].mxu1 }
  0xec   :  { %v1047_v13 = vpop.f32.mrb[6].mxu1 }
  0xed   :  { %v331_v14 = vpop.f32.mrb[7].mxu1 }
  0xf5   :  { %v1078_v15 = vpop.f32.mrb[0].mxu0 }
  0xf6   :  { %v1094_v39 = vadd.f32 %v1078_v15, %v1042_v16  ;;  %v667_v17 = vpop.f32.mrb[1].mxu0 }
  0xf7   :  { %v1095_v18 = vadd.f32 %v667_v17, %v312_v31  ;;  %v1079_v19 = vpop.f32.mrb[2].mxu0 }
  0xf8   :  { %v880_v20 = vpack.c.bf16 %v1094_v39, %v1094_v39  ;;  %v1096_v21 = vadd.f32 %v1079_v19, %v1043_v10  ;;  %v670_v22 = vpop.f32.mrb[3].mxu0 }
  0xf9   :  { %v878_v23 = vpack.c.bf16 %v1095_v18, %v1095_v18  ;;  %v1097_v24 = vadd.f32 %v670_v22, %v315_v11 }
  0xfa   :  { %813 = vst.msk [vmem:[%s1511_s12 + $0x8] sm:$0xf] %vm810_vm3, %v880_v20  ;;  %v881_v25 = vpack.c.bf16 %v1096_v21, %v1096_v21 }
  0xfb   :  { %811 = vst.msk [vmem:[%s1511_s12] sm:$0xf] %vm810_vm3, %v878_v23  ;;  %v879_v26 = vpack.c.bf16 %v1097_v24, %v1097_v24 }
  0xfc   :  { %814 = vst.msk [vmem:[%s1511_s12 + $0xc] sm:$0xf] %vm810_vm3, %v881_v25 }
  0xfd   :  { %812 = vst.msk [vmem:[%s1511_s12 + $0x4] sm:$0xf] %vm810_vm3, %v879_v26 }
  0xff   :  { %v1082_v27 = vpop.f32.mrb[4].mxu0 }
 0x100   :  { %v1098_v28 = vadd.f32 %v1082_v27, %v1046_v1  ;;  %v683_v29 = vpop.f32.mrb[5].mxu0 }
 0x101   :  { %v1099_v30 = vadd.f32 %v683_v29, %v328_v12  ;;  %v1083_v32 = vpop.f32.mrb[6].mxu0 }
 0x102   :  { %v884_v33 = vpack.c.bf16 %v1098_v28, %v1098_v28  ;;  %v1100_v34 = vadd.f32 %v1083_v32, %v1047_v13  ;;  %v686_v35 = vpop.f32.mrb[7].mxu0 }
 0x103   :  { %v882_v36 = vpack.c.bf16 %v1099_v30, %v1099_v30  ;;  %v1101_v37 = vadd.f32 %v686_v35, %v331_v14 }
 0x104   :  { %817 = vst.msk [vmem:[%s1511_s12 + $0x18] sm:$0xf] %vm810_vm3, %v884_v33  ;;  %v885_v38 = vpack.c.bf16 %v1100_v34, %v1100_v34 }
 0x105   :  { %815 = vst.msk [vmem:[%s1511_s12 + $0x10] sm:$0xf] %vm810_vm3, %v882_v36  ;;  %v883_v40 = vpack.c.bf16 %v1101_v37, %v1101_v37  ;;  %v1068_v41 = vpop.f32.mrb[8].mxu1 }
 0x106   :  { %818 = vst.msk [vmem:[%s1511_s12 + $0x1c] sm:$0xf] %vm810_vm3, %v885_v38  ;;  %v472_v42 = vpop.f32.mrb[9].mxu1 }
 0x107   :  { %816 = vst.msk [vmem:[%s1511_s12 + $0x14] sm:$0xf] %vm810_vm3, %v883_v40  ;;  %v1069_v43 = vpop.f32.mrb[10].mxu1 }
 0x108   :  { %v1086_v44 = vpop.f32.mrb[8].mxu0  ;;  %v475_v45 = vpop.f32.mrb[11].mxu1 }
 0x109   :  { %v1102_v4 = vadd.f32 %v1086_v44, %v1068_v41  ;;  %v699_v46 = vpop.f32.mrb[9].mxu0 }
 0x10a   :  { %v1103_v47 = vadd.f32 %v699_v46, %v472_v42  ;;  %v1087_v48 = vpop.f32.mrb[10].mxu0 }
 0x10b   :  { %v888_v49 = vpack.c.bf16 %v1102_v4, %v1102_v4  ;;  %v1104_v50 = vadd.f32 %v1087_v48, %v1069_v43  ;;  %v702_v51 = vpop.f32.mrb[11].mxu0 }
 0x10c   :  { %v886_v52 = vpack.c.bf16 %v1103_v47, %v1103_v47  ;;  %v1105_v9 = vadd.f32 %v702_v51, %v475_v45 }
 0x10d   :  { %821 = vst.msk [vmem:[%s1511_s12 + $0x28] sm:$0xf] %vm810_vm3, %v888_v49  ;;  %v889_v53 = vpack.c.bf16 %v1104_v50, %v1104_v50 }
 0x10e   :  { %819 = vst.msk [vmem:[%s1511_s12 + $0x20] sm:$0xf] %vm810_vm3, %v886_v52  ;;  %v887_v54 = vpack.c.bf16 %v1105_v9, %v1105_v9  ;;  %v1072_v55 = vpop.f32.mrb[12].mxu1 }
 0x10f   :  { %822 = vst.msk [vmem:[%s1511_s12 + $0x2c] sm:$0xf] %vm810_vm3, %v889_v53  ;;  %v488_v56 = vpop.f32.mrb[13].mxu1 }
 0x110   :  { %820 = vst.msk [vmem:[%s1511_s12 + $0x24] sm:$0xf] %vm810_vm3, %v887_v54  ;;  %v1073_v57 = vpop.f32.mrb[14].mxu1 }
 0x111   :  { %v1090_v58 = vpop.f32.mrb[12].mxu0  ;;  %v491_v59 = vpop.f32.mrb[15].mxu1 }
 0x112   :  { %v1106_v60 = vadd.f32 %v1090_v58, %v1072_v55  ;;  %v715_v61 = vpop.f32.mrb[13].mxu0 }
 0x113   :  { %v1107_v62 = vadd.f32 %v715_v61, %v488_v56  ;;  %v1091_v63 = vpop.f32.mrb[14].mxu0 }
 0x114   :  { %v892_v8 = vpack.c.bf16 %v1106_v60, %v1106_v60  ;;  %v1108_v0 = vadd.f32 %v1091_v63, %v1073_v57  ;;  %v718_v2 = vpop.f32.mrb[15].mxu0 }
 0x115   :  { %v890_v3 = vpack.c.bf16 %v1107_v62, %v1107_v62  ;;  %v1109_v5 = vadd.f32 %v718_v2, %v491_v59 }
 0x116   :  { %825 = vst.msk [vmem:[%s1511_s12 + $0x38] sm:$0xf] %vm810_vm3, %v892_v8  ;;  %v893_v6 = vpack.c.bf16 %v1108_v0, %v1108_v0 }
 0x117   :  { %823 = vst.msk [vmem:[%s1511_s12 + $0x30] sm:$0xf] %vm810_vm3, %v890_v3  ;;  %v891_v7 = vpack.c.bf16 %v1109_v5, %v1109_v5 }
 0x118   :  { %826 = vst.msk [vmem:[%s1511_s12 + $0x3c] sm:$0xf] %vm810_vm3, %v893_v6 }
 0x119   :  { %824 = vst.msk [vmem:[%s1511_s12 + $0x34] sm:$0xf] %vm810_vm3, %v891_v7 }

// kernel: densenet_forward.22
= control target key start
LH: loop header
LB: loop body
LE: loop exit
PB: predicated region body
PF: predicated region fallthrough
CT: control target
= control target key end

     0   :  { %s2267_s9 = smov 0   ;;  %s2761_s0 = inlined_call_operand.vmem [shape: bf16[2,110,32], index: 0, kind: input, shape index: {}]   ;;  %s2762_s1 = inlined_call_operand.vmem [shape: bf16[9,32,8], index: 1, kind: input, shape index: {}]   ;;  %s2763_s2 = inlined_call_operand.vmem [shape: bf16[2,80,8], index: 2, kind: output, shape index: {}]  }
   0x1 LB: > { %s1609_s10 = sadd.s32 4294967295, %s2248_s9   ;;  %p1613_p0 = scmp.ge.s32.totalorder %s2248_s9, 1  ;;  %s2248_s9 = sphi %s2267_s9, %s12_s9  }
   0x2   : > { %p112_p1 = scmp.lt.s32.totalorder %s2248_s9, 3 }
   0x4   : > { %p113_p2 = pnand %p1613_p0, %p112_p1 }
   0x5   : > { %v2278_v0 = vld [vmem:[%s2762_s1 + $0x40] sm:$0xff] (!%p113_p2)   ;;  %v2250_v1 = vmov (!%p113_p2), 0.0   ;;  %v2202_v2 = vld [vmem:[%s2762_s1 + $0x10] sm:$0xff] (!%p113_p2)   ;;  %v2289_v3 = vld [vmem:[%s2762_s1 + $0x48] sm:$0xff] (!%p113_p2)   ;;  %vm2251_vm0 = vmmov (!%p113_p2), 0   ;;  %p134_p3 = scmp.lt.s32.totalorder (!%p113_p2), %s1609_s10, 1 }
   0x6   : > { %116 = sbr.rel (%p113_p2) target bundleno = 424 (0x1a8), region = 28  ;;  %1915 = vmatprep.subr.bf16.mxu0 (!%p113_p2), %v2250_v1  ;;  %1819 = vmatprep.subr.bf16.mxu1 (!%p113_p2), %v2250_v1  ;;  %v2204_v4 = vld [vmem:[%s2762_s1 + $0x18] sm:$0xff] (!%p113_p2)   ;;  %vm193_vm1 = vsmask.f32 (!%p113_p2), 7424  ;;  %vm739_vm2 = vsmask.f32 (!%p113_p2), 6400 }
   0x7   : > { %1916 = vmatpush3.bf16.msra.mxu0 (!%p113_p2), %v2278_v0  ;;  %1823 = vmatprep.mubr.msk.bf16.mxu1 (!%p113_p2), %vm2251_vm0, %v2250_v1  ;;  %vm250_vm3 = vcmask (!%p113_p2), 261120   ;;  %v2211_v29 = vld [vmem:[%s2762_s1] sm:$0xff] (!%p113_p2)   ;;  %v2209_v37 = vld [vmem:[%s2762_s1 + $0x50] sm:$0xff] (!%p113_p2)   ;;  %v2219_v44 = vld [vmem:[%s2762_s1 + $0x8] sm:$0xff] (!%p113_p2)   ;;  %vm443_vm4 = vcmask (!%p113_p2), 1046528   ;;  %vm912_vm5 = vcmask (!%p113_p2), 1045504  }
   0x8   : > { %1820 = vmatpush3.bf16.msra.mxu1 (!%p113_p2), %v2202_v2  ;;  %1917 = vmatprep.subr.bf16.mxu0 (!%p113_p2), %v2250_v1  ;;  %v2213_v47 = vld [vmem:[%s2762_s1 + $0x58] sm:$0xff] (!%p113_p2)   ;;  %vm1381_vm6 = vcmask (!%p113_p2), 1044480   ;;  %vm1208_vm7 = vsmask.f32 (!%p113_p2), 5376  ;;  %vm1543_vm8 = vcmask (!%p113_p2), 60416  }
   0x9   : > { %1821 = vmatprep.subr.bf16.mxu1 (!%p113_p2), %v2250_v1  ;;  %1919 = vmatprep.mubr.msk.bf16.mxu0 (!%p113_p2), %vm2251_vm0, %v2250_v1 }
   0xb   : > { %1918 = vmatpush3.bf16.msra.mxu0 (!%p113_p2), %v2289_v3 }
   0xc   : > { %1822 = vmatpush3.bf16.msra.mxu1 (!%p113_p2), %v2204_v4  ;;  %1939 = vmatprep.subr.bf16.mxu0 (!%p113_p2), %v2250_v1 }
   0xd   : > { %s2765_s10 = smov (!%p134_p3, %s1609_s10), 1  ;;  %1843 = vmatprep.subr.bf16.mxu1 %v2250_v1 }
   0xe   : > { %s2189_s19 = smul.u32 56, %s2765_s10 }
   0xf   : > { %s2190_s25 = smul.u32 40, %s2765_s10 }
  0x10   : > { %s2308_s22 = scalar_lea.vmem %s2761_s0, %s2189_s19 }
  0x11   : > { %v145_v5 = vld [vmem:[%s2308_s22] sm:$0xf]  ;;  %v2313_v6 = vld [vmem:[%s2308_s22 + $0x4] sm:$0xf]  ;;  %v2319_v8 = vld [vmem:[%s2308_s22 + $0x8] sm:$0xff]   ;;  %s2736_s28 = scalar_lea.vmem %s2763_s2, %s2190_s25 }
  0x12   : > { %v2316_v7 = vcombine.low %v145_v5, %v2313_v6  ;;  %v565_v9 = vld [vmem:[%s2308_s22 + $0x4] sm:$0xe]  ;;  %v2323_v10 = vld [vmem:[%s2308_s22 + $0x8] sm:$0xf]  ;;  %v202_v13 = vshll.u32 %v2319_v8, 16  ;;  %v2332_v15 = vld [vmem:[%s2308_s22 + $0xc] sm:$0xff]  }
  0x13   : > { %v2329_v14 = vcombine.low %v565_v9, %v2323_v10  ;;  %v2335_v16 = vld [vmem:[%s2308_s22 + $0x10] sm:$0xff]   ;;  %v749_v21 = vshrl.u32 %v2332_v15, 16  ;;  %v752_v22 = vshll.u32 %v2332_v15, 16  ;;  %v206_v23 = vshrl.u32 %v2319_v8, 16  ;;  %v2357_v39 = vld [vmem:[%s2308_s22 + $0x1c] sm:$0xff]  }
  0x14   : > { %v195_v11 = vshrl.u32 %v2316_v7, 16  ;;  %v197_v12 = vshll.u32 %v2316_v7, 16  ;;  %v204_v18 = vrot.slane %v202_v13, 1  ;;  %v2343_v24 = vld [vmem:[%s2308_s22 + $0x14] sm:$0xff]   ;;  %v210_v28 = vshll.u32 %v2335_v16, 16  ;;  %v2385_v56 = vld [vmem:[%s2308_s22 + $0x20] sm:$0xff]  }
  0x15   : > { %v741_v19 = vshrl.u32 %v2329_v14, 16  ;;  %v744_v20 = vshll.u32 %v2329_v14, 16  ;;  %v751_v30 = vrot.slane %v749_v21, 1  ;;  %v754_v31 = vrot.slane %v752_v22, 2  ;;  %v2362_v43 = vld [vmem:[%s2308_s22 + $0x18] sm:$0xff]   ;;  %v2403_v9 = vld [vmem:[%s2308_s22 + $0x20] sm:$0xff]  }
  0x16   : > { %v199_v17 = vrot.slane %v197_v12, 1  ;;  %v758_v32 = vshrl.u32 %v2343_v24, 16  ;;  %v761_v35 = vshll.u32 %v2343_v24, 16  ;;  %v208_v40 = vor.u32 %v206_v23, %v204_v18  ;;  %v903_v59 = vld [vmem:[%s2308_s22 + $0x4] sm:$0xc] }
  0x17   : > { %v743_v26 = vrot.slane %v741_v19, 1  ;;  %v746_v27 = vrot.slane %v744_v20, 2  ;;  %v755_v36 = vor.u32 %v754_v31, %v751_v30  ;;  %v212_v41 = vrot.slane %v210_v28, 1  ;;  %v434_v2 = vld [vmem:[%s2308_s22] sm:$0xe] }
  0x18   : > { %v200_v25 = vor.u32 %v199_v17, %v195_v11  ;;  %v760_v38 = vrot.slane %v758_v32, 1  ;;  %v763_v42 = vrot.slane %v761_v35, 2  ;;  %v767_v48 = vshrl.u32 %v2357_v39, 16  ;;  %v2408_v13 = vld [vmem:[%s2308_s22 + $0x28] ss:$0 sps:$4 sm:$0x11]  }
  0x19   : > { %v747_v34 = vor.u32 %v746_v27, %v743_v26  ;;  %v770_v49 = vshll.u32 %v2357_v39, 16  ;;  %v213_v50 = vsel %vm193_vm1, %v208_v40, %v212_v41  ;;  %v214_v51 = vshrl.u32 %v2335_v16, 16  ;;  %v2235_v26 = vld [vmem:[%s2308_s22 + $0x30] ss:$0 sps:$4 sm:$0x33]  }
  0x1a   : > { %v205_v33 = vsel %vm193_vm1, %v200_v25, %v204_v18  ;;  %v764_v46 = vor.u32 %v763_v42, %v760_v38  ;;  %v218_v52 = vshll.u32 %v2362_v43, 16  ;;  %v769_v54 = vrot.slane %v767_v48, 1  ;;  %v2218_v38 = vld [vmem:[%s2762_s1 + $0x60] sm:$0xff]  }
  0x1b   : > { %1824 = vmatmul.mubr.msk.bf16.vlgmr.msra.gmra.mrb[0].mxu1 %vm250_vm3, %v205_v33  ;;  %v756_v45 = vsel %vm739_vm2, %v747_v34, %v755_v36  ;;  %v772_v55 = vrot.slane %v770_v49, 2  ;;  %v216_v57 = vor.u32 %v214_v51, %v212_v41  ;;  %v226_v61 = vshll.u32 %v2385_v56, 16  ;;  %v2480_v51 = vld [vmem:[%s2308_s22 + $0xc] sm:$0xf] }
  0x1c   : > { %1827 = vmatprep.mubr.msk.bf16.mxu1 %vm2251_vm0, %v2250_v1  ;;  %1844 = vmatpush3.bf16.msra.mxu1 %v2211_v29  ;;  %v765_v53 = vsel %vm739_vm2, %v755_v36, %v764_v46  ;;  %v220_v58 = vrot.slane %v218_v52, 1  ;;  %v222_v63 = vshrl.u32 %v2362_v43, 16  ;;  %v445_v4 = vrot.slane %v2319_v8, 1  ;;  %v2483_v52 = vld [vmem:[%s2308_s22 + $0x10] sm:$0xff]  }
  0x1d   : > { %1845 = vmatprep.subr.bf16.mxu1 %v2250_v1  ;;  %1920 = vmatmul.mubr.msk.bf16.vlgmr.msra.gmra.mrb[0].mxu0 %vm250_vm3, %v756_v45  ;;  %v2394_v60 = vor.u32 %v772_v55, %v769_v54  ;;  %v1644_v5 = vcombine.low %v434_v2, %v2313_v6  ;;  %v447_v11 = vrot.slane %v2335_v16, 1  ;;  %v1685_v12 = vcombine.low %v903_v59, %v2323_v10  ;;  %v2417_v6 = vld [vmem:[%s2308_s22 + $0x28] sm:$0xff]  }
  0x1e   : > { %1940 = vmatpush3.bf16.msra.mxu0 %v2209_v37  ;;  %1923 = vmatprep.mubr.msk.bf16.mxu0 %vm2251_vm0, %v2250_v1  ;;  %v221_v62 = vsel %vm193_vm1, %v216_v57, %v220_v58  ;;  %v228_v18 = vrot.slane %v226_v61, 1  ;;  %v224_v21 = vor.u32 %v222_v63, %v220_v58  ;;  %v1083_v10 = vrot.slane %v2403_v9, 2  ;;  %v2492_v58 = vld [vmem:[%s2308_s22 + $0x18] sm:$0xff]  }
  0x1f   : > { %1941 = vmatprep.subr.bf16.mxu0 %v2250_v1  ;;  %v774_v17 = vsel %vm739_vm2, %v764_v46, %v2394_v60  ;;  %v444_v19 = vrot.slane %v1644_v5, 1  ;;  %v2414_v20 = vsel %vm443_vm4, %v445_v4, %v447_v11  ;;  %v449_v22 = vrot.slane %v2362_v43, 1  ;;  %v1372_v46 = vld [vmem:[%s2308_s22 + $0x8] sm:$0x8] }
  0x20   : > { %1846 = vmatpush3.bf16.msra.mxu1 %v2219_v44  ;;  %v1085_v25 = vrot.slane %v2417_v6, 2  ;;  %v913_v28 = vrot.slane %v1685_v12, 2  ;;  %v914_v29 = vrot.slane %v2332_v15, 2  ;;  %v1087_v31 = vrot.slane %v2235_v26, 2 }
  0x21   : > { %1867 = vmatprep.subr.bf16.mxu1 %v2250_v1  ;;  %v2424_v23 = vsel %vm443_vm4, %v444_v19, %v445_v4  ;;  %v2432_v27 = vsel %vm443_vm4, %v447_v11, %v449_v22  ;;  %v229_v32 = vsel %vm193_vm1, %v224_v21, %v228_v18  ;;  %v230_v33 = vshrl.u32 %v2385_v56, 16  ;;  %v2224_v5 = vld [vmem:[%s2308_s22 + $0x2c] ss:$0 sps:$4 sm:$0x33]  }
  0x22   : > { %1942 = vmatpush3.bf16.msra.mxu0 %v2213_v47  ;;  %v2440_v30 = vsel %vm912_vm5, %v1083_v10, %v1085_v25  ;;  %v234_v34 = vshll.u32 %v2408_v13, 16  ;;  %v2446_v35 = vsel %vm912_vm5, %v1085_v25, %v1087_v31  ;;  %v609_v36 = vrot.slane %v2329_v14, 1  ;;  %v2470_v47 = vld [vmem:[%s2308_s22 + $0x24] sm:$0xff]  }
  0x23   : > { %1828 = vmatmul.mubr.msk.bf16.gmra.mrb[4].mxu1 %vm250_vm3, %v213_v50  ;;  %1963 = vmatprep.subr.bf16.mxu0 %v2250_v1  ;;  %v915_v37 = vsel %vm912_vm5, %v913_v28, %v914_v29  ;;  %v610_v40 = vrot.slane %v2332_v15, 1  ;;  %v232_v41 = vor.u32 %v230_v33, %v228_v18  ;;  %v612_v44 = vrot.slane %v2343_v24, 1  ;;  %v2221_v15 = vld [vmem:[%s2762_s1 + $0x68] sm:$0xff]  }
  0x24   : > { %1831 = vmatprep.mubr.msk.bf16.mxu1 %vm2251_vm0, %v2250_v1  ;;  %v236_v42 = vrot.slane %v234_v34, 1  ;;  %v916_v45 = vrot.slane %v2343_v24, 2  ;;  %v614_v49 = vrot.slane %v2357_v39, 1  ;;  %v2241_v50 = vld [vmem:[%s2308_s22 + $0x2c] ss:$0 sps:$4 sm:$0x11]   ;;  %v1726_v55 = vcombine.low %v1372_v46, %v2480_v51 }
  0x25   : > { %1924 = vmatmul.mubr.msk.bf16.gmra.mrb[4].mxu0 %vm250_vm3, %v765_v53  ;;  %v2458_v14 = vsel %vm443_vm4, %v609_v36, %v610_v40  ;;  %v2473_v48 = vsel %vm443_vm4, %v610_v40, %v612_v44  ;;  %v616_v54 = vrot.slane %v2470_v47, 1  ;;  %v618_v63 = vrot.slane %v2241_v50, 1 }
  0x26   : > { %1927 = vmatprep.mubr.msk.bf16.mxu0 %vm2251_vm0, %v2250_v1  ;;  %v237_v24 = vsel %vm193_vm1, %v232_v41, %v236_v42  ;;  %v2486_v53 = vsel %vm443_vm4, %v612_v44, %v614_v49  ;;  %v917_v57 = vsel %vm912_vm5, %v914_v29, %v916_v45  ;;  %v1382_v61 = vrot.slane %v1726_v55, 3  ;;  %v2228_v41 = vld [vmem:[%s2762_s1 + $0x28] sm:$0xff]  }
  0x27   : > { %v2496_v59 = vsel %vm443_vm4, %v614_v49, %v616_v54  ;;  %v1385_v2 = vrot.slane %v2492_v58, 3  ;;  %v776_v4 = vshrl.u32 %v2470_v47, 16  ;;  %v2509_v12 = vsel %vm443_vm4, %v616_v54, %v618_v63  ;;  %v1034_v49 = vld [vmem:[%s2308_s22 + $0x8] sm:$0xc] }
  0x28   : > { %v1387_v18 = vrot.slane %v2403_v9, 3  ;;  %v918_v19 = vrot.slane %v2357_v39, 2  ;;  %v785_v29 = vshrl.u32 %v2224_v5, 16  ;;  %v788_v31 = vshll.u32 %v2224_v5, 16 }
  0x29   : > { %v778_v25 = vrot.slane %v776_v4, 1  ;;  %v1389_v40 = vrot.slane %v2417_v6, 3  ;;  %v920_v44 = vrot.slane %v2470_v47, 2  ;;  %v1079_v54 = vrot.slane %v2483_v52, 2 }
  0x2a   : > { %v2521_v28 = vsel %vm1381_vm6, %v1385_v2, %v1387_v18  ;;  %v787_v39 = vrot.slane %v785_v29, 1  ;;  %v790_v34 = vrot.slane %v788_v31, 2  ;;  %v919_v36 = vsel %vm912_vm5, %v916_v45, %v918_v19 }
  0x2b   : > { %1832 = vmatmul.mubr.msk.bf16.gmra.mrb[8].mxu1 %vm250_vm3, %v221_v62  ;;  %v1383_v62 = vrot.slane %v2483_v52, 3  ;;  %v1081_v55 = vrot.slane %v2492_v58, 2  ;;  %v1218_v4 = vshrl.u32 %v2483_v52, 16 }
  0x2c   : > { %1835 = vmatprep.mubr.msk.bf16.mxu1 %vm2251_vm0, %v2250_v1 }
  0x2d   : > { %1928 = vmatmul.mubr.msk.bf16.gmra.mrb[8].mxu0 %vm250_vm3, %v774_v17  ;;  %v2506_v11 = vsel %vm1381_vm6, %v1382_v61, %v1383_v62  ;;  %v779_v17 = vshll.u32 %v2470_v47, 16  ;;  %v2516_v21 = vsel %vm1381_vm6, %v1383_v62, %v1385_v2  ;;  %v922_v47 = vrot.slane %v2224_v5, 2  ;;  %v2233_v62 = vld [vmem:[%s2762_s1 + $0x30] sm:$0xff]   ;;  %v2237_v2 = vld [vmem:[%s2762_s1 + $0x38] sm:$0xff]  }
  0x2e   : > { %1943 = vmatprep.mubr.msk.bf16.mxu0 %vm2251_vm0, %v2250_v1  ;;  %v1082_v61 = vsel %vm912_vm5, %v1079_v54, %v1081_v55  ;;  %v1084_v63 = vsel %vm912_vm5, %v1081_v55, %v1083_v10  ;;  %v1221_v5 = vshll.u32 %v2483_v52, 16 }
  0x2f   : > { %v781_v26 = vrot.slane %v779_v17, 2  ;;  %v923_v50 = vsel %vm912_vm5, %v920_v44, %v922_v47 }
  0x31   : > { %v782_v33 = vor.u32 %v781_v26, %v778_v25  ;;  %v1227_v26 = vshrl.u32 %v2492_v58, 16 }
  0x33   : > { %1836 = vmatmul.mubr.msk.bf16.gmra.mrb[12].mxu1 %vm250_vm3, %v229_v32  ;;  %v2222_v32 = vld [vmem:[%s2762_s1 + $0x20] sm:$0xff]   ;;  %v1229_v31 = vrot.slane %v1227_v26, 2 }
  0x34   : > { %1839 = vmatprep.mubr.msk.bf16.mxu1 %vm2251_vm0, %v2250_v1 }
  0x35   : > { %1944 = vmatmul.mubr.msk.bf16.vlgmr.msra.gmra.mrb[0].mxu0 %vm250_vm3, %v915_v37  ;;  %v2531_v37 = vsel %vm739_vm2, %v2394_v60, %v782_v33  ;;  %v2547_v60 = vsel %vm1381_vm6, %v1387_v18, %v1389_v40  ;;  %v1220_v18 = vrot.slane %v1218_v4, 2 }
  0x36   : > { %1964 = vmatpush3.bf16.msra.mxu0 %v2218_v38  ;;  %1947 = vmatprep.mubr.msk.bf16.mxu0 %vm2251_vm0, %v2250_v1  ;;  %v791_v38 = vor.u32 %v790_v34, %v787_v39  ;;  %v2238_v39 = vld [vmem:[%s2762_s1 + $0x88] sm:$0xff]  }
  0x37   : > { %1965 = vmatprep.subr.bf16.mxu0 %v2250_v1 }
  0x38   : > { %v2544_v42 = vsel %vm739_vm2, %v782_v33, %v791_v38  ;;  %v1239_v33 = vshll.u32 %v2403_v9, 16 }
  0x3a   : > { %1966 = vmatpush3.bf16.msra.mxu0 %v2221_v15  ;;  %v921_v15 = vsel %vm912_vm5, %v918_v19, %v920_v44  ;;  %v1223_v19 = vrot.slane %v1221_v5, 3  ;;  %v1241_v38 = vrot.slane %v1239_v33, 3 }
  0x3b   : > { %1840 = vmatmul.mubr.msk.bf16.gmra.mrb[16].mxu1 %vm250_vm3, %v237_v24  ;;  %1987 = vmatprep.subr.bf16.mxu0 %v2250_v1  ;;  %v1697_v24 = vcombine.low %v1034_v49, %v2480_v51  ;;  %v2227_v51 = vld [vmem:[%s2762_s1 + $0x70] sm:$0xff]  }
  0x3c   : > { %1847 = vmatprep.mubr.msk.bf16.mxu1 %vm2251_vm0, %v2250_v1  ;;  %v1224_v52 = vor.u32 %v1223_v19, %v1220_v18 }
  0x3d   : > { %1948 = vmatmul.mubr.msk.bf16.gmra.mrb[4].mxu0 %vm250_vm3, %v917_v57  ;;  %v2232_v57 = vld [vmem:[%s2762_s1 + $0x78] sm:$0xff]   ;;  %v1210_v10 = vshrl.u32 %v1697_v24, 16 }
  0x3e   : > { %1951 = vmatprep.mubr.msk.bf16.mxu0 %vm2251_vm0, %v2250_v1 }
  0x3f   : > { %v1212_v17 = vrot.slane %v1210_v10, 2 }
  0x43   : > { %1848 = vmatmul.mubr.msk.bf16.vlgmr.msra.gmra.mrb[0].mxu1 %vm250_vm3, %v2316_v7  ;;  %v2541_v7 = vld [vmem:[%s2308_s22 + $0x30] ss:$0 sps:$4 sm:$0x77]  }
  0x44   : > { %1851 = vmatprep.mubr.msk.bf16.mxu1 %vm2251_vm0, %v2250_v1  ;;  %1868 = vmatpush3.bf16.msra.mxu1 %v2222_v32  ;;  %v1391_v45 = vrot.slane %v2541_v7, 3  ;;  %v1254_v47 = vshrl.u32 %v2541_v7, 16 }
  0x45   : > { %1869 = vmatprep.subr.bf16.mxu1 %v2250_v1  ;;  %1952 = vmatmul.mubr.msk.bf16.gmra.mrb[8].mxu0 %vm250_vm3, %v919_v36 }
  0x46   : > { %1955 = vmatprep.mubr.msk.bf16.mxu0 %vm2251_vm0, %v2250_v1  ;;  %v2556_v46 = vsel %vm1381_vm6, %v1389_v40, %v1391_v45  ;;  %v1245_v40 = vshrl.u32 %v2417_v6, 16 }
  0x48   : > { %1870 = vmatpush3.bf16.msra.mxu1 %v2228_v41  ;;  %v1248_v41 = vshll.u32 %v2417_v6, 16  ;;  %v1247_v45 = vrot.slane %v1245_v40, 2 }
  0x49   : > { %1891 = vmatprep.subr.bf16.mxu1 %v2250_v1 }
  0x4b   : > { %1852 = vmatmul.mubr.msk.bf16.gmra.mrb[4].mxu1 %vm250_vm3, %v2319_v8  ;;  %v1078_v8 = vrot.slane %v1697_v24, 2 }
  0x4c   : > { %1855 = vmatprep.mubr.msk.bf16.mxu1 %vm2251_vm0, %v2250_v1 }
  0x4d   : > { %1956 = vmatmul.mubr.msk.bf16.gmra.mrb[12].mxu0 %vm250_vm3, %v921_v15  ;;  %v1250_v15 = vrot.slane %v1248_v41, 3 }
  0x4e   : > { %1959 = vmatprep.mubr.msk.bf16.mxu0 %vm2251_vm0, %v2250_v1 }
  0x4f   : > { %v1251_v6 = vor.u32 %v1250_v15, %v1247_v45 }
  0x53   : > { %1856 = vmatmul.mubr.msk.bf16.gmra.mrb[8].mxu1 %vm250_vm3, %v2335_v16  ;;  %v1080_v16 = vsel %vm912_vm5, %v1078_v8, %v1079_v54 }
  0x54   : > { %1859 = vmatprep.mubr.msk.bf16.mxu1 %vm2251_vm0, %v2250_v1 }
  0x55   : > { %1960 = vmatmul.mubr.msk.bf16.gmra.mrb[16].mxu0 %vm250_vm3, %v923_v50 }
  0x56   : > { %1967 = vmatprep.mubr.msk.bf16.mxu0 %vm2251_vm0, %v2250_v1 }
  0x5b   : > { %1860 = vmatmul.mubr.msk.bf16.gmra.mrb[12].mxu1 %vm250_vm3, %v2362_v43 }
  0x5c   : > { %1863 = vmatprep.mubr.msk.bf16.mxu1 %vm2251_vm0, %v2250_v1 }
  0x5d   : > { %1968 = vmatmul.mubr.msk.bf16.vlgmr.msra.gmra.mrb[0].mxu0 %vm250_vm3, %v1080_v16 }
  0x5e   : > { %1988 = vmatpush3.bf16.msra.mxu0 %v2227_v51  ;;  %1971 = vmatprep.mubr.msk.bf16.mxu0 %vm2251_vm0, %v2250_v1 }
  0x5f   : > { %1989 = vmatprep.subr.bf16.mxu0 %v2250_v1 }
  0x62   : > { %1990 = vmatpush3.bf16.msra.mxu0 %v2232_v57 }
  0x63   : > { %1864 = vmatmul.mubr.msk.bf16.gmra.mrb[16].mxu1 %vm250_vm3, %v2385_v56  ;;  %2011 = vmatprep.subr.bf16.mxu0 %v2250_v1 }
  0x64   : > { %1871 = vmatprep.mubr.msk.bf16.mxu1 %vm2251_vm0, %v2250_v1 }
  0x65   : > { %1972 = vmatmul.mubr.msk.bf16.gmra.mrb[4].mxu0 %vm250_vm3, %v1082_v61 }
  0x66   : > { %1975 = vmatprep.mubr.msk.bf16.mxu0 %vm2251_vm0, %v2250_v1 }
  0x6b   : > { %1872 = vmatmul.mubr.msk.bf16.vlgmr.msra.gmra.mrb[0].mxu1 %vm250_vm3, %v2424_v23  ;;  %v1213_v23 = vshll.u32 %v1697_v24, 16 }
  0x6c   : > { %1875 = vmatprep.mubr.msk.bf16.mxu1 %vm2251_vm0, %v2250_v1  ;;  %1892 = vmatpush3.bf16.msra.mxu1 %v2233_v62 }
  0x6d   : > { %1893 = vmatprep.subr.bf16.mxu1 %v2250_v1  ;;  %1976 = vmatmul.mubr.msk.bf16.gmra.mrb[8].mxu0 %vm250_vm3, %v1084_v63 }
  0x6e   : > { %1979 = vmatprep.mubr.msk.bf16.mxu0 %vm2251_vm0, %v2250_v1 }
  0x70   : > { %1894 = vmatpush3.bf16.msra.mxu1 %v2237_v2 }
  0x71   : > { %2035 = vmatprep.subr.bf16.mxu1 %v2250_v1 }
  0x73   : > { %1876 = vmatmul.mubr.msk.bf16.gmra.mrb[4].mxu1 %vm250_vm3, %v2414_v20  ;;  %v1215_v20 = vrot.slane %v1213_v23, 3 }
  0x74   : > { %1879 = vmatprep.mubr.msk.bf16.mxu1 %vm2251_vm0, %v2250_v1 }
  0x75   : > { %1980 = vmatmul.mubr.msk.bf16.gmra.mrb[12].mxu0 %vm250_vm3, %v2440_v30  ;;  %v451_v30 = vrot.slane %v2385_v56, 1  ;;  %v1216_v25 = vor.u32 %v1215_v20, %v1212_v17 }
  0x76   : > { %1983 = vmatprep.mubr.msk.bf16.mxu0 %vm2251_vm0, %v2250_v1 }
  0x77   : > { %v452_v29 = vsel %vm443_vm4, %v449_v22, %v451_v30  ;;  %v1225_v56 = vsel %vm1208_vm7, %v1216_v25, %v1224_v52  ;;  %v1236_v22 = vshrl.u32 %v2403_v9, 16 }
  0x79   : > { %v1238_v36 = vrot.slane %v1236_v22, 2 }
  0x7b   : > { %1880 = vmatmul.mubr.msk.bf16.gmra.mrb[8].mxu1 %vm250_vm3, %v2432_v27  ;;  %v1230_v27 = vshll.u32 %v2492_v58, 16  ;;  %v453_v58 = vrot.slane %v2408_v13, 1  ;;  %v1242_v9 = vor.u32 %v1241_v38, %v1238_v36 }
  0x7c   : > { %1883 = vmatprep.mubr.msk.bf16.mxu1 %vm2251_vm0, %v2250_v1 }
  0x7d   : > { %1984 = vmatmul.mubr.msk.bf16.gmra.mrb[16].mxu0 %vm250_vm3, %v2446_v35  ;;  %v2236_v35 = vld [vmem:[%s2762_s1 + $0x80] sm:$0xff]   ;;  %v1232_v32 = vrot.slane %v1230_v27, 3  ;;  %v454_v34 = vsel %vm443_vm4, %v451_v30, %v453_v58  ;;  %v1252_v49 = vsel %vm1208_vm7, %v1242_v9, %v1251_v6 }
  0x7e   : > { %1991 = vmatprep.mubr.msk.bf16.mxu0 %vm2251_vm0, %v2250_v1 }
  0x7f   : > { %v1233_v43 = vor.u32 %v1232_v32, %v1229_v31 }
  0x81   : > { %v1234_v13 = vsel %vm1208_vm7, %v1224_v52, %v1233_v43  ;;  %v1243_v44 = vsel %vm1208_vm7, %v1233_v43, %v1242_v9 }
  0x83   : > { %1884 = vmatmul.mubr.msk.bf16.gmra.mrb[12].mxu1 %vm250_vm3, %v452_v29 }
  0x84   : > { %1887 = vmatprep.mubr.msk.bf16.mxu1 %vm2251_vm0, %v2250_v1 }
  0x85   : > { %1992 = vmatmul.mubr.msk.bf16.vlgmr.msra.gmra.mrb[0].mxu0 %vm250_vm3, %v1225_v56 }
  0x86   : > { %2012 = vmatpush3.bf16.msra.mxu0 %v2236_v35  ;;  %1995 = vmatprep.mubr.msk.bf16.mxu0 %vm2251_vm0, %v2250_v1 }
  0x87   : > { %2013 = vmatprep.subr.bf16.mxu0 %v2250_v1 }
  0x8a   : > { %2014 = vmatpush3.bf16.msra.mxu0 %v2238_v39 }
  0x8b   : > { %1888 = vmatmul.mubr.msk.bf16.gmra.mrb[16].mxu1 %vm250_vm3, %v454_v34 }
  0x8c   : > { %1895 = vmatprep.mubr.msk.bf16.mxu1 %vm2251_vm0, %v2250_v1 }
  0x8d   : > { %1996 = vmatmul.mubr.msk.bf16.gmra.mrb[4].mxu0 %vm250_vm3, %v1234_v13 }
  0x8e   : > { %1999 = vmatprep.mubr.msk.bf16.mxu0 %vm2251_vm0, %v2250_v1 }
  0x93   : > { %1896 = vmatmul.mubr.msk.bf16.vlgmr.msra.gmra.mrb[0].mxu1 %vm250_vm3, %v2458_v14  ;;  %v1257_v14 = vshll.u32 %v2541_v7, 16 }
  0x94   : > { %1899 = vmatprep.mubr.msk.bf16.mxu1 %vm2251_vm0, %v2250_v1  ;;  %2037 = vmatpush3.bf16.msra.mxu1 %v2278_v0  ;;  %v1256_v0 = vrot.slane %v1254_v47, 2 }
  0x95   : > { %2036 = vmatprep.subr.bf16.mxu1 %v2250_v1  ;;  %2000 = vmatmul.mubr.msk.bf16.gmra.mrb[8].mxu0 %vm250_vm3, %v1243_v44  ;;  %v1259_v50 = vrot.slane %v1257_v14, 3 }
  0x96   : > { %2003 = vmatprep.mubr.msk.bf16.mxu0 %vm2251_vm0, %v2250_v1 }
  0x97   : > { %v1260_v24 = vor.u32 %v1259_v50, %v1256_v0 }
  0x98   : > { %2038 = vmatpush3.bf16.msra.mxu1 %v2289_v3 }
  0x99   : > { %v1261_v3 = vsel %vm1208_vm7, %v1251_v6, %v1260_v24 }
  0x9b   : > { %1900 = vmatmul.mubr.msk.bf16.gmra.mrb[4].mxu1 %vm250_vm3, %v2473_v48 }
  0x9c   : > { %1903 = vmatprep.mubr.msk.bf16.mxu1 %vm2251_vm0, %v2250_v1 }
  0x9d   : > { %2004 = vmatmul.mubr.msk.bf16.gmra.mrb[12].mxu0 %vm250_vm3, %v1252_v49 }
  0x9e   : > { %2007 = vmatprep.mubr.msk.bf16.mxu0 %vm2251_vm0, %v2250_v1 }
  0xa3   : > { %1904 = vmatmul.mubr.msk.bf16.gmra.mrb[8].mxu1 %vm250_vm3, %v2486_v53 }
  0xa4   : > { %1907 = vmatprep.mubr.msk.bf16.mxu1 %vm2251_vm0, %v2250_v1 }
  0xa5   : > { %2008 = vmatmul.mubr.msk.bf16.gmra.mrb[16].mxu0 %vm250_vm3, %v1261_v3 }
  0xa6   : > { %2015 = vmatprep.mubr.msk.bf16.mxu0 %vm2251_vm0, %v2250_v1 }
  0xab   : > { %1908 = vmatmul.mubr.msk.bf16.gmra.mrb[12].mxu1 %vm250_vm3, %v2496_v59 }
  0xac   : > { %1911 = vmatprep.mubr.msk.bf16.mxu1 %vm2251_vm0, %v2250_v1 }
  0xad   : > { %2016 = vmatmul.mubr.msk.bf16.vlgmr.msra.gmra.mrb[0].mxu0 %vm250_vm3, %v2506_v11 }
  0xae   : > { %2019 = vmatprep.mubr.msk.bf16.mxu0 %vm2251_vm0, %v2250_v1 }
  0xb3   : > { %1912 = vmatmul.mubr.msk.bf16.gmra.mrb[16].mxu1 %vm250_vm3, %v2509_v12 }
  0xb4   : > { %1931 = vmatprep.mubr.msk.bf16.mxu1 %vm2251_vm0, %v2250_v1 }
  0xb5   : > { %2020 = vmatmul.mubr.msk.bf16.gmra.mrb[4].mxu0 %vm250_vm3, %v2516_v21 }
  0xb6   : > { %2023 = vmatprep.mubr.msk.bf16.mxu0 %vm2251_vm0, %v2250_v1 }
  0xbb   : > { %1932 = vmatmul.mubr.msk.bf16.vlgmr.msra.gmra.mrb[12].mxu1 %vm250_vm3, %v2531_v37 }
  0xbc   : > { %1935 = vmatprep.mubr.msk.bf16.mxu1 %vm2251_vm0, %v2250_v1 }
  0xbd   : > { %2024 = vmatmul.mubr.msk.bf16.gmra.mrb[8].mxu0 %vm250_vm3, %v2521_v28 }
  0xbe   : > { %2027 = vmatprep.mubr.msk.bf16.mxu0 %vm2251_vm0, %v2250_v1 }
  0xc3   : > { %1936 = vmatmul.mubr.msk.bf16.gmra.mrb[16].mxu1 %vm250_vm3, %v2544_v42 }
  0xc5   : > { %2028 = vmatmul.mubr.msk.bf16.gmra.mrb[12].mxu0 %vm250_vm3, %v2547_v60 }
  0xc6   : > { %2031 = vmatprep.mubr.msk.bf16.mxu0 %vm2251_vm0, %v2250_v1 }
  0xcd   : > { %2032 = vmatmul.mubr.msk.bf16.gmra.mrb[16].mxu0 %vm250_vm3, %v2556_v46 }
 0x166   : > { %v681_v48 = vpop.f32.mrb[0].mxu1 }
 0x167   : > { %v1897_v53 = vpop.f32.mrb[1].mxu1 }
 0x168   : > { %v684_v59 = vpop.f32.mrb[2].mxu1 }
 0x169   : > { %v1898_v11 = vpop.f32.mrb[3].mxu1 }
 0x16e   : > { %v689_v12 = vpop.f32.mrb[4].mxu1 }
 0x16f   : > { %v1901_v21 = vpop.f32.mrb[5].mxu1 }
 0x170   : > { %v692_v28 = vpop.f32.mrb[6].mxu1 }
 0x171   : > { %v1902_v37 = vpop.f32.mrb[7].mxu1 }
 0x176   : > { %v697_v7 = vpop.f32.mrb[8].mxu1 }
 0x177   : > { %v1905_v42 = vpop.f32.mrb[9].mxu1 }
 0x178   : > { %v700_v8 = vpop.f32.mrb[10].mxu1 }
 0x179   : > { %v1906_v54 = vpop.f32.mrb[11].mxu1 }
 0x180   : > { %v1454_v60 = vpop.f32.mrb[0].mxu0 }
 0x181   : > { %v2039_v16 = vadd.f32 %v1454_v60, %v681_v48  ;;  %v2017_v51 = vpop.f32.mrb[1].mxu0 }
 0x182   : > { %v1457_v1 = vpop.f32.mrb[2].mxu0 }
 0x183   : > { %v1746_v46 = vpack.c.bf16 %v2039_v16, %v2039_v16  ;;  %v2040_v55 = vadd.f32 %v1457_v1, %v684_v59  ;;  %v2018_v57 = vpop.f32.mrb[3].mxu0 }
 0x185   : > { %1544 = vst.msk [vmem:[%s2736_s28] sm:$0xf] %vm1543_vm8, %v1746_v46  ;;  %v1747_v61 = vpack.c.bf16 %v2040_v55, %v2040_v55 }
 0x187   : > { %1545 = vst.msk [vmem:[%s2736_s28 + $0x4] sm:$0xf] %vm1543_vm8, %v1747_v61 }
 0x188   : > { %v1462_v62 = vpop.f32.mrb[4].mxu0 }
 0x189   : > { %v2041_v63 = vadd.f32 %v1462_v62, %v689_v12  ;;  %v2021_v2 = vpop.f32.mrb[5].mxu0 }
 0x18a   : > { %v1465_v10 = vpop.f32.mrb[6].mxu0 }
 0x18b   : > { %v1748_v23 = vpack.c.bf16 %v2041_v63, %v2041_v63  ;;  %v2042_v4 = vadd.f32 %v1465_v10, %v692_v28  ;;  %v2022_v5 = vpop.f32.mrb[7].mxu0 }
 0x18d   : > { %1546 = vst.msk [vmem:[%s2736_s28 + $0x8] sm:$0xf] %vm1543_vm8, %v1748_v23  ;;  %v1749_v17 = vpack.c.bf16 %v2042_v4, %v2042_v4 }
 0x18e   : > { %v878_v20 = vpop.f32.mrb[12].mxu1 }
 0x18f   : > { %v1933_v18 = vpop.f32.mrb[13].mxu1  ;;  %1547 = vst.msk [vmem:[%s2736_s28 + $0xc] sm:$0xf] %vm1543_vm8, %v1749_v17 }
 0x190   : > { %v881_v19 = vpop.f32.mrb[14].mxu1  ;;  %v1470_v30 = vpop.f32.mrb[8].mxu0 }
 0x191   : > { %v1934_v25 = vpop.f32.mrb[15].mxu1  ;;  %v2043_v52 = vadd.f32 %v1470_v30, %v697_v7  ;;  %v2025_v26 = vpop.f32.mrb[9].mxu0 }
 0x192   : > { %v1473_v27 = vpop.f32.mrb[10].mxu0 }
 0x193   : > { %v1750_v29 = vpack.c.bf16 %v2043_v52, %v2043_v52  ;;  %v2044_v56 = vadd.f32 %v1473_v27, %v700_v8  ;;  %v2026_v35 = vpop.f32.mrb[11].mxu0 }
 0x195   : > { %1548 = vst.msk [vmem:[%s2736_s28 + $0x10] sm:$0xf] %vm1543_vm8, %v1750_v29  ;;  %v1751_v31 = vpack.c.bf16 %v2044_v56, %v2044_v56 }
 0x196   : > { %v886_v32 = vpop.f32.mrb[16].mxu1 }
 0x197   : > { %v1937_v58 = vpop.f32.mrb[17].mxu1  ;;  %1549 = vst.msk [vmem:[%s2736_s28 + $0x14] sm:$0xf] %vm1543_vm8, %v1751_v31 }
 0x198   : > { %v889_v43 = vpop.f32.mrb[18].mxu1  ;;  %v1478_v22 = vpop.f32.mrb[12].mxu0 }
 0x199   : > { %v1938_v33 = vpop.f32.mrb[19].mxu1  ;;  %v2045_v39 = vadd.f32 %v1478_v22, %v878_v20  ;;  %v2029_v34 = vpop.f32.mrb[13].mxu0 }
 0x19a   : > { %v1481_v13 = vpop.f32.mrb[14].mxu0 }
 0x19b   : > { %v1752_v36 = vpack.c.bf16 %v2045_v39, %v2045_v39  ;;  %v2046_v38 = vadd.f32 %v1481_v13, %v881_v19  ;;  %v2030_v9 = vpop.f32.mrb[15].mxu0 }
 0x19d   : > { %1550 = vst.msk [vmem:[%s2736_s28 + $0x18] sm:$0xf] %vm1543_vm8, %v1752_v36  ;;  %v1753_v40 = vpack.c.bf16 %v2046_v38, %v2046_v38 }
 0x19f   : > { %1551 = vst.msk [vmem:[%s2736_s28 + $0x1c] sm:$0xf] %vm1543_vm8, %v1753_v40 }
 0x1a0   : > { %v1486_v41 = vpop.f32.mrb[16].mxu0 }
 0x1a1   : > { %v2047_v44 = vadd.f32 %v1486_v41, %v886_v32  ;;  %v2033_v45 = vpop.f32.mrb[17].mxu0 }
 0x1a2   : > { %v1489_v15 = vpop.f32.mrb[18].mxu0 }
 0x1a3   : > { %v1754_v6 = vpack.c.bf16 %v2047_v44, %v2047_v44  ;;  %v2048_v47 = vadd.f32 %v1489_v15, %v889_v43  ;;  %v2034_v14 = vpop.f32.mrb[19].mxu0 }
 0x1a5   : > { %1552 = vst.msk [vmem:[%s2736_s28 + $0x20] sm:$0xf] %vm1543_vm8, %v1754_v6  ;;  %v1755_v49 = vpack.c.bf16 %v2048_v47, %v2048_v47 }
 0x1a7   : > { %1553 = vst.msk [vmem:[%s2736_s28 + $0x24] sm:$0xf] %vm1543_vm8, %v1755_v49 }
 0x1a8 PF: > { %s12_s9 = sadd.s32 1, %s2248_s9  }
 0x1a9   : > { %p9_p4 = scmp.ge.s32.totalorder %s12_s9, 4  }
 0x1ab   :  { %11 = sbr.rel (!%p9_p4) target bundleno = 1 (0x1), region = 66 }

// kernel: densenet_forward.23
= control target key start
LH: loop header
LB: loop body
LE: loop exit
PB: predicated region body
PF: predicated region fallthrough
CT: control target
= control target key end

     0   :  { %vm268_vm0 = vcmask 1043456   ;;  %vm243_vm1 = vcmask 64512   ;;  %vm375_vm2 = vcmask 130048   ;;  %vm623_vm3 = vcmask 257024   ;;  %s1164_s7 = inlined_call_operand.vmem [shape: bf16[8,32], index: 7, kind: input, shape index: {}]   ;;  %s1165_s6 = inlined_call_operand.vmem [shape: bf16[16,32], index: 6, kind: input, shape index: {}]   ;;  %s1166_s1 = inlined_call_operand.vmem [shape: bf16[128,8], index: 1, kind: input, shape index: {}]   ;;  %s1167_s3 = inlined_call_operand.vmem [shape: f32[1,8], index: 3, kind: input, shape index: {}]   ;;  %s1168_s0 = inlined_call_operand.vmem [shape: bf16[128,16], index: 0, kind: input, shape index: {}]   ;;  %s1169_s2 = inlined_call_operand.vmem [shape: f32[1,16], index: 2, kind: input, shape index: {}]   ;;  %s1170_s5 = inlined_call_operand.vmem [shape: f32[1,8], index: 5, kind: input, shape index: {}]   ;;  %s1171_s4 = inlined_call_operand.vmem [shape: f32[1,16], index: 4, kind: input, shape index: {}]   ;;  %s1172_s8 = inlined_call_operand.vmem [shape: f32[1,32], index: 8, kind: input, shape index: {}]   ;;  %s1173_s9 = inlined_call_operand.vmem [shape: f32[1,32], index: 9, kind: input, shape index: {}]   ;;  %s1174_s10 = inlined_call_operand.vmem [shape: bf16[128,32], index: 10, kind: output, shape index: {}]  }
   0x1   :  { %v242_v0 = vld [vmem:[%s1164_s7] sm:$0xf]  ;;  %v770_v12 = vld [vmem:[%s1166_s1 + $0x8] sm:$0xff]   ;;  %v771_v31 = vld [vmem:[%s1166_s1 + $0x10] sm:$0xff]  }
   0x2   :  { %847 = vmatprep.subr.msk.bf16.mxu1 %vm268_vm0, %v242_v0  ;;  %v848_v1 = vld [vmem:[%s1165_s6] sm:$0xff]   ;;  %v270_v2 = vsel %vm268_vm0, %v242_v0, 0  ;;  %v763_v13 = vld [vmem:[%s1168_s0 + $0x8] sm:$0xff]   ;;  %v737_v17 = vunpack.c.l.bf16 %v770_v12  ;;  %v738_v18 = vunpack.c.h.bf16 %v770_v12  ;;  %v764_v40 = vld [vmem:[%s1168_s0 + $0x10] sm:$0xff]   ;;  %v741_v44 = vunpack.c.l.bf16 %v771_v31 }
   0x3   :  { %v732_v3 = vld [vmem:[%s1166_s1] sm:$0xff]   ;;  %796 = vmatpush3.bf16.msra.mxu1 %v270_v2  ;;  %813 = vmatprep.subr.bf16.mxu0 %v848_v1  ;;  %v705_v21 = vunpack.c.l.bf16 %v763_v13  ;;  %v706_v22 = vunpack.c.h.bf16 %v763_v13  ;;  %v772_v45 = vld [vmem:[%s1166_s1 + $0x18] sm:$0xff]   ;;  %v742_v49 = vunpack.c.h.bf16 %v771_v31  ;;  %v709_v53 = vunpack.c.l.bf16 %v764_v40 }
   0x4   :  { %v916_v4 = vld [vmem:[%s1167_s3] ss:$0 sm:$0xff]  ;;  %v733_v5 = vunpack.c.l.bf16 %v732_v3  ;;  %v734_v6 = vunpack.c.h.bf16 %v732_v3  ;;  %814 = vmatpush3.bf16.msra.mxu0 %v848_v1  ;;  %v765_v50 = vld [vmem:[%s1168_s0 + $0x18] sm:$0xff]   ;;  %v710_v54 = vunpack.c.h.bf16 %v764_v40  ;;  %v745_v57 = vunpack.c.l.bf16 %v772_v45 }
   0x5   :  { %v700_v7 = vld [vmem:[%s1168_s0] sm:$0xff]   ;;  %v181_v25 = vmul.f32 %v737_v17, %v916_v4  ;;  %v182_v26 = vmul.f32 %v738_v18, %v916_v4  ;;  %v183_v52 = vmul.f32 %v741_v44, %v916_v4  ;;  %v184_v56 = vmul.f32 %v742_v49, %v916_v4 }
   0x6   :  { %v924_v8 = vld [vmem:[%s1169_s2] ss:$0 sm:$0xff]  ;;  %v701_v10 = vunpack.c.l.bf16 %v700_v7  ;;  %v702_v11 = vunpack.c.h.bf16 %v700_v7  ;;  %v179_v14 = vmul.f32 %v733_v5, %v916_v4  ;;  %v180_v15 = vmul.f32 %v734_v6, %v916_v4 }
   0x7   :  { %v929_v9 = vld [vmem:[%s1170_s5] ss:$0 sm:$0xff]  ;;  %v77_v29 = vmul.f32 %v705_v21, %v924_v8  ;;  %v78_v30 = vmul.f32 %v706_v22, %v924_v8  ;;  %v746_v58 = vunpack.c.h.bf16 %v772_v45  ;;  %v79_v60 = vmul.f32 %v709_v53, %v924_v8 }
   0x8   :  { %v942_v16 = vld [vmem:[%s1171_s4] ss:$0 sm:$0xff]  ;;  %v75_v19 = vmul.f32 %v701_v10, %v924_v8  ;;  %v76_v20 = vmul.f32 %v702_v11, %v924_v8  ;;  %v202_v23 = vadd.f32 %v929_v9, %v179_v14  ;;  %v203_v24 = vadd.f32 %v929_v9, %v180_v15 }
   0x9   :  { %v204_v34 = vadd.f32 %v929_v9, %v181_v25  ;;  %v205_v35 = vadd.f32 %v929_v9, %v182_v26  ;;  %v100_v38 = vadd.f32 %v942_v16, %v77_v29  ;;  %v101_v39 = vadd.f32 %v942_v16, %v78_v30  ;;  %v773_v3 = vld [vmem:[%s1166_s1 + $0x20] sm:$0xff]   ;;  %v774_v25 = vld [vmem:[%s1166_s1 + $0x28] sm:$0xff]  }
   0xa   :  { %v98_v27 = vadd.f32 %v942_v16, %v75_v19  ;;  %v99_v28 = vadd.f32 %v942_v16, %v76_v20  ;;  %v218_v32 = vmax.f32 %v202_v23, 0.0  ;;  %v219_v33 = vmax.f32 %v203_v24, 0.0  ;;  %v766_v20 = vld [vmem:[%s1168_s0 + $0x20] sm:$0xff]   ;;  %v767_v30 = vld [vmem:[%s1168_s0 + $0x28] sm:$0xff]  }
   0xb   :  { %v220_v42 = vmax.f32 %v204_v34, 0.0  ;;  %v221_v43 = vmax.f32 %v205_v35, 0.0  ;;  %v116_v47 = vmax.f32 %v100_v38, 0.0  ;;  %v117_v48 = vmax.f32 %v101_v39, 0.0 }
   0xc   :  { %v114_v36 = vmax.f32 %v98_v27, 0.0  ;;  %v115_v37 = vmax.f32 %v99_v28, 0.0  ;;  %v234_v41 = vpack.c.bf16 %v219_v33, %v218_v32  ;;  %v206_v59 = vadd.f32 %v929_v9, %v183_v52 }
   0xd   :  { %v235_v51 = vpack.c.bf16 %v221_v43, %v220_v42  ;;  %v131_v55 = vpack.c.bf16 %v117_v48, %v116_v47  ;;  %v80_v61 = vmul.f32 %v710_v54, %v924_v8  ;;  %v713_v62 = vunpack.c.l.bf16 %v765_v50  ;;  %v775_v43 = vld [vmem:[%s1166_s1 + $0x30] sm:$0xff]  }
   0xe   :  { %v130_v46 = vpack.c.bf16 %v115_v37, %v114_v36  ;;  %797 = vmatprep.mubr.msk.bf16.mxu1 %vm243_vm1, %v234_v41  ;;  %v207_v63 = vadd.f32 %v929_v9, %v184_v56  ;;  %v185_v0 = vmul.f32 %v745_v57, %v916_v4  ;;  %v186_v1 = vmul.f32 %v746_v58, %v916_v4 }
   0xf   :  { %798 = vmatmul.mubr.msk.bf16.vlgmr.msra.gmra.mrb[0].mxu1 %vm243_vm1, %v235_v51  ;;  %v714_v2 = vunpack.c.h.bf16 %v765_v50  ;;  %v222_v5 = vmax.f32 %v206_v59, 0.0  ;;  %v102_v6 = vadd.f32 %v942_v16, %v79_v60  ;;  %v103_v7 = vadd.f32 %v942_v16, %v80_v61  ;;  %v768_v60 = vld [vmem:[%s1168_s0 + $0x30] sm:$0xff]  }
  0x10   :  { %815 = vmatprep.mubr.msk.bf16.mxu0 %vm375_vm2, %v130_v46  ;;  %v81_v10 = vmul.f32 %v713_v62, %v924_v8  ;;  %v223_v11 = vmax.f32 %v207_v63, 0.0  ;;  %v208_v12 = vadd.f32 %v929_v9, %v185_v0  ;;  %v209_v13 = vadd.f32 %v929_v9, %v186_v1  ;;  %v776_v1 = vld [vmem:[%s1166_s1 + $0x38] sm:$0xff]  }
  0x11   :  { %816 = vmatmul.mubr.msk.bf16.vlgmr.msra.gmra.mrb[0].mxu0 %vm375_vm2, %v131_v55  ;;  %v82_v14 = vmul.f32 %v714_v2, %v924_v8  ;;  %v118_v15 = vmax.f32 %v102_v6, 0.0  ;;  %v119_v17 = vmax.f32 %v103_v7, 0.0  ;;  %v749_v19 = vunpack.c.l.bf16 %v773_v3  ;;  %v769_v7 = vld [vmem:[%s1168_s0 + $0x38] sm:$0xff]  }
  0x12   :  { %v104_v18 = vadd.f32 %v942_v16, %v81_v10  ;;  %v236_v21 = vpack.c.bf16 %v223_v11, %v222_v5  ;;  %v224_v22 = vmax.f32 %v208_v12, 0.0  ;;  %v225_v23 = vmax.f32 %v209_v13, 0.0 }
  0x13   :  { %v105_v24 = vadd.f32 %v942_v16, %v82_v14  ;;  %v132_v26 = vpack.c.bf16 %v119_v17, %v118_v15  ;;  %v750_v28 = vunpack.c.h.bf16 %v773_v3  ;;  %v187_v29 = vmul.f32 %v749_v19, %v916_v4 }
  0x14   :  { %v120_v27 = vmax.f32 %v104_v18, 0.0  ;;  %801 = vmatprep.mubr.msk.bf16.mxu1 %vm243_vm1, %v236_v21  ;;  %v237_v31 = vpack.c.bf16 %v225_v23, %v224_v22  ;;  %v717_v33 = vunpack.c.l.bf16 %v766_v20  ;;  %v718_v34 = vunpack.c.h.bf16 %v766_v20 }
  0x15   :  { %v121_v32 = vmax.f32 %v105_v24, 0.0  ;;  %819 = vmatprep.mubr.msk.bf16.mxu0 %vm375_vm2, %v132_v26  ;;  %v188_v35 = vmul.f32 %v750_v28, %v916_v4  ;;  %v210_v36 = vadd.f32 %v929_v9, %v187_v29  ;;  %v753_v37 = vunpack.c.l.bf16 %v774_v25 }
  0x16   :  { %v754_v38 = vunpack.c.h.bf16 %v774_v25  ;;  %v83_v40 = vmul.f32 %v717_v33, %v924_v8  ;;  %v84_v41 = vmul.f32 %v718_v34, %v924_v8  ;;  %v721_v42 = vunpack.c.l.bf16 %v767_v30 }
  0x17   :  { %802 = vmatmul.mubr.msk.bf16.gmra.mrb[4].mxu1 %vm243_vm1, %v237_v31  ;;  %v133_v39 = vpack.c.bf16 %v121_v32, %v120_v27  ;;  %v211_v44 = vadd.f32 %v929_v9, %v188_v35  ;;  %v226_v45 = vmax.f32 %v210_v36, 0.0  ;;  %v189_v46 = vmul.f32 %v753_v37, %v916_v4 }
  0x18   :  { %v190_v47 = vmul.f32 %v754_v38, %v916_v4  ;;  %v106_v48 = vadd.f32 %v942_v16, %v83_v40  ;;  %v107_v49 = vadd.f32 %v942_v16, %v84_v41  ;;  %v722_v50 = vunpack.c.h.bf16 %v767_v30 }
  0x19   :  { %820 = vmatmul.mubr.msk.bf16.gmra.mrb[4].mxu0 %vm375_vm2, %v133_v39  ;;  %v85_v51 = vmul.f32 %v721_v42, %v924_v8  ;;  %v227_v52 = vmax.f32 %v211_v44, 0.0  ;;  %v212_v53 = vadd.f32 %v929_v9, %v189_v46  ;;  %v757_v55 = vunpack.c.l.bf16 %v775_v43  ;;  %v1061_v46 = vld [vmem:[%s1172_s8] ss:$0 sm:$0xff] }
  0x1a   :  { %v213_v54 = vadd.f32 %v929_v9, %v190_v47  ;;  %v122_v56 = vmax.f32 %v106_v48, 0.0  ;;  %v123_v57 = vmax.f32 %v107_v49, 0.0  ;;  %v86_v58 = vmul.f32 %v722_v50, %v924_v8  ;;  %v1066_v50 = vld [vmem:[%s1173_s9] ss:$0 sm:$0xff] }
  0x1b   :  { %v108_v59 = vadd.f32 %v942_v16, %v85_v51  ;;  %v238_v61 = vpack.c.bf16 %v227_v52, %v226_v45  ;;  %v228_v62 = vmax.f32 %v212_v53, 0.0  ;;  %v758_v0 = vunpack.c.h.bf16 %v775_v43 }
  0x1c   :  { %v229_v63 = vmax.f32 %v213_v54, 0.0  ;;  %v134_v2 = vpack.c.bf16 %v123_v57, %v122_v56  ;;  %v109_v3 = vadd.f32 %v942_v16, %v86_v58  ;;  %v191_v6 = vmul.f32 %v757_v55, %v916_v4 }
  0x1d   :  { %v124_v5 = vmax.f32 %v108_v59, 0.0  ;;  %805 = vmatprep.mubr.msk.bf16.mxu1 %vm243_vm1, %v238_v61  ;;  %v192_v11 = vmul.f32 %v758_v0, %v916_v4  ;;  %v725_v12 = vunpack.c.l.bf16 %v768_v60  ;;  %v726_v13 = vunpack.c.h.bf16 %v768_v60 }
  0x1e   :  { %v239_v10 = vpack.c.bf16 %v229_v63, %v228_v62  ;;  %823 = vmatprep.mubr.msk.bf16.mxu0 %vm375_vm2, %v134_v2  ;;  %v125_v14 = vmax.f32 %v109_v3, 0.0  ;;  %v214_v15 = vadd.f32 %v929_v9, %v191_v6  ;;  %v761_v17 = vunpack.c.l.bf16 %v776_v1 }
  0x1f   :  { %v762_v18 = vunpack.c.h.bf16 %v776_v1  ;;  %v215_v19 = vadd.f32 %v929_v9, %v192_v11  ;;  %v87_v20 = vmul.f32 %v725_v12, %v924_v8  ;;  %v88_v21 = vmul.f32 %v726_v13, %v924_v8 }
  0x20   :  { %806 = vmatmul.mubr.msk.bf16.gmra.mrb[8].mxu1 %vm243_vm1, %v239_v10  ;;  %v729_v22 = vunpack.c.l.bf16 %v769_v7  ;;  %v135_v23 = vpack.c.bf16 %v125_v14, %v124_v5  ;;  %v230_v24 = vmax.f32 %v214_v15, 0.0  ;;  %v193_v25 = vmul.f32 %v761_v17, %v916_v4 }
  0x21   :  { %v194_v26 = vmul.f32 %v762_v18, %v916_v4  ;;  %v231_v27 = vmax.f32 %v215_v19, 0.0  ;;  %v110_v28 = vadd.f32 %v942_v16, %v87_v20  ;;  %v111_v29 = vadd.f32 %v942_v16, %v88_v21 }
  0x22   :  { %v730_v30 = vunpack.c.h.bf16 %v769_v7  ;;  %824 = vmatmul.mubr.msk.bf16.gmra.mrb[8].mxu0 %vm375_vm2, %v135_v23  ;;  %v216_v31 = vadd.f32 %v929_v9, %v193_v25  ;;  %v89_v33 = vmul.f32 %v729_v22, %v924_v8 }
  0x23   :  { %v217_v32 = vadd.f32 %v929_v9, %v194_v26  ;;  %v240_v34 = vpack.c.bf16 %v231_v27, %v230_v24  ;;  %v126_v35 = vmax.f32 %v110_v28, 0.0  ;;  %v127_v36 = vmax.f32 %v111_v29, 0.0 }
  0x24   :  { %v90_v37 = vmul.f32 %v730_v30, %v924_v8  ;;  %v232_v4 = vmax.f32 %v216_v31, 0.0  ;;  %v112_v39 = vadd.f32 %v942_v16, %v89_v33 }
  0x25   :  { %v233_v38 = vmax.f32 %v217_v32, 0.0  ;;  %809 = vmatprep.mubr.msk.bf16.mxu1 %vm243_vm1, %v240_v34  ;;  %v136_v40 = vpack.c.bf16 %v127_v36, %v126_v35 }
  0x26   :  { %v113_v41 = vadd.f32 %v942_v16, %v90_v37  ;;  %v128_v43 = vmax.f32 %v112_v39, 0.0 }
  0x27   :  { %v241_v42 = vpack.c.bf16 %v233_v38, %v232_v4  ;;  %827 = vmatprep.mubr.msk.bf16.mxu0 %vm375_vm2, %v136_v40 }
  0x28   :  { %v129_v9 = vmax.f32 %v113_v41, 0.0 }
  0x29   :  { %810 = vmatmul.mubr.msk.bf16.gmra.mrb[12].mxu1 %vm243_vm1, %v241_v42 }
  0x2a   :  { %v137_v44 = vpack.c.bf16 %v129_v9, %v128_v43 }
  0x2c   :  { %828 = vmatmul.mubr.msk.bf16.gmra.mrb[12].mxu0 %vm375_vm2, %v137_v44 }
  0xe2   :  { %v799_v8 = vpop.f32.mrb[0].mxu1 }
  0xe3   :  { %v306_v47 = vpop.f32.mrb[1].mxu1 }
  0xe4   :  { %v817_v45 = vpop.f32.mrb[0].mxu0  ;;  %v800_v49 = vpop.f32.mrb[2].mxu1 }
  0xe5   :  { %v443_v48 = vadd.f32 %v817_v45, %v799_v8  ;;  %v434_v16 = vpop.f32.mrb[1].mxu0  ;;  %v309_v53 = vpop.f32.mrb[3].mxu1 }
  0xe6   :  { %v435_v51 = vadd.f32 %v434_v16, %v306_v47  ;;  %v818_v52 = vpop.f32.mrb[2].mxu0 }
  0xe7   :  { %v506_v54 = vmul.f32 %v1061_v46, %v443_v48  ;;  %v446_v55 = vadd.f32 %v818_v52, %v800_v49  ;;  %v437_v56 = vpop.f32.mrb[3].mxu0 }
  0xe8   :  { %v504_v57 = vmul.f32 %v1061_v46, %v435_v51  ;;  %v438_v58 = vadd.f32 %v437_v56, %v309_v53 }
  0xe9   :  { %v529_v59 = vadd.f32 %v1066_v50, %v506_v54  ;;  %v507_v60 = vmul.f32 %v1061_v46, %v446_v55 }
  0xea   :  { %v527_v61 = vadd.f32 %v1066_v50, %v504_v57  ;;  %v505_v62 = vmul.f32 %v1061_v46, %v438_v58  ;;  %v803_v3 = vpop.f32.mrb[4].mxu1 }
  0xeb   :  { %v545_v63 = vmax.f32 %v529_v59, 0.0  ;;  %v530_v0 = vadd.f32 %v1066_v50, %v507_v60  ;;  %v322_v7 = vpop.f32.mrb[5].mxu1 }
  0xec   :  { %v543_v1 = vmax.f32 %v527_v61, 0.0  ;;  %v528_v2 = vadd.f32 %v1066_v50, %v505_v62  ;;  %v821_v12 = vpop.f32.mrb[4].mxu0  ;;  %v804_v13 = vpop.f32.mrb[6].mxu1 }
  0xed   :  { %v685_v5 = vpack.c.bf16 %v545_v63, %v545_v63  ;;  %v546_v6 = vmax.f32 %v530_v0, 0.0  ;;  %v459_v15 = vadd.f32 %v821_v12, %v803_v3  ;;  %v450_v17 = vpop.f32.mrb[5].mxu0  ;;  %v325_v18 = vpop.f32.mrb[7].mxu1 }
  0xee   :  { %v683_v10 = vpack.c.bf16 %v543_v1, %v543_v1  ;;  %v544_v11 = vmax.f32 %v528_v2, 0.0  ;;  %v451_v20 = vadd.f32 %v450_v17, %v322_v7  ;;  %v822_v21 = vpop.f32.mrb[6].mxu0 }
  0xef   :  { %626 = vst.msk [vmem:[%s1174_s10 + $0x8] sm:$0xf] %vm623_vm3, %v685_v5  ;;  %v686_v14 = vpack.c.bf16 %v546_v6, %v546_v6  ;;  %v510_v22 = vmul.f32 %v1061_v46, %v459_v15  ;;  %v462_v23 = vadd.f32 %v822_v21, %v804_v13  ;;  %v453_v24 = vpop.f32.mrb[7].mxu0 }
  0xf0   :  { %624 = vst.msk [vmem:[%s1174_s10] sm:$0xf] %vm623_vm3, %v683_v10  ;;  %v684_v19 = vpack.c.bf16 %v544_v11, %v544_v11  ;;  %v508_v25 = vmul.f32 %v1061_v46, %v451_v20  ;;  %v454_v26 = vadd.f32 %v453_v24, %v325_v18 }
  0xf1   :  { %627 = vst.msk [vmem:[%s1174_s10 + $0xc] sm:$0xf] %vm623_vm3, %v686_v14  ;;  %v533_v27 = vadd.f32 %v1066_v50, %v510_v22  ;;  %v511_v28 = vmul.f32 %v1061_v46, %v462_v23 }
  0xf2   :  { %625 = vst.msk [vmem:[%s1174_s10 + $0x4] sm:$0xf] %vm623_vm3, %v684_v19  ;;  %v531_v29 = vadd.f32 %v1066_v50, %v508_v25  ;;  %v509_v30 = vmul.f32 %v1061_v46, %v454_v26 }
  0xf3   :  { %v549_v31 = vmax.f32 %v533_v27, 0.0  ;;  %v534_v32 = vadd.f32 %v1066_v50, %v511_v28  ;;  %v807_v33 = vpop.f32.mrb[8].mxu1 }
  0xf4   :  { %v547_v34 = vmax.f32 %v531_v29, 0.0  ;;  %v532_v35 = vadd.f32 %v1066_v50, %v509_v30  ;;  %v338_v36 = vpop.f32.mrb[9].mxu1 }
  0xf5   :  { %v689_v37 = vpack.c.bf16 %v549_v31, %v549_v31  ;;  %v550_v4 = vmax.f32 %v534_v32, 0.0  ;;  %v808_v38 = vpop.f32.mrb[10].mxu1  ;;  %v825_v41 = vpop.f32.mrb[8].mxu0 }
  0xf6   :  { %v687_v39 = vpack.c.bf16 %v547_v34, %v547_v34  ;;  %v548_v40 = vmax.f32 %v532_v35, 0.0  ;;  %v341_v42 = vpop.f32.mrb[11].mxu1  ;;  %v475_v9 = vadd.f32 %v825_v41, %v807_v33  ;;  %v466_v44 = vpop.f32.mrb[9].mxu0 }
  0xf7   :  { %630 = vst.msk [vmem:[%s1174_s10 + $0x18] sm:$0xf] %vm623_vm3, %v689_v37  ;;  %v690_v43 = vpack.c.bf16 %v550_v4, %v550_v4  ;;  %v467_v45 = vadd.f32 %v466_v44, %v338_v36  ;;  %v826_v47 = vpop.f32.mrb[10].mxu0 }
  0xf8   :  { %628 = vst.msk [vmem:[%s1174_s10 + $0x10] sm:$0xf] %vm623_vm3, %v687_v39  ;;  %v688_v8 = vpack.c.bf16 %v548_v40, %v548_v40  ;;  %v514_v48 = vmul.f32 %v1061_v46, %v475_v9  ;;  %v478_v16 = vadd.f32 %v826_v47, %v808_v38  ;;  %v469_v49 = vpop.f32.mrb[11].mxu0 }
  0xf9   :  { %631 = vst.msk [vmem:[%s1174_s10 + $0x1c] sm:$0xf] %vm623_vm3, %v690_v43  ;;  %v512_v51 = vmul.f32 %v1061_v46, %v467_v45  ;;  %v470_v52 = vadd.f32 %v469_v49, %v341_v42 }
  0xfa   :  { %629 = vst.msk [vmem:[%s1174_s10 + $0x14] sm:$0xf] %vm623_vm3, %v688_v8  ;;  %v537_v53 = vadd.f32 %v1066_v50, %v514_v48  ;;  %v515_v54 = vmul.f32 %v1061_v46, %v478_v16 }
  0xfb   :  { %v535_v55 = vadd.f32 %v1066_v50, %v512_v51  ;;  %v513_v56 = vmul.f32 %v1061_v46, %v470_v52 }
  0xfc   :  { %v811_v57 = vpop.f32.mrb[12].mxu1  ;;  %v553_v58 = vmax.f32 %v537_v53, 0.0  ;;  %v538_v59 = vadd.f32 %v1066_v50, %v515_v54 }
  0xfd   :  { %v354_v60 = vpop.f32.mrb[13].mxu1  ;;  %v551_v61 = vmax.f32 %v535_v55, 0.0  ;;  %v536_v62 = vadd.f32 %v1066_v50, %v513_v56 }
  0xfe   :  { %v812_v63 = vpop.f32.mrb[14].mxu1  ;;  %v693_v0 = vpack.c.bf16 %v553_v58, %v553_v58  ;;  %v554_v1 = vmax.f32 %v538_v59, 0.0 }
  0xff   :  { %v829_v2 = vpop.f32.mrb[12].mxu0  ;;  %v357_v3 = vpop.f32.mrb[15].mxu1  ;;  %v691_v5 = vpack.c.bf16 %v551_v61, %v551_v61  ;;  %v552_v6 = vmax.f32 %v536_v62, 0.0 }
 0x100   :  { %v491_v7 = vadd.f32 %v829_v2, %v811_v57  ;;  %v482_v10 = vpop.f32.mrb[13].mxu0  ;;  %634 = vst.msk [vmem:[%s1174_s10 + $0x28] sm:$0xf] %vm623_vm3, %v693_v0  ;;  %v694_v11 = vpack.c.bf16 %v554_v1, %v554_v1 }
 0x101   :  { %v483_v12 = vadd.f32 %v482_v10, %v354_v60  ;;  %v830_v13 = vpop.f32.mrb[14].mxu0  ;;  %632 = vst.msk [vmem:[%s1174_s10 + $0x20] sm:$0xf] %vm623_vm3, %v691_v5  ;;  %v692_v14 = vpack.c.bf16 %v552_v6, %v552_v6 }
 0x102   :  { %v518_v15 = vmul.f32 %v1061_v46, %v491_v7  ;;  %v494_v17 = vadd.f32 %v830_v13, %v812_v63  ;;  %v485_v18 = vpop.f32.mrb[15].mxu0  ;;  %635 = vst.msk [vmem:[%s1174_s10 + $0x2c] sm:$0xf] %vm623_vm3, %v694_v11 }
 0x103   :  { %v516_v19 = vmul.f32 %v1061_v46, %v483_v12  ;;  %v486_v20 = vadd.f32 %v485_v18, %v357_v3  ;;  %633 = vst.msk [vmem:[%s1174_s10 + $0x24] sm:$0xf] %vm623_vm3, %v692_v14 }
 0x104   :  { %v541_v21 = vadd.f32 %v1066_v50, %v518_v15  ;;  %v519_v22 = vmul.f32 %v1061_v46, %v494_v17 }
 0x105   :  { %v539_v23 = vadd.f32 %v1066_v50, %v516_v19  ;;  %v517_v24 = vmul.f32 %v1061_v46, %v486_v20 }
 0x106   :  { %v557_v25 = vmax.f32 %v541_v21, 0.0  ;;  %v542_v26 = vadd.f32 %v1066_v50, %v519_v22 }
 0x107   :  { %v555_v27 = vmax.f32 %v539_v23, 0.0  ;;  %v540_v28 = vadd.f32 %v1066_v50, %v517_v24 }
 0x108   :  { %v697_v29 = vpack.c.bf16 %v557_v25, %v557_v25  ;;  %v558_v30 = vmax.f32 %v542_v26, 0.0 }
 0x109   :  { %v695_v31 = vpack.c.bf16 %v555_v27, %v555_v27  ;;  %v556_v32 = vmax.f32 %v540_v28, 0.0 }
 0x10a   :  { %638 = vst.msk [vmem:[%s1174_s10 + $0x38] sm:$0xf] %vm623_vm3, %v697_v29  ;;  %v698_v33 = vpack.c.bf16 %v558_v30, %v558_v30 }
 0x10b   :  { %636 = vst.msk [vmem:[%s1174_s10 + $0x30] sm:$0xf] %vm623_vm3, %v695_v31  ;;  %v696_v46 = vpack.c.bf16 %v556_v32, %v556_v32 }
 0x10c   :  { %639 = vst.msk [vmem:[%s1174_s10 + $0x3c] sm:$0xf] %vm623_vm3, %v698_v33 }
 0x10d   :  { %637 = vst.msk [vmem:[%s1174_s10 + $0x34] sm:$0xf] %vm623_vm3, %v696_v46 }

// kernel: densenet_forward.27
= control target key start
LH: loop header
LB: loop body
LE: loop exit
PB: predicated region body
PF: predicated region fallthrough
CT: control target
= control target key end

     0   :  { %vm68_vm0 = vcmask 130048   ;;  %vm166_vm1 = vcmask 257024   ;;  %s277_s3 = inlined_call_operand.vmem [shape: bf16[16,32], index: 3, kind: input, shape index: {}]   ;;  %s278_s0 = inlined_call_operand.vmem [shape: bf16[32,16], index: 0, kind: input, shape index: {}]   ;;  %s279_s1 = inlined_call_operand.vmem [shape: f32[1,16], index: 1, kind: input, shape index: {}]   ;;  %s280_s2 = inlined_call_operand.vmem [shape: f32[1,16], index: 2, kind: input, shape index: {}]   ;;  %s281_s4 = inlined_call_operand.vmem [shape: f32[1,32], index: 4, kind: input, shape index: {}]   ;;  %s282_s5 = inlined_call_operand.vmem [shape: f32[1,32], index: 5, kind: input, shape index: {}]   ;;  %s283_s6 = inlined_call_operand.vmem [shape: bf16[32,32], index: 6, kind: output, shape index: {}]  }
   0x1   :  { %v208_v0 = vld [vmem:[%s277_s3] sm:$0xff]   ;;  %v198_v2 = vld [vmem:[%s278_s0 + $0x8] sm:$0xff]  }
   0x2   :  { %v191_v1 = vld [vmem:[%s278_s0] sm:$0xff]   ;;  %202 = vmatprep.subr.bf16.mxu0 %v208_v0  ;;  %v196_v6 = vunpack.c.l.bf16 %v198_v2  ;;  %v197_v7 = vunpack.c.h.bf16 %v198_v2 }
   0x3   :  { %v175_v3 = vld [vmem:[%s279_s1] ss:$0 sm:$0xff]  ;;  %v192_v4 = vunpack.c.l.bf16 %v191_v1  ;;  %v193_v5 = vunpack.c.h.bf16 %v191_v1  ;;  %203 = vmatpush3.bf16.msra.mxu0 %v208_v0 }
   0x4   :  { %v176_v8 = vld [vmem:[%s280_s2] ss:$0 sm:$0xff]  ;;  %v41_v11 = vmul.f32 %v196_v6, %v175_v3  ;;  %v42_v12 = vmul.f32 %v197_v7, %v175_v3 }
   0x5   :  { %v39_v9 = vmul.f32 %v192_v4, %v175_v3  ;;  %v40_v10 = vmul.f32 %v193_v5, %v175_v3  ;;  %v180_v23 = vld [vmem:[%s281_s4] ss:$0 sm:$0xff] }
   0x6   :  { %v52_v15 = vadd.f32 %v176_v8, %v41_v11  ;;  %v53_v16 = vadd.f32 %v176_v8, %v42_v12  ;;  %v181_v25 = vld [vmem:[%s282_s5] ss:$0 sm:$0xff] }
   0x7   :  { %v50_v13 = vadd.f32 %v176_v8, %v39_v9  ;;  %v51_v14 = vadd.f32 %v176_v8, %v40_v10 }
   0x8   :  { %v56_v19 = vmax.f32 %v52_v15, 0.0  ;;  %v57_v20 = vmax.f32 %v53_v16, 0.0 }
   0x9   :  { %v54_v17 = vmax.f32 %v50_v13, 0.0  ;;  %v55_v18 = vmax.f32 %v51_v14, 0.0 }
   0xa   :  { %v59_v22 = vpack.c.bf16 %v57_v20, %v56_v19 }
   0xb   :  { %v58_v21 = vpack.c.bf16 %v55_v18, %v54_v17 }
   0xd   :  { %204 = vmatprep.mubr.msk.bf16.mxu0 %vm68_vm0, %v58_v21 }
   0xe   :  { %205 = vmatmul.mubr.msk.bf16.vlgmr.msra.gmra.mrb[0].mxu0 %vm68_vm0, %v59_v22 }
  0xe1   :  { %v206_v24 = vpop.f32.mrb[0].mxu0 }
  0xe2   :  { %v133_v26 = vmul.f32 %v206_v24, %v180_v23  ;;  %v109_v27 = vpop.f32.mrb[1].mxu0 }
  0xe3   :  { %v131_v28 = vmul.f32 %v180_v23, %v109_v27  ;;  %v207_v29 = vpop.f32.mrb[2].mxu0 }
  0xe4   :  { %v144_v30 = vadd.f32 %v181_v25, %v133_v26  ;;  %v134_v31 = vmul.f32 %v207_v29, %v180_v23  ;;  %v112_v32 = vpop.f32.mrb[3].mxu0 }
  0xe5   :  { %v142_v33 = vadd.f32 %v181_v25, %v131_v28  ;;  %v132_v34 = vmul.f32 %v180_v23, %v112_v32 }
  0xe6   :  { %v148_v35 = vmax.f32 %v144_v30, 0.0  ;;  %v145_v36 = vadd.f32 %v181_v25, %v134_v31 }
  0xe7   :  { %v146_v37 = vmax.f32 %v142_v33, 0.0  ;;  %v143_v38 = vadd.f32 %v181_v25, %v132_v34 }
  0xe8   :  { %v188_v39 = vpack.c.bf16 %v148_v35, %v148_v35  ;;  %v149_v40 = vmax.f32 %v145_v36, 0.0 }
  0xe9   :  { %v186_v41 = vpack.c.bf16 %v146_v37, %v146_v37  ;;  %v147_v42 = vmax.f32 %v143_v38, 0.0 }
  0xea   :  { %169 = vst.msk [vmem:[%s283_s6 + $0x8] sm:$0xf] %vm166_vm1, %v188_v39  ;;  %v189_v43 = vpack.c.bf16 %v149_v40, %v149_v40 }
  0xeb   :  { %167 = vst.msk [vmem:[%s283_s6] sm:$0xf] %vm166_vm1, %v186_v41  ;;  %v187_v44 = vpack.c.bf16 %v147_v42, %v147_v42 }
  0xec   :  { %170 = vst.msk [vmem:[%s283_s6 + $0xc] sm:$0xf] %vm166_vm1, %v189_v43 }
  0xed   :  { %168 = vst.msk [vmem:[%s283_s6 + $0x4] sm:$0xf] %vm166_vm1, %v187_v44 }

// kernel: densenet_forward.29
= control target key start
LH: loop header
LB: loop body
LE: loop exit
PB: predicated region body
PF: predicated region fallthrough
CT: control target
= control target key end

     0   :  { %vm118_vm0 = vcmask 1043456   ;;  %vm111_vm1 = vcmask 64512   ;;  %vm177_vm2 = vcmask 130048   ;;  %vm275_vm3 = vcmask 257024   ;;  %s450_s7 = inlined_call_operand.vmem [shape: bf16[8,32], index: 7, kind: input, shape index: {}]   ;;  %s451_s6 = inlined_call_operand.vmem [shape: bf16[16,32], index: 6, kind: input, shape index: {}]   ;;  %s452_s1 = inlined_call_operand.vmem [shape: bf16[32,8], index: 1, kind: input, shape index: {}]   ;;  %s453_s3 = inlined_call_operand.vmem [shape: f32[1,8], index: 3, kind: input, shape index: {}]   ;;  %s454_s0 = inlined_call_operand.vmem [shape: bf16[32,16], index: 0, kind: input, shape index: {}]   ;;  %s455_s5 = inlined_call_operand.vmem [shape: f32[1,8], index: 5, kind: input, shape index: {}]   ;;  %s456_s2 = inlined_call_operand.vmem [shape: f32[1,16], index: 2, kind: input, shape index: {}]   ;;  %s457_s4 = inlined_call_operand.vmem [shape: f32[1,16], index: 4, kind: input, shape index: {}]   ;;  %s458_s8 = inlined_call_operand.vmem [shape: f32[1,32], index: 8, kind: input, shape index: {}]   ;;  %s459_s9 = inlined_call_operand.vmem [shape: f32[1,32], index: 9, kind: input, shape index: {}]   ;;  %s460_s10 = inlined_call_operand.vmem [shape: bf16[32,32], index: 10, kind: output, shape index: {}]  }
   0x1   :  { %v110_v0 = vld [vmem:[%s450_s7] sm:$0xf]  ;;  %v320_v4 = vld [vmem:[%s452_s1 + $0x8] sm:$0xff]  }
   0x2   :  { %343 = vmatprep.subr.msk.bf16.mxu1 %vm118_vm0, %v110_v0  ;;  %v344_v1 = vld [vmem:[%s451_s6] sm:$0xff]   ;;  %v120_v2 = vsel %vm118_vm0, %v110_v0, 0  ;;  %v317_v7 = vunpack.c.l.bf16 %v320_v4  ;;  %v318_v8 = vunpack.c.h.bf16 %v320_v4  ;;  %v319_v14 = vld [vmem:[%s454_s0 + $0x8] sm:$0xff]  }
   0x3   :  { %v312_v3 = vld [vmem:[%s452_s1] sm:$0xff]   ;;  %328 = vmatpush3.bf16.msra.mxu1 %v120_v2  ;;  %333 = vmatprep.subr.bf16.mxu0 %v344_v1  ;;  %v309_v18 = vunpack.c.l.bf16 %v319_v14  ;;  %v310_v19 = vunpack.c.h.bf16 %v319_v14 }
   0x4   :  { %v313_v5 = vunpack.c.l.bf16 %v312_v3  ;;  %v314_v6 = vunpack.c.h.bf16 %v312_v3  ;;  %v286_v9 = vld [vmem:[%s453_s3] ss:$0 sm:$0xff]  ;;  %334 = vmatpush3.bf16.msra.mxu0 %v344_v1 }
   0x5   :  { %v304_v10 = vld [vmem:[%s454_s0] sm:$0xff]   ;;  %v91_v23 = vmul.f32 %v317_v7, %v286_v9  ;;  %v92_v24 = vmul.f32 %v318_v8, %v286_v9 }
   0x6   :  { %v287_v11 = vld [vmem:[%s455_s5] ss:$0 sm:$0xff]  ;;  %v305_v12 = vunpack.c.l.bf16 %v304_v10  ;;  %v306_v13 = vunpack.c.h.bf16 %v304_v10  ;;  %v89_v16 = vmul.f32 %v313_v5, %v286_v9  ;;  %v90_v17 = vmul.f32 %v314_v6, %v286_v9 }
   0x7   :  { %v284_v15 = vld [vmem:[%s456_s2] ss:$0 sm:$0xff]  ;;  %v102_v31 = vadd.f32 %v287_v11, %v91_v23  ;;  %v103_v32 = vadd.f32 %v287_v11, %v92_v24 }
   0x8   :  { %v285_v20 = vld [vmem:[%s457_s4] ss:$0 sm:$0xff]  ;;  %v51_v21 = vmul.f32 %v305_v12, %v284_v15  ;;  %v52_v22 = vmul.f32 %v306_v13, %v284_v15  ;;  %v100_v25 = vadd.f32 %v287_v11, %v89_v16  ;;  %v101_v26 = vadd.f32 %v287_v11, %v90_v17 }
   0x9   :  { %v53_v27 = vmul.f32 %v309_v18, %v284_v15  ;;  %v54_v28 = vmul.f32 %v310_v19, %v284_v15  ;;  %v106_v39 = vmax.f32 %v102_v31, 0.0  ;;  %v107_v40 = vmax.f32 %v103_v32, 0.0  ;;  %v293_v49 = vld [vmem:[%s458_s8] ss:$0 sm:$0xff] }
   0xa   :  { %v62_v29 = vadd.f32 %v285_v20, %v51_v21  ;;  %v63_v30 = vadd.f32 %v285_v20, %v52_v22  ;;  %v104_v33 = vmax.f32 %v100_v25, 0.0  ;;  %v105_v34 = vmax.f32 %v101_v26, 0.0  ;;  %v294_v54 = vld [vmem:[%s459_s9] ss:$0 sm:$0xff] }
   0xb   :  { %v64_v35 = vadd.f32 %v285_v20, %v53_v27  ;;  %v65_v36 = vadd.f32 %v285_v20, %v54_v28  ;;  %v109_v45 = vpack.c.bf16 %v107_v40, %v106_v39 }
   0xc   :  { %v66_v37 = vmax.f32 %v62_v29, 0.0  ;;  %v67_v38 = vmax.f32 %v63_v30, 0.0  ;;  %v108_v41 = vpack.c.bf16 %v105_v34, %v104_v33 }
   0xd   :  { %v68_v42 = vmax.f32 %v64_v35, 0.0  ;;  %v69_v43 = vmax.f32 %v65_v36, 0.0 }
   0xe   :  { %v70_v44 = vpack.c.bf16 %v67_v38, %v66_v37  ;;  %329 = vmatprep.mubr.msk.bf16.mxu1 %vm111_vm1, %v108_v41 }
   0xf   :  { %v71_v46 = vpack.c.bf16 %v69_v43, %v68_v42  ;;  %330 = vmatmul.mubr.msk.bf16.vlgmr.msra.gmra.mrb[0].mxu1 %vm111_vm1, %v109_v45 }
  0x10   :  { %335 = vmatprep.mubr.msk.bf16.mxu0 %vm177_vm2, %v70_v44 }
  0x11   :  { %336 = vmatmul.mubr.msk.bf16.vlgmr.msra.gmra.mrb[0].mxu0 %vm177_vm2, %v71_v46 }
  0xe2   :  { %v331_v47 = vpop.f32.mrb[0].mxu1 }
  0xe3   :  { %v156_v50 = vpop.f32.mrb[1].mxu1 }
  0xe4   :  { %v337_v48 = vpop.f32.mrb[0].mxu0  ;;  %v332_v53 = vpop.f32.mrb[2].mxu1 }
  0xe5   :  { %v227_v51 = vadd.f32 %v337_v48, %v331_v47  ;;  %v218_v52 = vpop.f32.mrb[1].mxu0  ;;  %v159_v57 = vpop.f32.mrb[3].mxu1 }
  0xe6   :  { %v219_v55 = vadd.f32 %v218_v52, %v156_v50  ;;  %v338_v56 = vpop.f32.mrb[2].mxu0 }
  0xe7   :  { %v242_v58 = vmul.f32 %v293_v49, %v227_v51  ;;  %v230_v59 = vadd.f32 %v338_v56, %v332_v53  ;;  %v221_v60 = vpop.f32.mrb[3].mxu0 }
  0xe8   :  { %v240_v61 = vmul.f32 %v293_v49, %v219_v55  ;;  %v222_v62 = vadd.f32 %v221_v60, %v159_v57 }
  0xe9   :  { %v253_v63 = vadd.f32 %v294_v54, %v242_v58  ;;  %v243_v0 = vmul.f32 %v293_v49, %v230_v59 }
  0xea   :  { %v251_v1 = vadd.f32 %v294_v54, %v240_v61  ;;  %v241_v2 = vmul.f32 %v293_v49, %v222_v62 }
  0xeb   :  { %v257_v3 = vmax.f32 %v253_v63, 0.0  ;;  %v254_v4 = vadd.f32 %v294_v54, %v243_v0 }
  0xec   :  { %v255_v5 = vmax.f32 %v251_v1, 0.0  ;;  %v252_v6 = vadd.f32 %v294_v54, %v241_v2 }
  0xed   :  { %v301_v7 = vpack.c.bf16 %v257_v3, %v257_v3  ;;  %v258_v8 = vmax.f32 %v254_v4, 0.0 }
  0xee   :  { %v299_v9 = vpack.c.bf16 %v255_v5, %v255_v5  ;;  %v256_v10 = vmax.f32 %v252_v6, 0.0 }
  0xef   :  { %278 = vst.msk [vmem:[%s460_s10 + $0x8] sm:$0xf] %vm275_vm3, %v301_v7  ;;  %v302_v11 = vpack.c.bf16 %v258_v8, %v258_v8 }
  0xf0   :  { %276 = vst.msk [vmem:[%s460_s10] sm:$0xf] %vm275_vm3, %v299_v9  ;;  %v300_v12 = vpack.c.bf16 %v256_v10, %v256_v10 }
  0xf1   :  { %279 = vst.msk [vmem:[%s460_s10 + $0xc] sm:$0xf] %vm275_vm3, %v302_v11 }
  0xf2   :  { %277 = vst.msk [vmem:[%s460_s10 + $0x4] sm:$0xf] %vm275_vm3, %v300_v12 }

// kernel: densenet_forward.28
= control target key start
LH: loop header
LB: loop body
LE: loop exit
PB: predicated region body
PF: predicated region fallthrough
CT: control target
= control target key end

     0   :  { %s1297_s9 = smov 0   ;;  %s1442_s0 = inlined_call_operand.vmem [shape: bf16[2,42,32], index: 0, kind: input, shape index: {}]   ;;  %s1443_s1 = inlined_call_operand.vmem [shape: bf16[9,32,8], index: 1, kind: input, shape index: {}]   ;;  %s1444_s2 = inlined_call_operand.vmem [shape: bf16[2,24,8], index: 2, kind: output, shape index: {}]  }
   0x1 LB: > { %s998_s10 = sadd.s32 4294967295, %s1280_s9   ;;  %p1002_p0 = scmp.ge.s32.totalorder %s1280_s9, 1  ;;  %s1280_s9 = sphi %s1297_s9, %s12_s9  }
   0x2   : > { %p112_p1 = scmp.lt.s32.totalorder %s1280_s9, 3 }
   0x4   : > { %p113_p2 = pnand %p1002_p0, %p112_p1 }
   0x5   : > { %v1243_v0 = vld [vmem:[%s1443_s1 + $0x40] sm:$0xff] (!%p113_p2)   ;;  %p134_p3 = scmp.lt.s32.totalorder (!%p113_p2), %s998_s10, 1  ;;  %v1244_v1 = vld [vmem:[%s1443_s1 + $0x10] sm:$0xff] (!%p113_p2)   ;;  %v1245_v2 = vld [vmem:[%s1443_s1 + $0x48] sm:$0xff] (!%p113_p2)   ;;  %vm168_vm0 = vsmask.f32 (!%p113_p2), 7424 }
   0x6   : > { %116 = sbr.rel (%p113_p2) target bundleno = 298 (0x12a), region = 28  ;;  %1162 = vmatprep.subr.bf16.mxu0 (!%p113_p2), %v1243_v0  ;;  %1130 = vmatprep.subr.bf16.mxu1 (!%p113_p2), %v1244_v1  ;;  %v1246_v3 = vld [vmem:[%s1443_s1 + $0x18] sm:$0xff] (!%p113_p2)   ;;  %v1252_v4 = vld [vmem:[%s1443_s1 + $0x50] sm:$0xff] (!%p113_p2)   ;;  %v1253_v5 = vld [vmem:[%s1443_s1] sm:$0xff] (!%p113_p2)   ;;  %vm494_vm1 = vsmask.f32 (!%p113_p2), 4352 }
   0x7   : > { %1163 = vmatpush3.bf16.msra.mxu0 (!%p113_p2), %v1243_v0  ;;  %1131 = vmatpush3.bf16.msra.mxu1 (!%p113_p2), %v1244_v1  ;;  %vm196_vm2 = vcmask (!%p113_p2), 261120   ;;  %v1254_v35 = vld [vmem:[%s1443_s1 + $0x58] sm:$0xff] (!%p113_p2)   ;;  %v1255_v36 = vld [vmem:[%s1443_s1 + $0x8] sm:$0xff] (!%p113_p2)   ;;  %v1259_v44 = vld [vmem:[%s1443_s1 + $0x20] sm:$0xff] (!%p113_p2)   ;;  %vm326_vm3 = vcmask (!%p113_p2), 1046528   ;;  %vm676_vm4 = vcmask (!%p113_p2), 1045504  }
   0x8   : > { %1164 = vmatprep.subr.bf16.mxu0 (!%p113_p2), %v1245_v2  ;;  %1132 = vmatprep.subr.bf16.mxu1 (!%p113_p2), %v1246_v3  ;;  %v1257_v48 = vld [vmem:[%s1443_s1 + $0x60] sm:$0xff] (!%p113_p2)   ;;  %v1261_v57 = vld [vmem:[%s1443_s1 + $0x28] sm:$0xff] (!%p113_p2)   ;;  %vm412_vm5 = vcmask (!%p113_p2), 1044480   ;;  %vm758_vm6 = vsmask.f32 (!%p113_p2), 5376  ;;  %vm939_vm7 = vcmask (!%p113_p2), 60416  }
   0x9   : > { %v1260_v61 = vld [vmem:[%s1443_s1 + $0x68] sm:$0xff] (!%p113_p2)  }
   0xb   : > { %1165 = vmatpush3.bf16.msra.mxu0 (!%p113_p2), %v1245_v2  ;;  %1133 = vmatpush3.bf16.msra.mxu1 (!%p113_p2), %v1246_v3  ;;  %v1267_v2 = vld [vmem:[%s1443_s1 + $0x30] sm:$0xff] (!%p113_p2)  }
   0xc   : > { %1170 = vmatprep.subr.bf16.mxu0 (!%p113_p2), %v1252_v4  ;;  %1138 = vmatprep.subr.bf16.mxu1 (!%p113_p2), %v1253_v5 }
   0xd   : > { %s1446_s10 = smov (!%p134_p3, %s998_s10), 1 }
   0xe   : > { %s1233_s19 = smul.u32 24, %s1446_s10 }
   0xf   : > { %s1234_s25 = smul.u32 12, %s1446_s10 }
  0x10   : > { %s1326_s24 = scalar_lea.vmem %s1442_s0, %s1233_s19 }
  0x11   : > { %v145_v6 = vld [vmem:[%s1326_s24] sm:$0xf]  ;;  %v146_v7 = vld [vmem:[%s1326_s24 + $0x4] sm:$0xf]  ;;  %v1334_v8 = vld [vmem:[%s1326_s24 + $0x8] sm:$0xf]  ;;  %s143_s28 = scalar_lea.vmem %s1444_s2, %s1234_s25 }
  0x12   : > { %v152_v9 = vld [vmem:[%s1326_s24 + $0xc] sm:$0x1]  ;;  %v1009_v10 = vcombine.low %v145_v6, %v146_v7  ;;  %v399_v11 = vld [vmem:[%s1326_s24] sm:$0x8]  ;;  %v657_v38 = vld [vmem:[%s1326_s24 + $0x4] sm:$0xc]  ;;  %v1052_v42 = vcombine.low %v146_v7, %v1334_v8  ;;  %v1015_v54 = vcombine.low %v1334_v8, %v1334_v8 }
  0x13   : > { %v1339_v12 = vld [vmem:[%s1326_s24 + $0xc] sm:$0xf]  ;;  %v1342_v13 = vcombine.low %v1334_v8, %v152_v9  ;;  %v1344_v14 = vcombine.low %v399_v11, %v146_v7  ;;  %v317_v37 = vld [vmem:[%s1326_s24] sm:$0xe]  ;;  %v1363_v39 = vld [vmem:[%s1326_s24 + $0x8] sm:$0xf] }
  0x14   : > { %v1043_v15 = vcombine.low %v1334_v8, %v1339_v12  ;;  %v170_v16 = vshrl.u32 %v1009_v10, 16  ;;  %v172_v17 = vshll.u32 %v1009_v10, 16  ;;  %v659_v40 = vld [vmem:[%s1326_s24 + $0xc] sm:$0xf]  ;;  %v660_v43 = vld [vmem:[%s1326_s24 + $0x10] sm:$0x3]  ;;  %v1024_v45 = vcombine.low %v317_v37, %v146_v7 }
  0x15   : > { %v177_v18 = vshll.u32 %v1342_v13, 16  ;;  %v181_v19 = vshrl.u32 %v1342_v13, 16  ;;  %v496_v20 = vshrl.u32 %v1344_v14, 16  ;;  %v499_v21 = vshll.u32 %v1344_v14, 16  ;;  %v749_v49 = vld [vmem:[%s1326_s24 + $0x10] sm:$0x7] }
  0x16   : > { %v174_v22 = vrot.slane %v172_v17, 1  ;;  %v504_v23 = vshrl.u32 %v1043_v15, 16  ;;  %v507_v24 = vshll.u32 %v1043_v15, 16  ;;  %v1062_v46 = vcombine.low %v657_v38, %v1363_v39  ;;  %v400_v60 = vld [vmem:[%s1326_s24 + $0xc] sm:$0x7] }
  0x17   : > { %v179_v25 = vrot.slane %v177_v18, 1  ;;  %v498_v26 = vrot.slane %v496_v20, 3  ;;  %v501_v27 = vrot.slane %v499_v21, 4  ;;  %v1063_v47 = vcombine.low %v659_v40, %v660_v43  ;;  %v845_v17 = vld [vmem:[%s1326_s24 + $0x4] sm:$0x8] }
  0x18   : > { %v175_v28 = vor.u32 %v174_v22, %v170_v16  ;;  %v506_v29 = vrot.slane %v504_v23, 3  ;;  %v509_v30 = vrot.slane %v507_v24, 4  ;;  %v327_v50 = vrot.slane %v1024_v45, 1  ;;  %v1268_v16 = vld [vmem:[%s1443_s1 + $0x78] sm:$0xff]   ;;  %v1271_v18 = vld [vmem:[%s1443_s1 + $0x80] sm:$0xff]   ;;  %v1272_v22 = vld [vmem:[%s1443_s1 + $0x88] sm:$0xff]  }
  0x19   : > { %v183_v31 = vor.u32 %v181_v19, %v179_v25  ;;  %v502_v32 = vor.u32 %v501_v27, %v498_v26  ;;  %v328_v51 = vrot.slane %v1342_v13, 1  ;;  %v677_v52 = vrot.slane %v1062_v46, 2  ;;  %v1269_v13 = vld [vmem:[%s1443_s1 + $0x38] sm:$0xff]  }
  0x1a   : > { %v180_v33 = vsel %vm168_vm0, %v175_v28, %v179_v25  ;;  %v510_v34 = vor.u32 %v509_v30, %v506_v29  ;;  %v678_v53 = vrot.slane %v1063_v47, 2  ;;  %v1385_v55 = vcombine.low %v659_v40, %v749_v49 }
  0x1b   : > { %1134 = vmatprep.mubr.msk.bf16.mxu1 %vm196_vm2, %v180_v33  ;;  %v1053_v56 = vcombine.low %v1339_v12, %v1339_v12  ;;  %v329_v58 = vsel %vm326_vm3, %v327_v50, %v328_v51  ;;  %v760_v62 = vshrl.u32 %v1062_v46, 16  ;;  %v763_v63 = vshll.u32 %v1062_v46, 16 }
  0x1c   : > { %v511_v41 = vsel %vm494_vm1, %v502_v32, %v510_v34  ;;  %1135 = vmatmul.mubr.msk.bf16.vlgmr.msra.gmra.mrb[0].mxu1 %vm196_vm2, %v183_v31  ;;  %v679_v59 = vsel %vm676_vm4, %v677_v52, %v678_v53  ;;  %v768_v0 = vshrl.u32 %v1385_v55, 16  ;;  %v771_v1 = vshll.u32 %v1385_v55, 16 }
  0x1d   : > { %1166 = vmatprep.mubr.msk.bf16.mxu0 %vm196_vm2, %v511_v41  ;;  %1139 = vmatpush3.bf16.msra.mxu1 %v1253_v5  ;;  %v1034_v3 = vcombine.low %v1334_v8, %v400_v60  ;;  %v762_v5 = vrot.slane %v760_v62, 2  ;;  %v765_v6 = vrot.slane %v763_v63, 3  ;;  %v1081_v19 = vcombine.low %v845_v17, %v1363_v39 }
  0x1e   : > { %1167 = vmatmul.mubr.msk.bf16.vlgmr.msra.gmra.mrb[0].mxu0 %vm196_vm2, %v510_v34  ;;  %1140 = vmatprep.subr.bf16.mxu1 %v1255_v36  ;;  %v770_v7 = vrot.slane %v768_v0, 2  ;;  %v773_v9 = vrot.slane %v771_v1, 3  ;;  %v855_v21 = vrot.slane %v1385_v55, 3 }
  0x1f   : > { %1171 = vmatpush3.bf16.msra.mxu0 %v1252_v4  ;;  %1142 = vmatprep.mubr.msk.bf16.mxu1 %vm196_vm2, %v1009_v10  ;;  %v1266_v4 = vld [vmem:[%s1443_s1 + $0x70] sm:$0xff]   ;;  %v413_v10 = vrot.slane %v1344_v14, 3  ;;  %v414_v11 = vrot.slane %v1034_v3, 3  ;;  %v766_v8 = vor.u32 %v765_v6, %v762_v5  ;;  %v854_v20 = vrot.slane %v1081_v19, 3 }
  0x20   : > { %1172 = vmatprep.subr.bf16.mxu0 %v1254_v35  ;;  %1174 = vmatprep.mubr.msk.bf16.mxu0 %vm196_vm2, %v1052_v42  ;;  %v774_v12 = vor.u32 %v773_v9, %v770_v7 }
  0x21   : > { %1141 = vmatpush3.bf16.msra.mxu1 %v1255_v36  ;;  %v415_v15 = vsel %vm412_vm5, %v413_v10, %v414_v11  ;;  %v856_v23 = vsel %vm412_vm5, %v854_v20, %v855_v21 }
  0x22   : > { %1146 = vmatprep.subr.bf16.mxu1 %v1259_v44  ;;  %v775_v14 = vsel %vm758_vm6, %v766_v8, %v774_v12 }
  0x23   : > { %1173 = vmatpush3.bf16.msra.mxu0 %v1254_v35 }
  0x24   : > { %1178 = vmatprep.subr.bf16.mxu0 %v1257_v48 }
  0x28   : > { %1143 = vmatmul.mubr.msk.bf16.vlgmr.msra.gmra.mrb[0].mxu1 %vm196_vm2, %v1015_v54 }
  0x29   : > { %1147 = vmatpush3.bf16.msra.mxu1 %v1259_v44  ;;  %1150 = vmatprep.mubr.msk.bf16.mxu1 %vm196_vm2, %v329_v58 }
  0x2a   : > { %1175 = vmatmul.mubr.msk.bf16.vlgmr.msra.gmra.mrb[0].mxu0 %vm196_vm2, %v1053_v56  ;;  %1148 = vmatprep.subr.bf16.mxu1 %v1261_v57 }
  0x2b   : > { %1179 = vmatpush3.bf16.msra.mxu0 %v1257_v48  ;;  %1182 = vmatprep.mubr.msk.bf16.mxu0 %vm196_vm2, %v679_v59 }
  0x2c   : > { %1180 = vmatprep.subr.bf16.mxu0 %v1260_v61 }
  0x2d   : > { %1149 = vmatpush3.bf16.msra.mxu1 %v1261_v57 }
  0x2e   : > { %1154 = vmatprep.subr.bf16.mxu1 %v1267_v2 }
  0x2f   : > { %1181 = vmatpush3.bf16.msra.mxu0 %v1260_v61 }
  0x30   : > { %1186 = vmatprep.subr.bf16.mxu0 %v1266_v4 }
  0x34   : > { %1151 = vmatmul.mubr.msk.bf16.vlgmr.msra.gmra.mrb[0].mxu1 %vm196_vm2, %v328_v51 }
  0x35   : > { %1155 = vmatpush3.bf16.msra.mxu1 %v1267_v2  ;;  %1158 = vmatprep.mubr.msk.bf16.mxu1 %vm196_vm2, %v415_v15 }
  0x36   : > { %1183 = vmatmul.mubr.msk.bf16.vlgmr.msra.gmra.mrb[0].mxu0 %vm196_vm2, %v678_v53  ;;  %1156 = vmatprep.subr.bf16.mxu1 %v1269_v13 }
  0x37   : > { %1187 = vmatpush3.bf16.msra.mxu0 %v1266_v4  ;;  %1190 = vmatprep.mubr.msk.bf16.mxu0 %vm196_vm2, %v775_v14 }
  0x38   : > { %1188 = vmatprep.subr.bf16.mxu0 %v1268_v16 }
  0x39   : > { %1157 = vmatpush3.bf16.msra.mxu1 %v1269_v13 }
  0x3b   : > { %1189 = vmatpush3.bf16.msra.mxu0 %v1268_v16 }
  0x3c   : > { %1194 = vmatprep.subr.bf16.mxu0 %v1271_v18 }
  0x40   : > { %1159 = vmatmul.mubr.msk.bf16.vlgmr.msra.gmra.mrb[0].mxu1 %vm196_vm2, %v414_v11 }
  0x42   : > { %1191 = vmatmul.mubr.msk.bf16.vlgmr.msra.gmra.mrb[0].mxu0 %vm196_vm2, %v774_v12 }
  0x43   : > { %1195 = vmatpush3.bf16.msra.mxu0 %v1271_v18  ;;  %1198 = vmatprep.mubr.msk.bf16.mxu0 %vm196_vm2, %v856_v23 }
  0x44   : > { %1196 = vmatprep.subr.bf16.mxu0 %v1272_v22 }
  0x47   : > { %1197 = vmatpush3.bf16.msra.mxu0 %v1272_v22 }
  0x4e   : > { %1199 = vmatmul.mubr.msk.bf16.vlgmr.msra.gmra.mrb[0].mxu0 %vm196_vm2, %v855_v21 }
 0x113   : > { %v1160_v24 = vpop.f32.mrb[0].mxu1 }
 0x114   : > { %v468_v25 = vpop.f32.mrb[1].mxu1 }
 0x115   : > { %v1161_v26 = vpop.f32.mrb[2].mxu1 }
 0x116   : > { %v471_v27 = vpop.f32.mrb[3].mxu1 }
 0x121   : > { %v1200_v28 = vpop.f32.mrb[0].mxu0 }
 0x122   : > { %v1202_v29 = vadd.f32 %v1200_v28, %v1160_v24  ;;  %v909_v30 = vpop.f32.mrb[1].mxu0 }
 0x123   : > { %v1203_v31 = vadd.f32 %v909_v30, %v468_v25  ;;  %v1201_v32 = vpop.f32.mrb[2].mxu0 }
 0x124   : > { %v1093_v33 = vpack.c.bf16 %v1202_v29, %v1202_v29  ;;  %v912_v34 = vpop.f32.mrb[3].mxu0 }
 0x125   : > { %v1091_v35 = vpack.c.bf16 %v1203_v31, %v1203_v31  ;;  %v1204_v36 = vadd.f32 %v912_v34, %v471_v27 }
 0x126   : > { %942 = vst.msk [vmem:[%s143_s28 + $0x8] sm:$0xf] %vm939_vm7, %v1093_v33 }
 0x127   : > { %940 = vst.msk [vmem:[%s143_s28] sm:$0xf] %vm939_vm7, %v1091_v35  ;;  %v1092_v37 = vpack.c.bf16 %v1204_v36, %v1204_v36 }
 0x129   : > { %941 = vst.msk [vmem:[%s143_s28 + $0x4] sm:$0xf] %vm939_vm7, %v1092_v37 }
 0x12a PF: > { %s12_s9 = sadd.s32 1, %s1280_s9  }
 0x12b   : > { %p9_p4 = scmp.ge.s32.totalorder %s12_s9, 4  }
 0x12d   :  { %11 = sbr.rel (!%p9_p4) target bundleno = 1 (0x1), region = 66 }

// kernel: densenet_forward.31
= control target key start
LH: loop header
LB: loop body
LE: loop exit
PB: predicated region body
PF: predicated region fallthrough
CT: control target
= control target key end

     0   :  { %vm124_vm0 = vcmask 1043456   ;;  %vm183_vm1 = vcmask 130048   ;;  %vm117_vm2 = vcmask 64512   ;;  %vm354_vm3 = vcmask 125952   ;;  %s581_s9 = inlined_call_operand.vmem [shape: bf16[16,16], index: 9, kind: input, shape index: {}]   ;;  %s582_s0 = inlined_call_operand.vmem [shape: bf16[32,16], index: 0, kind: input, shape index: {}]   ;;  %s583_s3 = inlined_call_operand.vmem [shape: f32[1,16], index: 3, kind: input, shape index: {}]   ;;  %s584_s11 = inlined_call_operand.vmem [shape: bf16[8,16], index: 11, kind: input, shape index: {}]   ;;  %s585_s10 = inlined_call_operand.vmem [shape: bf16[8,16], index: 10, kind: input, shape index: {}]   ;;  %s586_s6 = inlined_call_operand.vmem [shape: f32[1,16], index: 6, kind: input, shape index: {}]   ;;  %s587_s1 = inlined_call_operand.vmem [shape: bf16[32,8], index: 1, kind: input, shape index: {}]   ;;  %s588_s4 = inlined_call_operand.vmem [shape: f32[1,8], index: 4, kind: input, shape index: {}]   ;;  %s589_s7 = inlined_call_operand.vmem [shape: f32[1,8], index: 7, kind: input, shape index: {}]   ;;  %s590_s2 = inlined_call_operand.vmem [shape: bf16[32,8], index: 2, kind: input, shape index: {}]   ;;  %s591_s5 = inlined_call_operand.vmem [shape: f32[1,8], index: 5, kind: input, shape index: {}]   ;;  %s592_s8 = inlined_call_operand.vmem [shape: f32[1,8], index: 8, kind: input, shape index: {}]   ;;  %s593_s12 = inlined_call_operand.vmem [shape: bf16[32,16], index: 12, kind: output, shape index: {}]  }
   0x1   :  { %v448_v0 = vld [vmem:[%s581_s9] sm:$0xff]   ;;  %v408_v2 = vld [vmem:[%s582_s0 + $0x8] sm:$0xff]  }
   0x2   :  { %v385_v1 = vld [vmem:[%s582_s0] sm:$0xff]   ;;  %426 = vmatprep.subr.bf16.mxu0 %v448_v0  ;;  %v390_v6 = vunpack.c.l.bf16 %v408_v2  ;;  %v391_v7 = vunpack.c.h.bf16 %v408_v2  ;;  %v409_v14 = vld [vmem:[%s587_s1 + $0x8] sm:$0xff]  }
   0x3   :  { %v363_v3 = vld [vmem:[%s583_s3] ss:$0 sm:$0xff]  ;;  %v386_v4 = vunpack.c.l.bf16 %v385_v1  ;;  %v387_v5 = vunpack.c.h.bf16 %v385_v1  ;;  %427 = vmatpush3.bf16.msra.mxu0 %v448_v0  ;;  %v398_v22 = vunpack.c.l.bf16 %v409_v14  ;;  %v399_v23 = vunpack.c.h.bf16 %v409_v14  ;;  %v410_v42 = vld [vmem:[%s590_s2 + $0x8] sm:$0xff]  }
   0x4   :  { %v275_v8 = vld [vmem:[%s584_s11] sm:$0xf]  ;;  %v59_v17 = vmul.f32 %v390_v6, %v363_v3  ;;  %v60_v18 = vmul.f32 %v391_v7, %v363_v3  ;;  %v406_v53 = vunpack.c.l.bf16 %v410_v42  ;;  %v407_v54 = vunpack.c.h.bf16 %v410_v42 }
   0x5   :  { %v116_v9 = vld [vmem:[%s585_s10] sm:$0xf]  ;;  %v283_v11 = vsel %vm124_vm0, %v275_v8, 0  ;;  %v57_v15 = vmul.f32 %v386_v4, %v363_v3  ;;  %v58_v16 = vmul.f32 %v387_v5, %v363_v3  ;;  %447 = vmatprep.subr.msk.bf16.mxu0 %vm124_vm0, %v275_v8 }
   0x6   :  { %v364_v10 = vld [vmem:[%s586_s6] ss:$0 sm:$0xff]  ;;  %446 = vmatprep.subr.msk.bf16.mxu1 %vm124_vm0, %v116_v9  ;;  %v126_v12 = vsel %vm124_vm0, %v116_v9, 0 }
   0x7   :  { %v393_v13 = vld [vmem:[%s587_s1] sm:$0xff]   ;;  %421 = vmatpush3.bf16.msra.mxu1 %v126_v12  ;;  %v68_v24 = vadd.f32 %v364_v10, %v57_v15  ;;  %v69_v25 = vadd.f32 %v364_v10, %v58_v16  ;;  %v70_v26 = vadd.f32 %v364_v10, %v59_v17  ;;  %v71_v27 = vadd.f32 %v364_v10, %v60_v18 }
   0x8   :  { %v365_v19 = vld [vmem:[%s588_s4] ss:$0 sm:$0xff]  ;;  %v394_v20 = vunpack.c.l.bf16 %v393_v13  ;;  %v395_v21 = vunpack.c.h.bf16 %v393_v13 }
   0x9   :  { %v366_v28 = vld [vmem:[%s589_s7] ss:$0 sm:$0xff]  ;;  %v97_v31 = vmul.f32 %v398_v22, %v365_v19  ;;  %v98_v32 = vmul.f32 %v399_v23, %v365_v19  ;;  %v72_v34 = vmax.f32 %v68_v24, 0.0  ;;  %v73_v35 = vmax.f32 %v69_v25, 0.0 }
   0xa   :  { %v95_v29 = vmul.f32 %v394_v20, %v365_v19  ;;  %v96_v30 = vmul.f32 %v395_v21, %v365_v19  ;;  %v401_v33 = vld [vmem:[%s590_s2] sm:$0xff]   ;;  %v74_v36 = vmax.f32 %v70_v26, 0.0  ;;  %v75_v37 = vmax.f32 %v71_v27, 0.0 }
   0xb   :  { %v108_v40 = vadd.f32 %v366_v28, %v97_v31  ;;  %v109_v41 = vadd.f32 %v366_v28, %v98_v32  ;;  %v372_v43 = vld [vmem:[%s591_s5] ss:$0 sm:$0xff]  ;;  %v76_v44 = vpack.c.bf16 %v73_v35, %v72_v34  ;;  %v402_v46 = vunpack.c.l.bf16 %v401_v33 }
   0xc   :  { %v106_v38 = vadd.f32 %v366_v28, %v95_v29  ;;  %v107_v39 = vadd.f32 %v366_v28, %v96_v30  ;;  %v77_v45 = vpack.c.bf16 %v75_v37, %v74_v36  ;;  %v403_v47 = vunpack.c.h.bf16 %v401_v33  ;;  %v373_v52 = vld [vmem:[%s592_s8] ss:$0 sm:$0xff] }
   0xd   :  { %v112_v50 = vmax.f32 %v108_v40, 0.0  ;;  %v113_v51 = vmax.f32 %v109_v41, 0.0  ;;  %428 = vmatprep.mubr.msk.bf16.mxu0 %vm183_vm1, %v76_v44  ;;  %v254_v55 = vmul.f32 %v402_v46, %v372_v43  ;;  %v256_v61 = vmul.f32 %v406_v53, %v372_v43 }
   0xe   :  { %v110_v48 = vmax.f32 %v106_v38, 0.0  ;;  %v111_v49 = vmax.f32 %v107_v39, 0.0  ;;  %v255_v56 = vmul.f32 %v403_v47, %v372_v43  ;;  %429 = vmatmul.mubr.msk.bf16.vlgmr.msra.gmra.mrb[0].mxu0 %vm183_vm1, %v77_v45  ;;  %v257_v62 = vmul.f32 %v407_v54, %v372_v43 }
   0xf   :  { %v115_v58 = vpack.c.bf16 %v113_v51, %v112_v50  ;;  %433 = vmatpush3.bf16.msra.mxu0 %v283_v11  ;;  %v265_v59 = vadd.f32 %v373_v52, %v254_v55  ;;  %v267_v1 = vadd.f32 %v373_v52, %v256_v61 }
  0x10   :  { %v114_v57 = vpack.c.bf16 %v111_v49, %v110_v48  ;;  %v266_v60 = vadd.f32 %v373_v52, %v255_v56  ;;  %v268_v2 = vadd.f32 %v373_v52, %v257_v62 }
  0x11   :  { %v269_v63 = vmax.f32 %v265_v59, 0.0  ;;  %v271_v4 = vmax.f32 %v267_v1, 0.0 }
  0x12   :  { %422 = vmatprep.mubr.msk.bf16.mxu1 %vm117_vm2, %v114_v57  ;;  %v270_v0 = vmax.f32 %v266_v60, 0.0  ;;  %v272_v5 = vmax.f32 %v268_v2, 0.0 }
  0x13   :  { %423 = vmatmul.mubr.msk.bf16.vlgmr.msra.gmra.mrb[0].mxu1 %vm117_vm2, %v115_v58 }
  0x14   :  { %v273_v3 = vpack.c.bf16 %v270_v0, %v269_v63  ;;  %v274_v6 = vpack.c.bf16 %v272_v5, %v271_v4 }
  0x16   :  { %434 = vmatprep.mubr.msk.bf16.mxu0 %vm117_vm2, %v273_v3 }
  0x1a   :  { %435 = vmatmul.mubr.msk.bf16.vlgmr.msra.gmra.mrb[0].mxu0 %vm117_vm2, %v274_v6 }
  0xe6   :  { %v424_v7 = vpop.f32.mrb[0].mxu1 }
  0xe7   :  { %v162_v8 = vpop.f32.mrb[1].mxu1 }
  0xe8   :  { %v425_v9 = vpop.f32.mrb[2].mxu1 }
  0xe9   :  { %v165_v10 = vpop.f32.mrb[3].mxu1 }
  0xed   :  { %v436_v11 = vpop.f32.mrb[0].mxu0 }
  0xee   :  { %v438_v12 = vadd.f32 %v436_v11, %v424_v7  ;;  %v319_v13 = vpop.f32.mrb[1].mxu0 }
  0xef   :  { %v439_v14 = vadd.f32 %v319_v13, %v162_v8  ;;  %v437_v15 = vpop.f32.mrb[2].mxu0 }
  0xf0   :  { %v382_v16 = vpack.c.bf16 %v438_v12, %v438_v12  ;;  %v440_v17 = vadd.f32 %v437_v15, %v425_v9  ;;  %v322_v18 = vpop.f32.mrb[3].mxu0 }
  0xf1   :  { %v380_v19 = vpack.c.bf16 %v439_v14, %v439_v14  ;;  %v441_v20 = vadd.f32 %v322_v18, %v165_v10 }
  0xf2   :  { %357 = vst.msk [vmem:[%s593_s12 + $0x8] sm:$0xf] %vm354_vm3, %v382_v16  ;;  %v383_v21 = vpack.c.bf16 %v440_v17, %v440_v17 }
  0xf3   :  { %355 = vst.msk [vmem:[%s593_s12] sm:$0xf] %vm354_vm3, %v380_v19  ;;  %v381_v22 = vpack.c.bf16 %v441_v20, %v441_v20 }
  0xf4   :  { %358 = vst.msk [vmem:[%s593_s12 + $0xc] sm:$0xf] %vm354_vm3, %v383_v21 }
  0xf5   :  { %356 = vst.msk [vmem:[%s593_s12 + $0x4] sm:$0xf] %vm354_vm3, %v381_v22 }

// kernel: densenet_forward.32
= control target key start
LH: loop header
LB: loop body
LE: loop exit
PB: predicated region body
PF: predicated region fallthrough
CT: control target
= control target key end

     0   :  { %vm30_vm0 = vcmask 125952   ;;  %s76_s0 = inlined_call_operand.vmem [shape: bf16[8,16], index: 0, kind: input, shape index: {}]   ;;  %s77_s1 = inlined_call_operand.vmem [shape: bf16[8,16], index: 1, kind: input, shape index: {}]   ;;  %s78_s2 = inlined_call_operand.vmem [shape: bf16[8,16], index: 2, kind: input, shape index: {}]   ;;  %s79_s3 = inlined_call_operand.vmem [shape: bf16[8,16], index: 3, kind: input, shape index: {}]   ;;  %s80_s4 = inlined_call_operand.vmem [shape: bf16[8,16], index: 4, kind: output, shape index: {}]  }
   0x1   :  { %v17_v0 = vld [vmem:[%s76_s0] sm:$0xf] }
   0x2   :  { %v19_v1 = vld [vmem:[%s77_s1] sm:$0xf]  ;;  %v18_v3 = vunpack.c.l.bf16 %v17_v0 }
   0x3   :  { %v22_v2 = vld [vmem:[%s78_s2] sm:$0xf]  ;;  %v20_v4 = vunpack.c.l.bf16 %v19_v1 }
   0x4   :  { %v23_v5 = vunpack.c.l.bf16 %v22_v2  ;;  %v25_v6 = vld [vmem:[%s79_s3] sm:$0xf] }
   0x5   :  { %v21_v7 = vadd.f32 %v20_v4, %v18_v3  ;;  %v26_v8 = vunpack.c.l.bf16 %v25_v6 }
   0x7   :  { %v24_v9 = vadd.f32 %v23_v5, %v21_v7 }
   0x9   :  { %v27_v10 = vadd.f32 %v26_v8, %v24_v9 }
   0xb   :  { %v28_v11 = vmul.f32 0.25, %v27_v10 }
   0xd   :  { %v29_v12 = vpack.c.bf16 %v28_v11, %v28_v11 }
   0xf   :  { %31 = vst.msk [vmem:[%s80_s4] sm:$0xf] %vm30_vm0, %v29_v12 }

// kernel: densenet_forward.33
= control target key start
LH: loop header
LB: loop body
LE: loop exit
PB: predicated region body
PF: predicated region fallthrough
CT: control target
= control target key end

     0   :  { %v137_v0 = vmov 0.0   ;;  %vm138_vm0 = vmmov 0   ;;  %vm52_vm1 = vcmask 130048   ;;  %vm114_vm2 = vcmask 257024   ;;  %s195_s3 = inlined_call_operand.vmem [shape: bf16[16,32], index: 3, kind: input, shape index: {}]   ;;  %s196_s0 = inlined_call_operand.vmem [shape: bf16[8,16], index: 0, kind: input, shape index: {}]   ;;  %s197_s1 = inlined_call_operand.vmem [shape: f32[1,16], index: 1, kind: input, shape index: {}]   ;;  %s198_s2 = inlined_call_operand.vmem [shape: f32[1,16], index: 2, kind: input, shape index: {}]   ;;  %s199_s4 = inlined_call_operand.vmem [shape: f32[1,32], index: 4, kind: input, shape index: {}]   ;;  %s200_s5 = inlined_call_operand.vmem [shape: f32[1,32], index: 5, kind: input, shape index: {}]   ;;  %s201_s6 = inlined_call_operand.vmem [shape: bf16[8,32], index: 6, kind: output, shape index: {}]  }
   0x1   :  { %128 = vmatprep.subr.bf16.mxu0 %v137_v0  ;;  %v136_v1 = vld [vmem:[%s195_s3] sm:$0xff]   ;;  %130 = vmatprep.mubr.msk.bf16.mxu0 %vm138_vm0, %v137_v0 }
   0x2   :  { %v24_v2 = vld [vmem:[%s196_s0] sm:$0xf]  ;;  %129 = vmatpush3.bf16.msra.mxu0 %v136_v1 }
   0x3   :  { %v120_v3 = vld [vmem:[%s197_s1] ss:$0 sm:$0xff]  ;;  %v25_v4 = vunpack.c.l.bf16 %v24_v2 }
   0x4   :  { %v121_v5 = vld [vmem:[%s198_s2] ss:$0 sm:$0xff] }
   0x5   :  { %v33_v6 = vmul.f32 %v120_v3, %v25_v4  ;;  %v124_v10 = vld [vmem:[%s199_s4] ss:$0 sm:$0xff] }
   0x6   :  { %v125_v12 = vld [vmem:[%s200_s5] ss:$0 sm:$0xff] }
   0x7   :  { %v41_v7 = vadd.f32 %v121_v5, %v33_v6 }
   0x9   :  { %v42_v8 = vmax.f32 %v41_v7, 0.0 }
   0xb   :  { %v43_v9 = vpack.c.bf16 %v42_v8, %v42_v8 }
   0xd   :  { %131 = vmatmul.mubr.msk.bf16.vlgmr.msra.gmra.mrb[0].mxu0 %vm52_vm1, %v43_v9 }
  0xe0   :  { %v90_v11 = vpop.f32.mrb[0].mxu0 }
  0xe1   :  { %v103_v13 = vmul.f32 %v124_v10, %v90_v11  ;;  %v132_v14 = vpop.f32.mrb[1].mxu0 }
  0xe2   :  { %v93_v15 = vpop.f32.mrb[2].mxu0 }
  0xe3   :  { %v111_v16 = vadd.f32 %v125_v12, %v103_v13  ;;  %v133_v17 = vpop.f32.mrb[3].mxu0 }
  0xe5   :  { %v112_v18 = vmax.f32 %v111_v16, 0.0 }
  0xe7   :  { %v113_v19 = vpack.c.bf16 %v112_v18, %v112_v18 }
  0xe9   :  { %115 = vst.msk [vmem:[%s201_s6] sm:$0xf] %vm114_vm2, %v113_v19 }

// kernel: densenet_forward.37
= control target key start
LH: loop header
LB: loop body
LE: loop exit
PB: predicated region body
PF: predicated region fallthrough
CT: control target
= control target key end

     0   :  { %s118_s0 = inlined_call_operand.vmem [shape: bf16[8,32], index: 0, kind: input, shape index: {}]   ;;  %s119_s1 = inlined_call_operand.vmem [shape: f32[1,32], index: 1, kind: input, shape index: {}]   ;;  %s120_s2 = inlined_call_operand.vmem [shape: f32[1,32], index: 2, kind: input, shape index: {}]   ;;  %s121_s3 = inlined_call_operand.hbm [shape: f32[8,32], index: 3, kind: output, shape index: {}]  }
   0x1   :  { %v15_v0 = vld [vmem:[%s118_s0] sm:$0xf] }
   0x2   :  { %v49_v1 = vld [vmem:[%s119_s1] ss:$0 sm:$0xff]  ;;  %v16_v2 = vunpack.c.l.bf16 %v15_v0 }
   0x3   :  { %8 = vsyncpa [#allocation3], 0  ;;  %v50_v3 = vld [vmem:[%s120_s2] ss:$0 sm:$0xff]  ;;  %s76_s18 = smov [#allocation2]   ;;  %vm33_vm0 = vcmask 261120  }
   0x4   :  { %s41_s19 = sshll.u32 %s76_s18, 4  ;;  %v24_v4 = vmul.f32 %v49_v1, %v16_v2  ;;  %s42_s19 = int_to_ptr.vmem [resolvable:$true] %s41_s19 }
   0x5   :  { %s52_s20 = scalar_lea.vmem %s42_s19, 128  ;;  %p57_p1 = scmp.lt.s32.totalorder %s42_s19, %s42_s19 }
   0x6   :  { %v32_v5 = vadd.f32 %v50_v3, %v24_v4  ;;  %p53_p0 = scmp.ne.s32.totalorder %s42_s19, %s52_s20  ;;  %p58_p2 = scmp.lt.s32.totalorder %s52_s20, %s52_s20 }
   0x8   :  { %34 = vst.msk [vmem:[#allocation2] sm:$0xff] %vm33_vm0, %v32_v5  ;;  %p59_p3 = por %p58_p2, %p57_p1 }
   0xa   :  { %p60_p4 = pnand %p59_p3, %p53_p0 }
   0xc   :  { %63 = shalt.err (!%p60_p4)
}
   0xd   :  { %s64_s21 = scalar_lea.hbm %s121_s3, 128 }
   0xe   :  { %p65_p5 = scmp.ne.s32.totalorder %s121_s3, %s64_s21  ;;  %p68_p6 = scmp.lt.u32.totalorder %s64_s21, %s121_s3 }
  0x10   :  { %p70_p7 = pnand %p68_p6, %p65_p5 }
  0x12   :  { %73 = shalt.err (!%p70_p7)
}
  0x13   :  { %44 = dma.vmem_to_hbm [thread:$0]  %s42_s19, 128, %s121_s3, [#allocation3]  }
  0x14   :  { %74 = dma.done.wait [#allocation3], 128  }
  0x15   :  { %75 = vsyncadd [#allocation3], 4294967168 }
  0x16   :  { %48 = vsyncpa [#allocation3], 1 }

// kernel: densenet_forward.34
= control target key start
LH: loop header
LB: loop body
LE: loop exit
PB: predicated region body
PF: predicated region fallthrough
CT: control target
= control target key end

     0   :  { %s1074_s9 = smov 0   ;;  %s1211_s0 = inlined_call_operand.vmem [shape: bf16[2,20,32], index: 0, kind: input, shape index: {}]   ;;  %s1212_s1 = inlined_call_operand.vmem [shape: bf16[9,32,8], index: 1, kind: input, shape index: {}]   ;;  %s1213_s2 = inlined_call_operand.vmem [shape: bf16[2,8,8], index: 2, kind: output, shape index: {}]  }
   0x1 LB: > { %s810_s10 = sadd.s32 4294967295, %s1055_s9   ;;  %p814_p0 = scmp.ge.s32.totalorder %s1055_s9, 1  ;;  %s1055_s9 = sphi %s1074_s9, %s12_s9  }
   0x2   : > { %p112_p1 = scmp.lt.s32.totalorder %s1055_s9, 3 }
   0x4   : > { %p113_p2 = pnand %p814_p0, %p112_p1 }
   0x5   : > { %v1024_v0 = vld [vmem:[%s1212_s1 + $0x40] sm:$0xff] (!%p113_p2)   ;;  %v1057_v1 = vmov (!%p113_p2), 0.0   ;;  %v1025_v2 = vld [vmem:[%s1212_s1 + $0x10] sm:$0xff] (!%p113_p2)   ;;  %v1026_v3 = vld [vmem:[%s1212_s1 + $0x48] sm:$0xff] (!%p113_p2)   ;;  %vm1058_vm0 = vmmov (!%p113_p2), 0   ;;  %p133_p3 = scmp.lt.s32.totalorder (!%p113_p2), %s810_s10, 1 }
   0x6   : > { %116 = sbr.rel (%p113_p2) target bundleno = 292 (0x124), region = 28  ;;  %944 = vmatprep.subr.bf16.mxu0 (!%p113_p2), %v1057_v1  ;;  %912 = vmatprep.subr.bf16.mxu1 (!%p113_p2), %v1057_v1  ;;  %v1027_v4 = vld [vmem:[%s1212_s1 + $0x18] sm:$0xff] (!%p113_p2)   ;;  %vm178_vm1 = vcmask (!%p113_p2), 261120   ;;  %v1030_v18 = vld [vmem:[%s1212_s1 + $0x50] sm:$0xff] (!%p113_p2)   ;;  %v1031_v19 = vld [vmem:[%s1212_s1] sm:$0xff] (!%p113_p2)   ;;  %vm755_vm2 = vcmask (!%p113_p2), 60416  }
   0x7   : > { %945 = vmatpush3.bf16.msra.mxu0 (!%p113_p2), %v1024_v0  ;;  %916 = vmatprep.mubr.msk.bf16.mxu1 (!%p113_p2), %vm1058_vm0, %v1057_v1  ;;  %v1032_v22 = vld [vmem:[%s1212_s1 + $0x58] sm:$0xff] (!%p113_p2)   ;;  %v1033_v23 = vld [vmem:[%s1212_s1 + $0x8] sm:$0xff] (!%p113_p2)   ;;  %v1036_v27 = vld [vmem:[%s1212_s1 + $0x20] sm:$0xff] (!%p113_p2)  }
   0x8   : > { %913 = vmatpush3.bf16.msra.mxu1 (!%p113_p2), %v1025_v2  ;;  %946 = vmatprep.subr.bf16.mxu0 (!%p113_p2), %v1057_v1  ;;  %v1035_v28 = vld [vmem:[%s1212_s1 + $0x60] sm:$0xff] (!%p113_p2)   ;;  %v1038_v29 = vld [vmem:[%s1212_s1 + $0x28] sm:$0xff] (!%p113_p2)   ;;  %v1041_v36 = vld [vmem:[%s1212_s1 + $0x30] sm:$0xff] (!%p113_p2)  }
   0x9   : > { %914 = vmatprep.subr.bf16.mxu1 (!%p113_p2), %v1057_v1  ;;  %948 = vmatprep.mubr.msk.bf16.mxu0 (!%p113_p2), %vm1058_vm0, %v1057_v1  ;;  %v1037_v31 = vld [vmem:[%s1212_s1 + $0x68] sm:$0xff] (!%p113_p2)   ;;  %v1040_v39 = vld [vmem:[%s1212_s1 + $0x70] sm:$0xff] (!%p113_p2)   ;;  %v1043_v40 = vld [vmem:[%s1212_s1 + $0x38] sm:$0xff] (!%p113_p2)  }
   0xa   : > { %v1042_v43 = vld [vmem:[%s1212_s1 + $0x78] sm:$0xff] (!%p113_p2)   ;;  %v1046_v49 = vld [vmem:[%s1212_s1 + $0x80] sm:$0xff] (!%p113_p2)   ;;  %v1047_v50 = vld [vmem:[%s1212_s1 + $0x88] sm:$0xff] (!%p113_p2)  }
   0xb   : > { %947 = vmatpush3.bf16.msra.mxu0 (!%p113_p2), %v1026_v3 }
   0xc   : > { %915 = vmatpush3.bf16.msra.mxu1 (!%p113_p2), %v1027_v4  ;;  %952 = vmatprep.subr.bf16.mxu0 (!%p113_p2), %v1057_v1 }
   0xd   : > { %s1215_s10 = smov (!%p133_p3, %s810_s10), 1  ;;  %920 = vmatprep.subr.bf16.mxu1 %v1057_v1 }
   0xe   : > { %s1013_s19 = smul.u32 12, %s1215_s10  ;;  %s816_s26 = sshll.u32 %s1215_s10, 2 }
   0xf   : > { %s141_s29 = scalar_lea.vmem %s1213_s2, %s816_s26 }
  0x10   : > { %s1109_s22 = scalar_lea.vmem %s1211_s0, %s1013_s19 }
  0x11   : > { %v143_v5 = vld [vmem:[%s1109_s22] sm:$0xf]  ;;  %v148_v6 = vld [vmem:[%s1109_s22 + $0x4] sm:$0x1]  ;;  %v614_v34 = vld [vmem:[%s1109_s22 + $0x8] sm:$0x1] }
  0x12   : > { %v1115_v7 = vld [vmem:[%s1109_s22] sm:$0xc]  ;;  %v821_v8 = vcombine.low %v143_v5, %v148_v6  ;;  %v412_v9 = vld [vmem:[%s1109_s22 + $0x4] sm:$0x7] }
  0x13   : > { %v848_v10 = vcombine.low %v1115_v7, %v412_v9  ;;  %v485_v24 = vld [vmem:[%s1109_s22] sm:$0x8]  ;;  %v613_v33 = vld [vmem:[%s1109_s22 + $0x4] sm:$0xf] }
  0x14   : > { %v160_v11 = vshrl.u32 %v821_v8, 16  ;;  %v162_v12 = vshll.u32 %v821_v8, 16  ;;  %v856_v25 = vcombine.low %v485_v24, %v412_v9  ;;  %v277_v30 = vld [vmem:[%s1109_s22] sm:$0xe]  ;;  %v871_v37 = vcombine.low %v613_v33, %v614_v34  ;;  %v551_v38 = vld [vmem:[%s1109_s22 + $0x4] sm:$0xf] }
  0x15   : > { %v422_v13 = vshrl.u32 %v848_v10, 16  ;;  %v425_v14 = vshll.u32 %v848_v10, 16  ;;  %v832_v32 = vcombine.low %v277_v30, %v148_v6  ;;  %v344_v41 = vld [vmem:[%s1109_s22 + $0x4] sm:$0x3] }
  0x16   : > { %v164_v15 = vrot.slane %v162_v12, 1  ;;  %v494_v26 = vrot.slane %v856_v25, 3  ;;  %v628_v42 = vshll.u32 %v871_v37, 16  ;;  %v840_v44 = vcombine.low %v1115_v7, %v344_v41  ;;  %v688_v51 = vld [vmem:[%s1109_s22 + $0x4] sm:$0xe] }
  0x17   : > { %v424_v16 = vrot.slane %v422_v13, 2  ;;  %v427_v17 = vrot.slane %v425_v14, 3  ;;  %v286_v35 = vrot.slane %v832_v32, 1  ;;  %v626_v45 = vshrl.u32 %v871_v37, 16 }
  0x18   : > { %v165_v20 = vor.u32 %v164_v15, %v160_v11  ;;  %v630_v46 = vrot.slane %v628_v42, 1  ;;  %v355_v47 = vrot.slane %v840_v44, 2  ;;  %v879_v52 = vcombine.low %v688_v51, %v614_v34 }
  0x19   : > { %v428_v21 = vor.u32 %v427_v17, %v424_v16 }
  0x1a   : > { %917 = vmatmul.mubr.msk.bf16.vlgmr.msra.gmra.mrb[0].mxu1 %vm178_vm1, %v165_v20  ;;  %v631_v48 = vor.u32 %v630_v46, %v626_v45  ;;  %v697_v53 = vrot.slane %v879_v52, 1 }
  0x1b   : > { %949 = vmatmul.mubr.msk.bf16.vlgmr.msra.gmra.mrb[0].mxu0 %vm178_vm1, %v428_v21  ;;  %921 = vmatpush3.bf16.msra.mxu1 %v1031_v19 }
  0x1c   : > { %953 = vmatpush3.bf16.msra.mxu0 %v1030_v18  ;;  %922 = vmatprep.subr.bf16.mxu1 %v1057_v1 }
  0x1d   : > { %954 = vmatprep.subr.bf16.mxu0 %v1057_v1  ;;  %924 = vmatprep.mubr.msk.bf16.mxu1 %vm1058_vm0, %v1057_v1 }
  0x1e   : > { %956 = vmatprep.mubr.msk.bf16.mxu0 %vm1058_vm0, %v1057_v1 }
  0x1f   : > { %923 = vmatpush3.bf16.msra.mxu1 %v1033_v23 }
  0x20   : > { %955 = vmatpush3.bf16.msra.mxu0 %v1032_v22  ;;  %928 = vmatprep.subr.bf16.mxu1 %v1057_v1 }
  0x21   : > { %960 = vmatprep.subr.bf16.mxu0 %v1057_v1 }
  0x26   : > { %925 = vmatmul.mubr.msk.bf16.vlgmr.msra.gmra.mrb[0].mxu1 %vm178_vm1, %v143_v5 }
  0x27   : > { %957 = vmatmul.mubr.msk.bf16.vlgmr.msra.gmra.mrb[0].mxu0 %vm178_vm1, %v494_v26  ;;  %929 = vmatpush3.bf16.msra.mxu1 %v1036_v27 }
  0x28   : > { %961 = vmatpush3.bf16.msra.mxu0 %v1035_v28  ;;  %930 = vmatprep.subr.bf16.mxu1 %v1057_v1 }
  0x29   : > { %962 = vmatprep.subr.bf16.mxu0 %v1057_v1  ;;  %932 = vmatprep.mubr.msk.bf16.mxu1 %vm1058_vm0, %v1057_v1 }
  0x2a   : > { %964 = vmatprep.mubr.msk.bf16.mxu0 %vm1058_vm0, %v1057_v1 }
  0x2b   : > { %931 = vmatpush3.bf16.msra.mxu1 %v1038_v29 }
  0x2c   : > { %963 = vmatpush3.bf16.msra.mxu0 %v1037_v31  ;;  %936 = vmatprep.subr.bf16.mxu1 %v1057_v1 }
  0x2d   : > { %968 = vmatprep.subr.bf16.mxu0 %v1057_v1 }
  0x32   : > { %933 = vmatmul.mubr.msk.bf16.vlgmr.msra.gmra.mrb[0].mxu1 %vm178_vm1, %v286_v35 }
  0x33   : > { %965 = vmatmul.mubr.msk.bf16.vlgmr.msra.gmra.mrb[0].mxu0 %vm178_vm1, %v551_v38  ;;  %937 = vmatpush3.bf16.msra.mxu1 %v1041_v36 }
  0x34   : > { %969 = vmatpush3.bf16.msra.mxu0 %v1040_v39  ;;  %938 = vmatprep.subr.bf16.mxu1 %v1057_v1 }
  0x35   : > { %970 = vmatprep.subr.bf16.mxu0 %v1057_v1  ;;  %940 = vmatprep.mubr.msk.bf16.mxu1 %vm1058_vm0, %v1057_v1 }
  0x36   : > { %972 = vmatprep.mubr.msk.bf16.mxu0 %vm1058_vm0, %v1057_v1 }
  0x37   : > { %939 = vmatpush3.bf16.msra.mxu1 %v1043_v40 }
  0x38   : > { %971 = vmatpush3.bf16.msra.mxu0 %v1042_v43 }
  0x39   : > { %976 = vmatprep.subr.bf16.mxu0 %v1057_v1 }
  0x3e   : > { %941 = vmatmul.mubr.msk.bf16.vlgmr.msra.gmra.mrb[0].mxu1 %vm178_vm1, %v355_v47 }
  0x3f   : > { %973 = vmatmul.mubr.msk.bf16.vlgmr.msra.gmra.mrb[0].mxu0 %vm178_vm1, %v631_v48 }
  0x40   : > { %977 = vmatpush3.bf16.msra.mxu0 %v1046_v49  ;;  %980 = vmatprep.mubr.msk.bf16.mxu0 %vm1058_vm0, %v1057_v1 }
  0x41   : > { %978 = vmatprep.subr.bf16.mxu0 %v1057_v1 }
  0x44   : > { %979 = vmatpush3.bf16.msra.mxu0 %v1047_v50 }
  0x4b   : > { %981 = vmatmul.mubr.msk.bf16.vlgmr.msra.gmra.mrb[0].mxu0 %vm178_vm1, %v697_v53 }
 0x111   : > { %v405_v54 = vpop.f32.mrb[0].mxu1 }
 0x112   : > { %v942_v55 = vpop.f32.mrb[1].mxu1 }
 0x113   : > { %v408_v56 = vpop.f32.mrb[2].mxu1 }
 0x114   : > { %v943_v57 = vpop.f32.mrb[3].mxu1 }
 0x11e   : > { %v747_v58 = vpop.f32.mrb[0].mxu0 }
 0x11f   : > { %v984_v59 = vadd.f32 %v747_v58, %v405_v54  ;;  %v982_v60 = vpop.f32.mrb[1].mxu0 }
 0x120   : > { %v750_v61 = vpop.f32.mrb[2].mxu0 }
 0x121   : > { %v754_v62 = vpack.c.bf16 %v984_v59, %v984_v59  ;;  %v983_v63 = vpop.f32.mrb[3].mxu0 }
 0x123   : > { %756 = vst.msk [vmem:[%s141_s29] sm:$0xf] %vm755_vm2, %v754_v62 }
 0x124 PF: > { %s12_s9 = sadd.s32 1, %s1055_s9  }
 0x125   : > { %p9_p4 = scmp.ge.s32.totalorder %s12_s9, 4  }
 0x127   :  { %11 = sbr.rel (!%p9_p4) target bundleno = 1 (0x1), region = 66 }

// kernel: densenet_forward.35
= control target key start
LH: loop header
LB: loop body
LE: loop exit
PB: predicated region body
PF: predicated region fallthrough
CT: control target
= control target key end

     0   :  { %vm83_vm0 = vcmask 1043456   ;;  %v230_v0 = vmov 0.0   ;;  %vm231_vm1 = vmmov 0   ;;  %vm79_vm2 = vcmask 64512   ;;  %s320_s7 = inlined_call_operand.vmem [shape: bf16[8,32], index: 7, kind: input, shape index: {}]   ;;  %s321_s6 = inlined_call_operand.vmem [shape: bf16[16,32], index: 6, kind: input, shape index: {}]   ;;  %s322_s1 = inlined_call_operand.vmem [shape: bf16[8,8], index: 1, kind: input, shape index: {}]   ;;  %s323_s3 = inlined_call_operand.vmem [shape: f32[1,8], index: 3, kind: input, shape index: {}]   ;;  %s324_s0 = inlined_call_operand.vmem [shape: bf16[8,16], index: 0, kind: input, shape index: {}]   ;;  %s325_s2 = inlined_call_operand.vmem [shape: f32[1,16], index: 2, kind: input, shape index: {}]   ;;  %s326_s5 = inlined_call_operand.vmem [shape: f32[1,8], index: 5, kind: input, shape index: {}]   ;;  %s327_s4 = inlined_call_operand.vmem [shape: f32[1,16], index: 4, kind: input, shape index: {}]   ;;  %s328_s8 = inlined_call_operand.vmem [shape: f32[1,32], index: 8, kind: input, shape index: {}]   ;;  %s329_s9 = inlined_call_operand.vmem [shape: f32[1,32], index: 9, kind: input, shape index: {}]   ;;  %s330_s10 = inlined_call_operand.vmem [shape: bf16[8,32], index: 10, kind: output, shape index: {}]  }
   0x1   :  { %214 = vmatprep.subr.bf16.mxu1 %v230_v0  ;;  %220 = vmatprep.subr.bf16.mxu0 %v230_v0  ;;  %v78_v1 = vld [vmem:[%s320_s7] sm:$0xf]  ;;  %vm133_vm3 = vcmask 130048   ;;  %vm195_vm4 = vcmask 257024  }
   0x2   :  { %v85_v2 = vsel %vm83_vm0, %v78_v1, 0  ;;  %v229_v3 = vld [vmem:[%s321_s6] sm:$0xff]   ;;  %216 = vmatprep.mubr.msk.bf16.mxu1 %vm231_vm1, %v230_v0  ;;  %222 = vmatprep.mubr.msk.bf16.mxu0 %vm231_vm1, %v230_v0 }
   0x3   :  { %v58_v4 = vld [vmem:[%s322_s1] sm:$0xf]  ;;  %215 = vmatpush3.bf16.msra.mxu1 %v85_v2  ;;  %221 = vmatpush3.bf16.msra.mxu0 %v229_v3 }
   0x4   :  { %v203_v5 = vld [vmem:[%s323_s3] ss:$0 sm:$0xff]  ;;  %v59_v6 = vunpack.c.l.bf16 %v58_v4 }
   0x5   :  { %v36_v7 = vld [vmem:[%s324_s0] sm:$0xf] }
   0x6   :  { %v201_v8 = vld [vmem:[%s325_s2] ss:$0 sm:$0xff]  ;;  %v37_v10 = vunpack.c.l.bf16 %v36_v7  ;;  %v67_v11 = vmul.f32 %v203_v5, %v59_v6 }
   0x7   :  { %v204_v9 = vld [vmem:[%s326_s5] ss:$0 sm:$0xff] }
   0x8   :  { %v202_v12 = vld [vmem:[%s327_s4] ss:$0 sm:$0xff]  ;;  %v45_v13 = vmul.f32 %v201_v8, %v37_v10  ;;  %v75_v14 = vadd.f32 %v204_v9, %v67_v11 }
   0x9   :  { %v208_v22 = vld [vmem:[%s328_s8] ss:$0 sm:$0xff] }
   0xa   :  { %v53_v15 = vadd.f32 %v202_v12, %v45_v13  ;;  %v76_v16 = vmax.f32 %v75_v14, 0.0  ;;  %v209_v27 = vld [vmem:[%s329_s9] ss:$0 sm:$0xff] }
   0xc   :  { %v54_v17 = vmax.f32 %v53_v15, 0.0  ;;  %v77_v18 = vpack.c.bf16 %v76_v16, %v76_v16 }
   0xe   :  { %v55_v19 = vpack.c.bf16 %v54_v17, %v54_v17  ;;  %217 = vmatmul.mubr.msk.bf16.vlgmr.msra.gmra.mrb[0].mxu1 %vm79_vm2, %v77_v18 }
  0x10   :  { %223 = vmatmul.mubr.msk.bf16.vlgmr.msra.gmra.mrb[0].mxu0 %vm133_vm3, %v55_v19 }
  0xe1   :  { %v121_v20 = vpop.f32.mrb[0].mxu1 }
  0xe2   :  { %v218_v23 = vpop.f32.mrb[1].mxu1 }
  0xe3   :  { %v171_v21 = vpop.f32.mrb[0].mxu0  ;;  %v124_v26 = vpop.f32.mrb[2].mxu1 }
  0xe4   :  { %v172_v24 = vadd.f32 %v171_v21, %v121_v20  ;;  %v224_v25 = vpop.f32.mrb[1].mxu0  ;;  %v219_v29 = vpop.f32.mrb[3].mxu1 }
  0xe5   :  { %v174_v28 = vpop.f32.mrb[2].mxu0 }
  0xe6   :  { %v184_v30 = vmul.f32 %v208_v22, %v172_v24  ;;  %v225_v31 = vpop.f32.mrb[3].mxu0 }
  0xe8   :  { %v192_v32 = vadd.f32 %v209_v27, %v184_v30 }
  0xea   :  { %v193_v33 = vmax.f32 %v192_v32, 0.0 }
  0xec   :  { %v194_v34 = vpack.c.bf16 %v193_v33, %v193_v33 }
  0xee   :  { %196 = vst.msk [vmem:[%s330_s10] sm:$0xf] %vm195_vm4, %v194_v34 }

</bundles_post_ra>
